<compile_context>
chip_gen: v7x
topology: tpu7x:2x2x1
jax: 0.10.0
libtpu: 0.0.40
codegen_flags: <defaults>
</compile_context>

<pallas_src>
import functools

import jax
import jax.numpy as jnp
from jax import lax
from jax.experimental import pallas as pl
from jax.experimental.pallas import tpu as pltpu


def tinyvgg_fused_kernel(p_ref, wd_ref, b_ref, fcw_ref, fcb_ref, o_ref):
    # p_ref:   (1, BT*KP, 4*NPIX) bf16  im2col patches for one batch tile;
    #                                   row = b*KP + k, k = c*9 + (dy*3+dx),
    #                                   lane = parity*NPIX + (yo*32+xo)
    # wd_ref:  (Hc*BT, BT*KP)     bf16  block-diagonal conv weight
    # b_ref:   (Hc*BT, 1)         f32   conv bias, row c*BT+b -> bias[c]
    # fcw_ref: (Hc, NPIX, OUTP)   bf16  fc weight in (c, yo*32+xo, o) order
    # fcb_ref: (1, OUTP)          f32   fc bias (zero-padded lanes)
    # o_ref:   (1, BT, OUTP)      f32   logits (zero-padded lanes)
    hc, npix, outp = fcw_ref.shape
    bt = o_ref.shape[1]

    # ---- Conv for the whole batch tile: ONE MXU matmul, N = 4*NPIX -------
    # Output row index = c*BT + b (block-diagonal LHS keeps images separate).
    rhs = p_ref[0]                                              # (BT*KP, 4*NPIX)
    acc4 = jnp.dot(wd_ref[...], rhs,
                   preferred_element_type=jnp.float32)          # (Hc*BT, 4*NPIX)

    # 2x2 max-pool == tree-max over the four parity lane blocks (static,
    # 128-aligned lane slices -> free).
    acc = jnp.maximum(
        jnp.maximum(acc4[:, 0:npix], acc4[:, npix:2 * npix]),
        jnp.maximum(acc4[:, 2 * npix:3 * npix], acc4[:, 3 * npix:]))

    # max-pool commutes with the (constant-per-channel) bias add and ReLU:
    # both are monotone increasing.  Keep all elementwise math in f32 (v5e).
    pooled = jnp.maximum(acc + b_ref[...], 0.0)                 # (Hc*BT, NPIX)

    # ---- Fused classifier: per channel, (BT, NPIX) x (NPIX, OUTP) --------
    # Rows c*BT .. c*BT+BT-1 of `pooled` are exactly the FC LHS for channel c
    # (tile-aligned slice since BT=8).  M = BT reuses each weight tile BT x.
    parts = []
    for c in range(hc):
        lhs = pooled[c * bt:(c + 1) * bt, :].astype(jnp.bfloat16)
        parts.append(jnp.dot(lhs, fcw_ref[c],
                             preferred_element_type=jnp.float32))  # (BT, OUTP)
    while len(parts) > 1:                       # tree-sum: no serial add chain
        nxt = [parts[i] + parts[i + 1] for i in range(0, len(parts) - 1, 2)]
        if len(parts) % 2:
            nxt.append(parts[-1])
        parts = nxt
    o_ref[0] = (parts[0] + fcb_ref[...]).astype(o_ref.dtype)


def prepare_params(conv_w, conv_b, fc_w, fc_b, *, b_tile):
    """One-time (load-time) weight re-layout — hoisted out of the forward."""
    hc, cin, kh, kw = conv_w.shape
    assert kh == 3 and kw == 3
    out_dim = fc_w.shape[0]
    k = 9 * cin
    kp = ((k + 7) // 8) * 8                          # pad contraction to 8-mult
    outp = ((max(out_dim, 1) + 127) // 128) * 128    # lane-dense logits

    # conv weight: plain OIHW flatten -> k = c*9 + (dy*3 + dx)
    w_flat = jnp.pad(conv_w.reshape(hc, k), ((0, 0), (0, kp - k)))
    # block-diagonal over the batch tile:
    #   Wd[c*BT + b, b2*KP + kk] = w[c, kk] * delta(b, b2)
    eye = jnp.eye(b_tile, dtype=w_flat.dtype)
    wd = (w_flat[:, None, None, :] * eye[None, :, :, None]).reshape(
        hc * b_tile, b_tile * kp).astype(jnp.bfloat16)
    bd = jnp.repeat(conv_b, b_tile).reshape(hc * b_tile, 1).astype(jnp.float32)

    # fc weight: PyTorch flatten order f = c*1024 + yo*32 + xo  ->  (c, hw, o)
    fcw_k = jnp.transpose(fc_w.reshape(out_dim, hc, 32 * 32), (1, 2, 0))
    fcw_k = jnp.pad(fcw_k, ((0, 0), (0, 0), (0, outp - out_dim))
                    ).astype(jnp.bfloat16)
    fcb_k = jnp.pad(fc_b, (0, outp - out_dim)).reshape(1, outp
                                                       ).astype(jnp.float32)
    return wd, bd, fcw_k, fcb_k


def tinyvgg_forward(x_nchw, wd, bd, fcw_k, fcb_k, *, b_tile=8):
    """Forward pass; returns (B, OUTP) logits (lanes >= OUT are exactly 0)."""
    B, cin, H, W = x_nchw.shape
    hc, npix, outp = fcw_k.shape
    kp = wd.shape[1] // b_tile
    k = 9 * cin
    assert H == 64 and W == 64, "classifier in_features fixes input to 64x64"
    assert B % b_tile == 0
    assert wd.shape == (hc * b_tile, b_tile * kp)
    nt = B // b_tile

    # ---- XLA glue: parity-split im2col via strided slices only -----------
    # patches[b, c*9 + (dy*3+dx), p*NPIX + yo*32+xo]
    #     = xpad[b, c, 2*yo + py + dy, 2*xo + px + dx],   p = py*2 + px.
    # No NHWC / 6-D transpose kernels; slices fuse into the concatenates.
    xb = x_nchw.astype(jnp.bfloat16)
    xp = jnp.pad(xb, ((0, 0), (0, 0), (1, 1), (1, 1)))        # (B, Cin, 66, 66)
    tap_blocks = []
    for dy in range(3):
        for dx in range(3):
            par = []
            for py in range(2):
                for px in range(2):
                    s = xp[:, :, py + dy:py + dy + H:2, px + dx:px + dx + W:2]
                    par.append(s.reshape(B, cin, npix))
            tap_blocks.append(jnp.concatenate(par, axis=-1))   # (B, Cin, 4*NPIX)
    taps = jnp.stack(tap_blocks, axis=2)                       # (B, Cin, 9, 4*NPIX)
    patches = taps.reshape(B, k, 4 * npix)
    patches = jnp.pad(patches, ((0, 0), (0, kp - k), (0, 0)))
    patches = patches.reshape(nt, b_tile * kp, 4 * npix)       # kernel-ready

    flops = (2 * nt * (hc * b_tile) * (b_tile * kp) * (4 * npix)
             + 2 * B * hc * npix * outp)
    bytes_accessed = (patches.size * 2 + wd.size * 2 + bd.size * 4
                      + fcw_k.size * 2 + fcb_k.size * 4 + B * outp * 4)

    out = pl.pallas_call(
        tinyvgg_fused_kernel,
        out_shape=jax.ShapeDtypeStruct((nt, b_tile, outp), jnp.float32),
        grid=(nt,),
        in_specs=[
            pl.BlockSpec((1, b_tile * kp, 4 * npix), lambda t: (t, 0, 0)),
            pl.BlockSpec((hc * b_tile, b_tile * kp), lambda t: (0, 0)),
            pl.BlockSpec((hc * b_tile, 1), lambda t: (0, 0)),
            pl.BlockSpec((hc, npix, outp), lambda t: (0, 0, 0)),
            pl.BlockSpec((1, outp), lambda t: (0, 0)),
        ],
        out_specs=pl.BlockSpec((1, b_tile, outp), lambda t: (t, 0, 0)),
        compiler_params=pltpu.CompilerParams(
            dimension_semantics=("parallel",),
            vmem_limit_bytes=24 * 1024 * 1024),
        cost_estimate=pl.CostEstimate(
            flops=int(flops), transcendentals=0,
            bytes_accessed=int(bytes_accessed)),
    )(patches, wd, bd, fcw_k, fcb_k)
    # NOTE: padded logit lanes (>= OUT) are exactly 0.0; callers must slice
    # [:, :OUT] before any softmax/argmax.
    return out.reshape(B, outp)


def torch_semantics_reference(x_nchw, conv_w, conv_b, fc_w, fc_b):
    """Pure-JAX f32 reference reproducing the PyTorch module exactly."""
    y = lax.conv_general_dilated(
        x_nchw, conv_w, window_strides=(1, 1), padding=((1, 1), (1, 1)),
        dimension_numbers=("NCHW", "OIHW", "NCHW"))
    y = jnp.maximum(y + conv_b[None, :, None, None], 0.0)
    y = lax.reduce_window(y, -jnp.inf, lax.max,
                          (1, 1, 2, 2), (1, 1, 2, 2), "VALID")
    feats = y.reshape(y.shape[0], -1)            # PyTorch flatten: (c, h, w)
    return feats @ fc_w.T + fc_b[None, :]


if __name__ == "__main__":
    B, CIN, HID, OUT = 16, 3, 8, 10
    H = W = 64          # required by Linear(hidden_units * 32 * 32, ...)
    BT = 8              # batch tile -> grid=(2,): even, keeps both v7x TCs busy

    key = jax.random.PRNGKey(0)
    kx, k1, k2, k3, k4 = jax.random.split(key, 5)
    x = jax.random.normal(kx, (B, CIN, H, W), jnp.float32)
    conv_w = 0.1 * jax.random.normal(k1, (HID, CIN, 3, 3), jnp.float32)
    conv_b = 0.1 * jax.random.normal(k2, (HID,), jnp.float32)
    fc_w = 0.01 * jax.random.normal(k3, (OUT, HID * 32 * 32), jnp.float32)
    fc_b = 0.01 * jax.random.normal(k4, (OUT,), jnp.float32)

    params = prepare_params(conv_w, conv_b, fc_w, fc_b, b_tile=BT)
    fwd = jax.jit(functools.partial(tinyvgg_forward, b_tile=BT))
    out_padded = jax.block_until_ready(fwd(x, *params))
    out = out_padded[:, :OUT]

    ref = torch_semantics_reference(x, conv_w, conv_b, fc_w, fc_b)
    assert out.shape == (B, OUT)
    # bf16 MXU operands with f32 accumulation -> slightly looser tolerance
    if not jnp.allclose(out, ref, atol=2e-2, rtol=2e-2):
        raise AssertionError(
            f"mismatch: max abs err = {float(jnp.max(jnp.abs(out - ref)))}")
    print("KERNEL_OK")
</pallas_src>

<mosaic_0001>
module attributes {stable_mosaic.version = 11 : i64} {
  func.func @tinyvgg_fused_kernel(%arg0: i32, %arg1: memref<1x256x4096xbf16, #tpu.memory_space<vmem>>, %arg2: memref<64x256xbf16, #tpu.memory_space<vmem>>, %arg3: memref<64x1xf32, #tpu.memory_space<vmem>>, %arg4: memref<8x1024x128xbf16, #tpu.memory_space<vmem>>, %arg5: memref<1x128xf32, #tpu.memory_space<vmem>>, %arg6: memref<1x8x128xf32, #tpu.memory_space<vmem>>) attributes {dimension_semantics = [#tpu.dimension_semantics<parallel>], iteration_bounds = array<i64: 2>, scalar_prefetch = 0 : i64, scratch_operands = 0 : i64, tpu.core_type = #tpu.core_type<tc>, window_params = [{transform_indices = @transform_0, window_bounds = array<i64: 1, 256, 4096>}, {pipeline_mode = #tpu.pipeline_mode<synchronous>, transform_indices = @transform_1, window_bounds = array<i64: 64, 256>}, {pipeline_mode = #tpu.pipeline_mode<synchronous>, transform_indices = @transform_2, window_bounds = array<i64: 64, 1>}, {pipeline_mode = #tpu.pipeline_mode<synchronous>, transform_indices = @transform_3, window_bounds = array<i64: 8, 1024, 128>}, {pipeline_mode = #tpu.pipeline_mode<synchronous>, transform_indices = @transform_4, window_bounds = array<i64: 1, 128>}, {transform_indices = @transform_5, window_bounds = array<i64: 1, 8, 128>}]} {
    %c0 = arith.constant 0 : index
    %c0_0 = arith.constant 0 : index
    %c0_1 = arith.constant 0 : index
    %0 = vector.load %arg1[%c0, %c0_0, %c0_1] : memref<1x256x4096xbf16, #tpu.memory_space<vmem>>, vector<1x256x4096xbf16>
    %1 = vector.shape_cast %0 : vector<1x256x4096xbf16> to vector<256x4096xbf16>
    %c0_2 = arith.constant 0 : index
    %c0_3 = arith.constant 0 : index
    %2 = vector.load %arg2[%c0_2, %c0_3] : memref<64x256xbf16, #tpu.memory_space<vmem>>, vector<64x256xbf16>
    %cst = arith.constant dense<0.000000e+00> : vector<64x4096xf32>
    %3 = tpu.matmul %2, %1, %cst {dimension_numbers = #tpu.dot_dimension_numbers<[1], [0], [0], [1], [0, 0, 1, 1], [], []>} : vector<64x256xbf16>, vector<256x4096xbf16>, vector<64x4096xf32> -> vector<64x4096xf32>
    %4 = vector.extract_strided_slice %3 {offsets = [0, 0], sizes = [64, 1024], strides = [1, 1]} : vector<64x4096xf32> to vector<64x1024xf32>
    %5 = vector.extract_strided_slice %3 {offsets = [0, 1024], sizes = [64, 1024], strides = [1, 1]} : vector<64x4096xf32> to vector<64x1024xf32>
    %6 = arith.maximumf %4, %5 : vector<64x1024xf32>
    %7 = vector.extract_strided_slice %3 {offsets = [0, 2048], sizes = [64, 1024], strides = [1, 1]} : vector<64x4096xf32> to vector<64x1024xf32>
    %8 = vector.extract_strided_slice %3 {offsets = [0, 3072], sizes = [64, 1024], strides = [1, 1]} : vector<64x4096xf32> to vector<64x1024xf32>
    %9 = arith.maximumf %7, %8 : vector<64x1024xf32>
    %10 = arith.maximumf %6, %9 : vector<64x1024xf32>
    %c0_4 = arith.constant 0 : index
    %c0_5 = arith.constant 0 : index
    %11 = vector.load %arg3[%c0_4, %c0_5] : memref<64x1xf32, #tpu.memory_space<vmem>>, vector<64x1xf32>
    %12 = vector.broadcast %11 : vector<64x1xf32> to vector<64x1024xf32>
    %13 = arith.addf %10, %12 : vector<64x1024xf32>
    %cst_6 = arith.constant 0.000000e+00 : f32
    %14 = vector.broadcast %cst_6 : f32 to vector<64x1024xf32>
    %15 = arith.maximumf %13, %14 : vector<64x1024xf32>
    %16 = vector.extract_strided_slice %15 {offsets = [0, 0], sizes = [8, 1024], strides = [1, 1]} : vector<64x1024xf32> to vector<8x1024xf32>
    %17 = arith.truncf %16 : vector<8x1024xf32> to vector<8x1024xbf16>
    %c0_7 = arith.constant 0 : index
    %c0_8 = arith.constant 0 : index
    %c0_9 = arith.constant 0 : index
    %18 = vector.load %arg4[%c0_7, %c0_8, %c0_9] : memref<8x1024x128xbf16, #tpu.memory_space<vmem>>, vector<1x1024x128xbf16>
    %19 = vector.shape_cast %18 : vector<1x1024x128xbf16> to vector<1024x128xbf16>
    %cst_10 = arith.constant dense<0.000000e+00> : vector<8x128xf32>
    %20 = tpu.matmul %17, %19, %cst_10 {dimension_numbers = #tpu.dot_dimension_numbers<[1], [0], [0], [1], [0, 0, 1, 1], [], []>} : vector<8x1024xbf16>, vector<1024x128xbf16>, vector<8x128xf32> -> vector<8x128xf32>
    %21 = vector.extract_strided_slice %15 {offsets = [8, 0], sizes = [8, 1024], strides = [1, 1]} : vector<64x1024xf32> to vector<8x1024xf32>
    %22 = arith.truncf %21 : vector<8x1024xf32> to vector<8x1024xbf16>
    %c1 = arith.constant 1 : index
    %c0_11 = arith.constant 0 : index
    %c0_12 = arith.constant 0 : index
    %23 = vector.load %arg4[%c1, %c0_11, %c0_12] : memref<8x1024x128xbf16, #tpu.memory_space<vmem>>, vector<1x1024x128xbf16>
    %24 = vector.shape_cast %23 : vector<1x1024x128xbf16> to vector<1024x128xbf16>
    %cst_13 = arith.constant dense<0.000000e+00> : vector<8x128xf32>
    %25 = tpu.matmul %22, %24, %cst_13 {dimension_numbers = #tpu.dot_dimension_numbers<[1], [0], [0], [1], [0, 0, 1, 1], [], []>} : vector<8x1024xbf16>, vector<1024x128xbf16>, vector<8x128xf32> -> vector<8x128xf32>
    %26 = vector.extract_strided_slice %15 {offsets = [16, 0], sizes = [8, 1024], strides = [1, 1]} : vector<64x1024xf32> to vector<8x1024xf32>
    %27 = arith.truncf %26 : vector<8x1024xf32> to vector<8x1024xbf16>
    %c2 = arith.constant 2 : index
    %c0_14 = arith.constant 0 : index
    %c0_15 = arith.constant 0 : index
    %28 = vector.load %arg4[%c2, %c0_14, %c0_15] : memref<8x1024x128xbf16, #tpu.memory_space<vmem>>, vector<1x1024x128xbf16>
    %29 = vector.shape_cast %28 : vector<1x1024x128xbf16> to vector<1024x128xbf16>
    %cst_16 = arith.constant dense<0.000000e+00> : vector<8x128xf32>
    %30 = tpu.matmul %27, %29, %cst_16 {dimension_numbers = #tpu.dot_dimension_numbers<[1], [0], [0], [1], [0, 0, 1, 1], [], []>} : vector<8x1024xbf16>, vector<1024x128xbf16>, vector<8x128xf32> -> vector<8x128xf32>
    %31 = vector.extract_strided_slice %15 {offsets = [24, 0], sizes = [8, 1024], strides = [1, 1]} : vector<64x1024xf32> to vector<8x1024xf32>
    %32 = arith.truncf %31 : vector<8x1024xf32> to vector<8x1024xbf16>
    %c3 = arith.constant 3 : index
    %c0_17 = arith.constant 0 : index
    %c0_18 = arith.constant 0 : index
    %33 = vector.load %arg4[%c3, %c0_17, %c0_18] : memref<8x1024x128xbf16, #tpu.memory_space<vmem>>, vector<1x1024x128xbf16>
    %34 = vector.shape_cast %33 : vector<1x1024x128xbf16> to vector<1024x128xbf16>
    %cst_19 = arith.constant dense<0.000000e+00> : vector<8x128xf32>
    %35 = tpu.matmul %32, %34, %cst_19 {dimension_numbers = #tpu.dot_dimension_numbers<[1], [0], [0], [1], [0, 0, 1, 1], [], []>} : vector<8x1024xbf16>, vector<1024x128xbf16>, vector<8x128xf32> -> vector<8x128xf32>
    %36 = vector.extract_strided_slice %15 {offsets = [32, 0], sizes = [8, 1024], strides = [1, 1]} : vector<64x1024xf32> to vector<8x1024xf32>
    %37 = arith.truncf %36 : vector<8x1024xf32> to vector<8x1024xbf16>
    %c4 = arith.constant 4 : index
    %c0_20 = arith.constant 0 : index
    %c0_21 = arith.constant 0 : index
    %38 = vector.load %arg4[%c4, %c0_20, %c0_21] : memref<8x1024x128xbf16, #tpu.memory_space<vmem>>, vector<1x1024x128xbf16>
    %39 = vector.shape_cast %38 : vector<1x1024x128xbf16> to vector<1024x128xbf16>
    %cst_22 = arith.constant dense<0.000000e+00> : vector<8x128xf32>
    %40 = tpu.matmul %37, %39, %cst_22 {dimension_numbers = #tpu.dot_dimension_numbers<[1], [0], [0], [1], [0, 0, 1, 1], [], []>} : vector<8x1024xbf16>, vector<1024x128xbf16>, vector<8x128xf32> -> vector<8x128xf32>
    %41 = vector.extract_strided_slice %15 {offsets = [40, 0], sizes = [8, 1024], strides = [1, 1]} : vector<64x1024xf32> to vector<8x1024xf32>
    %42 = arith.truncf %41 : vector<8x1024xf32> to vector<8x1024xbf16>
    %c5 = arith.constant 5 : index
    %c0_23 = arith.constant 0 : index
    %c0_24 = arith.constant 0 : index
    %43 = vector.load %arg4[%c5, %c0_23, %c0_24] : memref<8x1024x128xbf16, #tpu.memory_space<vmem>>, vector<1x1024x128xbf16>
    %44 = vector.shape_cast %43 : vector<1x1024x128xbf16> to vector<1024x128xbf16>
    %cst_25 = arith.constant dense<0.000000e+00> : vector<8x128xf32>
    %45 = tpu.matmul %42, %44, %cst_25 {dimension_numbers = #tpu.dot_dimension_numbers<[1], [0], [0], [1], [0, 0, 1, 1], [], []>} : vector<8x1024xbf16>, vector<1024x128xbf16>, vector<8x128xf32> -> vector<8x128xf32>
    %46 = vector.extract_strided_slice %15 {offsets = [48, 0], sizes = [8, 1024], strides = [1, 1]} : vector<64x1024xf32> to vector<8x1024xf32>
    %47 = arith.truncf %46 : vector<8x1024xf32> to vector<8x1024xbf16>
    %c6 = arith.constant 6 : index
    %c0_26 = arith.constant 0 : index
    %c0_27 = arith.constant 0 : index
    %48 = vector.load %arg4[%c6, %c0_26, %c0_27] : memref<8x1024x128xbf16, #tpu.memory_space<vmem>>, vector<1x1024x128xbf16>
    %49 = vector.shape_cast %48 : vector<1x1024x128xbf16> to vector<1024x128xbf16>
    %cst_28 = arith.constant dense<0.000000e+00> : vector<8x128xf32>
    %50 = tpu.matmul %47, %49, %cst_28 {dimension_numbers = #tpu.dot_dimension_numbers<[1], [0], [0], [1], [0, 0, 1, 1], [], []>} : vector<8x1024xbf16>, vector<1024x128xbf16>, vector<8x128xf32> -> vector<8x128xf32>
    %51 = vector.extract_strided_slice %15 {offsets = [56, 0], sizes = [8, 1024], strides = [1, 1]} : vector<64x1024xf32> to vector<8x1024xf32>
    %52 = arith.truncf %51 : vector<8x1024xf32> to vector<8x1024xbf16>
    %c7 = arith.constant 7 : index
    %c0_29 = arith.constant 0 : index
    %c0_30 = arith.constant 0 : index
    %53 = vector.load %arg4[%c7, %c0_29, %c0_30] : memref<8x1024x128xbf16, #tpu.memory_space<vmem>>, vector<1x1024x128xbf16>
    %54 = vector.shape_cast %53 : vector<1x1024x128xbf16> to vector<1024x128xbf16>
    %cst_31 = arith.constant dense<0.000000e+00> : vector<8x128xf32>
    %55 = tpu.matmul %52, %54, %cst_31 {dimension_numbers = #tpu.dot_dimension_numbers<[1], [0], [0], [1], [0, 0, 1, 1], [], []>} : vector<8x1024xbf16>, vector<1024x128xbf16>, vector<8x128xf32> -> vector<8x128xf32>
    %56 = arith.addf %20, %25 : vector<8x128xf32>
    %57 = arith.addf %30, %35 : vector<8x128xf32>
    %58 = arith.addf %40, %45 : vector<8x128xf32>
    %59 = arith.addf %50, %55 : vector<8x128xf32>
    %60 = arith.addf %56, %57 : vector<8x128xf32>
    %61 = arith.addf %58, %59 : vector<8x128xf32>
    %62 = arith.addf %60, %61 : vector<8x128xf32>
    %c0_32 = arith.constant 0 : index
    %c0_33 = arith.constant 0 : index
    %63 = vector.load %arg5[%c0_32, %c0_33] : memref<1x128xf32, #tpu.memory_space<vmem>>, vector<1x128xf32>
    %64 = vector.broadcast %63 : vector<1x128xf32> to vector<8x128xf32>
    %65 = arith.addf %62, %64 : vector<8x128xf32>
    %c0_34 = arith.constant 0 : index
    %c0_35 = arith.constant 0 : index
    %c0_36 = arith.constant 0 : index
    %66 = vector.load %arg6[%c0_34, %c0_35, %c0_36] : memref<1x8x128xf32, #tpu.memory_space<vmem>>, vector<1x8x128xf32>
    %67 = vector.shape_cast %66 : vector<1x8x128xf32> to vector<8x128xf32>
    %68 = vector.shape_cast %65 : vector<8x128xf32> to vector<1x8x128xf32>
    tpu.vector_store %arg6[%c0_34, %c0_35, %c0_36], %68 {strides = array<i32>} : memref<1x8x128xf32, #tpu.memory_space<vmem>>, vector<1x8x128xf32>,
    return
  }
  func.func @transform_0(%arg0: i32) -> (i32, i32, i32) {
    %c0_i32 = arith.constant 0 : i32
    %c0_i32_0 = arith.constant 0 : i32
    %c0_i32_1 = arith.constant 0 : i32
    return %arg0, %c0_i32, %c0_i32_0 : i32, i32, i32
  }
  func.func @transform_1(%arg0: i32) -> (i32, i32) {
    %c0_i32 = arith.constant 0 : i32
    %c0_i32_0 = arith.constant 0 : i32
    %c0_i32_1 = arith.constant 0 : i32
    return %c0_i32, %c0_i32_0 : i32, i32
  }
  func.func @transform_2(%arg0: i32) -> (i32, i32) {
    %c0_i32 = arith.constant 0 : i32
    %c0_i32_0 = arith.constant 0 : i32
    %c0_i32_1 = arith.constant 0 : i32
    return %c0_i32, %c0_i32_0 : i32, i32
  }
  func.func @transform_3(%arg0: i32) -> (i32, i32, i32) {
    %c0_i32 = arith.constant 0 : i32
    %c0_i32_0 = arith.constant 0 : i32
    %c0_i32_1 = arith.constant 0 : i32
    %c0_i32_2 = arith.constant 0 : i32
    return %c0_i32, %c0_i32_0, %c0_i32_1 : i32, i32, i32
  }
  func.func @transform_4(%arg0: i32) -> (i32, i32) {
    %c0_i32 = arith.constant 0 : i32
    %c0_i32_0 = arith.constant 0 : i32
    %c0_i32_1 = arith.constant 0 : i32
    return %c0_i32, %c0_i32_0 : i32, i32
  }
  func.func @transform_5(%arg0: i32) -> (i32, i32, i32) {
    %c0_i32 = arith.constant 0 : i32
    %c0_i32_0 = arith.constant 0 : i32
    %c0_i32_1 = arith.constant 0 : i32
    return %arg0, %c0_i32, %c0_i32_0 : i32, i32, i32
  }
}

</mosaic_0001>

<bundles_post_ra>
// kernel: tinyvgg_forward.1
= control target key start
LH: loop header
LB: loop body
LE: loop exit
PB: predicated region body
PF: predicated region fallthrough
CT: control target
= control target key end

     0   :  { %10 = vsyncpa [#allocation3], 0  ;;  %s17304_s0 = inlined_call_operand.vmem [shape: bf16[2,256,4096], index: 0, kind: input, shape index: {}]   ;;  %s17305_s1 = inlined_call_operand.vmem [shape: bf16[64,256], index: 1, kind: input, shape index: {}]   ;;  %s17306_s2 = inlined_call_operand.vmem [shape: f32[64,1], index: 2, kind: input, shape index: {}]   ;;  %s17307_s3 = inlined_call_operand.vmem [shape: bf16[8,1024,128], index: 3, kind: input, shape index: {}]   ;;  %s17308_s4 = inlined_call_operand.vmem [shape: f32[1,128], index: 4, kind: input, shape index: {}]   ;;  %s17309_s5 = inlined_call_operand.hbm [shape: f32[2,8,128], index: 5, kind: output, shape index: {}]  }
   0x1   :  { %12 = vsyncpa [#allocation3 + $0x1], 0  ;;  %s13743_s18 = smov 0   ;;  %s13745_s19 = smov 0  }
   0x2   :  { %s13747_s20 = smov 0   ;;  %s13749_s21 = smov 0  }
   0x3 LB: > { %s13764_s22 = sadd.s32 4294967295, %s13709_s21   ;;  %s10412_s23 = sadd.s32 4294967294, %s13709_s21   ;;  %s13709_s21 = sphi %s13749_s21, %s17816_s21   ;;  %s13705_s20 = sphi %s13747_s20, %s17815_s20   ;;  %s13701_s19 = sphi %s13745_s19, %s17814_s19   ;;  %s13697_s18 = sphi %s13743_s18, %s17813_s18  }
   0x4   : > { %s13768_s24 = sadd.s32 1, %s13709_s21   ;;  %s135_s25 = sadd.s32 1, %s13705_s20 }
   0x5   : > { %s132_s26 = ssub.s32 %s13709_s21, %s13768_s24  ;;  %p145_p0 = scmp.ne.s32.totalorder %s13705_s20, %s13701_s19 }
   0x6   : > { %p133_p1 = scmp.eq.s32.totalorder %s132_s26, 0  ;;  %p146_p2 = scmp.eq.s32.totalorder %s13764_s22, 1 }
   0x7   : > { %p151_p3 = scmp.ne.s32.totalorder %s13701_s19, %s13697_s18  ;;  %p152_p4 = scmp.eq.s32.totalorder %s10412_s23, 1 }
   0x8   : > { %s13779_s27 = scalar_select %p133_p1, %s13705_s20, %s135_s25  }
   0x9   : > { %p13781_p5 = por %p146_p2, %p145_p0  ;;  %p13785_p6 = por %p152_p4, %p151_p3 }
   0xa   : > { %p10415_p7 = scmp.ge.s32.totalorder %s13709_s21, 1  ;;  %p190_p8 = scmp.lt.s32.totalorder %s13709_s21, 3 }
   0xc   : > { %p191_p9 = pnand %p10415_p7, %p190_p8 }
   0xe   : > { %194 = sbr.rel (%p191_p9) target bundleno = 1462 (0x5b6), region = 40 }
  0x15   : > { %p218_p10 = scmp.lt.s32.totalorder %s13764_s22, 1  ;;  %v13795_v0 = vld [vmem:[%s17305_s1 + $0x4] ss:$8 sps:$4 sm:$0xff]   ;;  %s215_s15 = sand.u32 1, %s13701_s19  }
  0x16   : > { %3376 = vmatprep.mubr.bf16.mxu0 %v13795_v0  ;;  %3449 = vmatprep.mubr.bf16.mxu1 %v13795_v0  ;;  %s10416_s16 = sshll.u32 %s215_s15, 3 }
  0x17   : > { %s219_s7 = scalar_select %p218_p10, %s13764_s22, 1 }
  0x18   : > { %s217_s25 = scalar_lea.vmem [#allocation2], %s10416_s16 }
  0x19   : > { %s12352_s8 = sshll.u32 %s219_s7, 12  ;;  %s10353_s26 = sshll.u32 %s217_s25, 4  ;;  %s17264_s26 = int_to_ptr.vmem [resolvable:$true] %s10353_s26 }
  0x1a   : > { %s13803_s11 = scalar_lea.vmem %s17304_s0, %s12352_s8  ;;  %s10340_s8 = scalar_lea.sflag [#allocation3], %s215_s15 }
  0x1b   : > { %v224_v1 = vld [vmem:[%s13803_s11] sm:$0xff]  ;;  %v225_v3 = vld [vmem:[%s13803_s11 + $0x8] sm:$0xff]  ;;  %s13647_s9 = scalar_lea.vmem %s17264_s26, 128 }
  0x1c   : > { %v240_v2 = vld [vmem:[%s13803_s11 + $0x80] sm:$0xff]  ;;  %v241_v5 = vld [vmem:[%s13803_s11 + $0x88] sm:$0xff]  ;;  %p13648_p11 = scmp.ne.s32.totalorder %s17264_s26, %s13647_s9 }
  0x1d   : > { %v10428_v4 = vcombine.high %v224_v1, %v240_v2  ;;  %v10427_v6 = vcombine.low %v224_v1, %v240_v2  ;;  %v256_v7 = vld [vmem:[%s13803_s11 + $0x100] sm:$0xff]  ;;  %v10430_v9 = vcombine.high %v225_v3, %v241_v5  ;;  %v10429_v10 = vcombine.low %v225_v3, %v241_v5  ;;  %v257_v12 = vld [vmem:[%s13803_s11 + $0x108] sm:$0xff] }
  0x1e   : > { %v272_v8 = vld [vmem:[%s13803_s11 + $0x180] sm:$0xff]  ;;  %v273_v13 = vld [vmem:[%s13803_s11 + $0x188] sm:$0xff]  ;;  %p13649_p12 = pnand %p13648_p11, %p13781_p5 }
  0x1f   : > { %v10460_v11 = vcombine.high %v256_v7, %v272_v8  ;;  %v288_v14 = vld [vmem:[%s13803_s11 + $0x200] sm:$0xff]  ;;  %3344 = vmatprep.subr.bf16.mxu0 %v10428_v4  ;;  %v10462_v15 = vcombine.high %v257_v12, %v273_v13  ;;  %v289_v17 = vld [vmem:[%s13803_s11 + $0x208] sm:$0xff]  ;;  %3417 = vmatprep.subr.bf16.mxu1 %v10430_v9  ;;  %v10459_v19 = vcombine.low %v256_v7, %v272_v8 }
  0x20   : > { %v304_v16 = vld [vmem:[%s13803_s11 + $0x280] sm:$0xff]  ;;  %v305_v18 = vld [vmem:[%s13803_s11 + $0x288] sm:$0xff]  ;;  %3345 = vmatpush1.bf16.msra.mxu0 %v10427_v6  ;;  %3418 = vmatpush1.bf16.msra.mxu1 %v10429_v10  ;;  %v10461_v20 = vcombine.low %v257_v12, %v273_v13  ;;  %p13650_p13 = pneg %p13649_p12 }
  0x21   : > { %3346 = vmatprep.subr.bf16.mxu0 %v10460_v11  ;;  %v10492_v21 = vcombine.high %v288_v14, %v304_v16  ;;  %3419 = vmatprep.subr.bf16.mxu1 %v10462_v15  ;;  %v10494_v22 = vcombine.high %v289_v17, %v305_v18  ;;  %v320_v23 = vld [vmem:[%s13803_s11 + $0x300] sm:$0xff]  ;;  %v321_v25 = vld [vmem:[%s13803_s11 + $0x308] sm:$0xff]  ;;  %v10491_v27 = vcombine.low %v288_v14, %v304_v16 }
  0x22   : > { %v336_v24 = vld [vmem:[%s13803_s11 + $0x380] sm:$0xff]  ;;  %v337_v26 = vld [vmem:[%s13803_s11 + $0x388] sm:$0xff]  ;;  %v10493_v28 = vcombine.low %v289_v17, %v305_v18 }
  0x23   : > { %v10524_v29 = vcombine.high %v320_v23, %v336_v24  ;;  %v10526_v30 = vcombine.high %v321_v25, %v337_v26  ;;  %v352_v31 = vld [vmem:[%s13803_s11 + $0x400] sm:$0xff]  ;;  %v353_v33 = vld [vmem:[%s13803_s11 + $0x408] sm:$0xff]  ;;  %v10523_v35 = vcombine.low %v320_v23, %v336_v24  ;;  %v10525_v36 = vcombine.low %v321_v25, %v337_v26 }
  0x24   : > { %3347 = vmatpush1.bf16.msra.mxu0 %v10459_v19  ;;  %3420 = vmatpush1.bf16.msra.mxu1 %v10461_v20  ;;  %v368_v32 = vld [vmem:[%s13803_s11 + $0x480] sm:$0xff]  ;;  %v369_v34 = vld [vmem:[%s13803_s11 + $0x488] sm:$0xff] }
  0x25   : > { %3348 = vmatprep.subr.bf16.mxu0 %v10492_v21  ;;  %3421 = vmatprep.subr.bf16.mxu1 %v10494_v22  ;;  %v10556_v37 = vcombine.high %v352_v31, %v368_v32  ;;  %v10558_v38 = vcombine.high %v353_v33, %v369_v34  ;;  %v384_v39 = vld [vmem:[%s13803_s11 + $0x500] sm:$0xff]  ;;  %v385_v41 = vld [vmem:[%s13803_s11 + $0x508] sm:$0xff]  ;;  %v10555_v43 = vcombine.low %v352_v31, %v368_v32 }
  0x26   : > { %v400_v40 = vld [vmem:[%s13803_s11 + $0x580] sm:$0xff]  ;;  %v401_v42 = vld [vmem:[%s13803_s11 + $0x588] sm:$0xff]  ;;  %v10557_v44 = vcombine.low %v353_v33, %v369_v34 }
  0x27   : > { %v10588_v45 = vcombine.high %v384_v39, %v400_v40  ;;  %v10590_v46 = vcombine.high %v385_v41, %v401_v42  ;;  %v416_v47 = vld [vmem:[%s13803_s11 + $0x600] sm:$0xff]  ;;  %v417_v49 = vld [vmem:[%s13803_s11 + $0x608] sm:$0xff]  ;;  %v10587_v51 = vcombine.low %v384_v39, %v400_v40  ;;  %v10589_v52 = vcombine.low %v385_v41, %v401_v42 }
  0x28   : > { %3349 = vmatpush1.bf16.msra.mxu0 %v10491_v27  ;;  %3422 = vmatpush1.bf16.msra.mxu1 %v10493_v28  ;;  %v432_v48 = vld [vmem:[%s13803_s11 + $0x680] sm:$0xff]  ;;  %v433_v50 = vld [vmem:[%s13803_s11 + $0x688] sm:$0xff] }
  0x29   : > { %3350 = vmatprep.subr.bf16.mxu0 %v10524_v29  ;;  %3423 = vmatprep.subr.bf16.mxu1 %v10526_v30  ;;  %v10620_v53 = vcombine.high %v416_v47, %v432_v48  ;;  %v10622_v54 = vcombine.high %v417_v49, %v433_v50  ;;  %v448_v55 = vld [vmem:[%s13803_s11 + $0x700] sm:$0xff]  ;;  %v449_v57 = vld [vmem:[%s13803_s11 + $0x708] sm:$0xff]  ;;  %v10619_v59 = vcombine.low %v416_v47, %v432_v48 }
  0x2a   : > { %v464_v56 = vld [vmem:[%s13803_s11 + $0x780] sm:$0xff]  ;;  %v465_v58 = vld [vmem:[%s13803_s11 + $0x788] sm:$0xff]  ;;  %v10621_v60 = vcombine.low %v417_v49, %v433_v50 }
  0x2b   : > { %v10652_v61 = vcombine.high %v448_v55, %v464_v56  ;;  %v10654_v62 = vcombine.high %v449_v57, %v465_v58  ;;  %v480_v63 = vld [vmem:[%s13803_s11 + $0x800] sm:$0xff]  ;;  %v481_v2 = vld [vmem:[%s13803_s11 + $0x808] sm:$0xff]  ;;  %v10651_v4 = vcombine.low %v448_v55, %v464_v56  ;;  %v10653_v5 = vcombine.low %v449_v57, %v465_v58 }
  0x2c   : > { %3351 = vmatpush1.bf16.msra.mxu0 %v10523_v35  ;;  %3424 = vmatpush1.bf16.msra.mxu1 %v10525_v36  ;;  %v496_v1 = vld [vmem:[%s13803_s11 + $0x880] sm:$0xff]  ;;  %v497_v3 = vld [vmem:[%s13803_s11 + $0x888] sm:$0xff] }
  0x2d   : > { %3352 = vmatprep.subr.bf16.mxu0 %v10556_v37  ;;  %3425 = vmatprep.subr.bf16.mxu1 %v10558_v38  ;;  %v10684_v6 = vcombine.high %v480_v63, %v496_v1  ;;  %v10686_v7 = vcombine.high %v481_v2, %v497_v3  ;;  %v512_v8 = vld [vmem:[%s13803_s11 + $0x900] sm:$0xff]  ;;  %v513_v10 = vld [vmem:[%s13803_s11 + $0x908] sm:$0xff]  ;;  %v10683_v12 = vcombine.low %v480_v63, %v496_v1  ;;  %v226_v1 = vld [vmem:[%s13803_s11 + $0x10] sm:$0xff] }
  0x2e   : > { %v528_v9 = vld [vmem:[%s13803_s11 + $0x980] sm:$0xff]  ;;  %v529_v11 = vld [vmem:[%s13803_s11 + $0x988] sm:$0xff]  ;;  %v10685_v13 = vcombine.low %v481_v2, %v497_v3  ;;  %v242_v2 = vld [vmem:[%s13803_s11 + $0x90] sm:$0xff] }
  0x2f   : > { %v10716_v14 = vcombine.high %v512_v8, %v528_v9  ;;  %v10718_v15 = vcombine.high %v513_v10, %v529_v11  ;;  %v544_v16 = vld [vmem:[%s13803_s11 + $0xa00] sm:$0xff]  ;;  %v545_v18 = vld [vmem:[%s13803_s11 + $0xa08] sm:$0xff]  ;;  %v10715_v20 = vcombine.low %v512_v8, %v528_v9  ;;  %v10717_v21 = vcombine.low %v513_v10, %v529_v11  ;;  %v227_v3 = vld [vmem:[%s13803_s11 + $0x18] sm:$0xff] }
  0x30   : > { %3353 = vmatpush1.bf16.msra.mxu0 %v10555_v43  ;;  %3426 = vmatpush1.bf16.msra.mxu1 %v10557_v44  ;;  %v560_v17 = vld [vmem:[%s13803_s11 + $0xa80] sm:$0xff]  ;;  %v561_v19 = vld [vmem:[%s13803_s11 + $0xa88] sm:$0xff]  ;;  %v258_v9 = vld [vmem:[%s13803_s11 + $0x110] sm:$0xff] }
  0x31   : > { %3354 = vmatprep.subr.bf16.mxu0 %v10588_v45  ;;  %3427 = vmatprep.subr.bf16.mxu1 %v10590_v46  ;;  %v10748_v22 = vcombine.high %v544_v16, %v560_v17  ;;  %v10750_v23 = vcombine.high %v545_v18, %v561_v19  ;;  %v576_v24 = vld [vmem:[%s13803_s11 + $0xb00] sm:$0xff]  ;;  %v577_v26 = vld [vmem:[%s13803_s11 + $0xb08] sm:$0xff]  ;;  %v10747_v28 = vcombine.low %v544_v16, %v560_v17  ;;  %v274_v10 = vld [vmem:[%s13803_s11 + $0x190] sm:$0xff] }
  0x32   : > { %v592_v25 = vld [vmem:[%s13803_s11 + $0xb80] sm:$0xff]  ;;  %v593_v27 = vld [vmem:[%s13803_s11 + $0xb88] sm:$0xff]  ;;  %v10749_v29 = vcombine.low %v545_v18, %v561_v19  ;;  %v10464_v17 = vcombine.high %v258_v9, %v274_v10  ;;  %v290_v18 = vld [vmem:[%s13803_s11 + $0x210] sm:$0xff] }
  0x33   : > { %v10780_v30 = vcombine.high %v576_v24, %v592_v25  ;;  %v10782_v31 = vcombine.high %v577_v26, %v593_v27  ;;  %v608_v32 = vld [vmem:[%s13803_s11 + $0xc00] sm:$0xff]  ;;  %v609_v34 = vld [vmem:[%s13803_s11 + $0xc08] sm:$0xff]  ;;  %v10779_v36 = vcombine.low %v576_v24, %v592_v25  ;;  %v10781_v37 = vcombine.low %v577_v26, %v593_v27  ;;  %v306_v19 = vld [vmem:[%s13803_s11 + $0x290] sm:$0xff] }
  0x34   : > { %3355 = vmatpush1.bf16.msra.mxu0 %v10587_v51  ;;  %3428 = vmatpush1.bf16.msra.mxu1 %v10589_v52  ;;  %v624_v33 = vld [vmem:[%s13803_s11 + $0xc80] sm:$0xff]  ;;  %v625_v35 = vld [vmem:[%s13803_s11 + $0xc88] sm:$0xff]  ;;  %v10496_v25 = vcombine.high %v290_v18, %v306_v19  ;;  %v322_v26 = vld [vmem:[%s13803_s11 + $0x310] sm:$0xff] }
  0x35   : > { %3356 = vmatprep.subr.bf16.mxu0 %v10620_v53  ;;  %3429 = vmatprep.subr.bf16.mxu1 %v10622_v54  ;;  %v10812_v38 = vcombine.high %v608_v32, %v624_v33  ;;  %v10814_v39 = vcombine.high %v609_v34, %v625_v35  ;;  %v640_v40 = vld [vmem:[%s13803_s11 + $0xd00] sm:$0xff]  ;;  %v641_v42 = vld [vmem:[%s13803_s11 + $0xd08] sm:$0xff]  ;;  %v10811_v44 = vcombine.low %v608_v32, %v624_v33  ;;  %v338_v27 = vld [vmem:[%s13803_s11 + $0x390] sm:$0xff] }
  0x36   : > { %v656_v41 = vld [vmem:[%s13803_s11 + $0xd80] sm:$0xff]  ;;  %v657_v43 = vld [vmem:[%s13803_s11 + $0xd88] sm:$0xff]  ;;  %v10813_v45 = vcombine.low %v609_v34, %v625_v35  ;;  %v10495_v32 = vcombine.low %v290_v18, %v306_v19  ;;  %v10528_v35 = vcombine.high %v322_v26, %v338_v27  ;;  %v514_v18 = vld [vmem:[%s13803_s11 + $0x910] sm:$0xff] }
  0x37   : > { %v10844_v46 = vcombine.high %v640_v40, %v656_v41  ;;  %v10846_v47 = vcombine.high %v641_v42, %v657_v43  ;;  %v672_v48 = vld [vmem:[%s13803_s11 + $0xe00] sm:$0xff]  ;;  %v673_v50 = vld [vmem:[%s13803_s11 + $0xe08] sm:$0xff]  ;;  %v10843_v52 = vcombine.low %v640_v40, %v656_v41  ;;  %v10845_v53 = vcombine.low %v641_v42, %v657_v43  ;;  %v371_v40 = vld [vmem:[%s13803_s11 + $0x498] sm:$0xff] }
  0x38   : > { %3357 = vmatpush1.bf16.msra.mxu0 %v10619_v59  ;;  %3430 = vmatpush1.bf16.msra.mxu1 %v10621_v60  ;;  %v688_v49 = vld [vmem:[%s13803_s11 + $0xe80] sm:$0xff]  ;;  %v689_v51 = vld [vmem:[%s13803_s11 + $0xe88] sm:$0xff]  ;;  %v10527_v41 = vcombine.low %v322_v26, %v338_v27  ;;  %v530_v19 = vld [vmem:[%s13803_s11 + $0x990] sm:$0xff] }
  0x39   : > { %3358 = vmatprep.subr.bf16.mxu0 %v10652_v61  ;;  %3431 = vmatprep.subr.bf16.mxu1 %v10654_v62  ;;  %v10876_v54 = vcombine.high %v672_v48, %v688_v49  ;;  %v10878_v55 = vcombine.high %v673_v50, %v689_v51  ;;  %v704_v56 = vld [vmem:[%s13803_s11 + $0xf00] sm:$0xff]  ;;  %v705_v58 = vld [vmem:[%s13803_s11 + $0xf08] sm:$0xff]  ;;  %v10875_v60 = vcombine.low %v672_v48, %v688_v49  ;;  %v403_v49 = vld [vmem:[%s13803_s11 + $0x598] sm:$0xff] }
  0x3a   : > { %v720_v57 = vld [vmem:[%s13803_s11 + $0xf80] sm:$0xff]  ;;  %v721_v59 = vld [vmem:[%s13803_s11 + $0xf88] sm:$0xff]  ;;  %v10877_v61 = vcombine.low %v673_v50, %v689_v51  ;;  %v13929_v51 = vld [vmem:[%s17305_s1 + $0x34] ss:$8 sps:$4 sm:$0xff]  }
  0x3b   : > { %v10908_v62 = vcombine.high %v704_v56, %v720_v57  ;;  %v10910_v63 = vcombine.high %v705_v58, %v721_v59  ;;  %v13878_v11 = vld [vmem:[%s17305_s1] ss:$8 sps:$4 sm:$0xff]   ;;  %v13907_v33 = vld [vmem:[%s17305_s1 + $0x24] ss:$8 sps:$4 sm:$0xff]   ;;  %v546_v26 = vld [vmem:[%s13803_s11 + $0xa10] sm:$0xff] }
  0x3c   : > { %3359 = vmatpush1.bf16.msra.mxu0 %v10651_v4  ;;  %3432 = vmatpush1.bf16.msra.mxu1 %v10653_v5  ;;  %v243_v4 = vld [vmem:[%s13803_s11 + $0x98] sm:$0xff]  ;;  %v10907_v5 = vcombine.low %v704_v56, %v720_v57  ;;  %v562_v27 = vld [vmem:[%s13803_s11 + $0xa90] sm:$0xff] }
  0x3d   : > { %3360 = vmatprep.subr.bf16.mxu0 %v10684_v6  ;;  %3433 = vmatprep.subr.bf16.mxu1 %v10686_v7  ;;  %v10909_v6 = vcombine.low %v705_v58, %v721_v59  ;;  %v10432_v7 = vcombine.high %v226_v1, %v242_v2  ;;  %v10434_v8 = vcombine.high %v227_v3, %v243_v4  ;;  %v419_v56 = vld [vmem:[%s13803_s11 + $0x618] sm:$0xff] }
  0x3e   : > { %v10433_v16 = vcombine.low %v227_v3, %v243_v4  ;;  %v435_v58 = vld [vmem:[%s13803_s11 + $0x698] sm:$0xff] }
  0x3f   : > { %v10626_v3 = vcombine.high %v419_v56, %v435_v58  ;;  %v467_v4 = vld [vmem:[%s13803_s11 + $0x798] sm:$0xff] }
  0x40   : > { %3361 = vmatpush1.bf16.msra.mxu0 %v10683_v12  ;;  %3434 = vmatpush1.bf16.msra.mxu1 %v10685_v13  ;;  %v259_v12 = vld [vmem:[%s13803_s11 + $0x118] sm:$0xff] }
  0x41   : > { %3362 = vmatprep.subr.bf16.mxu0 %v10716_v14  ;;  %3435 = vmatprep.subr.bf16.mxu1 %v10718_v15  ;;  %v275_v13 = vld [vmem:[%s13803_s11 + $0x198] sm:$0xff]  ;;  %v10431_v14 = vcombine.low %v226_v1, %v242_v2 }
  0x42   : > { %v13885_v15 = vld [vmem:[%s17305_s1 + $0x14] ss:$8 sps:$4 sm:$0xff]   ;;  %v10465_v24 = vcombine.low %v259_v12, %v275_v13  ;;  %v13943_v2 = vld [vmem:[%s17305_s1 + $0x30] ss:$8 sps:$4 sm:$0xff]  }
  0x43   : > { %v451_v1 = vld [vmem:[%s13803_s11 + $0x718] sm:$0xff] }
  0x44   : > { %3363 = vmatpush1.bf16.msra.mxu0 %v10715_v20  ;;  %3436 = vmatpush1.bf16.msra.mxu1 %v10717_v21  ;;  %v291_v20 = vld [vmem:[%s13803_s11 + $0x218] sm:$0xff]  ;;  %v10466_v21 = vcombine.high %v259_v12, %v275_v13  ;;  %v10658_v12 = vcombine.high %v451_v1, %v467_v4 }
  0x45   : > { %3364 = vmatprep.subr.bf16.mxu0 %v10748_v22  ;;  %3437 = vmatprep.subr.bf16.mxu1 %v10750_v23  ;;  %v307_v22 = vld [vmem:[%s13803_s11 + $0x298] sm:$0xff]  ;;  %v10463_v23 = vcombine.low %v258_v9, %v274_v10  ;;  %v498_v9 = vld [vmem:[%s13803_s11 + $0x890] sm:$0xff] }
  0x46   : > { %v10497_v34 = vcombine.low %v291_v20, %v307_v22  ;;  %v483_v10 = vld [vmem:[%s13803_s11 + $0x818] sm:$0xff] }
  0x47   : > { %v499_v13 = vld [vmem:[%s13803_s11 + $0x898] sm:$0xff] }
  0x48   : > { %3365 = vmatpush1.bf16.msra.mxu0 %v10747_v28  ;;  %3438 = vmatpush1.bf16.msra.mxu1 %v10749_v29  ;;  %v323_v28 = vld [vmem:[%s13803_s11 + $0x318] sm:$0xff] }
  0x49   : > { %3366 = vmatprep.subr.bf16.mxu0 %v10780_v30  ;;  %3439 = vmatprep.subr.bf16.mxu1 %v10782_v31  ;;  %v13899_v29 = vld [vmem:[%s17305_s1 + $0x10] ss:$8 sps:$4 sm:$0xff]   ;;  %v10498_v30 = vcombine.high %v291_v20, %v307_v22 }
  0x4a   : > { %v339_v31 = vld [vmem:[%s13803_s11 + $0x398] sm:$0xff] }
  0x4b   : > { %v10529_v42 = vcombine.low %v323_v28, %v339_v31  ;;  %v515_v20 = vld [vmem:[%s13803_s11 + $0x918] sm:$0xff] }
  0x4c   : > { %3367 = vmatpush1.bf16.msra.mxu0 %v10779_v36  ;;  %3440 = vmatpush1.bf16.msra.mxu1 %v10781_v37  ;;  %v354_v36 = vld [vmem:[%s13803_s11 + $0x410] sm:$0xff]  ;;  %v531_v22 = vld [vmem:[%s13803_s11 + $0x998] sm:$0xff] }
  0x4d   : > { %3368 = vmatprep.subr.bf16.mxu0 %v10812_v38  ;;  %3441 = vmatprep.subr.bf16.mxu1 %v10814_v39  ;;  %v370_v37 = vld [vmem:[%s13803_s11 + $0x490] sm:$0xff]  ;;  %v355_v38 = vld [vmem:[%s13803_s11 + $0x418] sm:$0xff]  ;;  %v10530_v39 = vcombine.high %v323_v28, %v339_v31 }
  0x4e   : > { %v10560_v43 = vcombine.high %v354_v36, %v370_v37  ;;  %v10562_v48 = vcombine.high %v355_v38, %v371_v40  ;;  %v10559_v50 = vcombine.low %v354_v36, %v370_v37  ;;  %v547_v28 = vld [vmem:[%s13803_s11 + $0xa18] sm:$0xff]  ;;  %v594_v36 = vld [vmem:[%s13803_s11 + $0xb90] sm:$0xff] }
  0x4f   : > { %v563_v31 = vld [vmem:[%s13803_s11 + $0xa98] sm:$0xff] }
  0x50   : > { %3369 = vmatpush1.bf16.msra.mxu0 %v10811_v44  ;;  %3442 = vmatpush1.bf16.msra.mxu1 %v10813_v45  ;;  %v386_v44 = vld [vmem:[%s13803_s11 + $0x510] sm:$0xff]  ;;  %v579_v37 = vld [vmem:[%s13803_s11 + $0xb18] sm:$0xff] }
  0x51   : > { %3370 = vmatprep.subr.bf16.mxu0 %v10844_v46  ;;  %3443 = vmatprep.subr.bf16.mxu1 %v10846_v47  ;;  %v402_v45 = vld [vmem:[%s13803_s11 + $0x590] sm:$0xff]  ;;  %v387_v46 = vld [vmem:[%s13803_s11 + $0x518] sm:$0xff]  ;;  %v13921_v47 = vld [vmem:[%s17305_s1 + $0x20] ss:$8 sps:$4 sm:$0xff]  }
  0x52   : > { %v10594_v57 = vcombine.high %v387_v46, %v403_v49  ;;  %v10591_v59 = vcombine.low %v386_v44, %v402_v45 }
  0x54   : > { %3371 = vmatpush1.bf16.msra.mxu0 %v10843_v52  ;;  %3444 = vmatpush1.bf16.msra.mxu1 %v10845_v53  ;;  %v10561_v52 = vcombine.low %v355_v38, %v371_v40  ;;  %v10592_v53 = vcombine.high %v386_v44, %v402_v45  ;;  %v10754_v38 = vcombine.high %v547_v28, %v563_v31  ;;  %v626_v44 = vld [vmem:[%s13803_s11 + $0xc90] sm:$0xff]  ;;  %v611_v45 = vld [vmem:[%s13803_s11 + $0xc18] sm:$0xff] }
  0x55   : > { %3372 = vmatprep.subr.bf16.mxu0 %v10876_v54  ;;  %3445 = vmatprep.subr.bf16.mxu1 %v10878_v55  ;;  %v418_v54 = vld [vmem:[%s13803_s11 + $0x610] sm:$0xff]  ;;  %v10751_v40 = vcombine.low %v546_v26, %v562_v27 }
  0x56   : > { %v434_v55 = vld [vmem:[%s13803_s11 + $0x690] sm:$0xff] }
  0x58   : > { %3373 = vmatpush1.bf16.msra.mxu0 %v10875_v60  ;;  %3446 = vmatpush1.bf16.msra.mxu1 %v10877_v61  ;;  %v10593_v60 = vcombine.low %v387_v46, %v403_v49  ;;  %v10624_v61 = vcombine.high %v418_v54, %v434_v55 }
  0x59   : > { %3374 = vmatprep.subr.bf16.mxu0 %v10908_v62  ;;  %3447 = vmatprep.subr.bf16.mxu1 %v10910_v63  ;;  %v450_v62 = vld [vmem:[%s13803_s11 + $0x710] sm:$0xff] }
  0x5a   : > { %v466_v63 = vld [vmem:[%s13803_s11 + $0x790] sm:$0xff] }
  0x5c   : > { %3375 = vmatpush1.bf16.msra.mxu0 %v10907_v5  ;;  %3448 = vmatpush1.bf16.msra.mxu1 %v10909_v6  ;;  %v10623_v5 = vcombine.low %v418_v54, %v434_v55  ;;  %v10625_v6 = vcombine.low %v419_v56, %v435_v58  ;;  %v658_v54 = vld [vmem:[%s13803_s11 + $0xd90] sm:$0xff]  ;;  %v643_v55 = vld [vmem:[%s13803_s11 + $0xd18] sm:$0xff] }
  0x5d   : > { %3490 = vmatprep.subr.bf16.mxu0 %v10432_v7  ;;  %3563 = vmatprep.subr.bf16.mxu1 %v10434_v8  ;;  %v10656_v7 = vcombine.high %v450_v62, %v466_v63  ;;  %v482_v8 = vld [vmem:[%s13803_s11 + $0x810] sm:$0xff] }
  0x5f   : > { %3377 = vmatmul.mubr.bf16.vlgmr.msra.gmra.mrb[0].mxu0 %v13878_v11  ;;  %3450 = vmatmul.mubr.bf16.vlgmr.msra.gmra.mrb[0].mxu1 %v13878_v11 }
  0x60   : > { %3491 = vmatpush1.bf16.msra.mxu0 %v10431_v14  ;;  %3564 = vmatpush1.bf16.msra.mxu1 %v10433_v16  ;;  %v10655_v14 = vcombine.low %v450_v62, %v466_v63  ;;  %v10657_v16 = vcombine.low %v451_v1, %v467_v4  ;;  %v690_v62 = vld [vmem:[%s13803_s11 + $0xe90] sm:$0xff]  ;;  %v675_v63 = vld [vmem:[%s13803_s11 + $0xe18] sm:$0xff] }
  0x61   : > { %3492 = vmatprep.subr.bf16.mxu0 %v10464_v17  ;;  %3565 = vmatprep.subr.bf16.mxu1 %v10466_v21  ;;  %v10688_v17 = vcombine.high %v482_v8, %v498_v9  ;;  %v10690_v21 = vcombine.high %v483_v10, %v499_v13 }
  0x62   : > { %3386 = vmatprep.mubr.bf16.mxu0 %v13885_v15  ;;  %3459 = vmatprep.mubr.bf16.mxu1 %v13885_v15 }
  0x64   : > { %3493 = vmatpush1.bf16.msra.mxu0 %v10463_v23  ;;  %3566 = vmatpush1.bf16.msra.mxu1 %v10465_v24  ;;  %v10687_v23 = vcombine.low %v482_v8, %v498_v9  ;;  %v10689_v24 = vcombine.low %v483_v10, %v499_v13  ;;  %v722_v8 = vld [vmem:[%s13803_s11 + $0xf90] sm:$0xff]  ;;  %v707_v9 = vld [vmem:[%s13803_s11 + $0xf18] sm:$0xff] }
  0x65   : > { %3494 = vmatprep.subr.bf16.mxu0 %v10496_v25  ;;  %3567 = vmatprep.subr.bf16.mxu1 %v10498_v30  ;;  %v10720_v25 = vcombine.high %v514_v18, %v530_v19  ;;  %v10722_v30 = vcombine.high %v515_v20, %v531_v22 }
  0x67   : > { %3387 = vmatmul.mubr.bf16.gmra.mrb[4].mxu0 %v13899_v29  ;;  %3460 = vmatmul.mubr.bf16.gmra.mrb[4].mxu1 %v13899_v29 }
  0x68   : > { %3495 = vmatpush1.bf16.msra.mxu0 %v10495_v32  ;;  %3568 = vmatpush1.bf16.msra.mxu1 %v10497_v34  ;;  %v10719_v32 = vcombine.low %v514_v18, %v530_v19  ;;  %v10752_v34 = vcombine.high %v546_v26, %v562_v27  ;;  %v244_v18 = vld [vmem:[%s13803_s11 + $0xa0] sm:$0xff]  ;;  %v229_v19 = vld [vmem:[%s13803_s11 + $0x28] sm:$0xff] }
  0x69   : > { %3496 = vmatprep.subr.bf16.mxu0 %v10528_v35  ;;  %3569 = vmatprep.subr.bf16.mxu1 %v10530_v39  ;;  %v578_v35 = vld [vmem:[%s13803_s11 + $0xb10] sm:$0xff]  ;;  %v595_v39 = vld [vmem:[%s13803_s11 + $0xb98] sm:$0xff]  ;;  %v276_v26 = vld [vmem:[%s13803_s11 + $0x1a0] sm:$0xff] }
  0x6a   : > { %3396 = vmatprep.mubr.bf16.mxu0 %v13907_v33  ;;  %3469 = vmatprep.mubr.bf16.mxu1 %v13907_v33  ;;  %v10786_v46 = vcombine.high %v579_v37, %v595_v39  ;;  %v10783_v49 = vcombine.low %v578_v35, %v594_v36  ;;  %v261_v27 = vld [vmem:[%s13803_s11 + $0x128] sm:$0xff] }
  0x6c   : > { %3497 = vmatpush1.bf16.msra.mxu0 %v10527_v41  ;;  %3570 = vmatpush1.bf16.msra.mxu1 %v10529_v42  ;;  %v10753_v41 = vcombine.low %v547_v28, %v563_v31  ;;  %v10784_v42 = vcombine.high %v578_v35, %v594_v36  ;;  %v308_v35 = vld [vmem:[%s13803_s11 + $0x2a0] sm:$0xff]  ;;  %v293_v36 = vld [vmem:[%s13803_s11 + $0x228] sm:$0xff] }
  0x6d   : > { %3498 = vmatprep.subr.bf16.mxu0 %v10560_v43  ;;  %3571 = vmatprep.subr.bf16.mxu1 %v10562_v48  ;;  %v610_v43 = vld [vmem:[%s13803_s11 + $0xc10] sm:$0xff]  ;;  %v627_v48 = vld [vmem:[%s13803_s11 + $0xc98] sm:$0xff] }
  0x6e   : > { %v10818_v56 = vcombine.high %v611_v45, %v627_v48  ;;  %v10815_v58 = vcombine.low %v610_v43, %v626_v44 }
  0x6f   : > { %3397 = vmatmul.mubr.bf16.gmra.mrb[8].mxu0 %v13921_v47  ;;  %3470 = vmatmul.mubr.bf16.gmra.mrb[8].mxu1 %v13921_v47 }
  0x70   : > { %3499 = vmatpush1.bf16.msra.mxu0 %v10559_v50  ;;  %3572 = vmatpush1.bf16.msra.mxu1 %v10561_v52  ;;  %v10785_v50 = vcombine.low %v579_v37, %v595_v39  ;;  %v10816_v52 = vcombine.high %v610_v43, %v626_v44  ;;  %v340_v43 = vld [vmem:[%s13803_s11 + $0x3a0] sm:$0xff]  ;;  %v325_v44 = vld [vmem:[%s13803_s11 + $0x328] sm:$0xff] }
  0x71   : > { %3500 = vmatprep.subr.bf16.mxu0 %v10592_v53  ;;  %3573 = vmatprep.subr.bf16.mxu1 %v10594_v57  ;;  %v642_v53 = vld [vmem:[%s13803_s11 + $0xd10] sm:$0xff]  ;;  %v659_v57 = vld [vmem:[%s13803_s11 + $0xd98] sm:$0xff] }
  0x72   : > { %3406 = vmatprep.mubr.bf16.mxu0 %v13929_v51  ;;  %3479 = vmatprep.mubr.bf16.mxu1 %v13929_v51  ;;  %v10850_v1 = vcombine.high %v643_v55, %v659_v57  ;;  %v10847_v4 = vcombine.low %v642_v53, %v658_v54 }
  0x74   : > { %3501 = vmatpush1.bf16.msra.mxu0 %v10591_v59  ;;  %3574 = vmatpush1.bf16.msra.mxu1 %v10593_v60  ;;  %v10817_v59 = vcombine.low %v611_v45, %v627_v48  ;;  %v10848_v60 = vcombine.high %v642_v53, %v658_v54  ;;  %v357_v53 = vld [vmem:[%s13803_s11 + $0x428] sm:$0xff] }
  0x75   : > { %3502 = vmatprep.subr.bf16.mxu0 %v10624_v61  ;;  %3575 = vmatprep.subr.bf16.mxu1 %v10626_v3  ;;  %v674_v61 = vld [vmem:[%s13803_s11 + $0xe10] sm:$0xff]  ;;  %v691_v3 = vld [vmem:[%s13803_s11 + $0xe98] sm:$0xff] }
  0x76   : > { %v10882_v10 = vcombine.high %v675_v63, %v691_v3  ;;  %v10879_v13 = vcombine.low %v674_v61, %v690_v62 }
  0x77   : > { %3407 = vmatmul.mubr.bf16.gmra.mrb[12].mxu0 %v13943_v2  ;;  %3480 = vmatmul.mubr.bf16.gmra.mrb[12].mxu1 %v13943_v2 }
  0x78   : > { %3503 = vmatpush1.bf16.msra.mxu0 %v10623_v5  ;;  %3576 = vmatpush1.bf16.msra.mxu1 %v10625_v6  ;;  %v10849_v5 = vcombine.low %v643_v55, %v659_v57  ;;  %v10880_v6 = vcombine.high %v674_v61, %v690_v62  ;;  %v373_v55 = vld [vmem:[%s13803_s11 + $0x4a8] sm:$0xff] }
  0x79   : > { %3504 = vmatprep.subr.bf16.mxu0 %v10656_v7  ;;  %3577 = vmatprep.subr.bf16.mxu1 %v10658_v12  ;;  %v706_v7 = vld [vmem:[%s13803_s11 + $0xf10] sm:$0xff]  ;;  %v723_v12 = vld [vmem:[%s13803_s11 + $0xf98] sm:$0xff]  ;;  %v10566_v61 = vcombine.high %v357_v53, %v373_v55  ;;  %v405_v62 = vld [vmem:[%s13803_s11 + $0x5a8] sm:$0xff] }
  0x7a   : > { %3522 = vmatprep.mubr.bf16.mxu0 %v13795_v0  ;;  %3595 = vmatprep.mubr.bf16.mxu1 %v13795_v0  ;;  %v10721_v0 = vcombine.low %v515_v20, %v531_v22  ;;  %v10914_v20 = vcombine.high %v707_v9, %v723_v12  ;;  %v10911_v22 = vcombine.low %v706_v7, %v722_v8 }
  0x7c   : > { %3505 = vmatpush1.bf16.msra.mxu0 %v10655_v14  ;;  %3578 = vmatpush1.bf16.msra.mxu1 %v10657_v16  ;;  %v10881_v14 = vcombine.low %v675_v63, %v691_v3  ;;  %v10912_v16 = vcombine.high %v706_v7, %v722_v8  ;;  %v10565_v63 = vcombine.low %v357_v53, %v373_v55  ;;  %v420_v3 = vld [vmem:[%s13803_s11 + $0x620] sm:$0xff]  ;;  %v437_v7 = vld [vmem:[%s13803_s11 + $0x6a8] sm:$0xff] }
  0x7d   : > { %3506 = vmatprep.subr.bf16.mxu0 %v10688_v17  ;;  %3579 = vmatprep.subr.bf16.mxu1 %v10690_v21  ;;  %v228_v17 = vld [vmem:[%s13803_s11 + $0x20] sm:$0xff]  ;;  %v245_v21 = vld [vmem:[%s13803_s11 + $0xa8] sm:$0xff] }
  0x7e   : > { %v10438_v28 = vcombine.high %v229_v19, %v245_v21  ;;  %v10435_v31 = vcombine.low %v228_v17, %v244_v18  ;;  %v628_v53 = vld [vmem:[%s13803_s11 + $0xca0] sm:$0xff] }
  0x80   : > { %3507 = vmatpush1.bf16.msra.mxu0 %v10687_v23  ;;  %3580 = vmatpush1.bf16.msra.mxu1 %v10689_v24  ;;  %v10913_v23 = vcombine.low %v707_v9, %v723_v12  ;;  %v10436_v24 = vcombine.high %v228_v17, %v244_v18  ;;  %v468_v12 = vld [vmem:[%s13803_s11 + $0x7a0] sm:$0xff] }
  0x81   : > { %3508 = vmatprep.subr.bf16.mxu0 %v10720_v25  ;;  %3581 = vmatprep.subr.bf16.mxu1 %v10722_v30  ;;  %v260_v25 = vld [vmem:[%s13803_s11 + $0x120] sm:$0xff]  ;;  %v277_v30 = vld [vmem:[%s13803_s11 + $0x1a8] sm:$0xff] }
  0x82   : > { %v10470_v37 = vcombine.high %v261_v27, %v277_v30  ;;  %v10467_v39 = vcombine.low %v260_v25, %v276_v26 }
  0x84   : > { %3509 = vmatpush1.bf16.msra.mxu0 %v10719_v32  ;;  %3582 = vmatpush1.bf16.msra.mxu1 %v10721_v0  ;;  %v10437_v32 = vcombine.low %v229_v19, %v245_v21  ;;  %v10468_v0 = vcombine.high %v260_v25, %v276_v26  ;;  %v484_v19 = vld [vmem:[%s13803_s11 + $0x820] sm:$0xff]  ;;  %v485_v21 = vld [vmem:[%s13803_s11 + $0x828] sm:$0xff] }
  0x85   : > { %3510 = vmatprep.subr.bf16.mxu0 %v10752_v34  ;;  %3583 = vmatprep.subr.bf16.mxu1 %v10754_v38  ;;  %v292_v34 = vld [vmem:[%s13803_s11 + $0x220] sm:$0xff]  ;;  %v309_v38 = vld [vmem:[%s13803_s11 + $0x2a8] sm:$0xff] }
  0x86   : > { %v10502_v45 = vcombine.high %v293_v36, %v309_v38  ;;  %v10501_v48 = vcombine.low %v293_v36, %v309_v38  ;;  %v516_v26 = vld [vmem:[%s13803_s11 + $0x920] sm:$0xff] }
  0x87   : > { %v564_v36 = vld [vmem:[%s13803_s11 + $0xaa0] sm:$0xff] }
  0x88   : > { %3511 = vmatpush1.bf16.msra.mxu0 %v10751_v40  ;;  %3584 = vmatpush1.bf16.msra.mxu1 %v10753_v41  ;;  %v10469_v40 = vcombine.low %v261_v27, %v277_v30  ;;  %v10500_v41 = vcombine.high %v292_v34, %v308_v35  ;;  %v532_v27 = vld [vmem:[%s13803_s11 + $0x9a0] sm:$0xff] }
  0x89   : > { %3512 = vmatprep.subr.bf16.mxu0 %v10784_v42  ;;  %3585 = vmatprep.subr.bf16.mxu1 %v10786_v46  ;;  %v324_v42 = vld [vmem:[%s13803_s11 + $0x320] sm:$0xff]  ;;  %v341_v46 = vld [vmem:[%s13803_s11 + $0x3a8] sm:$0xff] }
  0x8a   : > { %v10534_v54 = vcombine.high %v325_v44, %v341_v46 }
  0x8c   : > { %3513 = vmatpush1.bf16.msra.mxu0 %v10783_v49  ;;  %3586 = vmatpush1.bf16.msra.mxu1 %v10785_v50  ;;  %v10532_v49 = vcombine.high %v324_v42, %v340_v43  ;;  %v356_v50 = vld [vmem:[%s13803_s11 + $0x420] sm:$0xff] }
  0x8d   : > { %3514 = vmatprep.subr.bf16.mxu0 %v10816_v52  ;;  %3587 = vmatprep.subr.bf16.mxu1 %v10818_v56  ;;  %v372_v52 = vld [vmem:[%s13803_s11 + $0x4a0] sm:$0xff]  ;;  %v10533_v56 = vcombine.low %v325_v44, %v341_v46 }
  0x8e   : > { %v10564_v57 = vcombine.high %v356_v50, %v372_v52  ;;  %v596_v44 = vld [vmem:[%s13803_s11 + $0xba0] sm:$0xff] }
  0x90   : > { %3515 = vmatpush1.bf16.msra.mxu0 %v10815_v58  ;;  %3588 = vmatpush1.bf16.msra.mxu1 %v10817_v59  ;;  %v388_v58 = vld [vmem:[%s13803_s11 + $0x520] sm:$0xff] }
  0x91   : > { %3516 = vmatprep.subr.bf16.mxu0 %v10848_v60  ;;  %3589 = vmatprep.subr.bf16.mxu1 %v10850_v1  ;;  %v404_v59 = vld [vmem:[%s13803_s11 + $0x5a0] sm:$0xff]  ;;  %v389_v60 = vld [vmem:[%s13803_s11 + $0x528] sm:$0xff] }
  0x92   : > { %v10596_v1 = vcombine.high %v388_v58, %v404_v59  ;;  %v10597_v8 = vcombine.low %v389_v60, %v405_v62 }
  0x94   : > { %3517 = vmatpush1.bf16.msra.mxu0 %v10847_v4  ;;  %3590 = vmatpush1.bf16.msra.mxu1 %v10849_v5  ;;  %v436_v4 = vld [vmem:[%s13803_s11 + $0x6a0] sm:$0xff]  ;;  %v421_v5 = vld [vmem:[%s13803_s11 + $0x628] sm:$0xff] }
  0x95   : > { %3518 = vmatprep.subr.bf16.mxu0 %v10880_v6  ;;  %3591 = vmatprep.subr.bf16.mxu1 %v10882_v10  ;;  %v10598_v6 = vcombine.high %v389_v60, %v405_v62  ;;  %v10628_v9 = vcombine.high %v420_v3, %v436_v4  ;;  %v452_v10 = vld [vmem:[%s13803_s11 + $0x720] sm:$0xff]  ;;  %v10629_v17 = vcombine.low %v421_v5, %v437_v7 }
  0x96   : > { %v10660_v18 = vcombine.high %v452_v10, %v468_v12  ;;  %v660_v60 = vld [vmem:[%s13803_s11 + $0xda0] sm:$0xff] }
  0x98   : > { %3519 = vmatpush1.bf16.msra.mxu0 %v10879_v13  ;;  %3592 = vmatpush1.bf16.msra.mxu1 %v10881_v14  ;;  %v453_v13 = vld [vmem:[%s13803_s11 + $0x728] sm:$0xff]  ;;  %v10630_v14 = vcombine.high %v421_v5, %v437_v7  ;;  %v692_v5 = vld [vmem:[%s13803_s11 + $0xea0] sm:$0xff] }
  0x99   : > { %3520 = vmatprep.subr.bf16.mxu0 %v10912_v16  ;;  %3593 = vmatprep.subr.bf16.mxu1 %v10914_v20  ;;  %v469_v16 = vld [vmem:[%s13803_s11 + $0x7a8] sm:$0xff]  ;;  %v500_v20 = vld [vmem:[%s13803_s11 + $0x8a0] sm:$0xff] }
  0x9a   : > { %v10692_v25 = vcombine.high %v484_v19, %v500_v20 }
  0x9c   : > { %3521 = vmatpush1.bf16.msra.mxu0 %v10911_v22  ;;  %3594 = vmatpush1.bf16.msra.mxu1 %v10913_v23  ;;  %v10662_v22 = vcombine.high %v453_v13, %v469_v16  ;;  %v501_v23 = vld [vmem:[%s13803_s11 + $0x8a8] sm:$0xff] }
  0x9d   : > { %3636 = vmatprep.subr.bf16.mxu0 %v10436_v24  ;;  %3709 = vmatprep.subr.bf16.mxu1 %v10438_v28  ;;  %v10661_v24 = vcombine.low %v453_v13, %v469_v16  ;;  %v517_v28 = vld [vmem:[%s13803_s11 + $0x928] sm:$0xff]  ;;  %v10694_v30 = vcombine.high %v485_v21, %v501_v23  ;;  %v724_v13 = vld [vmem:[%s13803_s11 + $0xfa0] sm:$0xff] }
  0x9f   : > { %3523 = vmatmul.mubr.bf16.vlgmr.msra.gmra.mrb[16].mxu0 %v13878_v11  ;;  %3596 = vmatmul.mubr.bf16.vlgmr.msra.gmra.mrb[16].mxu1 %v13878_v11  ;;  %v10499_v11 = vcombine.low %v292_v34, %v308_v35  ;;  %v10724_v34 = vcombine.high %v516_v26, %v532_v27  ;;  %v548_v35 = vld [vmem:[%s13803_s11 + $0xa20] sm:$0xff] }
  0xa0   : > { %3637 = vmatpush1.bf16.msra.mxu0 %v10435_v31  ;;  %3710 = vmatpush1.bf16.msra.mxu1 %v10437_v32  ;;  %v533_v31 = vld [vmem:[%s13803_s11 + $0x9a8] sm:$0xff] }
  0xa1   : > { %3638 = vmatprep.subr.bf16.mxu0 %v10468_v0  ;;  %3711 = vmatprep.subr.bf16.mxu1 %v10470_v37  ;;  %v14041_v32 = vld [vmem:[%s17305_s1 + $0x4] ss:$8 sps:$4 sm:$0xff]   ;;  %v10693_v0 = vcombine.low %v485_v21, %v501_v23  ;;  %v10726_v38 = vcombine.high %v517_v28, %v533_v31  ;;  %v246_v21 = vld [vmem:[%s13803_s11 + $0xb0] sm:$0xff] }
  0xa2   : > { %3532 = vmatprep.mubr.bf16.mxu0 %v13885_v15  ;;  %3605 = vmatprep.mubr.bf16.mxu1 %v13885_v15  ;;  %v10531_v15 = vcombine.low %v324_v42, %v340_v43  ;;  %v549_v37 = vld [vmem:[%s13803_s11 + $0xa28] sm:$0xff]  ;;  %v10756_v42 = vcombine.high %v548_v35, %v564_v36  ;;  %v580_v43 = vld [vmem:[%s13803_s11 + $0xb20] sm:$0xff] }
  0xa4   : > { %3639 = vmatpush1.bf16.msra.mxu0 %v10467_v39  ;;  %3712 = vmatpush1.bf16.msra.mxu1 %v10469_v40  ;;  %v565_v39 = vld [vmem:[%s13803_s11 + $0xaa8] sm:$0xff]  ;;  %v10723_v40 = vcombine.low %v516_v26, %v532_v27  ;;  %v262_v27 = vld [vmem:[%s13803_s11 + $0x130] sm:$0xff] }
  0xa5   : > { %3640 = vmatprep.subr.bf16.mxu0 %v10500_v41  ;;  %3713 = vmatprep.subr.bf16.mxu1 %v10502_v45  ;;  %v10725_v41 = vcombine.low %v517_v28, %v533_v31  ;;  %v581_v45 = vld [vmem:[%s13803_s11 + $0xb28] sm:$0xff]  ;;  %v10758_v46 = vcombine.high %v549_v37, %v565_v39  ;;  %v278_v28 = vld [vmem:[%s13803_s11 + $0x1b0] sm:$0xff] }
  0xa7   : > { %3533 = vmatmul.mubr.bf16.gmra.mrb[20].mxu0 %v13899_v29  ;;  %3606 = vmatmul.mubr.bf16.gmra.mrb[20].mxu1 %v13899_v29  ;;  %v10563_v29 = vcombine.low %v356_v50, %v372_v52  ;;  %v10788_v50 = vcombine.high %v580_v43, %v596_v44  ;;  %v612_v52 = vld [vmem:[%s13803_s11 + $0xc20] sm:$0xff] }
  0xa8   : > { %3641 = vmatpush1.bf16.msra.mxu0 %v10499_v11  ;;  %3714 = vmatpush1.bf16.msra.mxu1 %v10501_v48  ;;  %v597_v11 = vld [vmem:[%s13803_s11 + $0xba8] sm:$0xff]  ;;  %v10755_v48 = vcombine.low %v548_v35, %v564_v36  ;;  %v10472_v35 = vcombine.high %v262_v27, %v278_v28  ;;  %v294_v36 = vld [vmem:[%s13803_s11 + $0x230] sm:$0xff] }
  0xa9   : > { %3642 = vmatprep.subr.bf16.mxu0 %v10532_v49  ;;  %3715 = vmatprep.subr.bf16.mxu1 %v10534_v54  ;;  %v10757_v49 = vcombine.low %v549_v37, %v565_v39  ;;  %v613_v54 = vld [vmem:[%s13803_s11 + $0xc28] sm:$0xff]  ;;  %v10790_v55 = vcombine.high %v581_v45, %v597_v11  ;;  %v310_v37 = vld [vmem:[%s13803_s11 + $0x2b0] sm:$0xff] }
  0xaa   : > { %3542 = vmatprep.mubr.bf16.mxu0 %v13907_v33  ;;  %3615 = vmatprep.mubr.bf16.mxu1 %v13907_v33  ;;  %v10595_v33 = vcombine.low %v388_v58, %v404_v59  ;;  %v10820_v58 = vcombine.high %v612_v52, %v628_v53  ;;  %v644_v59 = vld [vmem:[%s13803_s11 + $0xd20] sm:$0xff] }
  0xac   : > { %3643 = vmatpush1.bf16.msra.mxu0 %v10531_v15  ;;  %3716 = vmatpush1.bf16.msra.mxu1 %v10533_v56  ;;  %v629_v15 = vld [vmem:[%s13803_s11 + $0xca8] sm:$0xff]  ;;  %v10787_v56 = vcombine.low %v580_v43, %v596_v44  ;;  %v10504_v44 = vcombine.high %v294_v36, %v310_v37 }
  0xad   : > { %3644 = vmatprep.subr.bf16.mxu0 %v10564_v57  ;;  %3717 = vmatprep.subr.bf16.mxu1 %v10566_v61  ;;  %v10789_v57 = vcombine.low %v581_v45, %v597_v11  ;;  %v645_v61 = vld [vmem:[%s13803_s11 + $0xd28] sm:$0xff]  ;;  %v10822_v62 = vcombine.high %v613_v54, %v629_v15  ;;  %v326_v45 = vld [vmem:[%s13803_s11 + $0x330] sm:$0xff]  ;;  %v327_v11 = vld [vmem:[%s13803_s11 + $0x338] sm:$0xff] }
  0xaf   : > { %3543 = vmatmul.mubr.bf16.gmra.mrb[24].mxu0 %v13921_v47  ;;  %3616 = vmatmul.mubr.bf16.gmra.mrb[24].mxu1 %v13921_v47  ;;  %v10627_v47 = vcombine.low %v420_v3, %v436_v4  ;;  %v10852_v3 = vcombine.high %v644_v59, %v660_v60  ;;  %v676_v4 = vld [vmem:[%s13803_s11 + $0xe20] sm:$0xff] }
  0xb0   : > { %3645 = vmatpush1.bf16.msra.mxu0 %v10563_v29  ;;  %3718 = vmatpush1.bf16.msra.mxu1 %v10565_v63  ;;  %v661_v29 = vld [vmem:[%s13803_s11 + $0xda8] sm:$0xff]  ;;  %v10819_v63 = vcombine.low %v612_v52, %v628_v53  ;;  %v10503_v52 = vcombine.low %v294_v36, %v310_v37  ;;  %v518_v36 = vld [vmem:[%s13803_s11 + $0x930] sm:$0xff] }
  0xb1   : > { %3646 = vmatprep.subr.bf16.mxu0 %v10596_v1  ;;  %3719 = vmatprep.subr.bf16.mxu1 %v10598_v6  ;;  %v10821_v1 = vcombine.low %v613_v54, %v629_v15  ;;  %v677_v6 = vld [vmem:[%s13803_s11 + $0xe28] sm:$0xff]  ;;  %v10854_v7 = vcombine.high %v645_v61, %v661_v29  ;;  %v374_v15 = vld [vmem:[%s13803_s11 + $0x4b0] sm:$0xff] }
  0xb2   : > { %3552 = vmatprep.mubr.bf16.mxu0 %v13929_v51  ;;  %3625 = vmatprep.mubr.bf16.mxu1 %v13929_v51  ;;  %v10659_v51 = vcombine.low %v452_v10, %v468_v12  ;;  %v10884_v10 = vcombine.high %v676_v4, %v692_v5  ;;  %v708_v12 = vld [vmem:[%s13803_s11 + $0xf20] sm:$0xff]  ;;  %v534_v37 = vld [vmem:[%s13803_s11 + $0x9b0] sm:$0xff] }
  0xb4   : > { %3647 = vmatpush1.bf16.msra.mxu0 %v10595_v33  ;;  %3720 = vmatpush1.bf16.msra.mxu1 %v10597_v8  ;;  %v693_v33 = vld [vmem:[%s13803_s11 + $0xea8] sm:$0xff]  ;;  %v10851_v8 = vcombine.low %v644_v59, %v660_v60  ;;  %v14106_v59 = vld [vmem:[%s17305_s1 + $0x10] ss:$8 sps:$4 sm:$0xff]  }
  0xb5   : > { %3648 = vmatprep.subr.bf16.mxu0 %v10628_v9  ;;  %3721 = vmatprep.subr.bf16.mxu1 %v10630_v14  ;;  %v10853_v9 = vcombine.low %v645_v61, %v661_v29  ;;  %v709_v14 = vld [vmem:[%s13803_s11 + $0xf28] sm:$0xff]  ;;  %v10886_v16 = vcombine.high %v677_v6, %v693_v33  ;;  %v390_v29 = vld [vmem:[%s13803_s11 + $0x530] sm:$0xff] }
  0xb7   : > { %3553 = vmatmul.mubr.bf16.gmra.mrb[28].mxu0 %v13943_v2  ;;  %3626 = vmatmul.mubr.bf16.gmra.mrb[28].mxu1 %v13943_v2  ;;  %v10691_v2 = vcombine.low %v484_v19, %v500_v20  ;;  %v10916_v19 = vcombine.high %v708_v12, %v724_v13  ;;  %v230_v20 = vld [vmem:[%s13803_s11 + $0x30] sm:$0xff] }
  0xb8   : > { %3649 = vmatpush1.bf16.msra.mxu0 %v10627_v47  ;;  %3722 = vmatpush1.bf16.msra.mxu1 %v10629_v17  ;;  %v725_v47 = vld [vmem:[%s13803_s11 + $0xfa8] sm:$0xff]  ;;  %v10883_v17 = vcombine.low %v676_v4, %v692_v5  ;;  %v10440_v26 = vcombine.high %v230_v20, %v246_v21  ;;  %v407_v5 = vld [vmem:[%s13803_s11 + $0x5b8] sm:$0xff] }
  0xb9   : > { %3650 = vmatprep.subr.bf16.mxu0 %v10660_v18  ;;  %3723 = vmatprep.subr.bf16.mxu1 %v10662_v22  ;;  %v10885_v18 = vcombine.low %v677_v6, %v693_v33  ;;  %v231_v22 = vld [vmem:[%s13803_s11 + $0x38] sm:$0xff]  ;;  %v10918_v23 = vcombine.high %v709_v14, %v725_v47 }
  0xba   : > { %3668 = vmatprep.mubr.bf16.mxu0 %v14041_v32  ;;  %3741 = vmatprep.mubr.bf16.mxu1 %v14041_v32 }
  0xbc   : > { %3651 = vmatpush1.bf16.msra.mxu0 %v10659_v51  ;;  %3724 = vmatpush1.bf16.msra.mxu1 %v10661_v24  ;;  %v247_v51 = vld [vmem:[%s13803_s11 + $0xb8] sm:$0xff]  ;;  %v10915_v24 = vcombine.low %v708_v12, %v724_v13 }
  0xbd   : > { %3652 = vmatprep.subr.bf16.mxu0 %v10692_v25  ;;  %3725 = vmatprep.subr.bf16.mxu1 %v10694_v30  ;;  %v10917_v25 = vcombine.low %v709_v14, %v725_v47  ;;  %v263_v30 = vld [vmem:[%s13803_s11 + $0x138] sm:$0xff]  ;;  %v10442_v31 = vcombine.high %v231_v22, %v247_v51  ;;  %v14128_v14 = vld [vmem:[%s17305_s1 + $0x20] ss:$8 sps:$4 sm:$0xff]  }
  0xbe   : > { %v439_v13 = vld [vmem:[%s13803_s11 + $0x6b8] sm:$0xff] }
  0xc0   : > { %3653 = vmatpush1.bf16.msra.mxu0 %v10691_v2  ;;  %3726 = vmatpush1.bf16.msra.mxu1 %v10693_v0  ;;  %v279_v2 = vld [vmem:[%s13803_s11 + $0x1b8] sm:$0xff]  ;;  %v10439_v0 = vcombine.low %v230_v20, %v246_v21 }
  0xc1   : > { %3654 = vmatprep.subr.bf16.mxu0 %v10724_v34  ;;  %3727 = vmatprep.subr.bf16.mxu1 %v10726_v38  ;;  %v10441_v34 = vcombine.low %v231_v22, %v247_v51  ;;  %v295_v38 = vld [vmem:[%s13803_s11 + $0x238] sm:$0xff]  ;;  %v10474_v39 = vcombine.high %v263_v30, %v279_v2  ;;  %v10473_v43 = vcombine.low %v263_v30, %v279_v2 }
  0xc2   : > { %v455_v20 = vld [vmem:[%s13803_s11 + $0x738] sm:$0xff] }
  0xc3   : > { %v14138_v21 = vld [vmem:[%s17305_s1 + $0x34] ss:$8 sps:$4 sm:$0xff]   ;;  %v14150_v2 = vld [vmem:[%s17305_s1 + $0x30] ss:$8 sps:$4 sm:$0xff]  }
  0xc4   : > { %3655 = vmatpush1.bf16.msra.mxu0 %v10723_v40  ;;  %3728 = vmatpush1.bf16.msra.mxu1 %v10725_v41  ;;  %v311_v40 = vld [vmem:[%s13803_s11 + $0x2b8] sm:$0xff]  ;;  %v14084_v41 = vld [vmem:[%s17305_s1] ss:$8 sps:$4 sm:$0xff]  }
  0xc5   : > { %3656 = vmatprep.subr.bf16.mxu0 %v10756_v42  ;;  %3729 = vmatprep.subr.bf16.mxu1 %v10758_v46  ;;  %v10471_v42 = vcombine.low %v262_v27, %v278_v28  ;;  %v342_v46 = vld [vmem:[%s13803_s11 + $0x3b0] sm:$0xff]  ;;  %v10505_v53 = vcombine.low %v295_v38, %v311_v40  ;;  %v487_v28 = vld [vmem:[%s13803_s11 + $0x838] sm:$0xff] }
  0xc6   : > { %v10536_v54 = vcombine.high %v326_v45, %v342_v46  ;;  %v10535_v60 = vcombine.low %v326_v45, %v342_v46  ;;  %v502_v27 = vld [vmem:[%s13803_s11 + $0x8b0] sm:$0xff] }
  0xc7   : > { %v550_v45 = vld [vmem:[%s13803_s11 + $0xa30] sm:$0xff] }
  0xc8   : > { %3657 = vmatpush1.bf16.msra.mxu0 %v10755_v48  ;;  %3730 = vmatpush1.bf16.msra.mxu1 %v10757_v49  ;;  %v14094_v48 = vld [vmem:[%s17305_s1 + $0x14] ss:$8 sps:$4 sm:$0xff]   ;;  %v10506_v49 = vcombine.high %v295_v38, %v311_v40 }
  0xc9   : > { %3658 = vmatprep.subr.bf16.mxu0 %v10788_v50  ;;  %3731 = vmatprep.subr.bf16.mxu1 %v10790_v55  ;;  %v343_v50 = vld [vmem:[%s13803_s11 + $0x3b8] sm:$0xff]  ;;  %v358_v55 = vld [vmem:[%s13803_s11 + $0x430] sm:$0xff] }
  0xca   : > { %v10537_v61 = vcombine.low %v327_v11, %v343_v50  ;;  %v10567_v6 = vcombine.low %v358_v55, %v374_v15  ;;  %v519_v38 = vld [vmem:[%s13803_s11 + $0x938] sm:$0xff]  ;;  %v566_v46 = vld [vmem:[%s13803_s11 + $0xab0] sm:$0xff] }
  0xcb   : > { %v535_v40 = vld [vmem:[%s13803_s11 + $0x9b8] sm:$0xff] }
  0xcc   : > { %3659 = vmatpush1.bf16.msra.mxu0 %v10787_v56  ;;  %3732 = vmatpush1.bf16.msra.mxu1 %v10789_v57  ;;  %v359_v56 = vld [vmem:[%s13803_s11 + $0x438] sm:$0xff]  ;;  %v10538_v57 = vcombine.high %v327_v11, %v343_v50 }
  0xcd   : > { %3660 = vmatprep.subr.bf16.mxu0 %v10820_v58  ;;  %3733 = vmatprep.subr.bf16.mxu1 %v10822_v62  ;;  %v375_v58 = vld [vmem:[%s13803_s11 + $0x4b8] sm:$0xff]  ;;  %v10568_v62 = vcombine.high %v358_v55, %v374_v15  ;;  %v598_v55 = vld [vmem:[%s13803_s11 + $0xbb0] sm:$0xff] }
  0xce   : > { %v10570_v4 = vcombine.high %v359_v56, %v375_v58  ;;  %v551_v11 = vld [vmem:[%s13803_s11 + $0xa38] sm:$0xff] }
  0xcf   : > { %v567_v50 = vld [vmem:[%s13803_s11 + $0xab8] sm:$0xff] }
  0xd0   : > { %3661 = vmatpush1.bf16.msra.mxu0 %v10819_v63  ;;  %3734 = vmatpush1.bf16.msra.mxu1 %v10821_v1  ;;  %v406_v63 = vld [vmem:[%s13803_s11 + $0x5b0] sm:$0xff]  ;;  %v391_v1 = vld [vmem:[%s13803_s11 + $0x538] sm:$0xff] }
  0xd1   : > { %3662 = vmatprep.subr.bf16.mxu0 %v10852_v3  ;;  %3735 = vmatprep.subr.bf16.mxu1 %v10854_v7  ;;  %v14116_v3 = vld [vmem:[%s17305_s1 + $0x24] ss:$8 sps:$4 sm:$0xff]   ;;  %v10569_v7 = vcombine.low %v359_v56, %v375_v58  ;;  %v10600_v33 = vcombine.high %v390_v29, %v406_v63  ;;  %v10602_v12 = vcombine.high %v391_v1, %v407_v5  ;;  %v583_v15 = vld [vmem:[%s13803_s11 + $0xb38] sm:$0xff] }
  0xd2   : > { %v10601_v47 = vcombine.low %v391_v1, %v407_v5  ;;  %v10762_v56 = vcombine.high %v551_v11, %v567_v50  ;;  %v10759_v58 = vcombine.low %v550_v45, %v566_v46 }
  0xd4   : > { %3663 = vmatpush1.bf16.msra.mxu0 %v10851_v8  ;;  %3736 = vmatpush1.bf16.msra.mxu1 %v10853_v9  ;;  %v422_v8 = vld [vmem:[%s13803_s11 + $0x630] sm:$0xff] }
  0xd5   : > { %3664 = vmatprep.subr.bf16.mxu0 %v10884_v10  ;;  %3737 = vmatprep.subr.bf16.mxu1 %v10886_v16  ;;  %v438_v9 = vld [vmem:[%s13803_s11 + $0x6b0] sm:$0xff]  ;;  %v423_v10 = vld [vmem:[%s13803_s11 + $0x638] sm:$0xff]  ;;  %v10599_v16 = vcombine.low %v390_v29, %v406_v63 }
  0xd6   : > { %v10634_v22 = vcombine.high %v423_v10, %v439_v13  ;;  %v10631_v51 = vcombine.low %v422_v8, %v438_v9  ;;  %v630_v29 = vld [vmem:[%s13803_s11 + $0xcb0] sm:$0xff]  ;;  %v615_v63 = vld [vmem:[%s13803_s11 + $0xc38] sm:$0xff] }
  0xd8   : > { %3665 = vmatpush1.bf16.msra.mxu0 %v10883_v17  ;;  %3738 = vmatpush1.bf16.msra.mxu1 %v10885_v18  ;;  %v10632_v17 = vcombine.high %v422_v8, %v438_v9  ;;  %v454_v18 = vld [vmem:[%s13803_s11 + $0x730] sm:$0xff]  ;;  %v647_v9 = vld [vmem:[%s13803_s11 + $0xd38] sm:$0xff] }
  0xd9   : > { %3666 = vmatprep.subr.bf16.mxu0 %v10916_v19  ;;  %3739 = vmatprep.subr.bf16.mxu1 %v10918_v23  ;;  %v470_v19 = vld [vmem:[%s13803_s11 + $0x7b0] sm:$0xff]  ;;  %v471_v23 = vld [vmem:[%s13803_s11 + $0x7b8] sm:$0xff] }
  0xda   : > { %v10666_v30 = vcombine.high %v455_v20, %v471_v23  ;;  %v662_v8 = vld [vmem:[%s13803_s11 + $0xdb0] sm:$0xff] }
  0xdc   : > { %3667 = vmatpush1.bf16.msra.mxu0 %v10915_v24  ;;  %3740 = vmatpush1.bf16.msra.mxu1 %v10917_v25  ;;  %v10633_v24 = vcombine.low %v423_v10, %v439_v13  ;;  %v10664_v25 = vcombine.high %v454_v18, %v470_v19 }
  0xdd   : > { %3782 = vmatprep.subr.bf16.mxu0 %v10440_v26  ;;  %3855 = vmatprep.subr.bf16.mxu1 %v10442_v31  ;;  %v486_v26 = vld [vmem:[%s13803_s11 + $0x830] sm:$0xff]  ;;  %v503_v31 = vld [vmem:[%s13803_s11 + $0x8b8] sm:$0xff] }
  0xdf   : > { %3669 = vmatmul.mubr.bf16.vlgmr.msra.gmra.mrb[32].mxu0 %v14084_v41  ;;  %3742 = vmatmul.mubr.bf16.vlgmr.msra.gmra.mrb[32].mxu1 %v14084_v41 }
  0xe0   : > { %3783 = vmatpush1.bf16.msra.mxu0 %v10439_v0  ;;  %3856 = vmatpush1.bf16.msra.mxu1 %v10441_v34  ;;  %v10663_v0 = vcombine.low %v454_v18, %v470_v19  ;;  %v10665_v34 = vcombine.low %v455_v20, %v471_v23  ;;  %v694_v18 = vld [vmem:[%s13803_s11 + $0xeb0] sm:$0xff]  ;;  %v679_v19 = vld [vmem:[%s13803_s11 + $0xe38] sm:$0xff] }
  0xe1   : > { %3784 = vmatprep.subr.bf16.mxu0 %v10472_v35  ;;  %3857 = vmatprep.subr.bf16.mxu1 %v10474_v39  ;;  %v10696_v35 = vcombine.high %v486_v26, %v502_v27  ;;  %v10698_v39 = vcombine.high %v487_v28, %v503_v31 }
  0xe2   : > { %3678 = vmatprep.mubr.bf16.mxu0 %v14094_v48  ;;  %3751 = vmatprep.mubr.bf16.mxu1 %v14094_v48 }
  0xe4   : > { %3785 = vmatpush1.bf16.msra.mxu0 %v10471_v42  ;;  %3858 = vmatpush1.bf16.msra.mxu1 %v10473_v43  ;;  %v10695_v42 = vcombine.low %v486_v26, %v502_v27  ;;  %v10697_v43 = vcombine.low %v487_v28, %v503_v31  ;;  %v726_v26 = vld [vmem:[%s13803_s11 + $0xfb0] sm:$0xff]  ;;  %v711_v27 = vld [vmem:[%s13803_s11 + $0xf38] sm:$0xff] }
  0xe5   : > { %3786 = vmatprep.subr.bf16.mxu0 %v10504_v44  ;;  %3859 = vmatprep.subr.bf16.mxu1 %v10506_v49  ;;  %v10728_v44 = vcombine.high %v518_v36, %v534_v37  ;;  %v10730_v49 = vcombine.high %v519_v38, %v535_v40 }
  0xe7   : > { %3679 = vmatmul.mubr.bf16.gmra.mrb[36].mxu0 %v14106_v59  ;;  %3752 = vmatmul.mubr.bf16.gmra.mrb[36].mxu1 %v14106_v59 }
  0xe8   : > { %3787 = vmatpush1.bf16.msra.mxu0 %v10503_v52  ;;  %3860 = vmatpush1.bf16.msra.mxu1 %v10505_v53  ;;  %v10727_v52 = vcombine.low %v518_v36, %v534_v37  ;;  %v10760_v53 = vcombine.high %v550_v45, %v566_v46  ;;  %v248_v36 = vld [vmem:[%s13803_s11 + $0xc0] sm:$0xff]  ;;  %v233_v37 = vld [vmem:[%s13803_s11 + $0x48] sm:$0xff] }
  0xe9   : > { %3788 = vmatprep.subr.bf16.mxu0 %v10536_v54  ;;  %3861 = vmatprep.subr.bf16.mxu1 %v10538_v57  ;;  %v582_v54 = vld [vmem:[%s13803_s11 + $0xb30] sm:$0xff]  ;;  %v599_v57 = vld [vmem:[%s13803_s11 + $0xbb8] sm:$0xff]  ;;  %v280_v45 = vld [vmem:[%s13803_s11 + $0x1c0] sm:$0xff] }
  0xea   : > { %3688 = vmatprep.mubr.bf16.mxu0 %v14116_v3  ;;  %3761 = vmatprep.mubr.bf16.mxu1 %v14116_v3  ;;  %v10794_v1 = vcombine.high %v583_v15, %v599_v57  ;;  %v10791_v5 = vcombine.low %v582_v54, %v598_v55  ;;  %v265_v46 = vld [vmem:[%s13803_s11 + $0x148] sm:$0xff] }
  0xec   : > { %3789 = vmatpush1.bf16.msra.mxu0 %v10535_v60  ;;  %3862 = vmatpush1.bf16.msra.mxu1 %v10537_v61  ;;  %v10761_v60 = vcombine.low %v551_v11, %v567_v50  ;;  %v10792_v61 = vcombine.high %v582_v54, %v598_v55  ;;  %v312_v54 = vld [vmem:[%s13803_s11 + $0x2c0] sm:$0xff]  ;;  %v297_v55 = vld [vmem:[%s13803_s11 + $0x248] sm:$0xff] }
  0xed   : > { %3790 = vmatprep.subr.bf16.mxu0 %v10568_v62  ;;  %3863 = vmatprep.subr.bf16.mxu1 %v10570_v4  ;;  %v614_v62 = vld [vmem:[%s13803_s11 + $0xc30] sm:$0xff]  ;;  %v631_v4 = vld [vmem:[%s13803_s11 + $0xcb8] sm:$0xff] }
  0xee   : > { %v10826_v10 = vcombine.high %v615_v63, %v631_v4  ;;  %v10823_v13 = vcombine.low %v614_v62, %v630_v29 }
  0xef   : > { %3689 = vmatmul.mubr.bf16.gmra.mrb[40].mxu0 %v14128_v14  ;;  %3762 = vmatmul.mubr.bf16.gmra.mrb[40].mxu1 %v14128_v14 }
  0xf0   : > { %3791 = vmatpush1.bf16.msra.mxu0 %v10567_v6  ;;  %3864 = vmatpush1.bf16.msra.mxu1 %v10569_v7  ;;  %v10793_v6 = vcombine.low %v583_v15, %v599_v57  ;;  %v10824_v7 = vcombine.high %v614_v62, %v630_v29  ;;  %v344_v62 = vld [vmem:[%s13803_s11 + $0x3c0] sm:$0xff]  ;;  %v329_v29 = vld [vmem:[%s13803_s11 + $0x348] sm:$0xff] }
  0xf1   : > { %3792 = vmatprep.subr.bf16.mxu0 %v10600_v33  ;;  %3865 = vmatprep.subr.bf16.mxu1 %v10602_v12  ;;  %v646_v33 = vld [vmem:[%s13803_s11 + $0xd30] sm:$0xff]  ;;  %v663_v12 = vld [vmem:[%s13803_s11 + $0xdb8] sm:$0xff] }
  0xf2   : > { %3698 = vmatprep.mubr.bf16.mxu0 %v14138_v21  ;;  %3771 = vmatprep.mubr.bf16.mxu1 %v14138_v21  ;;  %v10858_v20 = vcombine.high %v647_v9, %v663_v12  ;;  %v10855_v23 = vcombine.low %v646_v33, %v662_v8 }
  0xf4   : > { %3793 = vmatpush1.bf16.msra.mxu0 %v10599_v16  ;;  %3866 = vmatpush1.bf16.msra.mxu1 %v10601_v47  ;;  %v10825_v16 = vcombine.low %v615_v63, %v631_v4  ;;  %v10856_v47 = vcombine.high %v646_v33, %v662_v8  ;;  %v361_v33 = vld [vmem:[%s13803_s11 + $0x448] sm:$0xff] }
  0xf5   : > { %3794 = vmatprep.subr.bf16.mxu0 %v10632_v17  ;;  %3867 = vmatprep.subr.bf16.mxu1 %v10634_v22  ;;  %v678_v17 = vld [vmem:[%s13803_s11 + $0xe30] sm:$0xff]  ;;  %v695_v22 = vld [vmem:[%s13803_s11 + $0xeb8] sm:$0xff] }
  0xf6   : > { %v10890_v28 = vcombine.high %v679_v19, %v695_v22  ;;  %v10887_v31 = vcombine.low %v678_v17, %v694_v18 }
  0xf7   : > { %3699 = vmatmul.mubr.bf16.gmra.mrb[44].mxu0 %v14150_v2  ;;  %3772 = vmatmul.mubr.bf16.gmra.mrb[44].mxu1 %v14150_v2 }
  0xf8   : > { %3795 = vmatpush1.bf16.msra.mxu0 %v10631_v51  ;;  %3868 = vmatpush1.bf16.msra.mxu1 %v10633_v24  ;;  %v10857_v51 = vcombine.low %v647_v9, %v663_v12  ;;  %v10888_v24 = vcombine.high %v678_v17, %v694_v18  ;;  %v377_v9 = vld [vmem:[%s13803_s11 + $0x4c8] sm:$0xff] }
  0xf9   : > { %3796 = vmatprep.subr.bf16.mxu0 %v10664_v25  ;;  %3869 = vmatprep.subr.bf16.mxu1 %v10666_v30  ;;  %v710_v25 = vld [vmem:[%s13803_s11 + $0xf30] sm:$0xff]  ;;  %v727_v30 = vld [vmem:[%s13803_s11 + $0xfb8] sm:$0xff]  ;;  %v10574_v17 = vcombine.high %v361_v33, %v377_v9  ;;  %v409_v18 = vld [vmem:[%s13803_s11 + $0x5c8] sm:$0xff] }
  0xfa   : > { %3814 = vmatprep.mubr.bf16.mxu0 %v14041_v32  ;;  %3887 = vmatprep.mubr.bf16.mxu1 %v14041_v32  ;;  %v10729_v32 = vcombine.low %v519_v38, %v535_v40  ;;  %v10922_v38 = vcombine.high %v711_v27, %v727_v30  ;;  %v10919_v40 = vcombine.low %v710_v25, %v726_v26 }
  0xfc   : > { %3797 = vmatpush1.bf16.msra.mxu0 %v10663_v0  ;;  %3870 = vmatpush1.bf16.msra.mxu1 %v10665_v34  ;;  %v10889_v0 = vcombine.low %v679_v19, %v695_v22  ;;  %v10920_v34 = vcombine.high %v710_v25, %v726_v26  ;;  %v10573_v19 = vcombine.low %v361_v33, %v377_v9  ;;  %v424_v22 = vld [vmem:[%s13803_s11 + $0x640] sm:$0xff]  ;;  %v441_v25 = vld [vmem:[%s13803_s11 + $0x6c8] sm:$0xff] }
  0xfd   : > { %3798 = vmatprep.subr.bf16.mxu0 %v10696_v35  ;;  %3871 = vmatprep.subr.bf16.mxu1 %v10698_v39  ;;  %v232_v35 = vld [vmem:[%s13803_s11 + $0x40] sm:$0xff]  ;;  %v249_v39 = vld [vmem:[%s13803_s11 + $0xc8] sm:$0xff] }
  0xfe   : > { %v10446_v11 = vcombine.high %v233_v37, %v249_v39  ;;  %v10443_v50 = vcombine.low %v232_v35, %v248_v36  ;;  %v569_v9 = vld [vmem:[%s13803_s11 + $0xac8] sm:$0xff] }
 0x100   : > { %3799 = vmatpush1.bf16.msra.mxu0 %v10695_v42  ;;  %3872 = vmatpush1.bf16.msra.mxu1 %v10697_v43  ;;  %v10921_v42 = vcombine.low %v711_v27, %v727_v30  ;;  %v10444_v43 = vcombine.high %v232_v35, %v248_v36  ;;  %v472_v30 = vld [vmem:[%s13803_s11 + $0x7c0] sm:$0xff]  ;;  %v473_v35 = vld [vmem:[%s13803_s11 + $0x7c8] sm:$0xff] }
 0x101   : > { %3800 = vmatprep.subr.bf16.mxu0 %v10728_v44  ;;  %3873 = vmatprep.subr.bf16.mxu1 %v10730_v49  ;;  %v264_v44 = vld [vmem:[%s13803_s11 + $0x140] sm:$0xff]  ;;  %v281_v49 = vld [vmem:[%s13803_s11 + $0x1c8] sm:$0xff] }
 0x102   : > { %v10478_v15 = vcombine.high %v265_v46, %v281_v49  ;;  %v10475_v57 = vcombine.low %v264_v44, %v280_v45 }
 0x104   : > { %3801 = vmatpush1.bf16.msra.mxu0 %v10727_v52  ;;  %3874 = vmatpush1.bf16.msra.mxu1 %v10729_v32  ;;  %v10445_v52 = vcombine.low %v233_v37, %v249_v39  ;;  %v10476_v32 = vcombine.high %v264_v44, %v280_v45  ;;  %v488_v45 = vld [vmem:[%s13803_s11 + $0x840] sm:$0xff] }
 0x105   : > { %3802 = vmatprep.subr.bf16.mxu0 %v10760_v53  ;;  %3875 = vmatprep.subr.bf16.mxu1 %v10762_v56  ;;  %v296_v53 = vld [vmem:[%s13803_s11 + $0x240] sm:$0xff]  ;;  %v313_v56 = vld [vmem:[%s13803_s11 + $0x2c8] sm:$0xff] }
 0x106   : > { %v10510_v63 = vcombine.high %v297_v55, %v313_v56  ;;  %v10509_v4 = vcombine.low %v297_v55, %v313_v56  ;;  %v536_v55 = vld [vmem:[%s13803_s11 + $0x9c0] sm:$0xff] }
 0x108   : > { %3803 = vmatpush1.bf16.msra.mxu0 %v10759_v58  ;;  %3876 = vmatpush1.bf16.msra.mxu1 %v10761_v60  ;;  %v10477_v58 = vcombine.low %v265_v46, %v281_v49  ;;  %v10508_v60 = vcombine.high %v296_v53, %v312_v54  ;;  %v504_v46 = vld [vmem:[%s13803_s11 + $0x8c0] sm:$0xff] }
 0x109   : > { %3804 = vmatprep.subr.bf16.mxu0 %v10792_v61  ;;  %3877 = vmatprep.subr.bf16.mxu1 %v10794_v1  ;;  %v328_v61 = vld [vmem:[%s13803_s11 + $0x340] sm:$0xff]  ;;  %v345_v1 = vld [vmem:[%s13803_s11 + $0x3c8] sm:$0xff] }
 0x10a   : > { %v10542_v8 = vcombine.high %v329_v29, %v345_v1 }
 0x10c   : > { %3805 = vmatpush1.bf16.msra.mxu0 %v10791_v5  ;;  %3878 = vmatpush1.bf16.msra.mxu1 %v10793_v6  ;;  %v10540_v5 = vcombine.high %v328_v61, %v344_v62  ;;  %v360_v6 = vld [vmem:[%s13803_s11 + $0x440] sm:$0xff] }
 0x10d   : > { %3806 = vmatprep.subr.bf16.mxu0 %v10824_v7  ;;  %3879 = vmatprep.subr.bf16.mxu1 %v10826_v10  ;;  %v376_v7 = vld [vmem:[%s13803_s11 + $0x4c0] sm:$0xff]  ;;  %v10541_v10 = vcombine.low %v329_v29, %v345_v1 }
 0x10e   : > { %v10572_v12 = vcombine.high %v360_v6, %v376_v7 }
 0x110   : > { %3807 = vmatpush1.bf16.msra.mxu0 %v10823_v13  ;;  %3880 = vmatpush1.bf16.msra.mxu1 %v10825_v16  ;;  %v392_v13 = vld [vmem:[%s13803_s11 + $0x540] sm:$0xff] }
 0x111   : > { %3808 = vmatprep.subr.bf16.mxu0 %v10856_v47  ;;  %3881 = vmatprep.subr.bf16.mxu1 %v10858_v20  ;;  %v408_v16 = vld [vmem:[%s13803_s11 + $0x5c0] sm:$0xff]  ;;  %v393_v47 = vld [vmem:[%s13803_s11 + $0x548] sm:$0xff] }
 0x112   : > { %v10604_v20 = vcombine.high %v392_v13, %v408_v16  ;;  %v10605_v26 = vcombine.low %v393_v47, %v409_v18 }
 0x114   : > { %3809 = vmatpush1.bf16.msra.mxu0 %v10855_v23  ;;  %3882 = vmatpush1.bf16.msra.mxu1 %v10857_v51  ;;  %v440_v23 = vld [vmem:[%s13803_s11 + $0x6c0] sm:$0xff]  ;;  %v425_v51 = vld [vmem:[%s13803_s11 + $0x648] sm:$0xff] }
 0x115   : > { %3810 = vmatprep.subr.bf16.mxu0 %v10888_v24  ;;  %3883 = vmatprep.subr.bf16.mxu1 %v10890_v28  ;;  %v10606_v24 = vcombine.high %v393_v47, %v409_v18  ;;  %v10636_v27 = vcombine.high %v424_v22, %v440_v23  ;;  %v456_v28 = vld [vmem:[%s13803_s11 + $0x740] sm:$0xff]  ;;  %v10635_v39 = vcombine.low %v424_v22, %v440_v23 }
 0x116   : > { %v10668_v44 = vcombine.high %v456_v28, %v472_v30  ;;  %v600_v47 = vld [vmem:[%s13803_s11 + $0xbc0] sm:$0xff] }
 0x118   : > { %3811 = vmatpush1.bf16.msra.mxu0 %v10887_v31  ;;  %3884 = vmatpush1.bf16.msra.mxu1 %v10889_v0  ;;  %v457_v31 = vld [vmem:[%s13803_s11 + $0x748] sm:$0xff] }
 0x119   : > { %3812 = vmatprep.subr.bf16.mxu0 %v10920_v34  ;;  %3885 = vmatprep.subr.bf16.mxu1 %v10922_v38  ;;  %v10638_v34 = vcombine.high %v425_v51, %v441_v25  ;;  %v10670_v49 = vcombine.high %v457_v31, %v473_v35 }
 0x11c   : > { %3813 = vmatpush1.bf16.msra.mxu0 %v10919_v40  ;;  %3886 = vmatpush1.bf16.msra.mxu1 %v10921_v42 }
 0x11d   : > { %3928 = vmatprep.subr.bf16.mxu0 %v10444_v43  ;;  %4001 = vmatprep.subr.bf16.mxu1 %v10446_v11  ;;  %v10637_v43 = vcombine.low %v425_v51, %v441_v25 }
 0x11f   : > { %3815 = vmatmul.mubr.bf16.vlgmr.msra.gmra.mrb[48].mxu0 %v14084_v41  ;;  %3888 = vmatmul.mubr.bf16.vlgmr.msra.gmra.mrb[48].mxu1 %v14084_v41  ;;  %v10507_v41 = vcombine.low %v296_v53, %v312_v54  ;;  %v10700_v53 = vcombine.high %v488_v45, %v504_v46  ;;  %v520_v54 = vld [vmem:[%s13803_s11 + $0x940] sm:$0xff] }
 0x120   : > { %3929 = vmatpush1.bf16.msra.mxu0 %v10443_v50  ;;  %4002 = vmatpush1.bf16.msra.mxu1 %v10445_v52  ;;  %v505_v50 = vld [vmem:[%s13803_s11 + $0x8c8] sm:$0xff]  ;;  %v10667_v52 = vcombine.low %v456_v28, %v472_v30 }
 0x121   : > { %3930 = vmatprep.subr.bf16.mxu0 %v10476_v32  ;;  %4003 = vmatprep.subr.bf16.mxu1 %v10478_v15  ;;  %v10669_v32 = vcombine.low %v457_v31, %v473_v35  ;;  %v521_v15 = vld [vmem:[%s13803_s11 + $0x948] sm:$0xff] }
 0x122   : > { %3824 = vmatprep.mubr.bf16.mxu0 %v14094_v48  ;;  %3897 = vmatprep.mubr.bf16.mxu1 %v14094_v48  ;;  %v10539_v48 = vcombine.low %v328_v61, %v344_v62  ;;  %v10699_v62 = vcombine.low %v488_v45, %v504_v46  ;;  %v617_v28 = vld [vmem:[%s13803_s11 + $0xc48] sm:$0xff]  ;;  %v648_v46 = vld [vmem:[%s13803_s11 + $0xd40] sm:$0xff] }
 0x123   : > { %v633_v35 = vld [vmem:[%s13803_s11 + $0xcc8] sm:$0xff] }
 0x124   : > { %3931 = vmatpush1.bf16.msra.mxu0 %v10475_v57  ;;  %4004 = vmatpush1.bf16.msra.mxu1 %v10477_v58  ;;  %v537_v57 = vld [vmem:[%s13803_s11 + $0x9c8] sm:$0xff] }
 0x125   : > { %3932 = vmatprep.subr.bf16.mxu0 %v10508_v60  ;;  %4005 = vmatprep.subr.bf16.mxu1 %v10510_v63 }
 0x127   : > { %3825 = vmatmul.mubr.bf16.gmra.mrb[52].mxu0 %v14106_v59  ;;  %3898 = vmatmul.mubr.bf16.gmra.mrb[52].mxu1 %v14106_v59  ;;  %v10571_v59 = vcombine.low %v360_v6, %v376_v7  ;;  %v553_v6 = vld [vmem:[%s13803_s11 + $0xa48] sm:$0xff] }
 0x128   : > { %3933 = vmatpush1.bf16.msra.mxu0 %v10507_v41  ;;  %4006 = vmatpush1.bf16.msra.mxu1 %v10509_v4  ;;  %v10732_v41 = vcombine.high %v520_v54, %v536_v55  ;;  %v552_v4 = vld [vmem:[%s13803_s11 + $0xa40] sm:$0xff]  ;;  %v10766_v18 = vcombine.high %v553_v6, %v569_v9  ;;  %v10765_v25 = vcombine.low %v553_v6, %v569_v9  ;;  %v697_v9 = vld [vmem:[%s13803_s11 + $0xec8] sm:$0xff] }
 0x129   : > { %3934 = vmatprep.subr.bf16.mxu0 %v10540_v5  ;;  %4007 = vmatprep.subr.bf16.mxu1 %v10542_v8  ;;  %v568_v5 = vld [vmem:[%s13803_s11 + $0xac0] sm:$0xff]  ;;  %v10734_v8 = vcombine.high %v521_v15, %v537_v57 }
 0x12a   : > { %3834 = vmatprep.mubr.bf16.mxu0 %v14116_v3  ;;  %3907 = vmatprep.mubr.bf16.mxu1 %v14116_v3  ;;  %v10603_v3 = vcombine.low %v392_v13, %v408_v16  ;;  %v10764_v13 = vcombine.high %v552_v4, %v568_v5  ;;  %v584_v16 = vld [vmem:[%s13803_s11 + $0xb40] sm:$0xff]  ;;  %v10763_v23 = vcombine.low %v552_v4, %v568_v5  ;;  %v681_v4 = vld [vmem:[%s13803_s11 + $0xe48] sm:$0xff] }
 0x12c   : > { %3935 = vmatpush1.bf16.msra.mxu0 %v10539_v48  ;;  %4008 = vmatpush1.bf16.msra.mxu1 %v10541_v10  ;;  %v10731_v10 = vcombine.low %v520_v54, %v536_v55 }
 0x12d   : > { %3936 = vmatprep.subr.bf16.mxu0 %v10572_v12  ;;  %4009 = vmatprep.subr.bf16.mxu1 %v10574_v17  ;;  %v10733_v12 = vcombine.low %v521_v15, %v537_v57  ;;  %v585_v17 = vld [vmem:[%s13803_s11 + $0xb48] sm:$0xff]  ;;  %v10829_v57 = vcombine.low %v617_v28, %v633_v35 }
 0x12f   : > { %3835 = vmatmul.mubr.bf16.gmra.mrb[56].mxu0 %v14128_v14  ;;  %3908 = vmatmul.mubr.bf16.gmra.mrb[56].mxu1 %v14128_v14 }
 0x130   : > { %3937 = vmatpush1.bf16.msra.mxu0 %v10571_v59  ;;  %4010 = vmatpush1.bf16.msra.mxu1 %v10573_v19  ;;  %v601_v59 = vld [vmem:[%s13803_s11 + $0xbc8] sm:$0xff] }
 0x131   : > { %3938 = vmatprep.subr.bf16.mxu0 %v10604_v20  ;;  %4011 = vmatprep.subr.bf16.mxu1 %v10606_v24 }
 0x132   : > { %v14225_v0 = vpop.f32.mrb[0].mxu0  ;;  %3844 = vmatprep.mubr.bf16.mxu0 %v14138_v21  ;;  %v14229_v14 = vpop.f32.mrb[0].mxu1  ;;  %3917 = vmatprep.mubr.bf16.mxu1 %v14138_v21  ;;  %v489_v21 = vld [vmem:[%s13803_s11 + $0x848] sm:$0xff] }
 0x133   : > { %v14231_v36 = vpop.f32.mrb[1].mxu0  ;;  %v14234_v37 = vpop.f32.mrb[1].mxu1  ;;  %v10702_v56 = vcombine.high %v489_v21, %v505_v50  ;;  %v10701_v1 = vcombine.low %v489_v21, %v505_v50  ;;  %v664_v21 = vld [vmem:[%s13803_s11 + $0xdc0] sm:$0xff]  ;;  %v10830_v50 = vcombine.high %v617_v28, %v633_v35  ;;  %v250_v28 = vld [vmem:[%s13803_s11 + $0xd0] sm:$0xff] }
 0x134   : > { %v14236_v38 = vpop.f32.mrb[2].mxu0  ;;  %3939 = vmatpush1.bf16.msra.mxu0 %v10603_v3  ;;  %v14238_v40 = vpop.f32.mrb[2].mxu1  ;;  %4012 = vmatpush1.bf16.msra.mxu1 %v10605_v26  ;;  %v10796_v3 = vcombine.high %v584_v16, %v600_v47  ;;  %v616_v26 = vld [vmem:[%s13803_s11 + $0xc40] sm:$0xff] }
 0x135   : > { %v14240_v42 = vpop.f32.mrb[3].mxu0  ;;  %3940 = vmatprep.subr.bf16.mxu0 %v10636_v27  ;;  %v14245_v11 = vpop.f32.mrb[3].mxu1  ;;  %4013 = vmatprep.subr.bf16.mxu1 %v10638_v34  ;;  %v632_v27 = vld [vmem:[%s13803_s11 + $0xcc0] sm:$0xff]  ;;  %v10798_v34 = vcombine.high %v585_v17, %v601_v59 }
 0x136   : > { %17413 = vst [vmem:[#allocation5_spill] sm:$0xff] %v14245_v11  ;;  %v10828_v45 = vcombine.high %v616_v26, %v632_v27  ;;  %v10827_v55 = vcombine.low %v616_v26, %v632_v27  ;;  %v234_v27 = vld [vmem:[%s13803_s11 + $0x50] sm:$0xff] }
 0x137   : > { %3845 = vmatmul.mubr.bf16.gmra.mrb[60].mxu0 %v14150_v2  ;;  %3918 = vmatmul.mubr.bf16.gmra.mrb[60].mxu1 %v14150_v2  ;;  %v14259_v2 = vld [vmem:[%s17305_s1 + $0x4] ss:$8 sps:$4 sm:$0xff]  }
 0x138   : > { %3941 = vmatpush1.bf16.msra.mxu0 %v10635_v39  ;;  %4014 = vmatpush1.bf16.msra.mxu1 %v10637_v43  ;;  %v10795_v43 = vcombine.low %v584_v16, %v600_v47  ;;  %v712_v47 = vld [vmem:[%s13803_s11 + $0xf40] sm:$0xff] }
 0x139   : > { %3942 = vmatprep.subr.bf16.mxu0 %v10668_v44  ;;  %4015 = vmatprep.subr.bf16.mxu1 %v10670_v49  ;;  %v10797_v44 = vcombine.low %v585_v17, %v601_v59  ;;  %v649_v49 = vld [vmem:[%s13803_s11 + $0xd48] sm:$0xff]  ;;  %v728_v17 = vld [vmem:[%s13803_s11 + $0xfc0] sm:$0xff]  ;;  %v10894_v59 = vcombine.high %v681_v4, %v697_v9 }
 0x13a   : > { %v14254_v58 = vpop.f32.mrb[4].mxu0  ;;  %3960 = vmatprep.mubr.bf16.mxu0 %v14259_v2  ;;  %v14264_v61 = vpop.f32.mrb[4].mxu1  ;;  %4033 = vmatprep.mubr.bf16.mxu1 %v14259_v2  ;;  %v10924_v26 = vcombine.high %v712_v47, %v728_v17 }
 0x13b   : > { %17414 = vst [vmem:[#allocation6_spill] sm:$0xff] %v14254_v58  ;;  %v14262_v60 = vpop.f32.mrb[5].mxu0  ;;  %v14269_v63 = vpop.f32.mrb[5].mxu1 }
 0x13c   : > { %3943 = vmatpush1.bf16.msra.mxu0 %v10667_v52  ;;  %v14267_v29 = vpop.f32.mrb[6].mxu0  ;;  %4016 = vmatpush1.bf16.msra.mxu1 %v10669_v32  ;;  %v14276_v33 = vpop.f32.mrb[6].mxu1  ;;  %v665_v52 = vld [vmem:[%s13803_s11 + $0xdc8] sm:$0xff] }
 0x13d   : > { %3944 = vmatprep.subr.bf16.mxu0 %v10700_v53  ;;  %v14274_v7 = vpop.f32.mrb[7].mxu0  ;;  %17416 = vst [vmem:[#allocation8_spill] sm:$0xff] %v14276_v33  ;;  %4017 = vmatprep.subr.bf16.mxu1 %v10702_v56  ;;  %v14279_v48 = vpop.f32.mrb[7].mxu1  ;;  %v620_v33 = vld [vmem:[%s13803_s11 + $0xc60] sm:$0xff] }
 0x13e   : > { %17415 = vst [vmem:[#allocation7_spill] sm:$0xff] %v14274_v7  ;;  %17417 = vst [vmem:[#allocation9_spill] sm:$0xff] %v14279_v48  ;;  %v604_v7 = vld [vmem:[%s13803_s11 + $0xbe0] sm:$0xff] }
 0x140   : > { %3945 = vmatpush1.bf16.msra.mxu0 %v10699_v62  ;;  %4018 = vmatpush1.bf16.msra.mxu1 %v10701_v1  ;;  %v10860_v62 = vcombine.high %v648_v46, %v664_v21  ;;  %v680_v1 = vld [vmem:[%s13803_s11 + $0xe40] sm:$0xff] }
 0x141   : > { %3946 = vmatprep.subr.bf16.mxu0 %v10732_v41  ;;  %4019 = vmatprep.subr.bf16.mxu1 %v10734_v8  ;;  %v696_v41 = vld [vmem:[%s13803_s11 + $0xec0] sm:$0xff]  ;;  %v10862_v8 = vcombine.high %v649_v49, %v665_v52 }
 0x142   : > { %v14285_v19 = vpop.f32.mrb[8].mxu0  ;;  %v14289_v22 = vpop.f32.mrb[8].mxu1  ;;  %v10892_v16 = vcombine.high %v680_v1, %v696_v41 }
 0x143   : > { %v14287_v20 = vpop.f32.mrb[9].mxu0  ;;  %v14293_v24 = vpop.f32.mrb[9].mxu1 }
 0x144   : > { %3947 = vmatpush1.bf16.msra.mxu0 %v10731_v10  ;;  %v14291_v51 = vpop.f32.mrb[10].mxu0  ;;  %17419 = vst [vmem:[#allocation11_spill] sm:$0xff] %v14293_v24  ;;  %4020 = vmatpush1.bf16.msra.mxu1 %v10733_v12  ;;  %v14300_v31 = vpop.f32.mrb[10].mxu1  ;;  %v10859_v12 = vcombine.low %v648_v46, %v664_v21  ;;  %v10448_v46 = vcombine.high %v234_v27, %v250_v28  ;;  %v266_v21 = vld [vmem:[%s13803_s11 + $0x150] sm:$0xff] }
 0x145   : > { %17418 = vst [vmem:[#allocation10_spill] sm:$0xff] %v14291_v51  ;;  %3948 = vmatprep.subr.bf16.mxu0 %v10764_v13  ;;  %v14298_v30 = vpop.f32.mrb[11].mxu0  ;;  %17421 = vst [vmem:[#allocation13_spill] sm:$0xff] %v14300_v31  ;;  %4021 = vmatprep.subr.bf16.mxu1 %v10766_v18  ;;  %v14303_v39 = vpop.f32.mrb[11].mxu1  ;;  %v10861_v13 = vcombine.low %v649_v49, %v665_v52  ;;  %v713_v18 = vld [vmem:[%s13803_s11 + $0xf48] sm:$0xff]  ;;  %v282_v49 = vld [vmem:[%s13803_s11 + $0x1d0] sm:$0xff] }
 0x146   : > { %17420 = vst [vmem:[#allocation12_spill] sm:$0xff] %v14298_v30  ;;  %17422 = vst [vmem:[#allocation14_spill] sm:$0xff] %v14303_v39  ;;  %v652_v51 = vld [vmem:[%s13803_s11 + $0xd60] sm:$0xff] }
 0x147   : > { %v700_v30 = vld [vmem:[%s13803_s11 + $0xee0] sm:$0xff] }
 0x148   : > { %3949 = vmatpush1.bf16.msra.mxu0 %v10763_v23  ;;  %4022 = vmatpush1.bf16.msra.mxu1 %v10765_v25  ;;  %v729_v23 = vld [vmem:[%s13803_s11 + $0xfc8] sm:$0xff]  ;;  %v10891_v25 = vcombine.low %v680_v1, %v696_v41  ;;  %v10480_v1 = vcombine.high %v266_v21, %v282_v49  ;;  %v298_v41 = vld [vmem:[%s13803_s11 + $0x250] sm:$0xff] }
 0x149   : > { %3950 = vmatprep.subr.bf16.mxu0 %v10796_v3  ;;  %4023 = vmatprep.subr.bf16.mxu1 %v10798_v34  ;;  %v10893_v3 = vcombine.low %v681_v4, %v697_v9  ;;  %v235_v34 = vld [vmem:[%s13803_s11 + $0x58] sm:$0xff]  ;;  %v10926_v35 = vcombine.high %v713_v18, %v729_v23  ;;  %v314_v4 = vld [vmem:[%s13803_s11 + $0x2d0] sm:$0xff] }
 0x14a   : > { %v14309_v32 = vpop.f32.mrb[12].mxu0  ;;  %v14313_v54 = vpop.f32.mrb[12].mxu1 }
 0x14b   : > { %17423 = vst [vmem:[#allocation15_spill] sm:$0xff] %v14309_v32  ;;  %v14311_v53 = vpop.f32.mrb[13].mxu0  ;;  %17425 = vst [vmem:[#allocation17_spill] sm:$0xff] %v14313_v54  ;;  %v14317_v56 = vpop.f32.mrb[13].mxu1  ;;  %v14915_v32 = vld [vmem:[%s17305_s1 + $0x30] ss:$8 sps:$4 sm:$0xff]  }
 0x14c   : > { %17424 = vst [vmem:[#allocation16_spill] sm:$0xff] %v14311_v53  ;;  %3951 = vmatpush1.bf16.msra.mxu0 %v10795_v43  ;;  %v14315_v15 = vpop.f32.mrb[14].mxu0  ;;  %17427 = vst [vmem:[#allocation19_spill] sm:$0xff] %v14317_v56  ;;  %4024 = vmatpush1.bf16.msra.mxu1 %v10797_v44  ;;  %v14324_v6 = vpop.f32.mrb[14].mxu1  ;;  %v251_v43 = vld [vmem:[%s13803_s11 + $0xd8] sm:$0xff]  ;;  %v10923_v44 = vcombine.low %v712_v47, %v728_v17  ;;  %v10512_v17 = vcombine.high %v298_v41, %v314_v4  ;;  %v526_v54 = vld [vmem:[%s13803_s11 + $0x970] sm:$0xff] }
 0x14d   : > { %17426 = vst [vmem:[#allocation18_spill] sm:$0xff] %v14315_v15  ;;  %3952 = vmatprep.subr.bf16.mxu0 %v10828_v45  ;;  %v14322_v5 = vpop.f32.mrb[15].mxu0  ;;  %17429 = vst [vmem:[#allocation21_spill] sm:$0xff] %v14324_v6  ;;  %4025 = vmatprep.subr.bf16.mxu1 %v10830_v50  ;;  %v14327_v10 = vpop.f32.mrb[15].mxu1  ;;  %v10925_v45 = vcombine.low %v713_v18, %v729_v23  ;;  %v267_v50 = vld [vmem:[%s13803_s11 + $0x158] sm:$0xff]  ;;  %v10450_v52 = vcombine.high %v235_v34, %v251_v43  ;;  %v330_v18 = vld [vmem:[%s13803_s11 + $0x350] sm:$0xff] }
 0x14e   : > { %17428 = vst [vmem:[#allocation20_spill] sm:$0xff] %v14322_v5  ;;  %17430 = vst [vmem:[#allocation22_spill] sm:$0xff] %v14327_v10  ;;  %v331_v23 = vld [vmem:[%s13803_s11 + $0x358] sm:$0xff]  ;;  %v732_v15 = vld [vmem:[%s13803_s11 + $0xfe0] sm:$0xff] }
 0x14f   : > { %v733_v5 = vld [vmem:[%s13803_s11 + $0xfe8] sm:$0xff] }
 0x150   : > { %3953 = vmatpush1.bf16.msra.mxu0 %v10827_v55  ;;  %4026 = vmatpush1.bf16.msra.mxu1 %v10829_v57  ;;  %v283_v55 = vld [vmem:[%s13803_s11 + $0x1d8] sm:$0xff]  ;;  %v10447_v57 = vcombine.low %v234_v27, %v250_v28  ;;  %v10511_v27 = vcombine.low %v298_v41, %v314_v4  ;;  %v14381_v4 = vld [vmem:[%s17305_s1 + $0x24] ss:$8 sps:$4 sm:$0xff]   ;;  %v14852_v6 = vld [vmem:[%s17305_s1 + $0x20] ss:$8 sps:$4 sm:$0xff]  }
 0x151   : > { %3954 = vmatprep.subr.bf16.mxu0 %v10860_v62  ;;  %4027 = vmatprep.subr.bf16.mxu1 %v10862_v8  ;;  %v10449_v62 = vcombine.low %v235_v34, %v251_v43  ;;  %v299_v8 = vld [vmem:[%s13803_s11 + $0x258] sm:$0xff]  ;;  %v10482_v9 = vcombine.high %v267_v50, %v283_v55  ;;  %v10481_v47 = vcombine.low %v267_v50, %v283_v55  ;;  %v378_v43 = vld [vmem:[%s13803_s11 + $0x4d0] sm:$0xff] }
 0x152   : > { %v394_v55 = vld [vmem:[%s13803_s11 + $0x550] sm:$0xff]  ;;  %v411_v41 = vld [vmem:[%s13803_s11 + $0x5d8] sm:$0xff] }
 0x154   : > { %3955 = vmatpush1.bf16.msra.mxu0 %v10859_v12  ;;  %4028 = vmatpush1.bf16.msra.mxu1 %v10861_v13  ;;  %v315_v12 = vld [vmem:[%s13803_s11 + $0x2d8] sm:$0xff]  ;;  %v14348_v13 = vld [vmem:[%s17305_s1] ss:$8 sps:$4 sm:$0xff]  }
 0x155   : > { %3956 = vmatprep.subr.bf16.mxu0 %v10892_v16  ;;  %4029 = vmatprep.subr.bf16.mxu1 %v10894_v59  ;;  %v10479_v16 = vcombine.low %v266_v21, %v282_v49  ;;  %v346_v59 = vld [vmem:[%s13803_s11 + $0x3d0] sm:$0xff]  ;;  %v10513_v28 = vcombine.low %v299_v8, %v315_v12 }
 0x156   : > { %v10544_v34 = vcombine.high %v330_v18, %v346_v59  ;;  %v14370_v21 = vld [vmem:[%s17305_s1 + $0x10] ss:$8 sps:$4 sm:$0xff]   ;;  %v10543_v49 = vcombine.low %v330_v18, %v346_v59 }
 0x157   : > { %v443_v59 = vld [vmem:[%s13803_s11 + $0x6d8] sm:$0xff] }
 0x158   : > { %3957 = vmatpush1.bf16.msra.mxu0 %v10891_v25  ;;  %4030 = vmatpush1.bf16.msra.mxu1 %v10893_v3  ;;  %v10514_v25 = vcombine.high %v299_v8, %v315_v12  ;;  %v347_v3 = vld [vmem:[%s13803_s11 + $0x3d8] sm:$0xff] }
 0x159   : > { %3958 = vmatprep.subr.bf16.mxu0 %v10924_v26  ;;  %4031 = vmatprep.subr.bf16.mxu1 %v10926_v35  ;;  %v14359_v26 = vld [vmem:[%s17305_s1 + $0x14] ss:$8 sps:$4 sm:$0xff]   ;;  %v10545_v50 = vcombine.low %v331_v23, %v347_v3 }
 0x15a   : > { %v362_v35 = vld [vmem:[%s13803_s11 + $0x450] sm:$0xff] }
 0x15b   : > { %v10575_v8 = vcombine.low %v362_v35, %v378_v43 }
 0x15c   : > { %3959 = vmatpush1.bf16.msra.mxu0 %v10923_v44  ;;  %4032 = vmatpush1.bf16.msra.mxu1 %v10925_v45  ;;  %v363_v44 = vld [vmem:[%s13803_s11 + $0x458] sm:$0xff]  ;;  %v10546_v45 = vcombine.high %v331_v23, %v347_v3  ;;  %v14392_v23 = vld [vmem:[%s17305_s1 + $0x20] ss:$8 sps:$4 sm:$0xff]  }
 0x15d   : > { %4074 = vmatprep.subr.bf16.mxu0 %v10448_v46  ;;  %4147 = vmatprep.subr.bf16.mxu1 %v10450_v52  ;;  %v379_v46 = vld [vmem:[%s13803_s11 + $0x4d8] sm:$0xff]  ;;  %v10576_v52 = vcombine.high %v362_v35, %v378_v43 }
 0x15e   : > { %v459_v35 = vld [vmem:[%s13803_s11 + $0x758] sm:$0xff] }
 0x15f   : > { %3961 = vmatmul.mubr.bf16.vlgmr.msra.gmra.mrb[64].mxu0 %v14348_v13  ;;  %4034 = vmatmul.mubr.bf16.vlgmr.msra.gmra.mrb[64].mxu1 %v14348_v13 }
 0x160   : > { %4075 = vmatpush1.bf16.msra.mxu0 %v10447_v57  ;;  %4148 = vmatpush1.bf16.msra.mxu1 %v10449_v62  ;;  %v410_v57 = vld [vmem:[%s13803_s11 + $0x5d0] sm:$0xff]  ;;  %v395_v62 = vld [vmem:[%s13803_s11 + $0x558] sm:$0xff] }
 0x161   : > { %4076 = vmatprep.subr.bf16.mxu0 %v10480_v1  ;;  %4149 = vmatprep.subr.bf16.mxu1 %v10482_v9  ;;  %v10578_v1 = vcombine.high %v363_v44, %v379_v46  ;;  %v10577_v9 = vcombine.low %v363_v44, %v379_v46  ;;  %v10608_v12 = vcombine.high %v394_v55, %v410_v57  ;;  %v14405_v46 = vld [vmem:[%s17305_s1 + $0x34] ss:$8 sps:$4 sm:$0xff]  }
 0x162   : > { %3970 = vmatprep.mubr.bf16.mxu0 %v14359_v26  ;;  %4043 = vmatprep.mubr.bf16.mxu1 %v14359_v26  ;;  %v10610_v18 = vcombine.high %v395_v62, %v411_v41  ;;  %v10609_v3 = vcombine.low %v395_v62, %v411_v41 }
 0x164   : > { %4077 = vmatpush1.bf16.msra.mxu0 %v10479_v16  ;;  %4150 = vmatpush1.bf16.msra.mxu1 %v10481_v47  ;;  %v426_v16 = vld [vmem:[%s13803_s11 + $0x650] sm:$0xff] }
 0x165   : > { %4078 = vmatprep.subr.bf16.mxu0 %v10512_v17  ;;  %4151 = vmatprep.subr.bf16.mxu1 %v10514_v25  ;;  %v442_v47 = vld [vmem:[%s13803_s11 + $0x6d0] sm:$0xff]  ;;  %v427_v17 = vld [vmem:[%s13803_s11 + $0x658] sm:$0xff]  ;;  %v10607_v25 = vcombine.low %v394_v55, %v410_v57 }
 0x166   : > { %v10642_v44 = vcombine.high %v427_v17, %v443_v59  ;;  %v10639_v57 = vcombine.low %v426_v16, %v442_v47  ;;  %v10641_v41 = vcombine.low %v427_v17, %v443_v59 }
 0x167   : > { %3971 = vmatmul.mubr.bf16.gmra.mrb[68].mxu0 %v14370_v21  ;;  %4044 = vmatmul.mubr.bf16.gmra.mrb[68].mxu1 %v14370_v21 }
 0x168   : > { %4079 = vmatpush1.bf16.msra.mxu0 %v10511_v27  ;;  %4152 = vmatpush1.bf16.msra.mxu1 %v10513_v28  ;;  %v10640_v27 = vcombine.high %v426_v16, %v442_v47  ;;  %v458_v28 = vld [vmem:[%s13803_s11 + $0x750] sm:$0xff]  ;;  %v507_v16 = vld [vmem:[%s13803_s11 + $0x8d8] sm:$0xff] }
 0x169   : > { %4080 = vmatprep.subr.bf16.mxu0 %v10544_v34  ;;  %4153 = vmatprep.subr.bf16.mxu1 %v10546_v45  ;;  %v474_v34 = vld [vmem:[%s13803_s11 + $0x7d0] sm:$0xff]  ;;  %v475_v45 = vld [vmem:[%s13803_s11 + $0x7d8] sm:$0xff] }
 0x16a   : > { %3980 = vmatprep.mubr.bf16.mxu0 %v14381_v4  ;;  %4053 = vmatprep.mubr.bf16.mxu1 %v14381_v4  ;;  %v14430_v47 = vld [vmem:[%s17305_s1 + $0x30] ss:$8 sps:$4 sm:$0xff]   ;;  %v10671_v17 = vcombine.low %v458_v28, %v474_v34  ;;  %v10673_v59 = vcombine.low %v459_v35, %v475_v45 }
 0x16c   : > { %4081 = vmatpush1.bf16.msra.mxu0 %v10543_v49  ;;  %4154 = vmatpush1.bf16.msra.mxu1 %v10545_v50 }
 0x16d   : > { %4082 = vmatprep.subr.bf16.mxu0 %v10576_v52  ;;  %4155 = vmatprep.subr.bf16.mxu1 %v10578_v1 }
 0x16f   : > { %3981 = vmatmul.mubr.bf16.gmra.mrb[72].mxu0 %v14392_v23  ;;  %4054 = vmatmul.mubr.bf16.gmra.mrb[72].mxu1 %v14392_v23 }
 0x170   : > { %4083 = vmatpush1.bf16.msra.mxu0 %v10575_v8  ;;  %4156 = vmatpush1.bf16.msra.mxu1 %v10577_v9  ;;  %v10672_v8 = vcombine.high %v458_v28, %v474_v34  ;;  %v490_v9 = vld [vmem:[%s13803_s11 + $0x850] sm:$0xff] }
 0x171   : > { %4084 = vmatprep.subr.bf16.mxu0 %v10608_v12  ;;  %4157 = vmatprep.subr.bf16.mxu1 %v10610_v18  ;;  %v506_v12 = vld [vmem:[%s13803_s11 + $0x8d0] sm:$0xff]  ;;  %v491_v18 = vld [vmem:[%s13803_s11 + $0x858] sm:$0xff] }
 0x172   : > { %v14399_v43 = vpop.f32.mrb[16].mxu0  ;;  %3990 = vmatprep.mubr.bf16.mxu0 %v14405_v46  ;;  %v14408_v49 = vpop.f32.mrb[16].mxu1  ;;  %4063 = vmatprep.mubr.bf16.mxu1 %v14405_v46 }
 0x173   : > { %17431 = vst [vmem:[#allocation23_spill] sm:$0xff] %v14399_v43  ;;  %17432 = vst [vmem:[#allocation24_spill] sm:$0xff] %v14408_v49  ;;  %v14410_v50 = vpop.f32.mrb[17].mxu0  ;;  %v14413_v52 = vpop.f32.mrb[17].mxu1  ;;  %v510_v43 = vld [vmem:[%s13803_s11 + $0x8f0] sm:$0xff]  ;;  %v13143_v49 = vld [vmem:[%s17307_s3 + $0x340] sm:$0xff]  }
 0x174   : > { %17433 = vst [vmem:[#allocation25_spill] sm:$0xff] %v14410_v50  ;;  %17434 = vst [vmem:[#allocation26_spill] sm:$0xff] %v14413_v52  ;;  %v14415_v55 = vpop.f32.mrb[18].mxu0  ;;  %4085 = vmatpush1.bf16.msra.mxu0 %v10607_v25  ;;  %v14417_v62 = vpop.f32.mrb[18].mxu1  ;;  %4158 = vmatpush1.bf16.msra.mxu1 %v10609_v3  ;;  %v10704_v25 = vcombine.high %v490_v9, %v506_v12  ;;  %v522_v3 = vld [vmem:[%s13803_s11 + $0x950] sm:$0xff] }
 0x175   : > { %17435 = vst [vmem:[#allocation27_spill] sm:$0xff] %v14415_v55  ;;  %17436 = vst [vmem:[#allocation28_spill] sm:$0xff] %v14417_v62  ;;  %v14419_v1 = vpop.f32.mrb[19].mxu0  ;;  %4086 = vmatprep.subr.bf16.mxu0 %v10640_v27  ;;  %v14424_v52 = vpop.f32.mrb[19].mxu1  ;;  %4159 = vmatprep.subr.bf16.mxu1 %v10642_v44  ;;  %v10674_v55 = vcombine.high %v459_v35, %v475_v45  ;;  %v538_v27 = vld [vmem:[%s13803_s11 + $0x9d0] sm:$0xff]  ;;  %v523_v44 = vld [vmem:[%s13803_s11 + $0x958] sm:$0xff]  ;;  %v10703_v35 = vcombine.low %v490_v9, %v506_v12 }
 0x176   : > { %17437 = vst [vmem:[#allocation29_spill] sm:$0xff] %v14419_v1  ;;  %17438 = vst [vmem:[#allocation30_spill] sm:$0xff] %v14424_v52  ;;  %v10706_v52 = vcombine.high %v491_v18, %v507_v16  ;;  %v539_v1 = vld [vmem:[%s13803_s11 + $0x9d8] sm:$0xff] }
 0x177   : > { %3991 = vmatmul.mubr.bf16.gmra.mrb[76].mxu0 %v14430_v47  ;;  %4064 = vmatmul.mubr.bf16.gmra.mrb[76].mxu1 %v14430_v47  ;;  %v10738_v9 = vcombine.high %v523_v44, %v539_v1  ;;  %v571_v12 = vld [vmem:[%s13803_s11 + $0xad8] sm:$0xff] }
 0x178   : > { %4087 = vmatpush1.bf16.msra.mxu0 %v10639_v57  ;;  %4160 = vmatpush1.bf16.msra.mxu1 %v10641_v41  ;;  %v10705_v57 = vcombine.low %v491_v18, %v507_v16  ;;  %v10736_v41 = vcombine.high %v522_v3, %v538_v27  ;;  %v10737_v18 = vcombine.low %v523_v44, %v539_v1 }
 0x179   : > { %4088 = vmatprep.subr.bf16.mxu0 %v10672_v8  ;;  %4161 = vmatprep.subr.bf16.mxu1 %v10674_v55  ;;  %v554_v8 = vld [vmem:[%s13803_s11 + $0xa50] sm:$0xff] }
 0x17a   : > { %v14438_v62 = vpop.f32.mrb[20].mxu0  ;;  %4106 = vmatprep.mubr.bf16.mxu0 %v14259_v2  ;;  %v14443_v34 = vpop.f32.mrb[20].mxu1  ;;  %4179 = vmatprep.mubr.bf16.mxu1 %v14259_v2 }
 0x17b   : > { %17439 = vst [vmem:[#allocation31_spill] sm:$0xff] %v14438_v62  ;;  %v14441_v28 = vpop.f32.mrb[21].mxu0  ;;  %17441 = vst [vmem:[#allocation33_spill] sm:$0xff] %v14443_v34  ;;  %v14448_v55 = vpop.f32.mrb[21].mxu1  ;;  %v570_v62 = vld [vmem:[%s13803_s11 + $0xad0] sm:$0xff] }
 0x17c   : > { %17440 = vst [vmem:[#allocation32_spill] sm:$0xff] %v14441_v28  ;;  %4089 = vmatpush1.bf16.msra.mxu0 %v10671_v17  ;;  %v14446_v45 = vpop.f32.mrb[22].mxu0  ;;  %17443 = vst [vmem:[#allocation35_spill] sm:$0xff] %v14448_v55  ;;  %4162 = vmatpush1.bf16.msra.mxu1 %v10673_v59  ;;  %v555_v28 = vld [vmem:[%s13803_s11 + $0xa58] sm:$0xff]  ;;  %v14455_v2 = vpop.f32.mrb[22].mxu1  ;;  %v10735_v59 = vcombine.low %v522_v3, %v538_v27  ;;  %v10768_v16 = vcombine.high %v554_v8, %v570_v62 }
 0x17d   : > { %17442 = vst [vmem:[#allocation34_spill] sm:$0xff] %v14446_v45  ;;  %4090 = vmatprep.subr.bf16.mxu0 %v10704_v25  ;;  %v14453_v34 = vpop.f32.mrb[23].mxu0  ;;  %17445 = vst [vmem:[#allocation37_spill] sm:$0xff] %v14455_v2  ;;  %4163 = vmatprep.subr.bf16.mxu1 %v10706_v52  ;;  %v14458_v17 = vpop.f32.mrb[23].mxu1  ;;  %v586_v25 = vld [vmem:[%s13803_s11 + $0xb50] sm:$0xff]  ;;  %v587_v55 = vld [vmem:[%s13803_s11 + $0xb58] sm:$0xff]  ;;  %v10767_v3 = vcombine.low %v554_v8, %v570_v62  ;;  %v10769_v44 = vcombine.low %v555_v28, %v571_v12 }
 0x17e   : > { %17444 = vst [vmem:[#allocation36_spill] sm:$0xff] %v14453_v34  ;;  %17446 = vst [vmem:[#allocation38_spill] sm:$0xff] %v14458_v17  ;;  %v602_v45 = vld [vmem:[%s13803_s11 + $0xbd0] sm:$0xff]  ;;  %v10770_v34 = vcombine.high %v555_v28, %v571_v12  ;;  %v603_v2 = vld [vmem:[%s13803_s11 + $0xbd8] sm:$0xff] }
 0x17f   : > { %v10802_v62 = vcombine.high %v587_v55, %v603_v2  ;;  %v635_v8 = vld [vmem:[%s13803_s11 + $0xcd8] sm:$0xff]  ;;  %v10801_v28 = vcombine.low %v587_v55, %v603_v2 }
 0x180   : > { %4091 = vmatpush1.bf16.msra.mxu0 %v10703_v35  ;;  %4164 = vmatpush1.bf16.msra.mxu1 %v10705_v57  ;;  %v10800_v35 = vcombine.high %v586_v25, %v602_v45  ;;  %v618_v57 = vld [vmem:[%s13803_s11 + $0xc50] sm:$0xff] }
 0x181   : > { %4092 = vmatprep.subr.bf16.mxu0 %v10736_v41  ;;  %4165 = vmatprep.subr.bf16.mxu1 %v10738_v9  ;;  %v634_v41 = vld [vmem:[%s13803_s11 + $0xcd0] sm:$0xff]  ;;  %v619_v9 = vld [vmem:[%s13803_s11 + $0xc58] sm:$0xff] }
 0x182   : > { %v14464_v52 = vpop.f32.mrb[24].mxu0  ;;  %v14468_v17 = vpop.f32.mrb[24].mxu1  ;;  %v10832_v12 = vcombine.high %v618_v57, %v634_v41 }
 0x183   : > { %17447 = vst [vmem:[#allocation39_spill] sm:$0xff] %v14464_v52  ;;  %v14466_v50 = vpop.f32.mrb[25].mxu0  ;;  %17449 = vst [vmem:[#allocation41_spill] sm:$0xff] %v14468_v17  ;;  %v14472_v27 = vpop.f32.mrb[25].mxu1 }
 0x184   : > { %17448 = vst [vmem:[#allocation40_spill] sm:$0xff] %v14466_v50  ;;  %4093 = vmatpush1.bf16.msra.mxu0 %v10735_v59  ;;  %v14470_v1 = vpop.f32.mrb[26].mxu0  ;;  %17451 = vst [vmem:[#allocation43_spill] sm:$0xff] %v14472_v27  ;;  %4166 = vmatpush1.bf16.msra.mxu1 %v10737_v18  ;;  %v14479_v17 = vpop.f32.mrb[26].mxu1  ;;  %v10799_v18 = vcombine.low %v586_v25, %v602_v45  ;;  %v651_v27 = vld [vmem:[%s13803_s11 + $0xd58] sm:$0xff]  ;;  %v10831_v45 = vcombine.low %v618_v57, %v634_v41 }
 0x185   : > { %17450 = vst [vmem:[#allocation42_spill] sm:$0xff] %v14470_v1  ;;  %4094 = vmatprep.subr.bf16.mxu0 %v10768_v16  ;;  %v14477_v50 = vpop.f32.mrb[27].mxu0  ;;  %17453 = vst [vmem:[#allocation45_spill] sm:$0xff] %v14479_v17  ;;  %4167 = vmatprep.subr.bf16.mxu1 %v10770_v34  ;;  %v14482_v59 = vpop.f32.mrb[27].mxu1  ;;  %v650_v16 = vld [vmem:[%s13803_s11 + $0xd50] sm:$0xff]  ;;  %v667_v17 = vld [vmem:[%s13803_s11 + $0xdd8] sm:$0xff]  ;;  %v10833_v25 = vcombine.low %v619_v9, %v635_v8 }
 0x186   : > { %17452 = vst [vmem:[#allocation44_spill] sm:$0xff] %v14477_v50  ;;  %17454 = vst [vmem:[#allocation46_spill] sm:$0xff] %v14482_v59  ;;  %v666_v1 = vld [vmem:[%s13803_s11 + $0xdd0] sm:$0xff]  ;;  %v10834_v50 = vcombine.high %v619_v9, %v635_v8  ;;  %v10866_v57 = vcombine.high %v651_v27, %v667_v17  ;;  %v699_v41 = vld [vmem:[%s13803_s11 + $0xed8] sm:$0xff]  ;;  %v10865_v9 = vcombine.low %v651_v27, %v667_v17 }
 0x187   : > { %v252_v17 = vld [vmem:[%s13803_s11 + $0xe0] sm:$0xff]  ;;  %v237_v27 = vld [vmem:[%s13803_s11 + $0x68] sm:$0xff] }
 0x188   : > { %4095 = vmatpush1.bf16.msra.mxu0 %v10767_v3  ;;  %4168 = vmatpush1.bf16.msra.mxu1 %v10769_v44  ;;  %v10864_v3 = vcombine.high %v650_v16, %v666_v1  ;;  %v682_v44 = vld [vmem:[%s13803_s11 + $0xe50] sm:$0xff] }
 0x189   : > { %4096 = vmatprep.subr.bf16.mxu0 %v10800_v35  ;;  %4169 = vmatprep.subr.bf16.mxu1 %v10802_v62  ;;  %v698_v35 = vld [vmem:[%s13803_s11 + $0xed0] sm:$0xff]  ;;  %v683_v62 = vld [vmem:[%s13803_s11 + $0xe58] sm:$0xff] }
 0x18a   : > { %v14488_v34 = vpop.f32.mrb[28].mxu0  ;;  %v14492_v59 = vpop.f32.mrb[28].mxu1  ;;  %v10896_v8 = vcombine.high %v682_v44, %v698_v35 }
 0x18b   : > { %17455 = vst [vmem:[#allocation47_spill] sm:$0xff] %v14488_v34  ;;  %v14490_v52 = vpop.f32.mrb[29].mxu0  ;;  %17457 = vst [vmem:[#allocation49_spill] sm:$0xff] %v14492_v59  ;;  %v14496_v2 = vpop.f32.mrb[29].mxu1  ;;  %v316_v34 = vld [vmem:[%s13803_s11 + $0x2e0] sm:$0xff] }
 0x18c   : > { %17456 = vst [vmem:[#allocation48_spill] sm:$0xff] %v14490_v52  ;;  %4097 = vmatpush1.bf16.msra.mxu0 %v10799_v18  ;;  %v14494_v55 = vpop.f32.mrb[30].mxu0  ;;  %17459 = vst [vmem:[#allocation51_spill] sm:$0xff] %v14496_v2  ;;  %4170 = vmatpush1.bf16.msra.mxu1 %v10801_v28  ;;  %v14503_v59 = vpop.f32.mrb[30].mxu1  ;;  %v10863_v28 = vcombine.low %v650_v16, %v666_v1  ;;  %v10895_v2 = vcombine.low %v682_v44, %v698_v35 }
 0x18d   : > { %17458 = vst [vmem:[#allocation50_spill] sm:$0xff] %v14494_v55  ;;  %4098 = vmatprep.subr.bf16.mxu0 %v10832_v12  ;;  %v14501_v52 = vpop.f32.mrb[31].mxu0  ;;  %17461 = vst [vmem:[#allocation53_spill] sm:$0xff] %v14503_v59  ;;  %4171 = vmatprep.subr.bf16.mxu1 %v10834_v50  ;;  %v14506_v18 = vpop.f32.mrb[31].mxu1  ;;  %v714_v12 = vld [vmem:[%s13803_s11 + $0xf50] sm:$0xff]  ;;  %v10898_v59 = vcombine.high %v683_v62, %v699_v41  ;;  %v731_v50 = vld [vmem:[%s13803_s11 + $0xfd8] sm:$0xff]  ;;  %v10897_v1 = vcombine.low %v683_v62, %v699_v41 }
 0x18e   : > { %17460 = vst [vmem:[#allocation52_spill] sm:$0xff] %v14501_v52  ;;  %17462 = vst [vmem:[#allocation54_spill] sm:$0xff] %v14506_v18  ;;  %v730_v55 = vld [vmem:[%s13803_s11 + $0xfd0] sm:$0xff]  ;;  %v715_v52 = vld [vmem:[%s13803_s11 + $0xf58] sm:$0xff] }
 0x18f   : > { %v10928_v16 = vcombine.high %v714_v12, %v730_v55  ;;  %v10929_v44 = vcombine.low %v715_v52, %v731_v50  ;;  %v268_v62 = vld [vmem:[%s13803_s11 + $0x160] sm:$0xff] }
 0x190   : > { %4099 = vmatpush1.bf16.msra.mxu0 %v10831_v45  ;;  %4172 = vmatpush1.bf16.msra.mxu1 %v10833_v25  ;;  %v236_v45 = vld [vmem:[%s13803_s11 + $0x60] sm:$0xff]  ;;  %v10930_v25 = vcombine.high %v715_v52, %v731_v50 }
 0x191   : > { %4100 = vmatprep.subr.bf16.mxu0 %v10864_v3  ;;  %4173 = vmatprep.subr.bf16.mxu1 %v10866_v57  ;;  %v253_v3 = vld [vmem:[%s13803_s11 + $0xe8] sm:$0xff]  ;;  %v10927_v57 = vcombine.low %v714_v12, %v730_v55  ;;  %v10452_v35 = vcombine.high %v236_v45, %v252_v17  ;;  %v284_v41 = vld [vmem:[%s13803_s11 + $0x1e0] sm:$0xff] }
 0x192   : > { %v300_v18 = vld [vmem:[%s13803_s11 + $0x260] sm:$0xff]  ;;  %v10453_v55 = vcombine.low %v237_v27, %v253_v3  ;;  %v10484_v52 = vcombine.high %v268_v62, %v284_v41  ;;  %v317_v12 = vld [vmem:[%s13803_s11 + $0x2e8] sm:$0xff] }
 0x194   : > { %4101 = vmatpush1.bf16.msra.mxu0 %v10863_v28  ;;  %4174 = vmatpush1.bf16.msra.mxu1 %v10865_v9  ;;  %v269_v28 = vld [vmem:[%s13803_s11 + $0x168] sm:$0xff]  ;;  %v10454_v9 = vcombine.high %v237_v27, %v253_v3  ;;  %v10516_v27 = vcombine.high %v300_v18, %v316_v34 }
 0x195   : > { %4102 = vmatprep.subr.bf16.mxu0 %v10896_v8  ;;  %4175 = vmatprep.subr.bf16.mxu1 %v10898_v59  ;;  %v285_v8 = vld [vmem:[%s13803_s11 + $0x1e8] sm:$0xff]  ;;  %v10451_v59 = vcombine.low %v236_v45, %v252_v17  ;;  %v348_v45 = vld [vmem:[%s13803_s11 + $0x3e0] sm:$0xff] }
 0x196   : > { %v10486_v50 = vcombine.high %v269_v28, %v285_v8  ;;  %v10485_v17 = vcombine.low %v269_v28, %v285_v8  ;;  %v349_v3 = vld [vmem:[%s13803_s11 + $0x3e8] sm:$0xff] }
 0x197   : > { %v365_v28 = vld [vmem:[%s13803_s11 + $0x468] sm:$0xff] }
 0x198   : > { %4103 = vmatpush1.bf16.msra.mxu0 %v10895_v2  ;;  %4176 = vmatpush1.bf16.msra.mxu1 %v10897_v1  ;;  %v301_v2 = vld [vmem:[%s13803_s11 + $0x268] sm:$0xff]  ;;  %v10483_v1 = vcombine.low %v268_v62, %v284_v41 }
 0x199   : > { %4104 = vmatprep.subr.bf16.mxu0 %v10928_v16  ;;  %4177 = vmatprep.subr.bf16.mxu1 %v10930_v25  ;;  %v332_v16 = vld [vmem:[%s13803_s11 + $0x360] sm:$0xff]  ;;  %v333_v25 = vld [vmem:[%s13803_s11 + $0x368] sm:$0xff]  ;;  %v10517_v62 = vcombine.low %v301_v2, %v317_v12 }
 0x19a   : > { %v10548_v41 = vcombine.high %v332_v16, %v348_v45  ;;  %v10550_v8 = vcombine.high %v333_v25, %v349_v3 }
 0x19c   : > { %4105 = vmatpush1.bf16.msra.mxu0 %v10927_v57  ;;  %4178 = vmatpush1.bf16.msra.mxu1 %v10929_v44  ;;  %v10518_v57 = vcombine.high %v301_v2, %v317_v12  ;;  %v364_v44 = vld [vmem:[%s13803_s11 + $0x460] sm:$0xff]  ;;  %v413_v2 = vld [vmem:[%s13803_s11 + $0x5e8] sm:$0xff] }
 0x19d   : > { %4220 = vmatprep.subr.bf16.mxu0 %v10452_v35  ;;  %4293 = vmatprep.subr.bf16.mxu1 %v10454_v9  ;;  %v380_v35 = vld [vmem:[%s13803_s11 + $0x4e0] sm:$0xff]  ;;  %v381_v9 = vld [vmem:[%s13803_s11 + $0x4e8] sm:$0xff] }
 0x19e   : > { %v4705_v12 = vld [vmem:[%s17306_s2 + $0x8] sm:$0xff] }
 0x19f   : > { %4107 = vmatmul.mubr.bf16.vlgmr.msra.gmra.mrb[80].mxu0 %v14348_v13  ;;  %4180 = vmatmul.mubr.bf16.vlgmr.msra.gmra.mrb[80].mxu1 %v14348_v13  ;;  %v10515_v13 = vcombine.low %v300_v18, %v316_v34  ;;  %v10549_v34 = vcombine.low %v333_v25, %v349_v3  ;;  %v10580_v18 = vcombine.high %v364_v44, %v380_v35  ;;  %v429_v25 = vld [vmem:[%s13803_s11 + $0x668] sm:$0xff] }
 0x1a0   : > { %4221 = vmatpush1.bf16.msra.mxu0 %v10451_v59  ;;  %4294 = vmatpush1.bf16.msra.mxu1 %v10453_v55  ;;  %v396_v59 = vld [vmem:[%s13803_s11 + $0x560] sm:$0xff]  ;;  %v445_v3 = vld [vmem:[%s13803_s11 + $0x6e8] sm:$0xff] }
 0x1a1   : > { %4222 = vmatprep.subr.bf16.mxu0 %v10484_v52  ;;  %4295 = vmatprep.subr.bf16.mxu1 %v10486_v50  ;;  %v412_v55 = vld [vmem:[%s13803_s11 + $0x5e0] sm:$0xff]  ;;  %v397_v52 = vld [vmem:[%s13803_s11 + $0x568] sm:$0xff]  ;;  %v10582_v50 = vcombine.high %v365_v28, %v381_v9 }
 0x1a2   : > { %4116 = vmatprep.mubr.bf16.mxu0 %v14359_v26  ;;  %4189 = vmatprep.mubr.bf16.mxu1 %v14359_v26  ;;  %v10547_v26 = vcombine.low %v332_v16, %v348_v45  ;;  %v428_v16 = vld [vmem:[%s13803_s11 + $0x660] sm:$0xff] }
 0x1a3   : > { %v444_v45 = vld [vmem:[%s13803_s11 + $0x6e0] sm:$0xff] }
 0x1a4   : > { %4223 = vmatpush1.bf16.msra.mxu0 %v10483_v1  ;;  %4296 = vmatpush1.bf16.msra.mxu1 %v10485_v17  ;;  %v10579_v1 = vcombine.low %v364_v44, %v380_v35  ;;  %v10581_v17 = vcombine.low %v365_v28, %v381_v9  ;;  %v14556_v44 = vld [vmem:[%s13803_s11 + $0x7e0] sm:$0xff]  ;;  %v10613_v35 = vcombine.low %v397_v52, %v413_v2  ;;  %v14562_v9 = vld [vmem:[%s13803_s11 + $0x768] sm:$0xff] }
 0x1a5   : > { %4224 = vmatprep.subr.bf16.mxu0 %v10516_v27  ;;  %4297 = vmatprep.subr.bf16.mxu1 %v10518_v57  ;;  %v10612_v27 = vcombine.high %v396_v59, %v412_v55  ;;  %v10614_v57 = vcombine.high %v397_v52, %v413_v2  ;;  %v10646_v28 = vcombine.high %v429_v25, %v445_v3 }
 0x1a7   : > { %4117 = vmatmul.mubr.bf16.gmra.mrb[84].mxu0 %v14370_v21  ;;  %4190 = vmatmul.mubr.bf16.gmra.mrb[84].mxu1 %v14370_v21  ;;  %v13711_v21 = vmov 0  }
 0x1a8   : > { %4225 = vmatpush1.bf16.msra.mxu0 %v10515_v13  ;;  %4298 = vmatpush1.bf16.msra.mxu1 %v10517_v62  ;;  %v14553_v13 = vld [vmem:[%s13803_s11 + $0x760] sm:$0xff]  ;;  %v10644_v62 = vcombine.high %v428_v16, %v444_v45 }
 0x1a9   : > { %4226 = vmatprep.subr.bf16.mxu0 %v10548_v41  ;;  %4299 = vmatprep.subr.bf16.mxu1 %v10550_v8  ;;  %v4706_v8 = vld [vmem:[%s17306_s2 + $0x10] sm:$0xff] }
 0x1aa   : > { %4126 = vmatprep.mubr.bf16.mxu0 %v14381_v4  ;;  %4199 = vmatprep.mubr.bf16.mxu1 %v14381_v4  ;;  %v10611_v4 = vcombine.low %v396_v59, %v412_v55  ;;  %v10643_v59 = vcombine.low %v428_v16, %v444_v45  ;;  %v14572_v55 = vld [vmem:[%s13803_s11 + $0x7e8] sm:$0xff] }
 0x1ab   : > { %13097 = vset.pattern.permute.xlu0 %v13711_v21  ;;  %13098 = vset.pattern.permute.xlu1 %v13711_v21  ;;  %v14587_v21 = vld [vmem:[%s13803_s11 + $0x860] sm:$0xff]  ;;  %v10677_v16 = vcombine.low %v14562_v9, %v14572_v55 }
 0x1ac   : > { %4227 = vmatpush1.bf16.msra.mxu0 %v10547_v26  ;;  %4719 = vperm.xlu0 %13097, %v4705_v12  }
 0x1ad   : > { %4300 = vmatpush1.bf16.msra.mxu1 %v10549_v34  ;;  %4228 = vmatprep.subr.bf16.mxu0 %v10580_v18  ;;  %v4707_v34 = vld [vmem:[%s17306_s2 + $0x18] sm:$0xff] }
 0x1ae   : > { %4301 = vmatprep.subr.bf16.mxu1 %v10582_v50  ;;  %v10645_v50 = vcombine.low %v429_v25, %v445_v3  ;;  %v14603_v25 = vld [vmem:[%s13803_s11 + $0x868] sm:$0xff]  ;;  %v14626_v3 = vld [vmem:[%s13803_s11 + $0x9e0] sm:$0xff] }
 0x1af   : > { %4127 = vmatmul.mubr.bf16.gmra.mrb[88].mxu0 %v14392_v23  ;;  %4200 = vmatmul.mubr.bf16.gmra.mrb[88].mxu1 %v14392_v23 }
 0x1b0   : > { %4229 = vmatpush1.bf16.msra.mxu0 %v10579_v1  ;;  %4136 = vmatprep.mubr.bf16.mxu0 %v14405_v46  ;;  %v4704_v1 = vld [vmem:[%s17306_s2] sm:$0xff] }
 0x1b1   : > { %4302 = vmatpush1.bf16.msra.mxu1 %v10581_v17  ;;  %4230 = vmatprep.subr.bf16.mxu0 %v10612_v27  ;;  %v10676_v27 = vcombine.high %v14553_v13, %v14556_v44 }
 0x1b2   : > { %v14559_v41 = vpop.f32.mrb[32].mxu0  ;;  %4303 = vmatprep.subr.bf16.mxu1 %v10614_v57  ;;  %v14567_v26 = vpop.f32.mrb[32].mxu1  ;;  %4209 = vmatprep.mubr.bf16.mxu1 %v14405_v46  ;;  %v14590_v46 = vld [vmem:[%s13803_s11 + $0x8e0] sm:$0xff] }
 0x1b3   : > { %v14569_v23 = vpop.f32.mrb[33].mxu0  ;;  %v14582_v2 = vpop.f32.mrb[33].mxu1  ;;  %4729 = vperm.xlu0 %13097, %v4707_v34   ;;  %v4709_v34 = vld [vmem:[%s17306_s2 + $0x28] sm:$0xff]  ;;  %v14623_v57 = vld [vmem:[%s13803_s11 + $0x960] sm:$0xff]  ;;  %v10707_v18 = vcombine.low %v14587_v21, %v14590_v46 }
 0x1b4   : > { %v14584_v12 = vpop.f32.mrb[34].mxu0  ;;  %4231 = vmatpush1.bf16.msra.mxu0 %v10611_v4  ;;  %v14596_v45 = vpop.f32.mrb[34].mxu1  ;;  %4739 = vperm.xlu1 %13098, %v4709_v34   ;;  %v14637_v34 = vld [vmem:[%s13803_s11 + $0x968] sm:$0xff] }
 0x1b5   : > { %4304 = vmatpush1.bf16.msra.mxu1 %v10613_v35  ;;  %v14598_v17 = vpop.f32.mrb[35].mxu0  ;;  %4232 = vmatprep.subr.bf16.mxu0 %v10644_v62  ;;  %v14609_v4 = vpop.f32.mrb[35].mxu1  ;;  %v10678_v35 = vcombine.high %v14562_v9, %v14572_v55  ;;  %v509_v62 = vld [vmem:[%s13803_s11 + $0x8e8] sm:$0xff]  ;;  %v4708_v55 = vld [vmem:[%s17306_s2 + $0x20] sm:$0xff] }
 0x1b6   : > { %17463 = vst [vmem:[#allocation55_spill] sm:$0xff] %v14609_v4  ;;  %4305 = vmatprep.subr.bf16.mxu1 %v10646_v28  ;;  %v10675_v28 = vcombine.low %v14553_v13, %v14556_v44  ;;  %v14640_v13 = vld [vmem:[%s13803_s11 + $0x9e8] sm:$0xff] }
 0x1b7   : > { %4137 = vmatmul.mubr.bf16.gmra.mrb[92].mxu0 %v14430_v47  ;;  %4210 = vmatmul.mubr.bf16.gmra.mrb[92].mxu1 %v14430_v47  ;;  %v4711_v47 = vld [vmem:[%s17306_s2 + $0x38] sm:$0xff]  ;;  %v14651_v9 = vld [vmem:[%s17305_s1 + $0x4] ss:$8 sps:$4 sm:$0xff]  }
 0x1b8   : > { %4233 = vmatpush1.bf16.msra.mxu0 %v10643_v59  ;;  %v10708_v59 = vcombine.high %v14587_v21, %v14590_v46  ;;  %4252 = vmatprep.mubr.bf16.mxu0 %v14651_v9  ;;  %v10709_v21 = vcombine.low %v14603_v25, %v509_v62  ;;  %v556_v46 = vld [vmem:[%s13803_s11 + $0xa60] sm:$0xff]  ;;  %v573_v4 = vld [vmem:[%s13803_s11 + $0xae8] sm:$0xff] }
 0x1b9   : > { %4306 = vmatpush1.bf16.msra.mxu1 %v10645_v50  ;;  %4234 = vmatprep.subr.bf16.mxu0 %v10676_v27  ;;  %v10710_v50 = vcombine.high %v14603_v25, %v509_v62  ;;  %v10740_v25 = vcombine.high %v14623_v57, %v14626_v3  ;;  %v557_v62 = vld [vmem:[%s13803_s11 + $0xa68] sm:$0xff] }
 0x1ba   : > { %v14645_v44 = vpop.f32.mrb[36].mxu0  ;;  %4307 = vmatprep.subr.bf16.mxu1 %v10678_v35  ;;  %v14659_v52 = vpop.f32.mrb[36].mxu1  ;;  %4325 = vmatprep.mubr.bf16.mxu1 %v14651_v9  ;;  %v10773_v48 = vcombine.low %v557_v62, %v573_v4 }
 0x1bb   : > { %17464 = vst [vmem:[#allocation56_spill] sm:$0xff] %v14645_v44  ;;  %17465 = vst [vmem:[#allocation57_spill] sm:$0xff] %v14659_v52  ;;  %v14661_v35 = vpop.f32.mrb[37].mxu0  ;;  %4714 = vperm.xlu0 %13097, %v4704_v1   ;;  %v14673_v44 = vpop.f32.mrb[37].mxu1  ;;  %v572_v1 = vld [vmem:[%s13803_s11 + $0xae0] sm:$0xff]  ;;  %4749 = vperm.xlu1 %13098, %v4711_v47   ;;  %v10739_v47 = vcombine.low %v14623_v57, %v14626_v3 }
 0x1bc   : > { %v14675_v58 = vpop.f32.mrb[38].mxu0  ;;  %4235 = vmatpush1.bf16.msra.mxu0 %v10675_v28  ;;  %v14684_v52 = vpop.f32.mrb[38].mxu1  ;;  %v4710_v28 = vld [vmem:[%s17306_s2 + $0x30] sm:$0xff]  ;;  %v636_v3 = vld [vmem:[%s13803_s11 + $0xce0] sm:$0xff] }
 0x1bd   : > { %17466 = vst [vmem:[#allocation58_spill] sm:$0xff] %v14684_v52  ;;  %4308 = vmatpush1.bf16.msra.mxu1 %v10677_v16  ;;  %v14686_v27 = vpop.f32.mrb[39].mxu0  ;;  %4236 = vmatprep.subr.bf16.mxu0 %v10708_v59  ;;  %v14695_v11 = vpop.f32.mrb[39].mxu1  ;;  %v10742_v16 = vcombine.high %v14637_v34, %v14640_v13  ;;  %v10772_v52 = vcombine.high %v556_v46, %v572_v1  ;;  %v589_v59 = vld [vmem:[%s13803_s11 + $0xb68] sm:$0xff] }
 0x1be   : > { %17467 = vst [vmem:[#allocation59_spill] sm:$0xff] %v14686_v27  ;;  %17468 = vst [vmem:[#allocation60_spill] sm:$0xff] %v14695_v11  ;;  %4309 = vmatprep.subr.bf16.mxu1 %v10710_v50  ;;  %v588_v27 = vld [vmem:[%s13803_s11 + $0xb60] sm:$0xff]  ;;  %v10741_v50 = vcombine.low %v14637_v34, %v14640_v13  ;;  %v10774_v11 = vcombine.high %v557_v62, %v573_v4  ;;  %v621_v4 = vld [vmem:[%s13803_s11 + $0xc68] sm:$0xff]  ;;  %v10836_v62 = vcombine.high %v620_v33, %v636_v3 }
 0x1bf   : > { %4734 = vperm.xlu0 %13097, %v4708_v55   ;;  %4724 = vperm.xlu1 %13098, %v4706_v8  }
 0x1c0   : > { %4237 = vmatpush1.bf16.msra.mxu0 %v10707_v18  ;;  %v605_v18 = vld [vmem:[%s13803_s11 + $0xbe8] sm:$0xff] }
 0x1c1   : > { %4310 = vmatpush1.bf16.msra.mxu1 %v10709_v21  ;;  %4238 = vmatprep.subr.bf16.mxu0 %v10740_v25  ;;  %v10771_v21 = vcombine.low %v556_v46, %v572_v1  ;;  %v10806_v1 = vcombine.high %v589_v59, %v605_v18  ;;  %v10805_v24 = vcombine.low %v589_v59, %v605_v18 }
 0x1c2   : > { %v14712_v55 = vpop.f32.mrb[40].mxu0  ;;  %4311 = vmatprep.subr.bf16.mxu1 %v10742_v16  ;;  %v14717_v57 = vpop.f32.mrb[40].mxu1 }
 0x1c3   : > { %v14719_v8 = vpop.f32.mrb[41].mxu0  ;;  %v14725_v25 = vpop.f32.mrb[41].mxu1  ;;  %4744 = vperm.xlu1 %13098, %v4710_v28  }
 0x1c4   : > { %17469 = vst [vmem:[#allocation61_spill] sm:$0xff] %v14725_v25  ;;  %v14727_v16 = vpop.f32.mrb[42].mxu0  ;;  %4239 = vmatpush1.bf16.msra.mxu0 %v10739_v47  ;;  %v14735_v34 = vpop.f32.mrb[42].mxu1  ;;  %v10804_v47 = vcombine.high %v588_v27, %v604_v7  ;;  %v668_v25 = vld [vmem:[%s13803_s11 + $0xde0] sm:$0xff] }
 0x1c5   : > { %17470 = vst [vmem:[#allocation62_spill] sm:$0xff] %v14727_v16  ;;  %17471 = vst [vmem:[#allocation63_spill] sm:$0xff] %v14735_v34  ;;  %4312 = vmatpush1.bf16.msra.mxu1 %v10741_v50  ;;  %v14737_v13 = vpop.f32.mrb[43].mxu0  ;;  %4240 = vmatprep.subr.bf16.mxu0 %v10772_v52  ;;  %v14744_v46 = vpop.f32.mrb[43].mxu1  ;;  %v637_v16 = vld [vmem:[%s13803_s11 + $0xce8] sm:$0xff]  ;;  %v10803_v52 = vcombine.low %v588_v27, %v604_v7 }
 0x1c6   : > { %17472 = vst [vmem:[#allocation64_spill] sm:$0xff] %v14737_v13  ;;  %17473 = vst [vmem:[#allocation65_spill] sm:$0xff] %v14744_v46  ;;  %4313 = vmatprep.subr.bf16.mxu1 %v10774_v11  ;;  %v653_v34 = vld [vmem:[%s13803_s11 + $0xd68] sm:$0xff]  ;;  %v10838_v11 = vcombine.high %v621_v4, %v637_v16 }
 0x1c7   : > { %v669_v13 = vld [vmem:[%s13803_s11 + $0xde8] sm:$0xff] }
 0x1c8   : > { %4241 = vmatpush1.bf16.msra.mxu0 %v10771_v21  ;;  %v10835_v21 = vcombine.low %v620_v33, %v636_v3  ;;  %v685_v33 = vld [vmem:[%s13803_s11 + $0xe68] sm:$0xff]  ;;  %v10869_v3 = vcombine.low %v653_v34, %v669_v13 }
 0x1c9   : > { %4314 = vmatpush1.bf16.msra.mxu1 %v10773_v48  ;;  %4242 = vmatprep.subr.bf16.mxu0 %v10804_v47  ;;  %v684_v47 = vld [vmem:[%s13803_s11 + $0xe60] sm:$0xff]  ;;  %v10870_v48 = vcombine.high %v653_v34, %v669_v13 }
 0x1ca   : > { %v14752_v28 = vpop.f32.mrb[44].mxu0  ;;  %4315 = vmatprep.subr.bf16.mxu1 %v10806_v1  ;;  %v14757_v50 = vpop.f32.mrb[44].mxu1  ;;  %v10837_v1 = vcombine.low %v621_v4, %v637_v16  ;;  %v10900_v16 = vcombine.high %v684_v47, %v700_v30 }
 0x1cb   : > { %17474 = vst [vmem:[#allocation66_spill] sm:$0xff] %v14752_v28  ;;  %17475 = vst [vmem:[#allocation67_spill] sm:$0xff] %v14757_v50  ;;  %v14759_v7 = vpop.f32.mrb[45].mxu0  ;;  %v14765_v59 = vpop.f32.mrb[45].mxu1  ;;  %v701_v28 = vld [vmem:[%s13803_s11 + $0xee8] sm:$0xff] }
 0x1cc   : > { %17476 = vst [vmem:[#allocation68_spill] sm:$0xff] %v14759_v7  ;;  %17477 = vst [vmem:[#allocation69_spill] sm:$0xff] %v14765_v59  ;;  %v14767_v18 = vpop.f32.mrb[46].mxu0  ;;  %4243 = vmatpush1.bf16.msra.mxu0 %v10803_v52  ;;  %v14775_v50 = vpop.f32.mrb[46].mxu1  ;;  %v10868_v52 = vcombine.high %v652_v51, %v668_v25 }
 0x1cd   : > { %17478 = vst [vmem:[#allocation70_spill] sm:$0xff] %v14767_v18  ;;  %17479 = vst [vmem:[#allocation71_spill] sm:$0xff] %v14775_v50  ;;  %4316 = vmatpush1.bf16.msra.mxu1 %v10805_v24  ;;  %v14777_v27 = vpop.f32.mrb[47].mxu0  ;;  %4244 = vmatprep.subr.bf16.mxu0 %v10836_v62  ;;  %v14784_v4 = vpop.f32.mrb[47].mxu1  ;;  %v10867_v62 = vcombine.low %v652_v51, %v668_v25  ;;  %v716_v18 = vld [vmem:[%s13803_s11 + $0xf60] sm:$0xff]  ;;  %v10899_v50 = vcombine.low %v684_v47, %v700_v30  ;;  %v238_v24 = vld [vmem:[%s13803_s11 + $0x70] sm:$0xff] }
 0x1ce   : > { %17480 = vst [vmem:[#allocation72_spill] sm:$0xff] %v14777_v27  ;;  %17481 = vst [vmem:[#allocation73_spill] sm:$0xff] %v14784_v4  ;;  %4317 = vmatprep.subr.bf16.mxu1 %v10838_v11  ;;  %v717_v27 = vld [vmem:[%s13803_s11 + $0xf68] sm:$0xff]  ;;  %v10902_v11 = vcombine.high %v685_v33, %v701_v28  ;;  %v254_v4 = vld [vmem:[%s13803_s11 + $0xf0] sm:$0xff]  ;;  %v10901_v51 = vcombine.low %v685_v33, %v701_v28  ;;  %v10932_v25 = vcombine.high %v716_v18, %v732_v15 }
 0x1cf   : > { %v10934_v34 = vcombine.high %v717_v27, %v733_v5  ;;  %v10931_v13 = vcombine.low %v716_v18, %v732_v15  ;;  %v10933_v30 = vcombine.low %v717_v27, %v733_v5  ;;  %v10456_v47 = vcombine.high %v238_v24, %v254_v4  ;;  %v303_v18 = vld [vmem:[%s13803_s11 + $0x278] sm:$0xff]  ;;  %v14808_v27 = vld [vmem:[%s17305_s1] ss:$8 sps:$4 sm:$0xff]  }
 0x1d0   : > { %4245 = vmatpush1.bf16.msra.mxu0 %v10835_v21  ;;  %v239_v21 = vld [vmem:[%s13803_s11 + $0x78] sm:$0xff]  ;;  %v10455_v33 = vcombine.low %v238_v24, %v254_v4  ;;  %v334_v24 = vld [vmem:[%s13803_s11 + $0x370] sm:$0xff] }
 0x1d1   : > { %4318 = vmatpush1.bf16.msra.mxu1 %v10837_v1  ;;  %4246 = vmatprep.subr.bf16.mxu0 %v10868_v52  ;;  %v255_v1 = vld [vmem:[%s13803_s11 + $0xf8] sm:$0xff]  ;;  %v286_v52 = vld [vmem:[%s13803_s11 + $0x1f0] sm:$0xff] }
 0x1d2   : > { %4319 = vmatprep.subr.bf16.mxu1 %v10870_v48  ;;  %v270_v48 = vld [vmem:[%s13803_s11 + $0x170] sm:$0xff]  ;;  %v10458_v28 = vcombine.high %v239_v21, %v255_v1  ;;  %v10457_v15 = vcombine.low %v239_v21, %v255_v1 }
 0x1d3   : > { %v10487_v4 = vcombine.low %v270_v48, %v286_v52 }
 0x1d4   : > { %4247 = vmatpush1.bf16.msra.mxu0 %v10867_v62  ;;  %v302_v62 = vld [vmem:[%s13803_s11 + $0x270] sm:$0xff] }
 0x1d5   : > { %4320 = vmatpush1.bf16.msra.mxu1 %v10869_v3  ;;  %4248 = vmatprep.subr.bf16.mxu0 %v10900_v16  ;;  %v271_v3 = vld [vmem:[%s13803_s11 + $0x178] sm:$0xff] }
 0x1d6   : > { %4321 = vmatprep.subr.bf16.mxu1 %v10902_v11  ;;  %v287_v16 = vld [vmem:[%s13803_s11 + $0x1f8] sm:$0xff]  ;;  %v318_v11 = vld [vmem:[%s13803_s11 + $0x2f0] sm:$0xff] }
 0x1d7   : > { %v10490_v5 = vcombine.high %v271_v3, %v287_v16  ;;  %v10489_v21 = vcombine.low %v271_v3, %v287_v16  ;;  %v10520_v1 = vcombine.high %v302_v62, %v318_v11  ;;  %v382_v3 = vld [vmem:[%s13803_s11 + $0x4f0] sm:$0xff] }
 0x1d8   : > { %4249 = vmatpush1.bf16.msra.mxu0 %v10899_v50  ;;  %v10488_v50 = vcombine.high %v270_v48, %v286_v52  ;;  %v10519_v52 = vcombine.low %v302_v62, %v318_v11  ;;  %v398_v11 = vld [vmem:[%s13803_s11 + $0x570] sm:$0xff] }
 0x1d9   : > { %4322 = vmatpush1.bf16.msra.mxu1 %v10901_v51  ;;  %4250 = vmatprep.subr.bf16.mxu0 %v10932_v25  ;;  %v319_v51 = vld [vmem:[%s13803_s11 + $0x2f8] sm:$0xff]  ;;  %v350_v25 = vld [vmem:[%s13803_s11 + $0x3f0] sm:$0xff] }
 0x1da   : > { %4323 = vmatprep.subr.bf16.mxu1 %v10934_v34  ;;  %v335_v34 = vld [vmem:[%s13803_s11 + $0x378] sm:$0xff]  ;;  %v10522_v48 = vcombine.high %v303_v18, %v319_v51  ;;  %v10521_v16 = vcombine.low %v303_v18, %v319_v51  ;;  %v10551_v62 = vcombine.low %v334_v24, %v350_v25  ;;  %v414_v18 = vld [vmem:[%s13803_s11 + $0x5f0] sm:$0xff] }
 0x1dc   : > { %4251 = vmatpush1.bf16.msra.mxu0 %v10931_v13  ;;  %v351_v13 = vld [vmem:[%s13803_s11 + $0x3f8] sm:$0xff] }
 0x1dd   : > { %4324 = vmatpush1.bf16.msra.mxu1 %v10933_v30  ;;  %4366 = vmatprep.subr.bf16.mxu0 %v10456_v47  ;;  %v14819_v30 = vld [vmem:[%s17305_s1 + $0x14] ss:$8 sps:$4 sm:$0xff]   ;;  %v10553_v51 = vcombine.low %v335_v34, %v351_v13 }
 0x1de   : > { %4439 = vmatprep.subr.bf16.mxu1 %v10458_v28  ;;  %v366_v47 = vld [vmem:[%s13803_s11 + $0x470] sm:$0xff]  ;;  %v10552_v28 = vcombine.high %v334_v24, %v350_v25 }
 0x1df   : > { %4253 = vmatmul.mubr.bf16.vlgmr.msra.gmra.mrb[96].mxu0 %v14808_v27  ;;  %v10583_v25 = vcombine.low %v366_v47, %v382_v3 }
 0x1e0   : > { %4326 = vmatmul.mubr.bf16.vlgmr.msra.gmra.mrb[96].mxu1 %v14808_v27  ;;  %4367 = vmatpush1.bf16.msra.mxu0 %v10455_v33  ;;  %v367_v33 = vld [vmem:[%s13803_s11 + $0x478] sm:$0xff] }
 0x1e1   : > { %4440 = vmatpush1.bf16.msra.mxu1 %v10457_v15  ;;  %4368 = vmatprep.subr.bf16.mxu0 %v10488_v50  ;;  %v383_v15 = vld [vmem:[%s13803_s11 + $0x4f8] sm:$0xff]  ;;  %v10554_v50 = vcombine.high %v335_v34, %v351_v13  ;;  %v430_v34 = vld [vmem:[%s13803_s11 + $0x670] sm:$0xff] }
 0x1e2   : > { %4441 = vmatprep.subr.bf16.mxu1 %v10490_v5  ;;  %4262 = vmatprep.mubr.bf16.mxu0 %v14819_v30  ;;  %v14830_v5 = vld [vmem:[%s17305_s1 + $0x10] ss:$8 sps:$4 sm:$0xff]   ;;  %v10586_v24 = vcombine.high %v367_v33, %v383_v15 }
 0x1e3   : > { %4335 = vmatprep.mubr.bf16.mxu1 %v14819_v30  ;;  %v446_v13 = vld [vmem:[%s13803_s11 + $0x6f0] sm:$0xff] }
 0x1e4   : > { %4369 = vmatpush1.bf16.msra.mxu0 %v10487_v4  ;;  %v10584_v4 = vcombine.high %v366_v47, %v382_v3  ;;  %v10615_v47 = vcombine.low %v398_v11, %v414_v18  ;;  %v14857_v3 = vld [vmem:[%s13803_s11 + $0x770] sm:$0xff]  ;;  %v10647_v7 = vcombine.low %v430_v34, %v446_v13 }
 0x1e5   : > { %4442 = vmatpush1.bf16.msra.mxu1 %v10489_v21  ;;  %4370 = vmatprep.subr.bf16.mxu0 %v10520_v1  ;;  %v399_v21 = vld [vmem:[%s13803_s11 + $0x578] sm:$0xff] }
 0x1e6   : > { %4443 = vmatprep.subr.bf16.mxu1 %v10522_v48  ;;  %v415_v1 = vld [vmem:[%s13803_s11 + $0x5f8] sm:$0xff]  ;;  %v14841_v48 = vld [vmem:[%s17305_s1 + $0x24] ss:$8 sps:$4 sm:$0xff]  }
 0x1e7   : > { %4263 = vmatmul.mubr.bf16.gmra.mrb[100].mxu0 %v14830_v5  ;;  %v10618_v10 = vcombine.high %v399_v21, %v415_v1 }
 0x1e8   : > { %4336 = vmatmul.mubr.bf16.gmra.mrb[100].mxu1 %v14830_v5  ;;  %4371 = vmatpush1.bf16.msra.mxu0 %v10519_v52  ;;  %v10585_v52 = vcombine.low %v367_v33, %v383_v15  ;;  %v14860_v33 = vld [vmem:[%s13803_s11 + $0x7f0] sm:$0xff]  ;;  %v10617_v15 = vcombine.low %v399_v21, %v415_v1 }
 0x1e9   : > { %4444 = vmatpush1.bf16.msra.mxu1 %v10521_v16  ;;  %4372 = vmatprep.subr.bf16.mxu0 %v10552_v28  ;;  %v10616_v16 = vcombine.high %v398_v11, %v414_v18  ;;  %v431_v28 = vld [vmem:[%s13803_s11 + $0x678] sm:$0xff] }
 0x1ea   : > { %4445 = vmatprep.subr.bf16.mxu1 %v10554_v50  ;;  %4272 = vmatprep.mubr.bf16.mxu0 %v14841_v48  ;;  %v447_v50 = vld [vmem:[%s13803_s11 + $0x6f8] sm:$0xff] }
 0x1eb   : > { %4345 = vmatprep.mubr.bf16.mxu1 %v14841_v48  ;;  %v10650_v11 = vcombine.high %v431_v28, %v447_v50  ;;  %v479_v18 = vld [vmem:[%s13803_s11 + $0x7f8] sm:$0xff]  ;;  %v10649_v21 = vcombine.low %v431_v28, %v447_v50  ;;  %v542_v50 = vld [vmem:[%s13803_s11 + $0x9f0] sm:$0xff] }
 0x1ec   : > { %4373 = vmatpush1.bf16.msra.mxu0 %v10551_v62  ;;  %v10648_v62 = vcombine.high %v430_v34, %v446_v13  ;;  %v10680_v34 = vcombine.high %v14857_v3, %v14860_v33  ;;  %v495_v13 = vld [vmem:[%s13803_s11 + $0x878] sm:$0xff] }
 0x1ed   : > { %4446 = vmatpush1.bf16.msra.mxu1 %v10553_v51  ;;  %4374 = vmatprep.subr.bf16.mxu0 %v10584_v4  ;;  %v14863_v51 = vld [vmem:[%s13803_s11 + $0x778] sm:$0xff] }
 0x1ee   : > { %4447 = vmatprep.subr.bf16.mxu1 %v10586_v24  ;;  %v14870_v24 = vld [vmem:[%s17305_s1 + $0x34] ss:$8 sps:$4 sm:$0xff]  }
 0x1ef   : > { %4273 = vmatmul.mubr.bf16.gmra.mrb[104].mxu0 %v14852_v6 }
 0x1f0   : > { %4346 = vmatmul.mubr.bf16.gmra.mrb[104].mxu1 %v14852_v6  ;;  %4375 = vmatpush1.bf16.msra.mxu0 %v10583_v25 }
 0x1f1   : > { %4448 = vmatpush1.bf16.msra.mxu1 %v10585_v52  ;;  %4376 = vmatprep.subr.bf16.mxu0 %v10616_v16 }
 0x1f2   : > { %v14865_v4 = vpop.f32.mrb[48].mxu0  ;;  %4449 = vmatprep.subr.bf16.mxu1 %v10618_v10  ;;  %4282 = vmatprep.mubr.bf16.mxu0 %v14870_v24  ;;  %v14876_v1 = vpop.f32.mrb[48].mxu1  ;;  %v511_v10 = vld [vmem:[%s13803_s11 + $0x8f8] sm:$0xff] }
 0x1f3   : > { %17482 = vst [vmem:[#allocation74_spill] sm:$0xff] %v14865_v4  ;;  %17483 = vst [vmem:[#allocation75_spill] sm:$0xff] %v14876_v1  ;;  %v14878_v25 = vpop.f32.mrb[49].mxu0  ;;  %4355 = vmatprep.mubr.bf16.mxu1 %v14870_v24  ;;  %v14885_v59 = vpop.f32.mrb[49].mxu1  ;;  %v494_v4 = vld [vmem:[%s13803_s11 + $0x870] sm:$0xff] }
 0x1f4   : > { %17484 = vst [vmem:[#allocation76_spill] sm:$0xff] %v14878_v25  ;;  %17486 = vst [vmem:[#allocation77_spill] sm:$0xff] %v14885_v59  ;;  %v14887_v56 = vpop.f32.mrb[50].mxu0  ;;  %4377 = vmatpush1.bf16.msra.mxu0 %v10615_v47  ;;  %v14895_v1 = vpop.f32.mrb[50].mxu1  ;;  %v10714_v47 = vcombine.high %v495_v13, %v511_v10  ;;  %v10711_v25 = vcombine.low %v494_v4, %v510_v43 }
 0x1f5   : > { %17487 = vst [vmem:[#allocation78_spill] sm:$0xff] %v14887_v56  ;;  %17490 = vst [vmem:[#allocation79_spill] sm:$0xff] %v14895_v1  ;;  %4450 = vmatpush1.bf16.msra.mxu1 %v10617_v15  ;;  %v14897_v16 = vpop.f32.mrb[51].mxu0  ;;  %4378 = vmatprep.subr.bf16.mxu0 %v10648_v62  ;;  %v14906_v59 = vpop.f32.mrb[51].mxu1  ;;  %v10682_v15 = vcombine.high %v14863_v51, %v479_v18  ;;  %v10681_v56 = vcombine.low %v14863_v51, %v479_v18  ;;  %v527_v62 = vld [vmem:[%s13803_s11 + $0x978] sm:$0xff]  ;;  %v13144_v51 = vld [vmem:[%s17307_s3 + $0x3c0] sm:$0xff]  }
 0x1f6   : > { %17491 = vst [vmem:[#allocation80_spill] sm:$0xff] %v14897_v16  ;;  %17494 = vst [vmem:[#allocation81_spill] sm:$0xff] %v14906_v59  ;;  %4451 = vmatprep.subr.bf16.mxu1 %v10650_v11  ;;  %v10679_v11 = vcombine.low %v14857_v3, %v14860_v33  ;;  %v10712_v59 = vcombine.high %v494_v4, %v510_v43  ;;  %v543_v1 = vld [vmem:[%s13803_s11 + $0x9f8] sm:$0xff]  ;;  %v10713_v3 = vcombine.low %v495_v13, %v511_v10 }
 0x1f7   : > { %4283 = vmatmul.mubr.bf16.gmra.mrb[108].mxu0 %v14915_v32  ;;  %v10746_v18 = vcombine.high %v527_v62, %v543_v1  ;;  %v10745_v4 = vcombine.low %v527_v62, %v543_v1 }
 0x1f8   : > { %4356 = vmatmul.mubr.bf16.gmra.mrb[108].mxu1 %v14915_v32  ;;  %4379 = vmatpush1.bf16.msra.mxu0 %v10647_v7  ;;  %v574_v7 = vld [vmem:[%s13803_s11 + $0xaf0] sm:$0xff] }
 0x1f9   : > { %4452 = vmatpush1.bf16.msra.mxu1 %v10649_v21  ;;  %4380 = vmatprep.subr.bf16.mxu0 %v10680_v34 }
 0x1fa   : > { %v14925_v16 = vpop.f32.mrb[52].mxu0  ;;  %4453 = vmatprep.subr.bf16.mxu1 %v10682_v15  ;;  %4398 = vmatprep.mubr.bf16.mxu0 %v14651_v9  ;;  %v14931_v33 = vpop.f32.mrb[52].mxu1 }
 0x1fb   : > { %17496 = vst [vmem:[#allocation82_spill] sm:$0xff] %v14925_v16  ;;  %17498 = vst [vmem:[#allocation83_spill] sm:$0xff] %v14931_v33  ;;  %v14933_v21 = vpop.f32.mrb[53].mxu0  ;;  %4471 = vmatprep.mubr.bf16.mxu1 %v14651_v9  ;;  %v14940_v28 = vpop.f32.mrb[53].mxu1  ;;  %v558_v16 = vld [vmem:[%s13803_s11 + $0xa70] sm:$0xff] }
 0x1fc   : > { %17499 = vst [vmem:[#allocation84_spill] sm:$0xff] %v14933_v21  ;;  %17502 = vst [vmem:[#allocation85_spill] sm:$0xff] %v14940_v28  ;;  %v14942_v53 = vpop.f32.mrb[54].mxu0  ;;  %4381 = vmatpush1.bf16.msra.mxu0 %v10679_v11  ;;  %v14950_v33 = vpop.f32.mrb[54].mxu1  ;;  %v10744_v21 = vcombine.high %v526_v54, %v542_v50  ;;  %v559_v11 = vld [vmem:[%s13803_s11 + $0xa78] sm:$0xff]  ;;  %v590_v28 = vld [vmem:[%s13803_s11 + $0xb70] sm:$0xff] }
 0x1fd   : > { %17503 = vst [vmem:[#allocation86_spill] sm:$0xff] %v14942_v53  ;;  %17506 = vst [vmem:[#allocation87_spill] sm:$0xff] %v14950_v33  ;;  %4454 = vmatpush1.bf16.msra.mxu1 %v10681_v56  ;;  %v14952_v15 = vpop.f32.mrb[55].mxu0  ;;  %4382 = vmatprep.subr.bf16.mxu0 %v10712_v59  ;;  %v14959_v9 = vpop.f32.mrb[55].mxu1  ;;  %v575_v53 = vld [vmem:[%s13803_s11 + $0xaf8] sm:$0xff]  ;;  %v10743_v59 = vcombine.low %v526_v54, %v542_v50  ;;  %v10776_v33 = vcombine.high %v558_v16, %v574_v7  ;;  %v622_v50 = vld [vmem:[%s13803_s11 + $0xc70] sm:$0xff] }
 0x1fe   : > { %17507 = vst [vmem:[#allocation88_spill] sm:$0xff] %v14952_v15  ;;  %17510 = vst [vmem:[#allocation89_spill] sm:$0xff] %v14959_v9  ;;  %4455 = vmatprep.subr.bf16.mxu1 %v10714_v47  ;;  %v10778_v13 = vcombine.high %v559_v11, %v575_v53  ;;  %v606_v15 = vld [vmem:[%s13803_s11 + $0xbf0] sm:$0xff]  ;;  %v591_v56 = vld [vmem:[%s13803_s11 + $0xb78] sm:$0xff]  ;;  %v10777_v10 = vcombine.low %v559_v11, %v575_v53 }
 0x1ff   : > { %v623_v9 = vld [vmem:[%s13803_s11 + $0xc78] sm:$0xff] }
 0x200   : > { %4383 = vmatpush1.bf16.msra.mxu0 %v10711_v25  ;;  %v607_v25 = vld [vmem:[%s13803_s11 + $0xbf8] sm:$0xff] }
 0x201   : > { %4456 = vmatpush1.bf16.msra.mxu1 %v10713_v3  ;;  %4384 = vmatprep.subr.bf16.mxu0 %v10744_v21  ;;  %v10810_v47 = vcombine.high %v591_v56, %v607_v25 }
 0x202   : > { %v14965_v43 = vpop.f32.mrb[56].mxu0  ;;  %4457 = vmatprep.subr.bf16.mxu1 %v10746_v18  ;;  %v14970_v52 = vpop.f32.mrb[56].mxu1  ;;  %v10775_v18 = vcombine.low %v558_v16, %v574_v7  ;;  %v654_v16 = vld [vmem:[%s13803_s11 + $0xd70] sm:$0xff]  ;;  %v10809_v7 = vcombine.low %v591_v56, %v607_v25 }
 0x203   : > { %17512 = vst [vmem:[#allocation90_spill] sm:$0xff] %v14965_v43  ;;  %17514 = vst [vmem:[#allocation91_spill] sm:$0xff] %v14970_v52  ;;  %v14972_v34 = vpop.f32.mrb[57].mxu0  ;;  %v14980_v3 = vpop.f32.mrb[57].mxu1  ;;  %v10807_v43 = vcombine.low %v590_v28, %v606_v15 }
 0x204   : > { %17515 = vst [vmem:[#allocation92_spill] sm:$0xff] %v14972_v34  ;;  %17518 = vst [vmem:[#allocation93_spill] sm:$0xff] %v14980_v3  ;;  %v14982_v21 = vpop.f32.mrb[58].mxu0  ;;  %4385 = vmatpush1.bf16.msra.mxu0 %v10743_v59  ;;  %v14988_v52 = vpop.f32.mrb[58].mxu1  ;;  %v10808_v34 = vcombine.high %v590_v28, %v606_v15 }
 0x205   : > { %17519 = vst [vmem:[#allocation94_spill] sm:$0xff] %v14982_v21  ;;  %17522 = vst [vmem:[#allocation95_spill] sm:$0xff] %v14988_v52  ;;  %4458 = vmatpush1.bf16.msra.mxu1 %v10745_v4  ;;  %v14990_v62 = vpop.f32.mrb[59].mxu0  ;;  %4386 = vmatprep.subr.bf16.mxu0 %v10776_v33  ;;  %v14996_v11 = vpop.f32.mrb[59].mxu1  ;;  %v638_v21 = vld [vmem:[%s13803_s11 + $0xcf0] sm:$0xff]  ;;  %v639_v33 = vld [vmem:[%s13803_s11 + $0xcf8] sm:$0xff] }
 0x206   : > { %17523 = vst [vmem:[#allocation96_spill] sm:$0xff] %v14990_v62  ;;  %17526 = vst [vmem:[#allocation97_spill] sm:$0xff] %v14996_v11  ;;  %4459 = vmatprep.subr.bf16.mxu1 %v10778_v13  ;;  %v10840_v62 = vcombine.high %v622_v50, %v638_v21  ;;  %v10842_v13 = vcombine.high %v623_v9, %v639_v33  ;;  %v670_v52 = vld [vmem:[%s13803_s11 + $0xdf0] sm:$0xff]  ;;  %v655_v11 = vld [vmem:[%s13803_s11 + $0xd78] sm:$0xff]  ;;  %v10839_v25 = vcombine.low %v622_v50, %v638_v21 }
 0x207   : > { %v10841_v1 = vcombine.low %v623_v9, %v639_v33  ;;  %v734_v9 = vld [vmem:[%s13803_s11 + $0xff0] sm:$0xff]  ;;  %v719_v21 = vld [vmem:[%s13803_s11 + $0xf78] sm:$0xff] }
 0x208   : > { %4387 = vmatpush1.bf16.msra.mxu0 %v10775_v18  ;;  %v671_v18 = vld [vmem:[%s13803_s11 + $0xdf8] sm:$0xff] }
 0x209   : > { %4460 = vmatpush1.bf16.msra.mxu1 %v10777_v10  ;;  %4388 = vmatprep.subr.bf16.mxu0 %v10808_v34  ;;  %v10874_v15 = vcombine.high %v655_v11, %v671_v18  ;;  %v718_v34 = vld [vmem:[%s13803_s11 + $0xf70] sm:$0xff]  ;;  %v10873_v33 = vcombine.low %v655_v11, %v671_v18  ;;  %v13114_v11 = vld [vmem:[%s17307_s3 + $0x280] sm:$0xff]   ;;  %v13115_v18 = vld [vmem:[%s17307_s3 + $0x248] sm:$0xff]  }
 0x20a   : > { %v15005_v53 = vpop.f32.mrb[60].mxu0  ;;  %4461 = vmatprep.subr.bf16.mxu1 %v10810_v47  ;;  %v15010_v54 = vpop.f32.mrb[60].mxu1 }
 0x20b   : > { %17528 = vst [vmem:[#allocation98_spill] sm:$0xff] %v15005_v53  ;;  %17530 = vst [vmem:[#allocation99_spill] sm:$0xff] %v15010_v54  ;;  %v15012_v3 = vpop.f32.mrb[61].mxu0  ;;  %v15020_v56 = vpop.f32.mrb[61].mxu1  ;;  %v687_v53 = vld [vmem:[%s13803_s11 + $0xe78] sm:$0xff] }
 0x20c   : > { %17531 = vst [vmem:[#allocation100_spill] sm:$0xff] %v15012_v3  ;;  %17534 = vst [vmem:[#allocation101_spill] sm:$0xff] %v15020_v56  ;;  %v15022_v47 = vpop.f32.mrb[62].mxu0  ;;  %4389 = vmatpush1.bf16.msra.mxu0 %v10807_v43  ;;  %v15028_v54 = vpop.f32.mrb[62].mxu1  ;;  %v10872_v43 = vcombine.high %v654_v16, %v670_v52  ;;  %v10871_v3 = vcombine.low %v654_v16, %v670_v52  ;;  %v10936_v56 = vcombine.high %v718_v34, %v734_v9  ;;  %v13111_v52 = vld [vmem:[%s17307_s3 + $0x240] sm:$0xff]  }
 0x20d   : > { %17535 = vst [vmem:[#allocation102_spill] sm:$0xff] %v15022_v47  ;;  %17538 = vst [vmem:[#allocation103_spill] sm:$0xff] %v15028_v54  ;;  %4462 = vmatpush1.bf16.msra.mxu1 %v10809_v7  ;;  %v15030_v10 = vpop.f32.mrb[63].mxu0  ;;  %4390 = vmatprep.subr.bf16.mxu0 %v10840_v62  ;;  %v15036_v59 = vpop.f32.mrb[63].mxu1  ;;  %v686_v47 = vld [vmem:[%s13803_s11 + $0xe70] sm:$0xff]  ;;  %v703_v62 = vld [vmem:[%s13803_s11 + $0xef8] sm:$0xff] }
 0x20e   : > { %17539 = vst [vmem:[#allocation104_spill] sm:$0xff] %v15030_v10  ;;  %17542 = vst [vmem:[#allocation105_spill] sm:$0xff] %v15036_v59  ;;  %4463 = vmatprep.subr.bf16.mxu1 %v10842_v13  ;;  %v702_v7 = vld [vmem:[%s13803_s11 + $0xef0] sm:$0xff]  ;;  %v735_v54 = vld [vmem:[%s13803_s11 + $0xff8] sm:$0xff]  ;;  %v10906_v13 = vcombine.high %v687_v53, %v703_v62  ;;  %v10905_v28 = vcombine.low %v687_v53, %v703_v62  ;;  %s12349_s11 = sshll.u32 %s13764_s22, 7  ;;  %s13712_s22 = smov [#allocation2]  }
 0x20f   : > { %v10904_v10 = vcombine.high %v686_v47, %v702_v7  ;;  %v10903_v50 = vcombine.low %v686_v47, %v702_v7  ;;  %v10938_v59 = vcombine.high %v719_v21, %v735_v54  ;;  %v13112_v16 = vld [vmem:[%s17307_s3 + $0x2c0] sm:$0xff]   ;;  %v13125_v47 = vld [vmem:[%s17307_s3 + $0x218] sm:$0xff]   ;;  %v13132_v62 = vld [vmem:[%s17307_s3 + $0x2e8] sm:$0xff]   ;;  %s17262_s7 = scalar_lea.hbm %s17309_s5, %s12349_s11  ;;  %s13651_s10 = sshll.u32 %s13712_s22, 4  ;;  %s13652_s10 = int_to_ptr.vmem [resolvable:$false] %s13651_s10 }
 0x210   : > { %4391 = vmatpush1.bf16.msra.mxu0 %v10839_v25  ;;  %v13113_v53 = vld [vmem:[%s17307_s3 + $0x200] sm:$0xff]   ;;  %v13126_v25 = vld [vmem:[%s17307_s3 + $0x298] sm:$0xff]   ;;  %s13653_s12 = scalar_lea.vmem %s13652_s10, 256  ;;  %p13654_p0 = scmp.lt.s32.totalorder %s17264_s26, %s13652_s10 }
 0x211   : > { %4464 = vmatpush1.bf16.msra.mxu1 %v10841_v1  ;;  %4392 = vmatprep.subr.bf16.mxu0 %v10872_v43  ;;  %v10935_v1 = vcombine.low %v718_v34, %v734_v9  ;;  %v13120_v34 = vld [vmem:[%s17307_s3 + $0x2d0] sm:$0xff]   ;;  %v13127_v43 = vld [vmem:[%s17307_s3 + $0x260] sm:$0xff]   ;;  %p13655_p1 = scmp.lt.s32.totalorder %s13653_s12, %s13647_s9 }
 0x212   : > { %4465 = vmatprep.subr.bf16.mxu1 %v10874_v15  ;;  %v13119_v15 = vld [vmem:[%s17307_s3 + $0x250] sm:$0xff]  }
 0x213   : > { %p13656_p2 = por %p13655_p1, %p13654_p0 }
 0x214   : > { %4393 = vmatpush1.bf16.msra.mxu0 %v10871_v3  ;;  %v10937_v3 = vcombine.low %v719_v21, %v735_v54  ;;  %v13116_v54 = vld [vmem:[%s17307_s3 + $0x2c8] sm:$0xff]  }
 0x215   : > { %4466 = vmatpush1.bf16.msra.mxu1 %v10873_v33  ;;  %4394 = vmatprep.subr.bf16.mxu0 %v10904_v10  ;;  %v13122_v10 = vld [vmem:[%s17307_s3 + $0x290] sm:$0xff]   ;;  %p13657_p3 = pnand %p13656_p2, %p13650_p13 }
 0x216   : > { %4467 = vmatprep.subr.bf16.mxu1 %v10906_v13 }
 0x218   : > { %4395 = vmatpush1.bf16.msra.mxu0 %v10903_v50  ;;  %v13128_v50 = vld [vmem:[%s17307_s3 + $0x2e0] sm:$0xff]  }
 0x219   : > { %4468 = vmatpush1.bf16.msra.mxu1 %v10905_v28  ;;  %4396 = vmatprep.subr.bf16.mxu0 %v10936_v56  ;;  %v13118_v28 = vld [vmem:[%s17307_s3 + $0x288] sm:$0xff]   ;;  %v13124_v56 = vld [vmem:[%s17307_s3 + $0x2d8] sm:$0xff]  }
 0x21a   : > { %4469 = vmatprep.subr.bf16.mxu1 %v10938_v59  ;;  %v13117_v59 = vld [vmem:[%s17307_s3 + $0x208] sm:$0xff]  }
 0x21c   : > { %4397 = vmatpush1.bf16.msra.mxu0 %v10935_v1  ;;  %v13133_v1 = vld [vmem:[%s17307_s3 + $0x228] sm:$0xff]  }
 0x21d   : > { %4470 = vmatpush1.bf16.msra.mxu1 %v10937_v3  ;;  %12353 = vmatprep.subr.bf16.mxu0 %v13111_v52 }
 0x21e   : > { %12375 = vmatprep.subr.bf16.mxu1 %v13112_v16  ;;  %v13134_v16 = vld [vmem:[%s17307_s3 + $0x2a8] sm:$0xff]  }
 0x21f   : > { %4399 = vmatmul.mubr.bf16.vlgmr.msra.gmra.mrb[112].mxu0 %v14808_v27 }
 0x220   : > { %4472 = vmatmul.mubr.bf16.vlgmr.msra.gmra.mrb[112].mxu1 %v14808_v27  ;;  %4408 = vmatprep.mubr.bf16.mxu0 %v14819_v30  ;;  %v13121_v27 = vld [vmem:[%s17307_s3 + $0x210] sm:$0xff]  }
 0x221   : > { %4481 = vmatprep.mubr.bf16.mxu1 %v14819_v30  ;;  %12354 = vmatpush3.bf16.msra.mxu0 %v13113_v53  ;;  %v13123_v30 = vld [vmem:[%s17307_s3 + $0x258] sm:$0xff]   ;;  %v13135_v53 = vld [vmem:[%s17307_s3 + $0x270] sm:$0xff]  }
 0x222   : > { %12376 = vmatpush3.bf16.msra.mxu1 %v13114_v11  ;;  %12355 = vmatprep.subr.bf16.mxu0 %v13115_v18  ;;  %v13136_v11 = vld [vmem:[%s17307_s3 + $0x2f0] sm:$0xff]  }
 0x223   : > { %12377 = vmatprep.subr.bf16.mxu1 %v13116_v54  ;;  %v13137_v18 = vld [vmem:[%s17307_s3 + $0x230] sm:$0xff]  }
 0x224   : > { %v13138_v54 = vld [vmem:[%s17307_s3 + $0x2b0] sm:$0xff]  }
 0x225   : > { %12356 = vmatpush3.bf16.msra.mxu0 %v13117_v59 }
 0x226   : > { %12378 = vmatpush3.bf16.msra.mxu1 %v13118_v28  ;;  %12357 = vmatprep.subr.bf16.mxu0 %v13119_v15 }
 0x227   : > { %4409 = vmatmul.mubr.bf16.gmra.mrb[116].mxu0 %v14830_v5  ;;  %12379 = vmatprep.subr.bf16.mxu1 %v13120_v34 }
 0x228   : > { %4482 = vmatmul.mubr.bf16.gmra.mrb[116].mxu1 %v14830_v5  ;;  %4418 = vmatprep.mubr.bf16.mxu0 %v14841_v48  ;;  %v13129_v5 = vld [vmem:[%s17307_s3 + $0x220] sm:$0xff]  }
 0x229   : > { %4491 = vmatprep.mubr.bf16.mxu1 %v14841_v48  ;;  %12358 = vmatpush3.bf16.msra.mxu0 %v13121_v27  ;;  %v13130_v48 = vld [vmem:[%s17307_s3 + $0x2a0] sm:$0xff]   ;;  %v13139_v27 = vld [vmem:[%s17307_s3 + $0x278] sm:$0xff]  }
 0x22a   : > { %12380 = vmatpush3.bf16.msra.mxu1 %v13122_v10  ;;  %12359 = vmatprep.subr.bf16.mxu0 %v13123_v30  ;;  %v13140_v10 = vld [vmem:[%s17307_s3 + $0x2f8] sm:$0xff]  }
 0x22b   : > { %12381 = vmatprep.subr.bf16.mxu1 %v13124_v56 }
 0x22d   : > { %12360 = vmatpush3.bf16.msra.mxu0 %v13125_v47  ;;  %v13141_v47 = vld [vmem:[%s17307_s3 + $0x238] sm:$0xff]  }
 0x22e   : > { %12382 = vmatpush3.bf16.msra.mxu1 %v13126_v25  ;;  %12361 = vmatprep.subr.bf16.mxu0 %v13127_v43  ;;  %v13142_v25 = vld [vmem:[%s17307_s3 + $0x2b8] sm:$0xff]  }
 0x22f   : > { %4419 = vmatmul.mubr.bf16.gmra.mrb[120].mxu0 %v14852_v6  ;;  %12383 = vmatprep.subr.bf16.mxu1 %v13128_v50 }
 0x230   : > { %4492 = vmatmul.mubr.bf16.gmra.mrb[120].mxu1 %v14852_v6  ;;  %4428 = vmatprep.mubr.bf16.mxu0 %v14870_v24 }
 0x231   : > { %4501 = vmatprep.mubr.bf16.mxu1 %v14870_v24  ;;  %12362 = vmatpush3.bf16.msra.mxu0 %v13129_v5  ;;  %v13131_v24 = vld [vmem:[%s17307_s3 + $0x268] sm:$0xff]  }
 0x232   : > { %v15120_v9 = vpop.f32.mrb[64].mxu0  ;;  %v15122_v21 = vpop.f32.mrb[64].mxu1  ;;  %12384 = vmatpush3.bf16.msra.mxu1 %v13130_v48  ;;  %12363 = vmatprep.subr.bf16.mxu0 %v13131_v24 }
 0x233   : > { %v15124_v33 = vpop.f32.mrb[65].mxu0  ;;  %v15126_v6 = vpop.f32.mrb[65].mxu1  ;;  %12385 = vmatprep.subr.bf16.mxu1 %v13132_v62 }
 0x234   : > { %v15128_v7 = vpop.f32.mrb[66].mxu0  ;;  %v15136_v13 = vpop.f32.mrb[66].mxu1 }
 0x235   : > { %v15138_v52 = vpop.f32.mrb[67].mxu0  ;;  %v15146_v3 = vpop.f32.mrb[67].mxu1  ;;  %12364 = vmatpush3.bf16.msra.mxu0 %v13133_v1 }
 0x236   : > { %12386 = vmatpush3.bf16.msra.mxu1 %v13134_v16  ;;  %12365 = vmatprep.subr.bf16.mxu0 %v13135_v53 }
 0x237   : > { %4429 = vmatmul.mubr.bf16.gmra.mrb[124].mxu0 %v14915_v32  ;;  %12387 = vmatprep.subr.bf16.mxu1 %v13136_v11 }
 0x238   : > { %4502 = vmatmul.mubr.bf16.gmra.mrb[124].mxu1 %v14915_v32 }
 0x239   : > { %12366 = vmatpush3.bf16.msra.mxu0 %v13137_v18 }
 0x23a   : > { %v15162_v59 = vpop.f32.mrb[68].mxu0  ;;  %v15166_v28 = vpop.f32.mrb[68].mxu1  ;;  %12388 = vmatpush3.bf16.msra.mxu1 %v13138_v54  ;;  %12367 = vmatprep.subr.bf16.mxu0 %v13139_v27 }
 0x23b   : > { %v15164_v32 = vpop.f32.mrb[69].mxu0  ;;  %v15170_v34 = vpop.f32.mrb[69].mxu1  ;;  %12389 = vmatprep.subr.bf16.mxu1 %v13140_v10 }
 0x23c   : > { %v15168_v15 = vpop.f32.mrb[70].mxu0  ;;  %v15180_v56 = vpop.f32.mrb[70].mxu1 }
 0x23d   : > { %v15178_v30 = vpop.f32.mrb[71].mxu0  ;;  %v15188_v43 = vpop.f32.mrb[71].mxu1  ;;  %12368 = vmatpush3.bf16.msra.mxu0 %v13141_v47 }
 0x23e   : > { %12390 = vmatpush3.bf16.msra.mxu1 %v13142_v25  ;;  %12397 = vmatprep.subr.bf16.mxu0 %v13143_v49 }
 0x23f   : > { %12419 = vmatprep.subr.bf16.mxu1 %v13144_v51 }
 0x242   : > { %v15190_v50 = vpop.f32.mrb[72].mxu0  ;;  %v15194_v48 = vpop.f32.mrb[72].mxu1 }
 0x243   : > { %v15192_v5 = vpop.f32.mrb[73].mxu0  ;;  %v15198_v62 = vpop.f32.mrb[73].mxu1 }
 0x244   : > { %v15196_v24 = vpop.f32.mrb[74].mxu0  ;;  %v15202_v16 = vpop.f32.mrb[74].mxu1 }
 0x245   : > { %v15200_v1 = vpop.f32.mrb[75].mxu0  ;;  %v15204_v53 = vpop.f32.mrb[75].mxu1 }
 0x246   : > { %17544 = vst [vmem:[#allocation106_spill] sm:$0xff] %v15204_v53 }
 0x24a   : > { %v15206_v11 = vpop.f32.mrb[76].mxu0  ;;  %v15210_v54 = vpop.f32.mrb[76].mxu1 }
 0x24b   : > { %17545 = vst [vmem:[#allocation107_spill] sm:$0xff] %v15206_v11  ;;  %v15208_v18 = vpop.f32.mrb[77].mxu0  ;;  %17547 = vst [vmem:[#allocation109_spill] sm:$0xff] %v15210_v54  ;;  %v15214_v10 = vpop.f32.mrb[77].mxu1 }
 0x24c   : > { %17546 = vst [vmem:[#allocation108_spill] sm:$0xff] %v15208_v18  ;;  %v15212_v27 = vpop.f32.mrb[78].mxu0  ;;  %17549 = vst [vmem:[#allocation111_spill] sm:$0xff] %v15214_v10  ;;  %v15218_v25 = vpop.f32.mrb[78].mxu1 }
 0x24d   : > { %17548 = vst [vmem:[#allocation110_spill] sm:$0xff] %v15212_v27  ;;  %v15216_v47 = vpop.f32.mrb[79].mxu0  ;;  %17551 = vst [vmem:[#allocation113_spill] sm:$0xff] %v15218_v25  ;;  %v15220_v4 = vpop.f32.mrb[79].mxu1 }
 0x24e   : > { %17550 = vst [vmem:[#allocation112_spill] sm:$0xff] %v15216_v47  ;;  %17552 = vst [vmem:[#allocation114_spill] sm:$0xff] %v15220_v4 }
 0x272   : > { %v15228_v18 = vpop.f32.mrb[80].mxu0  ;;  %v15230_v27 = vpop.f32.mrb[80].mxu1 }
 0x273   : > { %17553 = vst [vmem:[#allocation115_spill] sm:$0xff] %v15228_v18  ;;  %17554 = vst [vmem:[#allocation116_spill] sm:$0xff] %v15230_v27  ;;  %v15232_v10 = vpop.f32.mrb[81].mxu0  ;;  %v15234_v47 = vpop.f32.mrb[81].mxu1 }
 0x274   : > { %17555 = vst [vmem:[#allocation117_spill] sm:$0xff] %v15232_v10  ;;  %17556 = vst [vmem:[#allocation118_spill] sm:$0xff] %v15234_v47  ;;  %v15236_v25 = vpop.f32.mrb[82].mxu0  ;;  %v15238_v4 = vpop.f32.mrb[82].mxu1 }
 0x275   : > { %17557 = vst [vmem:[#allocation119_spill] sm:$0xff] %v15236_v25  ;;  %17558 = vst [vmem:[#allocation120_spill] sm:$0xff] %v15238_v4  ;;  %v15240_v54 = vpop.f32.mrb[83].mxu0  ;;  %v15242_v11 = vpop.f32.mrb[83].mxu1 }
 0x276   : > { %17559 = vst [vmem:[#allocation121_spill] sm:$0xff] %v15240_v54  ;;  %17560 = vst [vmem:[#allocation122_spill] sm:$0xff] %v15242_v11 }
 0x27a   : > { %v15244_v46 = vpop.f32.mrb[84].mxu0  ;;  %v15248_v51 = vpop.f32.mrb[84].mxu1 }
 0x27b   : > { %17561 = vst [vmem:[#allocation123_spill] sm:$0xff] %v15244_v46  ;;  %v15246_v49 = vpop.f32.mrb[85].mxu0  ;;  %17563 = vst [vmem:[#allocation125_spill] sm:$0xff] %v15248_v51  ;;  %v15252_v27 = vpop.f32.mrb[85].mxu1 }
 0x27c   : > { %17562 = vst [vmem:[#allocation124_spill] sm:$0xff] %v15246_v49  ;;  %v15250_v18 = vpop.f32.mrb[86].mxu0  ;;  %17565 = vst [vmem:[#allocation127_spill] sm:$0xff] %v15252_v27  ;;  %v15256_v47 = vpop.f32.mrb[86].mxu1 }
 0x27d   : > { %17564 = vst [vmem:[#allocation126_spill] sm:$0xff] %v15250_v18  ;;  %v15254_v10 = vpop.f32.mrb[87].mxu0  ;;  %17567 = vst [vmem:[#allocation129_spill] sm:$0xff] %v15256_v47  ;;  %v15258_v25 = vpop.f32.mrb[87].mxu1 }
 0x27e   : > { %17566 = vst [vmem:[#allocation128_spill] sm:$0xff] %v15254_v10  ;;  %17568 = vst [vmem:[#allocation130_spill] sm:$0xff] %v15258_v25 }
 0x282   : > { %v15260_v4 = vpop.f32.mrb[88].mxu0  ;;  %v15264_v11 = vpop.f32.mrb[88].mxu1 }
 0x283   : > { %17569 = vst [vmem:[#allocation131_spill] sm:$0xff] %v15260_v4  ;;  %v15262_v54 = vpop.f32.mrb[89].mxu0  ;;  %17571 = vst [vmem:[#allocation133_spill] sm:$0xff] %v15264_v11  ;;  %v15268_v49 = vpop.f32.mrb[89].mxu1 }
 0x284   : > { %17570 = vst [vmem:[#allocation132_spill] sm:$0xff] %v15262_v54  ;;  %v15266_v46 = vpop.f32.mrb[90].mxu0  ;;  %17573 = vst [vmem:[#allocation135_spill] sm:$0xff] %v15268_v49  ;;  %v15272_v18 = vpop.f32.mrb[90].mxu1 }
 0x285   : > { %17572 = vst [vmem:[#allocation134_spill] sm:$0xff] %v15266_v46  ;;  %v15270_v51 = vpop.f32.mrb[91].mxu0  ;;  %17575 = vst [vmem:[#allocation137_spill] sm:$0xff] %v15272_v18  ;;  %v15274_v27 = vpop.f32.mrb[91].mxu1 }
 0x286   : > { %17574 = vst [vmem:[#allocation136_spill] sm:$0xff] %v15270_v51  ;;  %17576 = vst [vmem:[#allocation138_spill] sm:$0xff] %v15274_v27 }
 0x28a   : > { %v15276_v10 = vpop.f32.mrb[92].mxu0  ;;  %v15280_v25 = vpop.f32.mrb[92].mxu1 }
 0x28b   : > { %17577 = vst [vmem:[#allocation139_spill] sm:$0xff] %v15276_v10  ;;  %v15278_v47 = vpop.f32.mrb[93].mxu0  ;;  %17579 = vst [vmem:[#allocation141_spill] sm:$0xff] %v15280_v25  ;;  %v15284_v54 = vpop.f32.mrb[93].mxu1 }
 0x28c   : > { %17578 = vst [vmem:[#allocation140_spill] sm:$0xff] %v15278_v47  ;;  %v15282_v4 = vpop.f32.mrb[94].mxu0  ;;  %17581 = vst [vmem:[#allocation143_spill] sm:$0xff] %v15284_v54  ;;  %v15288_v46 = vpop.f32.mrb[94].mxu1 }
 0x28d   : > { %17580 = vst [vmem:[#allocation142_spill] sm:$0xff] %v15282_v4  ;;  %v15286_v11 = vpop.f32.mrb[95].mxu0  ;;  %17583 = vst [vmem:[#allocation145_spill] sm:$0xff] %v15288_v46  ;;  %v15290_v49 = vpop.f32.mrb[95].mxu1  ;;  %v17585_v4 = vmax.f32 %v14225_v0, %v14559_v41 }
 0x28e   : > { %17582 = vst [vmem:[#allocation144_spill] sm:$0xff] %v15286_v11  ;;  %17584 = vst [vmem:[#allocation146_spill] sm:$0xff] %v15290_v49 }
 0x2b2   : > { %v4254_v51 = vpop.f32.mrb[96].mxu0 }
 0x2b3   : > { %v4576_v18 = vmax.f32 %v15120_v9, %v4254_v51  ;;  %v4327_v27 = vpop.f32.mrb[96].mxu1  ;;  %v4256_v39 = vpop.f32.mrb[97].mxu0  ;;  %v17586_v9 = vmax.f32 %v14229_v14, %v14567_v26  ;;  %v17589_v14 = vmax.f32 %v14236_v38, %v14584_v12 }
 0x2b4   : > { %v4578_v10 = vmax.f32 %v15122_v21, %v4327_v27  ;;  %v4577_v47 = vmax.f32 %v15124_v33, %v4256_v39  ;;  %v4329_v25 = vpop.f32.mrb[97].mxu1  ;;  %v4258_v31 = vpop.f32.mrb[98].mxu0  ;;  %v17587_v39 = vmax.f32 %v14231_v36, %v14569_v23  ;;  %v17590_v36 = vmax.f32 %v14238_v40, %v14596_v45 }
 0x2b5   : > { %v15298_v54 = vmax.f32 %v17585_v4, %v4576_v18  ;;  %v4579_v11 = vmax.f32 %v15126_v6, %v4329_v25  ;;  %v4584_v49 = vmax.f32 %v15128_v7, %v4258_v31  ;;  %v4331_v46 = vpop.f32.mrb[98].mxu1  ;;  %v4260_v53 = vpop.f32.mrb[99].mxu0  ;;  %v17588_v31 = vmax.f32 %v14234_v37, %v14582_v2  ;;  %v17592_v2 = vld [vmem:[#allocation5_spill] sm:$0xff] }
 0x2b6   : > { %v15305_v51 = vmax.f32 %v17586_v9, %v4578_v10  ;;  %v15310_v21 = vmax.f32 %v17587_v39, %v4577_v47  ;;  %v4586_v0 = vmax.f32 %v15136_v13, %v4331_v46  ;;  %v4585_v41 = vmax.f32 %v15138_v52, %v4260_v53  ;;  %v4333_v4 = vpop.f32.mrb[99].mxu1  ;;  %v15323_v7 = vpop.permute.xlu0 %4719  ;;  %v17593_v52 = vld [vmem:[#allocation55_spill] sm:$0xff]  ;;  %v17595_v9 = vld [vmem:[#allocation6_spill] sm:$0xff]  ;;  %v17596_v39 = vld [vmem:[#allocation56_spill] sm:$0xff] }
 0x2b7   : > { %v15317_v33 = vmax.f32 %v17588_v31, %v4579_v11  ;;  %v4648_v26 = vmax.f32 %v17589_v14, %v4584_v49  ;;  %v4587_v6 = vmax.f32 %v15146_v3, %v4333_v4  ;;  %v17591_v46 = vmax.f32 %v14240_v42, %v14598_v17 }
 0x2b8   : > { %v4650_v23 = vmax.f32 %v17590_v36, %v4586_v0  ;;  %v17594_v53 = vmax.f32 %v17592_v2, %v17593_v52  ;;  %v17597_v0 = vmax.f32 %v17595_v9, %v17596_v39  ;;  %v17600_v36 = vmax.f32 %v14262_v60, %v14661_v35  ;;  %v17603_v60 = vld [vmem:[#allocation8_spill] sm:$0xff]  ;;  %v17604_v35 = vld [vmem:[#allocation58_spill] sm:$0xff] }
 0x2b9   : > { %v4649_v13 = vmax.f32 %v17591_v46, %v4585_v41  ;;  %v4760_v37 = vadd.f32 %v15323_v7, %v4648_v26 }
 0x2ba   : > { %v4651_v11 = vmax.f32 %v17594_v53, %v4587_v6  ;;  %v4762_v38 = vadd.f32 %v15323_v7, %v4650_v23  ;;  %v4264_v3 = vpop.f32.mrb[100].mxu0  ;;  %v17605_v53 = vmax.f32 %v17603_v60, %v17604_v35 }
 0x2bb   : > { %v4761_v12 = vadd.f32 %v15323_v7, %v4649_v13  ;;  %v4592_v18 = vmax.f32 %v15162_v59, %v4264_v3  ;;  %v4337_v27 = vpop.f32.mrb[100].mxu1  ;;  %v4266_v40 = vpop.f32.mrb[101].mxu0  ;;  %v4824_v49 = vmax.f32 %v4760_v37, 0.0  ;;  %v17602_v37 = vmax.f32 %v14267_v29, %v14675_v58  ;;  %v17607_v58 = vld [vmem:[#allocation59_spill] sm:$0xff] }
 0x2bc   : > { %v4763_v45 = vadd.f32 %v15323_v7, %v4651_v11  ;;  %v4594_v42 = vmax.f32 %v15166_v28, %v4337_v27  ;;  %v4593_v17 = vmax.f32 %v15164_v32, %v4266_v40  ;;  %v4339_v10 = vpop.f32.mrb[101].mxu1  ;;  %v4268_v47 = vpop.f32.mrb[102].mxu0  ;;  %v4826_v26 = vmax.f32 %v4762_v38, 0.0  ;;  %v17598_v28 = vld [vmem:[#allocation57_spill] sm:$0xff] }
 0x2bd   : > { %v4825_v25 = vmax.f32 %v4761_v12, 0.0  ;;  %v15344_v41 = vmax.f32 %v17597_v0, %v4592_v18  ;;  %v4595_v4 = vmax.f32 %v15170_v34, %v4339_v10  ;;  %v4600_v59 = vmax.f32 %v15168_v15, %v4268_v47  ;;  %v4341_v31 = vpop.f32.mrb[102].mxu1  ;;  %v4270_v14 = vpop.f32.mrb[103].mxu0  ;;  %v17606_v12 = vld [vmem:[#allocation7_spill] sm:$0xff]  ;;  %v17610_v18 = vld [vmem:[#allocation60_spill] sm:$0xff] }
 0x2be   : > { %v17599_v6 = vmax.f32 %v14264_v61, %v17598_v28  ;;  %v15356_v23 = vmax.f32 %v17600_v36, %v4593_v17  ;;  %v4602_v46 = vmax.f32 %v15180_v56, %v4341_v31  ;;  %v4343_v13 = vpop.f32.mrb[103].mxu1  ;;  %v17601_v34 = vmax.f32 %v14269_v63, %v14673_v44  ;;  %v13145_v63 = vld [vmem:[%s17307_s3 + $0x300] sm:$0xff]  }
 0x2bf   : > { %v15367_v2 = vmax.f32 %v17602_v37, %v4600_v59  ;;  %v4601_v61 = vmax.f32 %v15178_v30, %v4270_v14  ;;  %v4603_v52 = vmax.f32 %v15188_v43, %v4343_v13  ;;  %v5017_v56 = vpack.c.bf16 %v4825_v25, %v4825_v25  ;;  %v17609_v30 = vld [vmem:[#allocation9_spill] sm:$0xff]  ;;  %v13148_v59 = vld [vmem:[%s17307_s3 + $0x3c8] sm:$0xff]  }
 0x2c0   : > { %v15351_v32 = vmax.f32 %v17599_v6, %v4594_v42  ;;  %v15362_v15 = vmax.f32 %v17601_v34, %v4595_v4  ;;  %v15374_v11 = vmax.f32 %v17605_v53, %v4602_v46  ;;  %v4827_v38 = vmax.f32 %v4763_v45, 0.0  ;;  %v13146_v45 = vld [vmem:[%s17307_s3 + $0x380] sm:$0xff]   ;;  %v13151_v6 = vld [vmem:[%s17307_s3 + $0x350] sm:$0xff]  }
 0x2c1   : > { %v5016_v44 = vpack.c.bf16 %v4824_v49, %v4824_v49  ;;  %v17608_v29 = vmax.f32 %v17606_v12, %v17607_v58  ;;  %v17611_v43 = vmax.f32 %v17609_v30, %v17610_v18  ;;  %5569 = vmatprep.mubr.bf16.mxu0 %v5017_v56  ;;  %v5018_v17 = vpack.c.bf16 %v4826_v26, %v4826_v26  ;;  %v13147_v49 = vld [vmem:[%s17307_s3 + $0x348] sm:$0xff]   ;;  %v17616_v34 = vld [vmem:[#allocation11_spill] sm:$0xff]  ;;  %v17617_v37 = vld [vmem:[#allocation61_spill] sm:$0xff] }
 0x2c2   : > { %v5019_v40 = vpack.c.bf16 %v4827_v38, %v4827_v38  ;;  %v4274_v42 = vpop.f32.mrb[104].mxu0  ;;  %v17612_v31 = vmax.f32 %v14285_v19, %v14712_v55  ;;  %v17613_v36 = vmax.f32 %v14289_v22, %v14717_v57  ;;  %v17615_v19 = vmax.f32 %v14287_v20, %v14719_v8  ;;  %v17619_v22 = vld [vmem:[#allocation10_spill] sm:$0xff]  ;;  %v13152_v53 = vld [vmem:[%s17307_s3 + $0x3d0] sm:$0xff]   ;;  %v17624_v38 = vld [vmem:[#allocation63_spill] sm:$0xff] }
 0x2c3   : > { %v15382_v3 = vmax.f32 %v17608_v29, %v4601_v61  ;;  %v15387_v27 = vmax.f32 %v17611_v43, %v4603_v52  ;;  %5570 = vmatmul.mubr.bf16.vlgmr.msra.gmra.mrb[128].mxu0 %v5016_v44  ;;  %v4608_v10 = vmax.f32 %v15190_v50, %v4274_v42  ;;  %v4347_v47 = vpop.f32.mrb[104].mxu1  ;;  %v4276_v25 = vpop.f32.mrb[105].mxu0  ;;  %v13149_v50 = vld [vmem:[%s17307_s3 + $0x308] sm:$0xff]   ;;  %v17618_v61 = vmax.f32 %v17616_v34, %v17617_v37  ;;  %v17620_v57 = vld [vmem:[#allocation62_spill] sm:$0xff]  ;;  %v17623_v56 = vld [vmem:[#allocation13_spill] sm:$0xff] }
 0x2c4   : > { %5609 = vmatprep.mubr.bf16.mxu1 %v5019_v40  ;;  %v4610_v9 = vmax.f32 %v15194_v48, %v4347_v47  ;;  %v4609_v39 = vmax.f32 %v15192_v5, %v4276_v25  ;;  %v4349_v0 = vpop.f32.mrb[105].mxu1  ;;  %v4278_v4 = vpop.f32.mrb[106].mxu0  ;;  %12398 = vmatpush3.bf16.msra.mxu0 %v13145_v63  ;;  %v17621_v60 = vmax.f32 %v17619_v22, %v17620_v57  ;;  %v17622_v8 = vld [vmem:[#allocation106_spill] sm:$0xff]  ;;  %v13153_v12 = vld [vmem:[%s17307_s3 + $0x310] sm:$0xff]   ;;  %v17626_v58 = vld [vmem:[#allocation12_spill] sm:$0xff] }
 0x2c5   : > { %5610 = vmatmul.mubr.bf16.vlgmr.msra.gmra.mrb[128].mxu1 %v5018_v17  ;;  %v15407_v14 = vmax.f32 %v17612_v31, %v4608_v10  ;;  %v4611_v48 = vmax.f32 %v15198_v62, %v4349_v0  ;;  %v4616_v5 = vmax.f32 %v15196_v24, %v4278_v4  ;;  %v4351_v26 = vpop.f32.mrb[106].mxu1  ;;  %v4280_v28 = vpop.f32.mrb[107].mxu0  ;;  %v13150_v24 = vld [vmem:[%s17307_s3 + $0x388] sm:$0xff]   ;;  %12399 = vmatprep.subr.bf16.mxu0 %v13147_v49  ;;  %v17629_v18 = vld [vmem:[#allocation14_spill] sm:$0xff]  ;;  %v17630_v43 = vld [vmem:[#allocation65_spill] sm:$0xff] }
 0x2c6   : > { %v15417_v46 = vmax.f32 %v17613_v36, %v4610_v9  ;;  %v15422_v55 = vmax.f32 %v17615_v19, %v4609_v39  ;;  %v4618_v62 = vmax.f32 %v15202_v16, %v4351_v26  ;;  %v4353_v13 = vpop.f32.mrb[107].mxu1  ;;  %12420 = vmatpush3.bf16.msra.mxu1 %v13146_v45  ;;  %v4617_v20 = vmax.f32 %v15200_v1, %v4280_v28  ;;  %v17627_v1 = vld [vmem:[#allocation64_spill] sm:$0xff]  ;;  %v13155_v45 = vld [vmem:[%s17307_s3 + $0x358] sm:$0xff]   ;;  %v13154_v10 = vld [vmem:[%s17307_s3 + $0x390] sm:$0xff]  }
 0x2c7   : > { %v15431_v52 = vmax.f32 %v17618_v61, %v4611_v48  ;;  %v15436_v35 = vmax.f32 %v17621_v60, %v4616_v5  ;;  %v4619_v16 = vmax.f32 %v17622_v8, %v4353_v13  ;;  %v17625_v63 = vmax.f32 %v17623_v56, %v17624_v38  ;;  %12421 = vmatprep.subr.bf16.mxu1 %v13148_v59  ;;  %v17632_v47 = vld [vmem:[#allocation107_spill] sm:$0xff]  ;;  %v13156_v39 = vld [vmem:[%s17307_s3 + $0x3d8] sm:$0xff]   ;;  %v17633_v0 = vld [vmem:[#allocation109_spill] sm:$0xff] }
 0x2c8   : > { %17614 = vst [vmem:[#allocation5_spill] sm:$0xff] %v15417_v46  ;;  %12400 = vmatpush3.bf16.msra.mxu0 %v13149_v50  ;;  %v17628_v29 = vmax.f32 %v17626_v58, %v17627_v1  ;;  %v17631_v40 = vmax.f32 %v17629_v18, %v17630_v43  ;;  %v17634_v59 = vld [vmem:[#allocation108_spill] sm:$0xff]  ;;  %v13157_v5 = vld [vmem:[%s17307_s3 + $0x318] sm:$0xff]   ;;  %v17635_v26 = vld [vmem:[#allocation15_spill] sm:$0xff] }
 0x2c9   : > { %v15446_v44 = vmax.f32 %v17625_v63, %v4618_v62  ;;  %12401 = vmatprep.subr.bf16.mxu0 %v13151_v6  ;;  %v17636_v28 = vld [vmem:[#allocation66_spill] sm:$0xff]  ;;  %v17639_v19 = vld [vmem:[#allocation111_spill] sm:$0xff]  ;;  %v17641_v22 = vld [vmem:[#allocation17_spill] sm:$0xff] }
 0x2ca   : > { %v15454_v30 = vmax.f32 %v17628_v29, %v4617_v20  ;;  %v15459_v42 = vmax.f32 %v17631_v40, %v4619_v16  ;;  %v4284_v17 = vpop.f32.mrb[108].mxu0  ;;  %12422 = vmatpush3.bf16.msra.mxu1 %v13150_v24  ;;  %v17637_v6 = vmax.f32 %v17635_v26, %v17636_v28  ;;  %v17640_v13 = vld [vmem:[#allocation110_spill] sm:$0xff]  ;;  %v13159_v61 = vld [vmem:[%s17307_s3 + $0x360] sm:$0xff]   ;;  %v17645_v8 = vld [vmem:[#allocation16_spill] sm:$0xff] }
 0x2cb   : > { %v4624_v25 = vmax.f32 %v17632_v47, %v4284_v17  ;;  %v4357_v49 = vpop.f32.mrb[108].mxu1  ;;  %v4286_v9 = vpop.f32.mrb[109].mxu0  ;;  %12423 = vmatprep.subr.bf16.mxu1 %v13152_v53  ;;  %v17642_v57 = vld [vmem:[#allocation67_spill] sm:$0xff]  ;;  %v17646_v16 = vld [vmem:[#allocation68_spill] sm:$0xff]  ;;  %v17649_v38 = vld [vmem:[#allocation113_spill] sm:$0xff] }
 0x2cc   : > { %v4626_v4 = vmax.f32 %v17633_v0, %v4357_v49  ;;  %v4625_v50 = vmax.f32 %v17634_v59, %v4286_v9  ;;  %v4359_v31 = vpop.f32.mrb[109].mxu1  ;;  %v4288_v48 = vpop.f32.mrb[110].mxu0  ;;  %12402 = vmatpush3.bf16.msra.mxu0 %v13153_v12  ;;  %v17643_v60 = vmax.f32 %v17641_v22, %v17642_v57  ;;  %v17647_v53 = vmax.f32 %v17645_v8, %v17646_v16  ;;  %v13158_v58 = vld [vmem:[%s17307_s3 + $0x398] sm:$0xff]   ;;  %v17650_v1 = vld [vmem:[#allocation19_spill] sm:$0xff]  ;;  %v17651_v29 = vld [vmem:[#allocation69_spill] sm:$0xff] }
 0x2cd   : > { %v15479_v36 = vmax.f32 %v17637_v6, %v4624_v25  ;;  %v4627_v62 = vmax.f32 %v17639_v19, %v4359_v31  ;;  %v4632_v24 = vmax.f32 %v17640_v13, %v4288_v48  ;;  %v4361_v34 = vpop.f32.mrb[110].mxu1  ;;  %v4290_v37 = vpop.f32.mrb[111].mxu0  ;;  %12403 = vmatprep.subr.bf16.mxu0 %v13155_v45  ;;  %v17652_v18 = vmax.f32 %v17650_v1, %v17651_v29  ;;  %v17654_v40 = vld [vmem:[#allocation18_spill] sm:$0xff]  ;;  %v17657_v25 = vld [vmem:[#allocation112_spill] sm:$0xff]  ;;  %v17660_v59 = vld [vmem:[#allocation71_spill] sm:$0xff] }
 0x2ce   : > { %v15489_v20 = vmax.f32 %v17643_v60, %v4626_v4  ;;  %v15494_v56 = vmax.f32 %v17647_v53, %v4625_v50  ;;  %v4634_v63 = vmax.f32 %v17649_v38, %v4361_v34  ;;  %v4363_v12 = vpop.f32.mrb[111].mxu1  ;;  %12424 = vmatpush3.bf16.msra.mxu1 %v13154_v10  ;;  %v17655_v45 = vld [vmem:[#allocation70_spill] sm:$0xff]  ;;  %v4633_v49 = vmax.f32 %v17657_v25, %v4290_v37  ;;  %v13160_v10 = vld [vmem:[%s17307_s3 + $0x3e0] sm:$0xff]   ;;  %v17659_v4 = vld [vmem:[#allocation21_spill] sm:$0xff] }
 0x2cf   : > { %17638 = vst [vmem:[#allocation55_spill] sm:$0xff] %v15479_v36  ;;  %v15503_v43 = vmax.f32 %v17652_v18, %v4627_v62  ;;  %v17656_v17 = vmax.f32 %v17654_v40, %v17655_v45  ;;  %v17658_v9 = vld [vmem:[#allocation114_spill] sm:$0xff]  ;;  %12425 = vmatprep.subr.bf16.mxu1 %v13156_v39  ;;  %v17661_v50 = vmax.f32 %v17659_v4, %v17660_v59  ;;  %v13161_v48 = vld [vmem:[%s17307_s3 + $0x320] sm:$0xff]   ;;  %v17662_v26 = vld [vmem:[#allocation20_spill] sm:$0xff] }
 0x2d0   : > { %17644 = vst [vmem:[#allocation6_spill] sm:$0xff] %v15489_v20  ;;  %17648 = vst [vmem:[#allocation56_spill] sm:$0xff] %v15494_v56  ;;  %v4635_v0 = vmax.f32 %v17658_v9, %v4363_v12  ;;  %12404 = vmatpush3.bf16.msra.mxu0 %v13157_v5  ;;  %v17663_v28 = vld [vmem:[#allocation72_spill] sm:$0xff]  ;;  %v17665_v39 = vld [vmem:[#allocation22_spill] sm:$0xff] }
 0x2d1   : > { %17653 = vst [vmem:[#allocation57_spill] sm:$0xff] %v15503_v43  ;;  %v15508_v47 = vmax.f32 %v17656_v17, %v4632_v24  ;;  %v15518_v31 = vmax.f32 %v17661_v50, %v4634_v63  ;;  %v17664_v6 = vmax.f32 %v17662_v26, %v17663_v28  ;;  %v17666_v62 = vld [vmem:[#allocation73_spill] sm:$0xff]  ;;  %12405 = vmatprep.subr.bf16.mxu0 %v13159_v61  ;;  %v13163_v34 = vld [vmem:[%s17307_s3 + $0x368] sm:$0xff]   ;;  %v13162_v5 = vld [vmem:[%s17307_s3 + $0x3a0] sm:$0xff]  }
 0x2d2   : > { %v17667_v13 = vmax.f32 %v17665_v39, %v17666_v62  ;;  %12426 = vmatpush3.bf16.msra.mxu1 %v13158_v58  ;;  %v13164_v37 = vld [vmem:[%s17307_s3 + $0x3e8] sm:$0xff]   ;;  %v13167_v61 = vld [vmem:[%s17307_s3 + $0x370] sm:$0xff]   ;;  %v13171_v16 = vld [vmem:[%s17307_s3 + $0x378] sm:$0xff]  }
 0x2d3   : > { %v15526_v19 = vmax.f32 %v17664_v6, %v4633_v49  ;;  %12427 = vmatprep.subr.bf16.mxu1 %v13160_v10  ;;  %v13165_v22 = vld [vmem:[%s17307_s3 + $0x328] sm:$0xff]   ;;  %v13168_v60 = vld [vmem:[%s17307_s3 + $0x3f0] sm:$0xff]   ;;  %v13172_v38 = vld [vmem:[%s17307_s3 + $0x3f8] sm:$0xff]  }
 0x2d4   : > { %v15531_v24 = vmax.f32 %v17667_v13, %v4635_v0  ;;  %12406 = vmatpush3.bf16.msra.mxu0 %v13161_v48  ;;  %v13166_v57 = vld [vmem:[%s17307_s3 + $0x3a8] sm:$0xff]   ;;  %v13169_v8 = vld [vmem:[%s17307_s3 + $0x330] sm:$0xff]   ;;  %v13173_v63 = vld [vmem:[%s17307_s3 + $0x338] sm:$0xff]  }
 0x2d5   : > { %12407 = vmatprep.subr.bf16.mxu0 %v13163_v34  ;;  %v13170_v53 = vld [vmem:[%s17307_s3 + $0x3b0] sm:$0xff]   ;;  %v13175_v12 = vld [vmem:[%s17307_s3 + $0x640] sm:$0xff]   ;;  %v13174_v58 = vld [vmem:[%s17307_s3 + $0x3b8] sm:$0xff]  }
 0x2d6   : > { %12428 = vmatpush3.bf16.msra.mxu1 %v13162_v5  ;;  %v13176_v1 = vld [vmem:[%s17307_s3 + $0x6c0] sm:$0xff]   ;;  %v17669_v25 = vld [vmem:[#allocation116_spill] sm:$0xff]  ;;  %v17670_v9 = vld [vmem:[#allocation117_spill] sm:$0xff] }
 0x2d7   : > { %12429 = vmatprep.subr.bf16.mxu1 %v13164_v37  ;;  %v17668_v18 = vld [vmem:[#allocation115_spill] sm:$0xff]  ;;  %v17672_v50 = vld [vmem:[#allocation74_spill] sm:$0xff]  ;;  %v17676_v5 = vld [vmem:[#allocation24_spill] sm:$0xff] }
 0x2d8   : > { %12408 = vmatpush3.bf16.msra.mxu0 %v13165_v22  ;;  %v17671_v59 = vld [vmem:[#allocation23_spill] sm:$0xff]  ;;  %v17674_v28 = vld [vmem:[#allocation118_spill] sm:$0xff]  ;;  %v17778_v46 = vld [vmem:[#allocation140_spill] sm:$0xff] }
 0x2d9   : > { %12409 = vmatprep.subr.bf16.mxu0 %v13167_v61  ;;  %v17673_v48 = vmax.f32 %v17671_v59, %v17672_v50  ;;  %v17675_v39 = vld [vmem:[#allocation119_spill] sm:$0xff]  ;;  %v17736_v36 = vld [vmem:[#allocation134_spill] sm:$0xff] }
 0x2da   : > { %12430 = vmatpush3.bf16.msra.mxu1 %v13166_v57  ;;  %v17677_v37 = vld [vmem:[#allocation75_spill] sm:$0xff]  ;;  %v17679_v57 = vld [vmem:[#allocation25_spill] sm:$0xff] }
 0x2db   : > { %12431 = vmatprep.subr.bf16.mxu1 %v13168_v60  ;;  %v17678_v22 = vmax.f32 %v17676_v5, %v17677_v37  ;;  %v17680_v60 = vld [vmem:[#allocation76_spill] sm:$0xff]  ;;  %v17692_v59 = vld [vmem:[#allocation79_spill] sm:$0xff]  ;;  %v17698_v5 = vld [vmem:[#allocation81_spill] sm:$0xff] }
 0x2dc   : > { %12410 = vmatpush3.bf16.msra.mxu0 %v13169_v8  ;;  %v17681_v8 = vmax.f32 %v17679_v57, %v17680_v60  ;;  %v17700_v60 = vld [vmem:[#allocation123_spill] sm:$0xff] }
 0x2dd   : > { %12411 = vmatprep.subr.bf16.mxu0 %v13171_v16 }
 0x2de   : > { %12432 = vmatpush3.bf16.msra.mxu1 %v13170_v53  ;;  %v17682_v53 = vld [vmem:[#allocation120_spill] sm:$0xff] }
 0x2df   : > { %12433 = vmatprep.subr.bf16.mxu1 %v13172_v38 }
 0x2e0   : > { %12412 = vmatpush3.bf16.msra.mxu0 %v13173_v63  ;;  %v17683_v63 = vld [vmem:[#allocation121_spill] sm:$0xff] }
 0x2e1   : > { %12441 = vmatprep.subr.bf16.mxu0 %v13175_v12 }
 0x2e2   : > { %12434 = vmatpush3.bf16.msra.mxu1 %v13174_v58 }
 0x2e3   : > { %12463 = vmatprep.subr.bf16.mxu1 %v13176_v1  ;;  %v17684_v1 = vld [vmem:[#allocation26_spill] sm:$0xff] }
 0x2f2   : > { %v4400_v29 = vpop.f32.mrb[112].mxu0 }
 0x2f3   : > { %v4580_v40 = vmax.f32 %v17668_v18, %v4400_v29  ;;  %v4473_v45 = vpop.f32.mrb[112].mxu1  ;;  %v4402_v17 = vpop.f32.mrb[113].mxu0  ;;  %v17685_v29 = vld [vmem:[#allocation77_spill] sm:$0xff] }
 0x2f4   : > { %v4582_v49 = vmax.f32 %v17669_v25, %v4473_v45  ;;  %v4581_v0 = vmax.f32 %v17670_v9, %v4402_v17  ;;  %v4475_v10 = vpop.f32.mrb[113].mxu1  ;;  %v4404_v4 = vpop.f32.mrb[114].mxu0  ;;  %v17686_v18 = vmax.f32 %v17684_v1, %v17685_v29  ;;  %v17687_v45 = vld [vmem:[#allocation27_spill] sm:$0xff]  ;;  %v17688_v17 = vld [vmem:[#allocation78_spill] sm:$0xff]  ;;  %v17702_v29 = vld [vmem:[#allocation124_spill] sm:$0xff] }
 0x2f5   : > { %v15584_v26 = vmax.f32 %v17673_v48, %v4580_v40  ;;  %v4583_v6 = vmax.f32 %v17674_v28, %v4475_v10  ;;  %v4588_v62 = vmax.f32 %v17675_v39, %v4404_v4  ;;  %v4477_v13 = vpop.f32.mrb[114].mxu1  ;;  %v4406_v34 = vpop.f32.mrb[115].mxu0  ;;  %v17689_v25 = vmax.f32 %v17687_v45, %v17688_v17  ;;  %v17690_v9 = vld [vmem:[#allocation122_spill] sm:$0xff]  ;;  %v17691_v4 = vld [vmem:[#allocation28_spill] sm:$0xff]  ;;  %v17694_v48 = vld [vmem:[#allocation29_spill] sm:$0xff] }
 0x2f6   : > { %v15591_v61 = vmax.f32 %v17678_v22, %v4582_v49  ;;  %v15596_v16 = vmax.f32 %v17681_v8, %v4581_v0  ;;  %v4590_v38 = vmax.f32 %v17682_v53, %v4477_v13  ;;  %v4589_v12 = vmax.f32 %v17683_v63, %v4406_v34  ;;  %v4479_v58 = vpop.f32.mrb[115].mxu1  ;;  %v17695_v28 = vld [vmem:[#allocation80_spill] sm:$0xff]  ;;  %v17697_v34 = vld [vmem:[#allocation30_spill] sm:$0xff] }
 0x2f7   : > { %v15603_v40 = vmax.f32 %v17686_v18, %v4583_v6  ;;  %v4652_v49 = vmax.f32 %v17689_v25, %v4588_v62  ;;  %v4591_v10 = vmax.f32 %v17690_v9, %v4479_v58  ;;  %v17693_v0 = vmax.f32 %v17691_v4, %v17692_v59  ;;  %v15618_v6 = vpop.permute.xlu0 %4729  ;;  %v17703_v9 = vld [vmem:[#allocation31_spill] sm:$0xff] }
 0x2f8   : > { %v17696_v39 = vmax.f32 %v17694_v48, %v17695_v28  ;;  %v17699_v37 = vmax.f32 %v17697_v34, %v17698_v5  ;;  %v4777_v62 = vadd.f32 %v15618_v6, %v15382_v3  ;;  %v17706_v59 = vld [vmem:[#allocation127_spill] sm:$0xff]  ;;  %v17707_v48 = vld [vmem:[#allocation126_spill] sm:$0xff]  ;;  %v17708_v34 = vld [vmem:[#allocation33_spill] sm:$0xff] }
 0x2f9   : > { %v4654_v50 = vmax.f32 %v17693_v0, %v4590_v38  ;;  %v4779_v38 = vadd.f32 %v15618_v6, %v15387_v27  ;;  %v4764_v58 = vadd.f32 %v15323_v7, %v4652_v49  ;;  %v17709_v5 = vld [vmem:[#allocation83_spill] sm:$0xff] }
 0x2fa   : > { %v4653_v13 = vmax.f32 %v17696_v39, %v4589_v12  ;;  %v4655_v22 = vmax.f32 %v17699_v37, %v4591_v10  ;;  %v4410_v57 = vpop.f32.mrb[116].mxu0  ;;  %v17701_v12 = vld [vmem:[#allocation125_spill] sm:$0xff]  ;;  %v17704_v10 = vld [vmem:[#allocation82_spill] sm:$0xff]  ;;  %v17710_v37 = vmax.f32 %v17708_v34, %v17709_v5  ;;  %v17721_v34 = vld [vmem:[#allocation128_spill] sm:$0xff] }
 0x2fb   : > { %v4596_v8 = vmax.f32 %v17700_v60, %v4410_v57  ;;  %v4483_v53 = vpop.f32.mrb[116].mxu1  ;;  %v4412_v63 = vpop.f32.mrb[117].mxu0  ;;  %v4766_v25 = vadd.f32 %v15323_v7, %v4654_v50  ;;  %v17705_v3 = vmax.f32 %v17703_v9, %v17704_v10  ;;  %v17711_v60 = vld [vmem:[#allocation32_spill] sm:$0xff]  ;;  %v17716_v9 = vld [vmem:[#allocation85_spill] sm:$0xff] }
 0x2fc   : > { %v4598_v1 = vmax.f32 %v17701_v12, %v4483_v53  ;;  %v4597_v18 = vmax.f32 %v17702_v29, %v4412_v63  ;;  %v4485_v45 = vpop.f32.mrb[117].mxu1  ;;  %v4414_v17 = vpop.f32.mrb[118].mxu0  ;;  %v4765_v49 = vadd.f32 %v15323_v7, %v4653_v13  ;;  %v17712_v50 = vld [vmem:[#allocation84_spill] sm:$0xff]  ;;  %v17718_v13 = vld [vmem:[#allocation34_spill] sm:$0xff] }
 0x2fd   : > { %v15632_v4 = vmax.f32 %v17705_v3, %v4596_v8  ;;  %v4599_v0 = vmax.f32 %v17706_v59, %v4485_v45  ;;  %v4604_v28 = vmax.f32 %v17707_v48, %v4414_v17  ;;  %v4487_v27 = vpop.f32.mrb[118].mxu1  ;;  %v4416_v39 = vpop.f32.mrb[119].mxu0  ;;  %v17713_v53 = vmax.f32 %v17711_v60, %v17712_v50  ;;  %v17714_v8 = vld [vmem:[#allocation129_spill] sm:$0xff]  ;;  %v17715_v17 = vld [vmem:[#allocation35_spill] sm:$0xff]  ;;  %v17719_v59 = vld [vmem:[#allocation86_spill] sm:$0xff] }
 0x2fe   : > { %v15640_v57 = vmax.f32 %v17710_v37, %v4598_v1  ;;  %v4606_v12 = vmax.f32 %v17714_v8, %v4487_v27  ;;  %v4489_v29 = vpop.f32.mrb[119].mxu1  ;;  %v4767_v45 = vadd.f32 %v15323_v7, %v4655_v22  ;;  %v17717_v10 = vmax.f32 %v17715_v17, %v17716_v9  ;;  %v17722_v37 = vld [vmem:[#allocation37_spill] sm:$0xff]  ;;  %v17725_v27 = vld [vmem:[#allocation130_spill] sm:$0xff]  ;;  %v17726_v17 = vld [vmem:[#allocation36_spill] sm:$0xff] }
 0x2ff   : > { %v15645_v63 = vmax.f32 %v17713_v53, %v4597_v18  ;;  %v17720_v48 = vmax.f32 %v17718_v13, %v17719_v59  ;;  %v4605_v5 = vmax.f32 %v17721_v34, %v4416_v39  ;;  %v17723_v18 = vld [vmem:[#allocation87_spill] sm:$0xff]  ;;  %v4607_v53 = vmax.f32 %v17725_v27, %v4489_v29  ;;  %v17730_v59 = vld [vmem:[#allocation89_spill] sm:$0xff] }
 0x300   : > { %v15652_v3 = vmax.f32 %v17717_v10, %v4599_v0  ;;  %v17724_v60 = vmax.f32 %v17722_v37, %v17723_v18  ;;  %v4841_v7 = vmax.f32 %v4777_v62, 0.0  ;;  %v4843_v22 = vmax.f32 %v4779_v38, 0.0  ;;  %v17727_v0 = vld [vmem:[#allocation88_spill] sm:$0xff]  ;;  %v13177_v62 = vld [vmem:[%s17307_s3 + $0x600] sm:$0xff]  }
 0x301   : > { %v15657_v1 = vmax.f32 %v17720_v48, %v4604_v28  ;;  %v4828_v8 = vmax.f32 %v4764_v58, 0.0  ;;  %v17728_v9 = vmax.f32 %v17726_v17, %v17727_v0  ;;  %v4830_v13 = vmax.f32 %v4766_v25, 0.0  ;;  %v17729_v28 = vld [vmem:[#allocation38_spill] sm:$0xff] }
 0x302   : > { %v15663_v50 = vmax.f32 %v17724_v60, %v4606_v12  ;;  %v17731_v48 = vmax.f32 %v17729_v28, %v17730_v59  ;;  %v4829_v34 = vmax.f32 %v4765_v49, 0.0  ;;  %v4420_v37 = vpop.f32.mrb[120].mxu0  ;;  %v4831_v12 = vmax.f32 %v4767_v45, 0.0  ;;  %v17732_v49 = vld [vmem:[#allocation131_spill] sm:$0xff]  ;;  %v17733_v45 = vld [vmem:[#allocation133_spill] sm:$0xff] }
 0x303   : > { %v15669_v10 = vmax.f32 %v17728_v9, %v4605_v5  ;;  %v4493_v18 = vpop.f32.mrb[120].mxu1  ;;  %v4422_v60 = vpop.f32.mrb[121].mxu0  ;;  %v5835_v38 = vpack.c.bf16 %v4841_v7, %v4841_v7  ;;  %v5837_v58 = vpack.c.bf16 %v4843_v22, %v4843_v22  ;;  %v5020_v25 = vpack.c.bf16 %v4828_v8, %v4828_v8  ;;  %v17735_v7 = vld [vmem:[#allocation135_spill] sm:$0xff]  ;;  %v13179_v8 = vld [vmem:[%s17307_s3 + $0x648] sm:$0xff]  }
 0x304   : > { %v15674_v39 = vmax.f32 %v17731_v48, %v4607_v53  ;;  %v5021_v29 = vpack.c.bf16 %v4829_v34, %v4829_v34  ;;  %v4495_v5 = vpop.f32.mrb[121].mxu1  ;;  %v4424_v27 = vpop.f32.mrb[122].mxu0  ;;  %v5023_v17 = vpack.c.bf16 %v4831_v12, %v4831_v12  ;;  %v13178_v53 = vld [vmem:[%s17307_s3 + $0x680] sm:$0xff]   ;;  %v4612_v0 = vmax.f32 %v17732_v49, %v4420_v37  ;;  %v17734_v34 = vld [vmem:[#allocation132_spill] sm:$0xff]  ;;  %v17738_v49 = vld [vmem:[#allocation90_spill] sm:$0xff] }
 0x305   : > { %v4614_v9 = vmax.f32 %v17733_v45, %v4493_v18  ;;  %v4497_v28 = vpop.f32.mrb[122].mxu1  ;;  %v4426_v59 = vpop.f32.mrb[123].mxu0  ;;  %v5022_v48 = vpack.c.bf16 %v4830_v13, %v4830_v13  ;;  %v4613_v20 = vmax.f32 %v17734_v34, %v4422_v60  ;;  %v4615_v22 = vmax.f32 %v17735_v7, %v4495_v5  ;;  %v17737_v37 = vld [vmem:[#allocation39_spill] sm:$0xff]  ;;  %v17741_v13 = vld [vmem:[#allocation41_spill] sm:$0xff] }
 0x306   : > { %5649 = vmatprep.mubr.bf16.mxu0 %v5021_v29  ;;  %v4620_v43 = vmax.f32 %v17736_v36, %v4424_v27  ;;  %v4499_v12 = vpop.f32.mrb[123].mxu1  ;;  %5689 = vmatprep.mubr.bf16.mxu1 %v5023_v17  ;;  %v17739_v18 = vmax.f32 %v17737_v37, %v17738_v49  ;;  %v17742_v29 = vld [vmem:[#allocation91_spill] sm:$0xff]  ;;  %v17745_v5 = vld [vmem:[#allocation137_spill] sm:$0xff]  ;;  %v13180_v36 = vld [vmem:[%s17307_s3 + $0x6c8] sm:$0xff]  }
 0x307   : > { %5650 = vmatmul.mubr.bf16.vlgmr.msra.gmra.mrb[132].mxu0 %v5020_v25  ;;  %v17743_v56 = vmax.f32 %v17741_v13, %v17742_v29  ;;  %v4622_v34 = vmax.f32 %v17745_v5, %v4497_v28  ;;  %5690 = vmatmul.mubr.bf16.vlgmr.msra.gmra.mrb[132].mxu1 %v5022_v48  ;;  %v17746_v27 = vld [vmem:[#allocation40_spill] sm:$0xff]  ;;  %v17751_v37 = vld [vmem:[#allocation93_spill] sm:$0xff]  ;;  %v17758_v29 = vld [vmem:[#allocation95_spill] sm:$0xff] }
 0x308   : > { %v15693_v45 = vmax.f32 %v17739_v18, %v4612_v0  ;;  %12442 = vmatpush3.bf16.msra.mxu0 %v13177_v62  ;;  %v17747_v25 = vld [vmem:[#allocation92_spill] sm:$0xff]  ;;  %v17750_v0 = vld [vmem:[#allocation43_spill] sm:$0xff]  ;;  %12464 = vmatpush3.bf16.msra.mxu1 %v13178_v53  ;;  %v17757_v62 = vld [vmem:[#allocation45_spill] sm:$0xff] }
 0x309   : > { %v15698_v60 = vmax.f32 %v17743_v56, %v4614_v9  ;;  %v17748_v17 = vmax.f32 %v17746_v27, %v17747_v25  ;;  %v17752_v49 = vmax.f32 %v17750_v0, %v17751_v37  ;;  %v17754_v56 = vld [vmem:[#allocation42_spill] sm:$0xff]  ;;  %v13181_v48 = vld [vmem:[%s17307_s3 + $0x608] sm:$0xff]   ;;  %6387 = vmatprep.mubr.bf16.mxu0 %v5835_v38  ;;  %6427 = vmatprep.mubr.bf16.mxu1 %v5837_v58  ;;  %v13184_v53 = vld [vmem:[%s17307_s3 + $0x6d0] sm:$0xff]  }
 0x30a   : > { %17740 = vst [vmem:[#allocation8_spill] sm:$0xff] %v15693_v45  ;;  %v17755_v9 = vld [vmem:[#allocation94_spill] sm:$0xff]  ;;  %12443 = vmatprep.subr.bf16.mxu0 %v13179_v8  ;;  %v4430_v38 = vpop.f32.mrb[124].mxu0  ;;  %12465 = vmatprep.subr.bf16.mxu1 %v13180_v36  ;;  %v17760_v27 = vld [vmem:[#allocation136_spill] sm:$0xff]  ;;  %v17763_v8 = vld [vmem:[#allocation141_spill] sm:$0xff] }
 0x30b   : > { %17744 = vst [vmem:[#allocation58_spill] sm:$0xff] %v15698_v60  ;;  %v15707_v7 = vmax.f32 %v17748_v17, %v4613_v20  ;;  %v15712_v18 = vmax.f32 %v17752_v49, %v4615_v22  ;;  %v17756_v13 = vmax.f32 %v17754_v56, %v17755_v9  ;;  %v17759_v20 = vmax.f32 %v17757_v62, %v17758_v29  ;;  %v13182_v22 = vld [vmem:[%s17307_s3 + $0x688] sm:$0xff]   ;;  %v4432_v17 = vpop.f32.mrb[125].mxu0  ;;  %v17761_v0 = vld [vmem:[#allocation138_spill] sm:$0xff]  ;;  %v13185_v49 = vld [vmem:[%s17307_s3 + $0x610] sm:$0xff]  }
 0x30c   : > { %v4621_v25 = vmax.f32 %v17760_v27, %v4426_v59  ;;  %v4623_v37 = vmax.f32 %v17761_v0, %v4499_v12  ;;  %12444 = vmatpush3.bf16.msra.mxu0 %v13181_v48  ;;  %v17762_v56 = vld [vmem:[#allocation139_spill] sm:$0xff]  ;;  %v4434_v62 = vpop.f32.mrb[126].mxu0  ;;  %v17764_v29 = vld [vmem:[#allocation44_spill] sm:$0xff]  ;;  %12466 = vmatpush3.bf16.msra.mxu1 %v13182_v22  ;;  %v13186_v59 = vld [vmem:[%s17307_s3 + $0x690] sm:$0xff]  }
 0x30d   : > { %17749 = vst [vmem:[#allocation7_spill] sm:$0xff] %v15707_v7  ;;  %17753 = vst [vmem:[#allocation59_spill] sm:$0xff] %v15712_v18  ;;  %v15717_v28 = vmax.f32 %v17756_v13, %v4620_v43  ;;  %v15725_v5 = vmax.f32 %v17759_v20, %v4622_v34  ;;  %v13183_v43 = vld [vmem:[%s17307_s3 + $0x650] sm:$0xff]   ;;  %v4503_v34 = vpop.f32.mrb[124].mxu1  ;;  %v4628_v58 = vmax.f32 %v17762_v56, %v4430_v38  ;;  %v17765_v20 = vld [vmem:[#allocation96_spill] sm:$0xff]  ;;  %v4436_v38 = vpop.f32.mrb[127].mxu0  ;;  %12467 = vmatprep.subr.bf16.mxu1 %v13184_v53 }
 0x30e   : > { %v4630_v9 = vmax.f32 %v17763_v8, %v4503_v34  ;;  %v4505_v13 = vpop.f32.mrb[125].mxu1  ;;  %v17766_v36 = vmax.f32 %v17764_v29, %v17765_v20  ;;  %12445 = vmatprep.subr.bf16.mxu0 %v13183_v43  ;;  %v13187_v48 = vld [vmem:[%s17307_s3 + $0x658] sm:$0xff]   ;;  %v17768_v34 = vld [vmem:[#allocation97_spill] sm:$0xff]  ;;  %v17775_v20 = vld [vmem:[#allocation99_spill] sm:$0xff] }
 0x30f   : > { %v4507_v12 = vpop.f32.mrb[126].mxu1  ;;  %v17767_v27 = vld [vmem:[#allocation46_spill] sm:$0xff]  ;;  %v17774_v29 = vld [vmem:[#allocation49_spill] sm:$0xff] }
 0x310   : > { %v15746_v60 = vmax.f32 %v17766_v36, %v4621_v25  ;;  %v17769_v0 = vmax.f32 %v17767_v27, %v17768_v34  ;;  %v17770_v25 = vld [vmem:[#allocation47_spill] sm:$0xff]  ;;  %v17771_v8 = vld [vmem:[#allocation98_spill] sm:$0xff]  ;;  %v17776_v36 = vmax.f32 %v17774_v29, %v17775_v20  ;;  %v4509_v7 = vpop.f32.mrb[127].mxu1  ;;  %v4629_v27 = vmax.f32 %v17778_v46, %v4432_v17  ;;  %12446 = vmatpush3.bf16.msra.mxu0 %v13185_v49  ;;  %v17785_v20 = vld [vmem:[#allocation101_spill] sm:$0xff] }
 0x311   : > { %v17772_v22 = vmax.f32 %v17770_v25, %v17771_v8  ;;  %v13188_v18 = vld [vmem:[%s17307_s3 + $0x6d8] sm:$0xff]   ;;  %12468 = vmatpush3.bf16.msra.mxu1 %v13186_v59  ;;  %v17781_v25 = vld [vmem:[#allocation48_spill] sm:$0xff]  ;;  %v17784_v29 = vld [vmem:[#allocation51_spill] sm:$0xff]  ;;  %12447 = vmatprep.subr.bf16.mxu0 %v13187_v48 }
 0x312   : > { %v15757_v56 = vmax.f32 %v17769_v0, %v4623_v37  ;;  %v15767_v45 = vmax.f32 %v17776_v36, %v4630_v9  ;;  %v17779_v37 = vld [vmem:[#allocation143_spill] sm:$0xff]  ;;  %v17780_v53 = vld [vmem:[#allocation142_spill] sm:$0xff]  ;;  %v17782_v9 = vld [vmem:[#allocation100_spill] sm:$0xff]  ;;  %v17786_v36 = vmax.f32 %v17784_v29, %v17785_v20  ;;  %12469 = vmatprep.subr.bf16.mxu1 %v13188_v18 }
 0x313   : > { %v15762_v43 = vmax.f32 %v17772_v22, %v4628_v58  ;;  %v4631_v34 = vmax.f32 %v17779_v37, %v4505_v13  ;;  %v4636_v0 = vmax.f32 %v17780_v53, %v4434_v62  ;;  %v13189_v58 = vld [vmem:[%s17307_s3 + $0x618] sm:$0xff]   ;;  %v17783_v8 = vmax.f32 %v17781_v25, %v17782_v9  ;;  %v17787_v46 = vld [vmem:[#allocation145_spill] sm:$0xff]  ;;  %v13191_v13 = vld [vmem:[%s17307_s3 + $0x660] sm:$0xff]  }
 0x314   : > { %17777 = vst [vmem:[#allocation60_spill] sm:$0xff] %v15767_v45  ;;  %v4638_v17 = vmax.f32 %v17787_v46, %v4507_v12  ;;  %v13190_v49 = vld [vmem:[%s17307_s3 + $0x698] sm:$0xff]   ;;  %v17791_v53 = vld [vmem:[#allocation144_spill] sm:$0xff]  ;;  %v13192_v12 = vld [vmem:[%s17307_s3 + $0x6e0] sm:$0xff]   ;;  %12448 = vmatpush3.bf16.msra.mxu0 %v13189_v58 }
 0x315   : > { %17773 = vst [vmem:[#allocation9_spill] sm:$0xff] %v15762_v43  ;;  %v15781_v22 = vmax.f32 %v17783_v8, %v4629_v27  ;;  %v15786_v45 = vmax.f32 %v17786_v36, %v4631_v34  ;;  %v17788_v62 = vld [vmem:[#allocation50_spill] sm:$0xff]  ;;  %v4637_v34 = vmax.f32 %v17791_v53, %v4436_v38  ;;  %v17792_v48 = vld [vmem:[#allocation53_spill] sm:$0xff]  ;;  %v17793_v25 = vld [vmem:[#allocation103_spill] sm:$0xff]  ;;  %12470 = vmatpush3.bf16.msra.mxu1 %v13190_v49 }
 0x316   : > { %v17789_v59 = vld [vmem:[#allocation102_spill] sm:$0xff]  ;;  %v17794_v9 = vmax.f32 %v17792_v48, %v17793_v25  ;;  %v17796_v36 = vld [vmem:[#allocation52_spill] sm:$0xff]  ;;  %v13193_v18 = vld [vmem:[%s17307_s3 + $0x620] sm:$0xff]   ;;  %12449 = vmatprep.subr.bf16.mxu0 %v13191_v13  ;;  %12471 = vmatprep.subr.bf16.mxu1 %v13192_v12  ;;  %v4776_v12 = vadd.f32 %v15618_v6, %v15367_v2  ;;  %v4781_v2 = vadd.f32 %v15618_v6, %v15669_v10 }
 0x317   : > { %v17790_v27 = vmax.f32 %v17788_v62, %v17789_v59  ;;  %v17795_v29 = vld [vmem:[#allocation146_spill] sm:$0xff]  ;;  %v17797_v46 = vld [vmem:[#allocation104_spill] sm:$0xff]  ;;  %v13199_v13 = vld [vmem:[%s17307_s3 + $0x670] sm:$0xff]  }
 0x318   : > { %v15807_v8 = vmax.f32 %v17794_v9, %v4638_v17  ;;  %v4639_v20 = vmax.f32 %v17795_v29, %v4509_v7  ;;  %v17798_v43 = vmax.f32 %v17796_v36, %v17797_v46  ;;  %v17799_v38 = vld [vmem:[#allocation54_spill] sm:$0xff]  ;;  %v13194_v7 = vld [vmem:[%s17307_s3 + $0x6a0] sm:$0xff]   ;;  %v13196_v58 = vld [vmem:[%s17307_s3 + $0x6e8] sm:$0xff]   ;;  %12450 = vmatpush3.bf16.msra.mxu0 %v13193_v18  ;;  %v4778_v9 = vadd.f32 %v15618_v6, %v15374_v11 }
 0x319   : > { %v15798_v37 = vmax.f32 %v17790_v27, %v4636_v0  ;;  %v17800_v0 = vld [vmem:[#allocation105_spill] sm:$0xff]  ;;  %v13197_v17 = vld [vmem:[%s17307_s3 + $0x628] sm:$0xff]   ;;  %12472 = vmatpush3.bf16.msra.mxu1 %v13194_v7  ;;  %v13203_v25 = vld [vmem:[%s17307_s3 + $0x678] sm:$0xff]   ;;  %v4840_v46 = vmax.f32 %v4776_v12, 0.0 }
 0x31a   : > { %v15813_v62 = vmax.f32 %v17798_v43, %v4637_v34  ;;  %v17801_v59 = vmax.f32 %v17799_v38, %v17800_v0  ;;  %v13195_v43 = vld [vmem:[%s17307_s3 + $0x668] sm:$0xff]   ;;  %12473 = vmatprep.subr.bf16.mxu1 %v13196_v58  ;;  %v13200_v53 = vld [vmem:[%s17307_s3 + $0x6f0] sm:$0xff]   ;;  %v13204_v29 = vld [vmem:[%s17307_s3 + $0x6f8] sm:$0xff]   ;;  %v4842_v10 = vmax.f32 %v4778_v9, 0.0  ;;  %v4845_v38 = vmax.f32 %v4781_v2, 0.0 }
 0x31b   : > { %12451 = vmatprep.subr.bf16.mxu0 %v13195_v43  ;;  %v13198_v49 = vld [vmem:[%s17307_s3 + $0x6a8] sm:$0xff]   ;;  %v13201_v34 = vld [vmem:[%s17307_s3 + $0x630] sm:$0xff]   ;;  %v13205_v36 = vld [vmem:[%s17307_s3 + $0x638] sm:$0xff]   ;;  %v5834_v7 = vpack.c.bf16 %v4840_v46, %v4840_v46 }
 0x31c   : > { %v15821_v27 = vmax.f32 %v17801_v59, %v4639_v20  ;;  %12452 = vmatpush3.bf16.msra.mxu0 %v13197_v17  ;;  %v13202_v48 = vld [vmem:[%s17307_s3 + $0x6b0] sm:$0xff]   ;;  %v4783_v20 = vadd.f32 %v15618_v6, %v15674_v39  ;;  %v13206_v11 = vld [vmem:[%s17307_s3 + $0x6b8] sm:$0xff]   ;;  %v13207_v18 = vld [vmem:[%s17307_s3 + $0x740] sm:$0xff]   ;;  %v5836_v58 = vpack.c.bf16 %v4842_v10, %v4842_v10 }
 0x31d   : > { %12474 = vmatpush3.bf16.msra.mxu1 %v13198_v49  ;;  %12453 = vmatprep.subr.bf16.mxu0 %v13199_v13  ;;  %v13208_v39 = vld [vmem:[%s17307_s3 + $0x7c0] sm:$0xff]   ;;  %v13211_v17 = vld [vmem:[%s17307_s3 + $0x748] sm:$0xff]   ;;  %v5839_v49 = vpack.c.bf16 %v4845_v38, %v4845_v38  ;;  %v13217_v9 = vld [vmem:[%s17307_s3 + $0x710] sm:$0xff]  }
 0x31e   : > { %12475 = vmatprep.subr.bf16.mxu1 %v13200_v53  ;;  %v13209_v0 = vld [vmem:[%s17307_s3 + $0x700] sm:$0xff]   ;;  %v4847_v59 = vmax.f32 %v4783_v20, 0.0  ;;  %v13212_v13 = vld [vmem:[%s17307_s3 + $0x7c8] sm:$0xff]   ;;  %v13219_v2 = vld [vmem:[%s17307_s3 + $0x758] sm:$0xff]  }
 0x31f   : > { %v13210_v43 = vld [vmem:[%s17307_s3 + $0x780] sm:$0xff]   ;;  %v13214_v12 = vld [vmem:[%s17307_s3 + $0x788] sm:$0xff]   ;;  %v13220_v20 = vld [vmem:[%s17307_s3 + $0x7d8] sm:$0xff]  }
 0x320   : > { %12454 = vmatpush3.bf16.msra.mxu0 %v13201_v34  ;;  %v5841_v53 = vpack.c.bf16 %v4847_v59, %v4847_v59  ;;  %v13213_v34 = vld [vmem:[%s17307_s3 + $0x708] sm:$0xff]   ;;  %v13222_v46 = vld [vmem:[%s17307_s3 + $0x798] sm:$0xff]   ;;  %v13225_v10 = vld [vmem:[%s17307_s3 + $0x720] sm:$0xff]  }
 0x321   : > { %12476 = vmatpush3.bf16.msra.mxu1 %v13202_v48  ;;  %12455 = vmatprep.subr.bf16.mxu0 %v13203_v25  ;;  %v13215_v48 = vld [vmem:[%s17307_s3 + $0x750] sm:$0xff]   ;;  %v13227_v38 = vld [vmem:[%s17307_s3 + $0x768] sm:$0xff]  }
 0x322   : > { %12477 = vmatprep.subr.bf16.mxu1 %v13204_v29  ;;  %v13216_v25 = vld [vmem:[%s17307_s3 + $0x7d0] sm:$0xff]   ;;  %v13229_v59 = vld [vmem:[%s17307_s3 + $0x728] sm:$0xff]  }
 0x323   : > { %v13218_v29 = vld [vmem:[%s17307_s3 + $0x790] sm:$0xff]  }
 0x324   : > { %12456 = vmatpush3.bf16.msra.mxu0 %v13205_v36  ;;  %v13221_v36 = vld [vmem:[%s17307_s3 + $0x718] sm:$0xff]  }
 0x325   : > { %12478 = vmatpush3.bf16.msra.mxu1 %v13206_v11  ;;  %12485 = vmatprep.subr.bf16.mxu0 %v13207_v18  ;;  %v13223_v11 = vld [vmem:[%s17307_s3 + $0x760] sm:$0xff]  }
 0x326   : > { %12507 = vmatprep.subr.bf16.mxu1 %v13208_v39  ;;  %v13224_v18 = vld [vmem:[%s17307_s3 + $0x7e0] sm:$0xff]  }
 0x327   : > { %6388 = vmatmul.mubr.bf16.vlgmr.msra.gmra.mrb[136].mxu0 %v5834_v7  ;;  %v13226_v39 = vld [vmem:[%s17307_s3 + $0x7a0] sm:$0xff]   ;;  %v13230_v7 = vld [vmem:[%s17307_s3 + $0x7a8] sm:$0xff]  }
 0x328   : > { %6428 = vmatmul.mubr.bf16.vlgmr.msra.gmra.mrb[136].mxu1 %v5836_v58  ;;  %12486 = vmatpush3.bf16.msra.mxu0 %v13209_v0  ;;  %v13228_v0 = vld [vmem:[%s17307_s3 + $0x7e8] sm:$0xff]   ;;  %v13232_v58 = vld [vmem:[%s17307_s3 + $0x7f0] sm:$0xff]  }
 0x329   : > { %6467 = vmatprep.mubr.bf16.mxu0 %v5839_v49  ;;  %12508 = vmatpush3.bf16.msra.mxu1 %v13210_v43  ;;  %v13231_v43 = vld [vmem:[%s17307_s3 + $0x770] sm:$0xff]   ;;  %v4780_v49 = vadd.f32 %v15618_v6, %v15657_v1  ;;  %v13236_v1 = vld [vmem:[%s17307_s3 + $0x7f8] sm:$0xff]  }
 0x32a   : > { %6507 = vmatprep.mubr.bf16.mxu1 %v5841_v53  ;;  %12487 = vmatprep.subr.bf16.mxu0 %v13211_v17  ;;  %v13233_v17 = vld [vmem:[%s17307_s3 + $0x730] sm:$0xff]   ;;  %v13235_v53 = vld [vmem:[%s17307_s3 + $0x778] sm:$0xff]  }
 0x32b   : > { %12509 = vmatprep.subr.bf16.mxu1 %v13212_v13  ;;  %v13234_v13 = vld [vmem:[%s17307_s3 + $0x7b0] sm:$0xff]  }
 0x32c   : > { %12488 = vmatpush3.bf16.msra.mxu0 %v13213_v34  ;;  %v15959_v34 = vpop.permute.xlu1 %4739 }
 0x32d   : > { %12510 = vmatpush3.bf16.msra.mxu1 %v13214_v12  ;;  %12489 = vmatprep.subr.bf16.mxu0 %v13215_v48  ;;  %v4782_v12 = vadd.f32 %v15618_v6, %v15663_v50  ;;  %v4793_v48 = vadd.f32 %v15959_v34, %v15454_v30  ;;  %v13238_v6 = vld [vmem:[%s17307_s3 + $0x7b8] sm:$0xff]   ;;  %v13239_v50 = vld [vmem:[%s17307_s3 + $0xa40] sm:$0xff]  }
 0x32e   : > { %12511 = vmatprep.subr.bf16.mxu1 %v13216_v25  ;;  %v4795_v25 = vadd.f32 %v15959_v34, %v15459_v42  ;;  %v13240_v42 = vld [vmem:[%s17307_s3 + $0xac0] sm:$0xff]  }
 0x32f   : > { %v4846_v30 = vmax.f32 %v4782_v12, 0.0  ;;  %v13253_v12 = vld [vmem:[%s17307_s3 + $0xa18] sm:$0xff]  }
 0x330   : > { %12490 = vmatpush3.bf16.msra.mxu0 %v13217_v9  ;;  %v13237_v9 = vld [vmem:[%s17307_s3 + $0x738] sm:$0xff]  }
 0x331   : > { %12512 = vmatpush3.bf16.msra.mxu1 %v13218_v29  ;;  %12491 = vmatprep.subr.bf16.mxu0 %v13219_v2  ;;  %v4844_v29 = vmax.f32 %v4780_v49, 0.0  ;;  %v4857_v2 = vmax.f32 %v4793_v48, 0.0  ;;  %v13250_v49 = vld [vmem:[%s17307_s3 + $0xa90] sm:$0xff]   ;;  %v13255_v48 = vld [vmem:[%s17307_s3 + $0xa60] sm:$0xff]  }
 0x332   : > { %12513 = vmatprep.subr.bf16.mxu1 %v13220_v20  ;;  %v13241_v20 = vld [vmem:[%s17307_s3 + $0xa00] sm:$0xff]  }
 0x334   : > { %12492 = vmatpush3.bf16.msra.mxu0 %v13221_v36  ;;  %v4859_v36 = vmax.f32 %v4795_v25, 0.0  ;;  %v13256_v25 = vld [vmem:[%s17307_s3 + $0xae0] sm:$0xff]  }
 0x335   : > { %12514 = vmatpush3.bf16.msra.mxu1 %v13222_v46  ;;  %12493 = vmatprep.subr.bf16.mxu0 %v13223_v11  ;;  %v5838_v46 = vpack.c.bf16 %v4844_v29, %v4844_v29  ;;  %v13242_v11 = vld [vmem:[%s17307_s3 + $0xa80] sm:$0xff]  }
 0x336   : > { %12515 = vmatprep.subr.bf16.mxu1 %v13224_v18  ;;  %v5840_v18 = vpack.c.bf16 %v4846_v30, %v4846_v30  ;;  %v13258_v29 = vld [vmem:[%s17307_s3 + $0xaa0] sm:$0xff]   ;;  %v13261_v30 = vld [vmem:[%s17307_s3 + $0xa28] sm:$0xff]  }
 0x338   : > { %12494 = vmatpush3.bf16.msra.mxu0 %v13225_v10  ;;  %v13243_v10 = vld [vmem:[%s17307_s3 + $0xa48] sm:$0xff]  }
 0x339   : > { %12516 = vmatpush3.bf16.msra.mxu1 %v13226_v39  ;;  %12495 = vmatprep.subr.bf16.mxu0 %v13227_v38  ;;  %v6653_v39 = vpack.c.bf16 %v4857_v2, %v4857_v2  ;;  %v13244_v38 = vld [vmem:[%s17307_s3 + $0xac8] sm:$0xff]   ;;  %v13263_v2 = vld [vmem:[%s17307_s3 + $0xa70] sm:$0xff]  }
 0x33a   : > { %12517 = vmatprep.subr.bf16.mxu1 %v13228_v0  ;;  %v6655_v0 = vpack.c.bf16 %v4859_v36, %v4859_v36  ;;  %v13265_v36 = vld [vmem:[%s17307_s3 + $0xa30] sm:$0xff]  }
 0x33c   : > { %12496 = vmatpush3.bf16.msra.mxu0 %v13229_v59  ;;  %v13245_v59 = vld [vmem:[%s17307_s3 + $0xa08] sm:$0xff]  }
 0x33d   : > { %12518 = vmatpush3.bf16.msra.mxu1 %v13230_v7  ;;  %12497 = vmatprep.subr.bf16.mxu0 %v13231_v43  ;;  %v13246_v7 = vld [vmem:[%s17307_s3 + $0xa88] sm:$0xff]   ;;  %v13247_v43 = vld [vmem:[%s17307_s3 + $0xa50] sm:$0xff]  }
 0x33e   : > { %12519 = vmatprep.subr.bf16.mxu1 %v13232_v58  ;;  %v13248_v58 = vld [vmem:[%s17307_s3 + $0xad0] sm:$0xff]  }
 0x340   : > { %12498 = vmatpush3.bf16.msra.mxu0 %v13233_v17  ;;  %v13249_v17 = vld [vmem:[%s17307_s3 + $0xa10] sm:$0xff]  }
 0x341   : > { %12520 = vmatpush3.bf16.msra.mxu1 %v13234_v13  ;;  %12499 = vmatprep.subr.bf16.mxu0 %v13235_v53  ;;  %v13251_v13 = vld [vmem:[%s17307_s3 + $0xa58] sm:$0xff]  }
 0x342   : > { %12521 = vmatprep.subr.bf16.mxu1 %v13236_v1  ;;  %v13252_v53 = vld [vmem:[%s17307_s3 + $0xad8] sm:$0xff]  }
 0x343   : > { %v13254_v1 = vld [vmem:[%s17307_s3 + $0xa98] sm:$0xff]  }
 0x344   : > { %12500 = vmatpush3.bf16.msra.mxu0 %v13237_v9  ;;  %v13257_v9 = vld [vmem:[%s17307_s3 + $0xa20] sm:$0xff]  }
 0x345   : > { %12522 = vmatpush3.bf16.msra.mxu1 %v13238_v6  ;;  %12529 = vmatprep.subr.bf16.mxu0 %v13239_v50  ;;  %v13259_v6 = vld [vmem:[%s17307_s3 + $0xa68] sm:$0xff]  }
 0x346   : > { %12551 = vmatprep.subr.bf16.mxu1 %v13240_v42  ;;  %v13260_v50 = vld [vmem:[%s17307_s3 + $0xae8] sm:$0xff]  }
 0x347   : > { %6468 = vmatmul.mubr.bf16.vlgmr.msra.gmra.mrb[140].mxu0 %v5838_v46  ;;  %v13262_v42 = vld [vmem:[%s17307_s3 + $0xaa8] sm:$0xff]   ;;  %v4792_v46 = vadd.f32 %v15959_v34, %v15436_v35  ;;  %v4797_v35 = vadd.f32 %v15959_v34, %v15746_v60 }
 0x348   : > { %6508 = vmatmul.mubr.bf16.vlgmr.msra.gmra.mrb[140].mxu1 %v5840_v18  ;;  %12530 = vmatpush3.bf16.msra.mxu0 %v13241_v20  ;;  %v13264_v20 = vld [vmem:[%s17307_s3 + $0xaf0] sm:$0xff]   ;;  %v13267_v18 = vld [vmem:[%s17307_s3 + $0xa78] sm:$0xff]  }
 0x349   : > { %7205 = vmatprep.mubr.bf16.mxu0 %v6653_v39  ;;  %12552 = vmatpush3.bf16.msra.mxu1 %v13242_v11  ;;  %v13266_v11 = vld [vmem:[%s17307_s3 + $0xab0] sm:$0xff]   ;;  %v13268_v39 = vld [vmem:[%s17307_s3 + $0xaf8] sm:$0xff]  }
 0x34a   : > { %7245 = vmatprep.mubr.bf16.mxu1 %v6655_v0  ;;  %12531 = vmatprep.subr.bf16.mxu0 %v13243_v10  ;;  %v4794_v10 = vadd.f32 %v15959_v34, %v15446_v44  ;;  %v13269_v0 = vld [vmem:[%s17307_s3 + $0xa38] sm:$0xff]  }
 0x34b   : > { %12553 = vmatprep.subr.bf16.mxu1 %v13244_v38  ;;  %v4799_v38 = vadd.f32 %v15959_v34, %v15757_v56  ;;  %v13270_v44 = vld [vmem:[%s17307_s3 + $0xab8] sm:$0xff]   ;;  %v13272_v56 = vld [vmem:[%s17307_s3 + $0xbc0] sm:$0xff]  }
 0x34c   : > { %12532 = vmatpush3.bf16.msra.mxu0 %v13245_v59  ;;  %v4856_v59 = vmax.f32 %v4792_v46, 0.0  ;;  %v4858_v60 = vmax.f32 %v4794_v10, 0.0  ;;  %v13286_v46 = vld [vmem:[%s17307_s3 + $0xb98] sm:$0xff]   ;;  %v13289_v10 = vld [vmem:[%s17307_s3 + $0xb20] sm:$0xff]  }
 0x34d   : > { %12554 = vmatpush3.bf16.msra.mxu1 %v13246_v7  ;;  %12533 = vmatprep.subr.bf16.mxu0 %v13247_v43  ;;  %v13271_v7 = vld [vmem:[%s17307_s3 + $0xb40] sm:$0xff]   ;;  %v4861_v43 = vmax.f32 %v4797_v35, 0.0  ;;  %v13291_v35 = vld [vmem:[%s17307_s3 + $0xb68] sm:$0xff]  }
 0x34e   : > { %12555 = vmatprep.subr.bf16.mxu1 %v13248_v58  ;;  %v13273_v58 = vld [vmem:[%s17307_s3 + $0xb00] sm:$0xff]  }
 0x350   : > { %12534 = vmatpush3.bf16.msra.mxu0 %v13249_v17  ;;  %v4863_v17 = vmax.f32 %v4799_v38, 0.0  ;;  %v13292_v38 = vld [vmem:[%s17307_s3 + $0xbe8] sm:$0xff]  }
 0x351   : > { %12556 = vmatpush3.bf16.msra.mxu1 %v13250_v49  ;;  %12535 = vmatprep.subr.bf16.mxu0 %v13251_v13  ;;  %v6652_v49 = vpack.c.bf16 %v4856_v59, %v4856_v59  ;;  %v13274_v13 = vld [vmem:[%s17307_s3 + $0xb80] sm:$0xff]   ;;  %v13294_v59 = vld [vmem:[%s17307_s3 + $0xba8] sm:$0xff]  }
 0x352   : > { %12557 = vmatprep.subr.bf16.mxu1 %v13252_v53  ;;  %v6654_v53 = vpack.c.bf16 %v4858_v60, %v4858_v60  ;;  %v13297_v60 = vld [vmem:[%s17307_s3 + $0xb30] sm:$0xff]  }
 0x354   : > { %12536 = vmatpush3.bf16.msra.mxu0 %v13253_v12  ;;  %v13275_v12 = vld [vmem:[%s17307_s3 + $0xb48] sm:$0xff]  }
 0x355   : > { %12558 = vmatpush3.bf16.msra.mxu1 %v13254_v1  ;;  %12537 = vmatprep.subr.bf16.mxu0 %v13255_v48  ;;  %v6657_v1 = vpack.c.bf16 %v4861_v43, %v4861_v43  ;;  %v13276_v48 = vld [vmem:[%s17307_s3 + $0xbc8] sm:$0xff]   ;;  %v13298_v43 = vld [vmem:[%s17307_s3 + $0xbb0] sm:$0xff]  }
 0x356   : > { %12559 = vmatprep.subr.bf16.mxu1 %v13256_v25  ;;  %v6659_v25 = vpack.c.bf16 %v4863_v17, %v4863_v17  ;;  %v16169_v17 = vpop.permute.xlu1 %4749 }
 0x358   : > { %12538 = vmatpush3.bf16.msra.mxu0 %v13257_v9  ;;  %v13277_v9 = vld [vmem:[%s17307_s3 + $0xb08] sm:$0xff]  }
 0x359   : > { %12560 = vmatpush3.bf16.msra.mxu1 %v13258_v29  ;;  %12539 = vmatprep.subr.bf16.mxu0 %v13259_v6  ;;  %v13278_v29 = vld [vmem:[%s17307_s3 + $0xb88] sm:$0xff]   ;;  %v13279_v6 = vld [vmem:[%s17307_s3 + $0xb50] sm:$0xff]  }
 0x35a   : > { %12561 = vmatprep.subr.bf16.mxu1 %v13260_v50  ;;  %v13280_v50 = vld [vmem:[%s17307_s3 + $0xbd0] sm:$0xff]  }
 0x35c   : > { %12540 = vmatpush3.bf16.msra.mxu0 %v13261_v30  ;;  %v13281_v30 = vld [vmem:[%s17307_s3 + $0xb10] sm:$0xff]  }
 0x35d   : > { %12562 = vmatpush3.bf16.msra.mxu1 %v13262_v42  ;;  %12541 = vmatprep.subr.bf16.mxu0 %v13263_v2  ;;  %v13282_v42 = vld [vmem:[%s17307_s3 + $0xb90] sm:$0xff]   ;;  %v13283_v2 = vld [vmem:[%s17307_s3 + $0xb58] sm:$0xff]  }
 0x35e   : > { %12563 = vmatprep.subr.bf16.mxu1 %v13264_v20  ;;  %v13284_v20 = vld [vmem:[%s17307_s3 + $0xbd8] sm:$0xff]  }
 0x360   : > { %12542 = vmatpush3.bf16.msra.mxu0 %v13265_v36  ;;  %v13285_v36 = vld [vmem:[%s17307_s3 + $0xb18] sm:$0xff]  }
 0x361   : > { %12564 = vmatpush3.bf16.msra.mxu1 %v13266_v11  ;;  %12543 = vmatprep.subr.bf16.mxu0 %v13267_v18  ;;  %v13287_v11 = vld [vmem:[%s17307_s3 + $0xb60] sm:$0xff]  }
 0x362   : > { %12565 = vmatprep.subr.bf16.mxu1 %v13268_v39  ;;  %v13288_v18 = vld [vmem:[%s17307_s3 + $0xbe0] sm:$0xff]  }
 0x363   : > { %v13290_v39 = vld [vmem:[%s17307_s3 + $0xba0] sm:$0xff]  }
 0x364   : > { %12544 = vmatpush3.bf16.msra.mxu0 %v13269_v0  ;;  %v13293_v0 = vld [vmem:[%s17307_s3 + $0xb28] sm:$0xff]  }
 0x365   : > { %12566 = vmatpush3.bf16.msra.mxu1 %v13270_v44  ;;  %12573 = vmatprep.subr.bf16.mxu0 %v13271_v7  ;;  %v13295_v44 = vld [vmem:[%s17307_s3 + $0xb70] sm:$0xff]  }
 0x366   : > { %12595 = vmatprep.subr.bf16.mxu1 %v13272_v56  ;;  %v13296_v7 = vld [vmem:[%s17307_s3 + $0xbf0] sm:$0xff]   ;;  %v4796_v56 = vadd.f32 %v15959_v34, %v15717_v28  ;;  %v13300_v28 = vld [vmem:[%s17307_s3 + $0xbf8] sm:$0xff]  }
 0x367   : > { %7206 = vmatmul.mubr.bf16.vlgmr.msra.gmra.mrb[144].mxu0 %v6652_v49  ;;  %v4798_v49 = vadd.f32 %v15959_v34, %v15725_v5  ;;  %v13302_v5 = vld [vmem:[%s17307_s3 + $0xbb8] sm:$0xff]   ;;  %v13303_v34 = vld [vmem:[%s17307_s3 + $0xe40] sm:$0xff]  }
 0x368   : > { %7246 = vmatmul.mubr.bf16.vlgmr.msra.gmra.mrb[144].mxu1 %v6654_v53  ;;  %12574 = vmatpush3.bf16.msra.mxu0 %v13273_v58  ;;  %v13299_v58 = vld [vmem:[%s17307_s3 + $0xb78] sm:$0xff]   ;;  %v4811_v53 = vadd.f32 %v16169_v17, %v15531_v24  ;;  %v13304_v24 = vld [vmem:[%s17307_s3 + $0xec0] sm:$0xff]  }
 0x369   : > { %7285 = vmatprep.mubr.bf16.mxu0 %v6657_v1  ;;  %12596 = vmatpush3.bf16.msra.mxu1 %v13274_v13  ;;  %v4809_v13 = vadd.f32 %v16169_v17, %v15526_v19  ;;  %v4860_v1 = vmax.f32 %v4796_v56, 0.0  ;;  %v4862_v19 = vmax.f32 %v4798_v49, 0.0  ;;  %v13322_v56 = vld [vmem:[%s17307_s3 + $0xea0] sm:$0xff]   ;;  %v13324_v49 = vld [vmem:[%s17307_s3 + $0xee8] sm:$0xff]  }
 0x36a   : > { %7325 = vmatprep.mubr.bf16.mxu1 %v6659_v25  ;;  %12575 = vmatprep.subr.bf16.mxu0 %v13275_v12  ;;  %v13301_v12 = vld [vmem:[%s17307_s3 + $0xb38] sm:$0xff]   ;;  %v13305_v25 = vld [vmem:[%s17307_s3 + $0xe00] sm:$0xff]  }
 0x36b   : > { %12597 = vmatprep.subr.bf16.mxu1 %v13276_v48  ;;  %v4873_v48 = vmax.f32 %v4809_v13, 0.0 }
 0x36c   : > { %12576 = vmatpush3.bf16.msra.mxu0 %v13277_v9  ;;  %v4875_v9 = vmax.f32 %v4811_v53, 0.0 }
 0x36d   : > { %12598 = vmatpush3.bf16.msra.mxu1 %v13278_v29  ;;  %12577 = vmatprep.subr.bf16.mxu0 %v13279_v6  ;;  %v6656_v29 = vpack.c.bf16 %v4860_v1, %v4860_v1  ;;  %v13306_v6 = vld [vmem:[%s17307_s3 + $0xe80] sm:$0xff]  }
 0x36e   : > { %12599 = vmatprep.subr.bf16.mxu1 %v13280_v50  ;;  %v6658_v50 = vpack.c.bf16 %v4862_v19, %v4862_v19 }
 0x370   : > { %12578 = vmatpush3.bf16.msra.mxu0 %v13281_v30  ;;  %v13307_v30 = vld [vmem:[%s17307_s3 + $0xe48] sm:$0xff]  }
 0x371   : > { %12600 = vmatpush3.bf16.msra.mxu1 %v13282_v42  ;;  %12579 = vmatprep.subr.bf16.mxu0 %v13283_v2  ;;  %v7471_v42 = vpack.c.bf16 %v4873_v48, %v4873_v48  ;;  %v13308_v2 = vld [vmem:[%s17307_s3 + $0xec8] sm:$0xff]  }
 0x372   : > { %12601 = vmatprep.subr.bf16.mxu1 %v13284_v20  ;;  %v7473_v20 = vpack.c.bf16 %v4875_v9, %v4875_v9  ;;  %v13328_v9 = vld [vmem:[%s17307_s3 + $0xef0] sm:$0xff]  }
 0x374   : > { %12580 = vmatpush3.bf16.msra.mxu0 %v13285_v36  ;;  %v13309_v36 = vld [vmem:[%s17307_s3 + $0xe08] sm:$0xff]  }
 0x375   : > { %12602 = vmatpush3.bf16.msra.mxu1 %v13286_v46  ;;  %12581 = vmatprep.subr.bf16.mxu0 %v13287_v11  ;;  %v13310_v46 = vld [vmem:[%s17307_s3 + $0xe88] sm:$0xff]   ;;  %v13311_v11 = vld [vmem:[%s17307_s3 + $0xe50] sm:$0xff]  }
 0x376   : > { %12603 = vmatprep.subr.bf16.mxu1 %v13288_v18  ;;  %v13312_v18 = vld [vmem:[%s17307_s3 + $0xed0] sm:$0xff]  }
 0x378   : > { %12582 = vmatpush3.bf16.msra.mxu0 %v13289_v10  ;;  %v13313_v10 = vld [vmem:[%s17307_s3 + $0xe10] sm:$0xff]  }
 0x379   : > { %12604 = vmatpush3.bf16.msra.mxu1 %v13290_v39  ;;  %12583 = vmatprep.subr.bf16.mxu0 %v13291_v35  ;;  %v13314_v39 = vld [vmem:[%s17307_s3 + $0xe90] sm:$0xff]   ;;  %v13315_v35 = vld [vmem:[%s17307_s3 + $0xe58] sm:$0xff]  }
 0x37a   : > { %12605 = vmatprep.subr.bf16.mxu1 %v13292_v38  ;;  %v13316_v38 = vld [vmem:[%s17307_s3 + $0xed8] sm:$0xff]  }
 0x37c   : > { %12584 = vmatpush3.bf16.msra.mxu0 %v13293_v0  ;;  %v13317_v0 = vld [vmem:[%s17307_s3 + $0xe18] sm:$0xff]  }
 0x37d   : > { %12606 = vmatpush3.bf16.msra.mxu1 %v13294_v59  ;;  %12585 = vmatprep.subr.bf16.mxu0 %v13295_v44  ;;  %v13318_v59 = vld [vmem:[%s17307_s3 + $0xe98] sm:$0xff]   ;;  %v13319_v44 = vld [vmem:[%s17307_s3 + $0xe60] sm:$0xff]  }
 0x37e   : > { %12607 = vmatprep.subr.bf16.mxu1 %v13296_v7  ;;  %v13320_v7 = vld [vmem:[%s17307_s3 + $0xee0] sm:$0xff]  }
 0x380   : > { %12586 = vmatpush3.bf16.msra.mxu0 %v13297_v60  ;;  %v13321_v60 = vld [vmem:[%s17307_s3 + $0xe20] sm:$0xff]  }
 0x381   : > { %12608 = vmatpush3.bf16.msra.mxu1 %v13298_v43  ;;  %12587 = vmatprep.subr.bf16.mxu0 %v13299_v58  ;;  %v13323_v43 = vld [vmem:[%s17307_s3 + $0xe68] sm:$0xff]  }
 0x382   : > { %12609 = vmatprep.subr.bf16.mxu1 %v13300_v28 }
 0x384   : > { %12588 = vmatpush3.bf16.msra.mxu0 %v13301_v12  ;;  %v13325_v12 = vld [vmem:[%s17307_s3 + $0xe28] sm:$0xff]  }
 0x385   : > { %12610 = vmatpush3.bf16.msra.mxu1 %v13302_v5  ;;  %12617 = vmatprep.subr.bf16.mxu0 %v13303_v34  ;;  %v13326_v34 = vld [vmem:[%s17307_s3 + $0xea8] sm:$0xff]  }
 0x386   : > { %12639 = vmatprep.subr.bf16.mxu1 %v13304_v24  ;;  %v13327_v24 = vld [vmem:[%s17307_s3 + $0xe70] sm:$0xff]  }
 0x387   : > { %7286 = vmatmul.mubr.bf16.vlgmr.msra.gmra.mrb[148].mxu0 %v6656_v29 }
 0x388   : > { %7326 = vmatmul.mubr.bf16.vlgmr.msra.gmra.mrb[148].mxu1 %v6658_v50  ;;  %12618 = vmatpush3.bf16.msra.mxu0 %v13305_v25  ;;  %v13329_v50 = vld [vmem:[%s17307_s3 + $0xe30] sm:$0xff]  }
 0x389   : > { %8023 = vmatprep.mubr.bf16.mxu0 %v7471_v42  ;;  %12640 = vmatpush3.bf16.msra.mxu1 %v13306_v6  ;;  %v13330_v42 = vld [vmem:[%s17307_s3 + $0xeb0] sm:$0xff]  }
 0x38a   : > { %8063 = vmatprep.mubr.bf16.mxu1 %v7473_v20  ;;  %12619 = vmatprep.subr.bf16.mxu0 %v13307_v30  ;;  %v4808_v30 = vadd.f32 %v16169_v17, %v15508_v47  ;;  %v4810_v20 = vadd.f32 %v16169_v17, %v15518_v31  ;;  %v4813_v47 = vadd.f32 %v16169_v17, %v15813_v62  ;;  %v13334_v31 = vld [vmem:[%s17307_s3 + $0xeb8] sm:$0xff]  }
 0x38b   : > { %12641 = vmatprep.subr.bf16.mxu1 %v13308_v2  ;;  %v13331_v2 = vld [vmem:[%s17307_s3 + $0xe78] sm:$0xff]  }
 0x38c   : > { %12620 = vmatpush3.bf16.msra.mxu0 %v13309_v36  ;;  %v13332_v36 = vld [vmem:[%s17307_s3 + $0xef8] sm:$0xff]   ;;  %v4874_v62 = vmax.f32 %v4810_v20, 0.0  ;;  %v13360_v20 = vld [vmem:[%s17307_s3 + $0xff0] sm:$0xff]  }
 0x38d   : > { %12642 = vmatpush3.bf16.msra.mxu1 %v13310_v46  ;;  %12621 = vmatprep.subr.bf16.mxu0 %v13311_v11  ;;  %v4815_v46 = vadd.f32 %v16169_v17, %v15821_v27  ;;  %v13333_v11 = vld [vmem:[%s17307_s3 + $0xe38] sm:$0xff]   ;;  %v13336_v27 = vld [vmem:[%s17307_s3 + $0xfc0] sm:$0xff]  }
 0x38e   : > { %12643 = vmatprep.subr.bf16.mxu1 %v13312_v18  ;;  %v4872_v18 = vmax.f32 %v4808_v30, 0.0  ;;  %v13357_v30 = vld [vmem:[%s17307_s3 + $0xf28] sm:$0xff]  }
 0x390   : > { %12622 = vmatpush3.bf16.msra.mxu0 %v13313_v10  ;;  %v13335_v10 = vld [vmem:[%s17307_s3 + $0xf40] sm:$0xff]  }
 0x391   : > { %12644 = vmatpush3.bf16.msra.mxu1 %v13314_v39  ;;  %12623 = vmatprep.subr.bf16.mxu0 %v13315_v35  ;;  %v4877_v39 = vmax.f32 %v4813_v47, 0.0  ;;  %v13337_v35 = vld [vmem:[%s17307_s3 + $0xf00] sm:$0xff]   ;;  %v13361_v47 = vld [vmem:[%s17307_s3 + $0xf30] sm:$0xff]  }
 0x392   : > { %12645 = vmatprep.subr.bf16.mxu1 %v13316_v38  ;;  %v4879_v38 = vmax.f32 %v4815_v46, 0.0  ;;  %v4812_v46 = vadd.f32 %v16169_v17, %v15798_v37 }
 0x394   : > { %12624 = vmatpush3.bf16.msra.mxu0 %v13317_v0  ;;  %v7470_v0 = vpack.c.bf16 %v4872_v18, %v4872_v18  ;;  %v13363_v18 = vld [vmem:[%s17307_s3 + $0xf78] sm:$0xff]  }
 0x395   : > { %12646 = vmatpush3.bf16.msra.mxu1 %v13318_v59  ;;  %12625 = vmatprep.subr.bf16.mxu0 %v13319_v44  ;;  %v13338_v59 = vld [vmem:[%s17307_s3 + $0xf80] sm:$0xff]   ;;  %v7472_v44 = vpack.c.bf16 %v4874_v62, %v4874_v62  ;;  %v13365_v62 = vld [vmem:[%s17307_s3 + $0xf38] sm:$0xff]  }
 0x396   : > { %12647 = vmatprep.subr.bf16.mxu1 %v13320_v7  ;;  %v12369_v58 = vpop.f32.mrb[128].mxu0  ;;  %v13339_v7 = vld [vmem:[%s17307_s3 + $0xf48] sm:$0xff]  }
 0x397   : > { %v12370_v28 = vpop.f32.mrb[129].mxu0 }
 0x398   : > { %12626 = vmatpush3.bf16.msra.mxu0 %v13321_v60  ;;  %v12391_v13 = vpop.f32.mrb[128].mxu1  ;;  %v12371_v53 = vadd.f32 %v12370_v28, %v12369_v58  ;;  %v12372_v1 = vpop.f32.mrb[130].mxu0  ;;  %v7475_v60 = vpack.c.bf16 %v4877_v39, %v4877_v39  ;;  %v13341_v58 = vld [vmem:[%s17307_s3 + $0xf08] sm:$0xff]   ;;  %v13343_v28 = vld [vmem:[%s17307_s3 + $0xf50] sm:$0xff]   ;;  %v4876_v39 = vmax.f32 %v4812_v46, 0.0 }
 0x399   : > { %12648 = vmatpush3.bf16.msra.mxu1 %v13322_v56  ;;  %12627 = vmatprep.subr.bf16.mxu0 %v13323_v43  ;;  %v12392_v5 = vpop.f32.mrb[129].mxu1  ;;  %v12373_v19 = vpop.f32.mrb[131].mxu0  ;;  %v13340_v56 = vld [vmem:[%s17307_s3 + $0xfc8] sm:$0xff]   ;;  %v7477_v43 = vpack.c.bf16 %v4879_v38, %v4879_v38  ;;  %v13347_v1 = vld [vmem:[%s17307_s3 + $0xf58] sm:$0xff]   ;;  %v13392_v46 = vld [vmem:[%s17307_s3 + $0xf0] sm:$0xff]  }
 0x39a   : > { %12649 = vmatprep.subr.bf16.mxu1 %v13324_v49  ;;  %v12393_v48 = vadd.f32 %v12392_v5, %v12391_v13  ;;  %v12394_v25 = vpop.f32.mrb[130].mxu1  ;;  %v13342_v49 = vld [vmem:[%s17307_s3 + $0xf88] sm:$0xff]   ;;  %v13344_v13 = vld [vmem:[%s17307_s3 + $0xfd0] sm:$0xff]   ;;  %v13348_v5 = vld [vmem:[%s17307_s3 + $0xfd8] sm:$0xff]  }
 0x39b   : > { %v12395_v29 = vpop.f32.mrb[131].mxu1  ;;  %v13350_v19 = vld [vmem:[%s17307_s3 + $0xf98] sm:$0xff]   ;;  %v13353_v25 = vld [vmem:[%s17307_s3 + $0xf20] sm:$0xff]  }
 0x39c   : > { %v16264_v6 = vadd.f32 %v12393_v48, %v12371_v53  ;;  %12628 = vmatpush3.bf16.msra.mxu0 %v13325_v12  ;;  %v13345_v53 = vld [vmem:[%s17307_s3 + $0xf10] sm:$0xff]   ;;  %v13352_v48 = vld [vmem:[%s17307_s3 + $0xfe0] sm:$0xff]   ;;  %v13355_v29 = vld [vmem:[%s17307_s3 + $0xf68] sm:$0xff]  }
 0x39d   : > { %12650 = vmatpush3.bf16.msra.mxu1 %v13326_v34  ;;  %12629 = vmatprep.subr.bf16.mxu0 %v13327_v24  ;;  %v13346_v12 = vld [vmem:[%s17307_s3 + $0xf90] sm:$0xff]   ;;  %v13349_v34 = vld [vmem:[%s17307_s3 + $0xf18] sm:$0xff]   ;;  %v13351_v24 = vld [vmem:[%s17307_s3 + $0xf60] sm:$0xff]  }
 0x39e   : > { %12651 = vmatprep.subr.bf16.mxu1 %v13328_v9  ;;  %v13354_v9 = vld [vmem:[%s17307_s3 + $0xfa0] sm:$0xff]  }
 0x3a0   : > { %12630 = vmatpush3.bf16.msra.mxu0 %v13329_v50  ;;  %v13356_v50 = vld [vmem:[%s17307_s3 + $0xfe8] sm:$0xff]  }
 0x3a1   : > { %12652 = vmatpush3.bf16.msra.mxu1 %v13330_v42  ;;  %12631 = vmatprep.subr.bf16.mxu0 %v13331_v2  ;;  %v13358_v42 = vld [vmem:[%s17307_s3 + $0xfa8] sm:$0xff]   ;;  %v13359_v2 = vld [vmem:[%s17307_s3 + $0xf70] sm:$0xff]  }
 0x3a2   : > { %12653 = vmatprep.subr.bf16.mxu1 %v13332_v36  ;;  %v16370_v36 = vpop.permute.xlu0 %4714 }
 0x3a3   : > { %v4753_v37 = vadd.f32 %v16370_v36, %v15310_v21 }
 0x3a4   : > { %12632 = vmatpush3.bf16.msra.mxu0 %v13333_v11  ;;  %v13362_v11 = vld [vmem:[%s17307_s3 + $0xfb0] sm:$0xff]  }
 0x3a5   : > { %12654 = vmatpush3.bf16.msra.mxu1 %v13334_v31  ;;  %12661 = vmatprep.subr.bf16.mxu0 %v13335_v10  ;;  %v4814_v31 = vadd.f32 %v16169_v17, %v15807_v8  ;;  %v13364_v10 = vld [vmem:[%s17307_s3 + $0xff8] sm:$0xff]   ;;  %v13367_v17 = vld [vmem:[%s17307_s3 + $0x40] sm:$0xff]   ;;  %v4817_v38 = vmax.f32 %v4753_v37, 0.0 }
 0x3a6   : > { %12683 = vmatprep.subr.bf16.mxu1 %v13336_v27  ;;  %v4755_v27 = vadd.f32 %v16370_v36, %v15317_v33  ;;  %v13366_v8 = vld [vmem:[%s17307_s3 + $0xfb8] sm:$0xff]   ;;  %v13369_v33 = vld [vmem:[%s17307_s3] sm:$0xff]  }
 0x3a7   : > { %8024 = vmatmul.mubr.bf16.vlgmr.msra.gmra.mrb[152].mxu0 %v7470_v0  ;;  %v4878_v21 = vmax.f32 %v4814_v31, 0.0 }
 0x3a8   : > { %8064 = vmatmul.mubr.bf16.vlgmr.msra.gmra.mrb[152].mxu1 %v7472_v44  ;;  %12662 = vmatpush3.bf16.msra.mxu0 %v13337_v35  ;;  %v13368_v35 = vld [vmem:[%s17307_s3 + $0xc0] sm:$0xff]   ;;  %v4819_v0 = vmax.f32 %v4755_v27, 0.0 }
 0x3a9   : > { %8103 = vmatprep.mubr.bf16.mxu0 %v7475_v60  ;;  %12684 = vmatpush3.bf16.msra.mxu1 %v13338_v59  ;;  %v7474_v59 = vpack.c.bf16 %v4876_v39, %v4876_v39  ;;  %v13370_v44 = vld [vmem:[%s17307_s3 + $0x80] sm:$0xff]   ;;  %v13371_v60 = vld [vmem:[%s17307_s3 + $0x48] sm:$0xff]  }
 0x3aa   : > { %8143 = vmatprep.mubr.bf16.mxu1 %v7477_v43  ;;  %12663 = vmatprep.subr.bf16.mxu0 %v13339_v7  ;;  %v7476_v7 = vpack.c.bf16 %v4878_v21, %v4878_v21  ;;  %v13372_v43 = vld [vmem:[%s17307_s3 + $0xc8] sm:$0xff]   ;;  %v13395_v21 = vld [vmem:[%s17307_s3 + $0x78] sm:$0xff]  }
 0x3ab   : > { %12685 = vmatprep.subr.bf16.mxu1 %v13340_v56  ;;  %v4881_v56 = vpack.c.bf16 %v4817_v38, %v4817_v38 }
 0x3ac   : > { %12664 = vmatpush3.bf16.msra.mxu0 %v13341_v58  ;;  %v4883_v58 = vpack.c.bf16 %v4819_v0, %v4819_v0  ;;  %v13396_v0 = vld [vmem:[%s17307_s3 + $0xf8] sm:$0xff]  }
 0x3ad   : > { %12686 = vmatpush3.bf16.msra.mxu1 %v13342_v49  ;;  %12665 = vmatprep.subr.bf16.mxu0 %v13343_v28  ;;  %v13373_v49 = vld [vmem:[%s17307_s3 + $0x8] sm:$0xff]  }
 0x3ae   : > { %12687 = vmatprep.subr.bf16.mxu1 %v13344_v13  ;;  %v13374_v28 = vld [vmem:[%s17307_s3 + $0x88] sm:$0xff]   ;;  %v13375_v13 = vld [vmem:[%s17307_s3 + $0x50] sm:$0xff]  }
 0x3b0   : > { %12666 = vmatpush3.bf16.msra.mxu0 %v13345_v53  ;;  %v13376_v53 = vld [vmem:[%s17307_s3 + $0xd0] sm:$0xff]  }
 0x3b1   : > { %12688 = vmatpush3.bf16.msra.mxu1 %v13346_v12  ;;  %12667 = vmatprep.subr.bf16.mxu0 %v13347_v1  ;;  %v13377_v12 = vld [vmem:[%s17307_s3 + $0x10] sm:$0xff]  }
 0x3b2   : > { %12689 = vmatprep.subr.bf16.mxu1 %v13348_v5  ;;  %v13378_v1 = vld [vmem:[%s17307_s3 + $0x90] sm:$0xff]   ;;  %v13379_v5 = vld [vmem:[%s17307_s3 + $0x58] sm:$0xff]  }
 0x3b4   : > { %12668 = vmatpush3.bf16.msra.mxu0 %v13349_v34  ;;  %v13380_v34 = vld [vmem:[%s17307_s3 + $0xd8] sm:$0xff]  }
 0x3b5   : > { %12690 = vmatpush3.bf16.msra.mxu1 %v13350_v19  ;;  %12669 = vmatprep.subr.bf16.mxu0 %v13351_v24  ;;  %v13381_v19 = vld [vmem:[%s17307_s3 + $0x18] sm:$0xff]  }
 0x3b6   : > { %12691 = vmatprep.subr.bf16.mxu1 %v13352_v48  ;;  %v13382_v24 = vld [vmem:[%s17307_s3 + $0x98] sm:$0xff]   ;;  %v13383_v48 = vld [vmem:[%s17307_s3 + $0x60] sm:$0xff]  }
 0x3b8   : > { %12670 = vmatpush3.bf16.msra.mxu0 %v13353_v25  ;;  %v13384_v25 = vld [vmem:[%s17307_s3 + $0xe0] sm:$0xff]  }
 0x3b9   : > { %12692 = vmatpush3.bf16.msra.mxu1 %v13354_v9  ;;  %12671 = vmatprep.subr.bf16.mxu0 %v13355_v29  ;;  %v13385_v9 = vld [vmem:[%s17307_s3 + $0x20] sm:$0xff]  }
 0x3ba   : > { %12693 = vmatprep.subr.bf16.mxu1 %v13356_v50  ;;  %v13386_v29 = vld [vmem:[%s17307_s3 + $0xa0] sm:$0xff]   ;;  %v13387_v50 = vld [vmem:[%s17307_s3 + $0x68] sm:$0xff]  }
 0x3bc   : > { %12672 = vmatpush3.bf16.msra.mxu0 %v13357_v30  ;;  %v13388_v30 = vld [vmem:[%s17307_s3 + $0xe8] sm:$0xff]  }
 0x3bd   : > { %12694 = vmatpush3.bf16.msra.mxu1 %v13358_v42  ;;  %12673 = vmatprep.subr.bf16.mxu0 %v13359_v2  ;;  %v13389_v42 = vld [vmem:[%s17307_s3 + $0x28] sm:$0xff]  }
 0x3be   : > { %12695 = vmatprep.subr.bf16.mxu1 %v13360_v20  ;;  %v13390_v2 = vld [vmem:[%s17307_s3 + $0xa8] sm:$0xff]   ;;  %v13391_v20 = vld [vmem:[%s17307_s3 + $0x70] sm:$0xff]  }
 0x3c0   : > { %12674 = vmatpush3.bf16.msra.mxu0 %v13361_v47 }
 0x3c1   : > { %12696 = vmatpush3.bf16.msra.mxu1 %v13362_v11  ;;  %12675 = vmatprep.subr.bf16.mxu0 %v13363_v18 }
 0x3c2   : > { %12697 = vmatprep.subr.bf16.mxu1 %v13364_v10 }
 0x3c4   : > { %12676 = vmatpush3.bf16.msra.mxu0 %v13365_v62  ;;  %v13393_v62 = vld [vmem:[%s17307_s3 + $0x30] sm:$0xff]  }
 0x3c5   : > { %12698 = vmatpush3.bf16.msra.mxu1 %v13366_v8  ;;  %12705 = vmatprep.subr.bf16.mxu0 %v13367_v17  ;;  %v13394_v17 = vld [vmem:[%s17307_s3 + $0xb0] sm:$0xff]  }
 0x3c6   : > { %12727 = vmatprep.subr.bf16.mxu1 %v13368_v35  ;;  %v4752_v35 = vadd.f32 %v16370_v36, %v15298_v54  ;;  %v13397_v54 = vld [vmem:[%s17307_s3 + $0x38] sm:$0xff]  }
 0x3c7   : > { %8104 = vmatmul.mubr.bf16.vlgmr.msra.gmra.mrb[156].mxu0 %v7474_v59  ;;  %v4754_v59 = vadd.f32 %v16370_v36, %v15305_v51 }
 0x3c8   : > { %8144 = vmatmul.mubr.bf16.vlgmr.msra.gmra.mrb[156].mxu1 %v7476_v7  ;;  %12706 = vmatpush3.bf16.msra.mxu0 %v13369_v33  ;;  %v4759_v7 = vadd.f32 %v16370_v36, %v15603_v40  ;;  %v4816_v51 = vmax.f32 %v4752_v35, 0.0 }
 0x3c9   : > { %8567 = vmatprep.mubr.bf16.mxu0 %v4881_v56  ;;  %12728 = vmatpush3.bf16.msra.mxu1 %v13370_v44  ;;  %v4757_v44 = vadd.f32 %v16370_v36, %v15596_v16  ;;  %v13399_v16 = vld [vmem:[%s17307_s3 + $0x140] sm:$0xff]   ;;  %v4818_v40 = vmax.f32 %v4754_v59, 0.0  ;;  %v4756_v59 = vadd.f32 %v16370_v36, %v15584_v26  ;;  %v13428_v26 = vld [vmem:[%s17307_s3 + $0x1f8] sm:$0xff]  }
 0x3ca   : > { %8607 = vmatprep.mubr.bf16.mxu1 %v4883_v58  ;;  %12707 = vmatprep.subr.bf16.mxu0 %v13371_v60  ;;  %v13400_v56 = vld [vmem:[%s17307_s3 + $0x1c0] sm:$0xff]  }
 0x3cb   : > { %12729 = vmatprep.subr.bf16.mxu1 %v13372_v43  ;;  %v4821_v43 = vmax.f32 %v4757_v44, 0.0  ;;  %v13401_v58 = vld [vmem:[%s17307_s3 + $0x100] sm:$0xff]  }
 0x3cc   : > { %12708 = vmatpush3.bf16.msra.mxu0 %v13373_v49  ;;  %v4823_v49 = vmax.f32 %v4759_v7, 0.0 }
 0x3cd   : > { %12730 = vmatpush3.bf16.msra.mxu1 %v13374_v28  ;;  %12709 = vmatprep.subr.bf16.mxu0 %v13375_v13  ;;  %v4880_v28 = vpack.c.bf16 %v4816_v51, %v4816_v51  ;;  %v13402_v13 = vld [vmem:[%s17307_s3 + $0x180] sm:$0xff]   ;;  %v13427_v51 = vld [vmem:[%s17307_s3 + $0x178] sm:$0xff]  }
 0x3ce   : > { %12731 = vmatprep.subr.bf16.mxu1 %v13376_v53  ;;  %v4882_v53 = vpack.c.bf16 %v4818_v40, %v4818_v40 }
 0x3d0   : > { %12710 = vmatpush3.bf16.msra.mxu0 %v13377_v12  ;;  %v13403_v12 = vld [vmem:[%s17307_s3 + $0x148] sm:$0xff]  }
 0x3d1   : > { %12732 = vmatpush3.bf16.msra.mxu1 %v13378_v1  ;;  %12711 = vmatprep.subr.bf16.mxu0 %v13379_v5  ;;  %v4885_v1 = vpack.c.bf16 %v4821_v43, %v4821_v43  ;;  %v13404_v5 = vld [vmem:[%s17307_s3 + $0x1c8] sm:$0xff]  }
 0x3d2   : > { %12733 = vmatprep.subr.bf16.mxu1 %v13380_v34  ;;  %v4887_v34 = vpack.c.bf16 %v4823_v49, %v4823_v49 }
 0x3d4   : > { %12712 = vmatpush3.bf16.msra.mxu0 %v13381_v19  ;;  %v13405_v19 = vld [vmem:[%s17307_s3 + $0x108] sm:$0xff]  }
 0x3d5   : > { %12734 = vmatpush3.bf16.msra.mxu1 %v13382_v24  ;;  %12713 = vmatprep.subr.bf16.mxu0 %v13383_v48  ;;  %v13406_v24 = vld [vmem:[%s17307_s3 + $0x188] sm:$0xff]   ;;  %v13407_v48 = vld [vmem:[%s17307_s3 + $0x150] sm:$0xff]  }
 0x3d6   : > { %12735 = vmatprep.subr.bf16.mxu1 %v13384_v25  ;;  %v13408_v25 = vld [vmem:[%s17307_s3 + $0x1d0] sm:$0xff]  }
 0x3d8   : > { %12714 = vmatpush3.bf16.msra.mxu0 %v13385_v9  ;;  %v13409_v9 = vld [vmem:[%s17307_s3 + $0x110] sm:$0xff]  }
 0x3d9   : > { %12736 = vmatpush3.bf16.msra.mxu1 %v13386_v29  ;;  %12715 = vmatprep.subr.bf16.mxu0 %v13387_v50  ;;  %v13410_v29 = vld [vmem:[%s17307_s3 + $0x190] sm:$0xff]   ;;  %v13411_v50 = vld [vmem:[%s17307_s3 + $0x158] sm:$0xff]  }
 0x3da   : > { %v12413_v47 = vpop.f32.mrb[132].mxu0  ;;  %12737 = vmatprep.subr.bf16.mxu1 %v13388_v30  ;;  %v12435_v11 = vpop.f32.mrb[132].mxu1  ;;  %v13412_v30 = vld [vmem:[%s17307_s3 + $0x1d8] sm:$0xff]  }
 0x3db   : > { %v12414_v18 = vpop.f32.mrb[133].mxu0  ;;  %v12436_v10 = vpop.f32.mrb[133].mxu1 }
 0x3dc   : > { %v12415_v31 = vadd.f32 %v12414_v18, %v12413_v47  ;;  %12716 = vmatpush3.bf16.msra.mxu0 %v13389_v42  ;;  %v12416_v37 = vpop.f32.mrb[134].mxu0  ;;  %v12437_v27 = vadd.f32 %v12436_v10, %v12435_v11  ;;  %v12438_v39 = vpop.f32.mrb[134].mxu1  ;;  %v13413_v42 = vld [vmem:[%s17307_s3 + $0x118] sm:$0xff]   ;;  %v13416_v47 = vld [vmem:[%s17307_s3 + $0x1e0] sm:$0xff]   ;;  %v13419_v18 = vld [vmem:[%s17307_s3 + $0x168] sm:$0xff]  }
 0x3dd   : > { %12738 = vmatpush3.bf16.msra.mxu1 %v13390_v2  ;;  %v12417_v8 = vpop.f32.mrb[135].mxu0  ;;  %12717 = vmatprep.subr.bf16.mxu0 %v13391_v20  ;;  %v12439_v33 = vpop.f32.mrb[135].mxu1  ;;  %v13414_v2 = vld [vmem:[%s17307_s3 + $0x198] sm:$0xff]   ;;  %v13415_v20 = vld [vmem:[%s17307_s3 + $0x160] sm:$0xff]   ;;  %v13421_v10 = vld [vmem:[%s17307_s3 + $0x128] sm:$0xff]  }
 0x3de   : > { %v5652_v38 = vadd.f32 %v12415_v31, %v16264_v6  ;;  %12739 = vmatprep.subr.bf16.mxu1 %v13392_v46  ;;  %v13398_v6 = vld [vmem:[%s17307_s3 + $0xb8] sm:$0xff]   ;;  %v13417_v46 = vld [vmem:[%s17307_s3 + $0x120] sm:$0xff]   ;;  %v13420_v31 = vld [vmem:[%s17307_s3 + $0x1e8] sm:$0xff]  }
 0x3df   : > { %v13418_v11 = vld [vmem:[%s17307_s3 + $0x1a0] sm:$0xff]   ;;  %v13422_v37 = vld [vmem:[%s17307_s3 + $0x1a8] sm:$0xff]   ;;  %v13424_v8 = vld [vmem:[%s17307_s3 + $0x1f0] sm:$0xff]  }
 0x3e0   : > { %v16497_v60 = vadd.f32 %v12437_v27, %v5652_v38  ;;  %12718 = vmatpush3.bf16.msra.mxu0 %v13393_v62  ;;  %v13423_v62 = vld [vmem:[%s17307_s3 + $0x170] sm:$0xff]   ;;  %v16580_v27 = vpop.permute.xlu1 %4724 }
 0x3e1   : > { %12740 = vmatpush3.bf16.msra.mxu1 %v13394_v17  ;;  %12719 = vmatprep.subr.bf16.mxu0 %v13395_v21  ;;  %v4769_v43 = vadd.f32 %v16580_v27, %v15356_v23  ;;  %v4771_v49 = vadd.f32 %v16580_v27, %v15362_v15  ;;  %v13433_v15 = vld [vmem:[%s17307_s3 + $0x400] sm:$0xff]  }
 0x3e2   : > { %12741 = vmatprep.subr.bf16.mxu1 %v13396_v0  ;;  %v13425_v0 = vld [vmem:[%s17307_s3 + $0x130] sm:$0xff]  }
 0x3e4   : > { %12720 = vmatpush3.bf16.msra.mxu0 %v13397_v54 }
 0x3e5   : > { %12742 = vmatpush3.bf16.msra.mxu1 %v13398_v6  ;;  %12749 = vmatprep.subr.bf16.mxu0 %v13399_v16  ;;  %v13426_v6 = vld [vmem:[%s17307_s3 + $0x1b0] sm:$0xff]   ;;  %v4758_v16 = vadd.f32 %v16370_v36, %v15591_v61  ;;  %v4820_v61 = vmax.f32 %v4756_v59, 0.0  ;;  %v13430_v36 = vld [vmem:[%s17307_s3 + $0x1b8] sm:$0xff]  }
 0x3e6   : > { %12771 = vmatprep.subr.bf16.mxu1 %v13400_v56 }
 0x3e7   : > { %8568 = vmatmul.mubr.bf16.vlgmr.msra.gmra.mrb[160].mxu0 %v4880_v28  ;;  %v13431_v28 = vld [vmem:[%s17307_s3 + $0x440] sm:$0xff]   ;;  %v4822_v23 = vmax.f32 %v4758_v16, 0.0 }
 0x3e8   : > { %8608 = vmatmul.mubr.bf16.vlgmr.msra.gmra.mrb[160].mxu1 %v4882_v53  ;;  %12750 = vmatpush3.bf16.msra.mxu0 %v13401_v58  ;;  %v13429_v58 = vld [vmem:[%s17307_s3 + $0x138] sm:$0xff]   ;;  %v4833_v53 = vmax.f32 %v4769_v43, 0.0  ;;  %v4768_v43 = vadd.f32 %v16580_v27, %v15344_v41 }
 0x3e9   : > { %8647 = vmatprep.mubr.bf16.mxu0 %v4885_v1  ;;  %12772 = vmatpush3.bf16.msra.mxu1 %v13402_v13  ;;  %v13432_v13 = vld [vmem:[%s17307_s3 + $0x4c0] sm:$0xff]   ;;  %v4884_v1 = vpack.c.bf16 %v4820_v61, %v4820_v61  ;;  %v13460_v61 = vld [vmem:[%s17307_s3 + $0x4f8] sm:$0xff]  }
 0x3ea   : > { %8687 = vmatprep.mubr.bf16.mxu1 %v4887_v34  ;;  %12751 = vmatprep.subr.bf16.mxu0 %v13403_v12  ;;  %v4835_v12 = vmax.f32 %v4771_v49, 0.0  ;;  %v4886_v34 = vpack.c.bf16 %v4822_v23, %v4822_v23  ;;  %v4775_v23 = vadd.f32 %v16580_v27, %v15652_v3  ;;  %v13461_v41 = vld [vmem:[%s17307_s3 + $0x438] sm:$0xff]  }
 0x3eb   : > { %12773 = vmatprep.subr.bf16.mxu1 %v13404_v5  ;;  %v13434_v5 = vld [vmem:[%s17307_s3 + $0x480] sm:$0xff]  }
 0x3ec   : > { %12752 = vmatpush3.bf16.msra.mxu0 %v13405_v19  ;;  %v13435_v19 = vld [vmem:[%s17307_s3 + $0x448] sm:$0xff]  }
 0x3ed   : > { %12774 = vmatpush3.bf16.msra.mxu1 %v13406_v24  ;;  %12753 = vmatprep.subr.bf16.mxu0 %v13407_v48  ;;  %v5698_v24 = vpack.c.bf16 %v4833_v53, %v4833_v53  ;;  %v13436_v48 = vld [vmem:[%s17307_s3 + $0x4c8] sm:$0xff]   ;;  %v13464_v53 = vld [vmem:[%s17307_s3 + $0x5c0] sm:$0xff]  }
 0x3ee   : > { %12775 = vmatprep.subr.bf16.mxu1 %v13408_v25  ;;  %v5700_v25 = vpack.c.bf16 %v4835_v12, %v4835_v12  ;;  %v13465_v12 = vld [vmem:[%s17307_s3 + $0x500] sm:$0xff]  }
 0x3f0   : > { %12754 = vmatpush3.bf16.msra.mxu0 %v13409_v9  ;;  %v13437_v9 = vld [vmem:[%s17307_s3 + $0x408] sm:$0xff]  }
 0x3f1   : > { %12776 = vmatpush3.bf16.msra.mxu1 %v13410_v29  ;;  %12755 = vmatprep.subr.bf16.mxu0 %v13411_v50  ;;  %v13438_v29 = vld [vmem:[%s17307_s3 + $0x488] sm:$0xff]   ;;  %v13439_v50 = vld [vmem:[%s17307_s3 + $0x450] sm:$0xff]  }
 0x3f2   : > { %12777 = vmatprep.subr.bf16.mxu1 %v13412_v30  ;;  %v13440_v30 = vld [vmem:[%s17307_s3 + $0x4d0] sm:$0xff]  }
 0x3f4   : > { %12756 = vmatpush3.bf16.msra.mxu0 %v13413_v42  ;;  %v13441_v42 = vld [vmem:[%s17307_s3 + $0x410] sm:$0xff]  }
 0x3f5   : > { %12778 = vmatpush3.bf16.msra.mxu1 %v13414_v2  ;;  %12757 = vmatprep.subr.bf16.mxu0 %v13415_v20  ;;  %v13442_v2 = vld [vmem:[%s17307_s3 + $0x490] sm:$0xff]   ;;  %v13443_v20 = vld [vmem:[%s17307_s3 + $0x458] sm:$0xff]  }
 0x3f6   : > { %12779 = vmatprep.subr.bf16.mxu1 %v13416_v47  ;;  %v13444_v47 = vld [vmem:[%s17307_s3 + $0x4d8] sm:$0xff]  }
 0x3f8   : > { %12758 = vmatpush3.bf16.msra.mxu0 %v13417_v46  ;;  %v13445_v46 = vld [vmem:[%s17307_s3 + $0x418] sm:$0xff]  }
 0x3f9   : > { %12780 = vmatpush3.bf16.msra.mxu1 %v13418_v11  ;;  %12759 = vmatprep.subr.bf16.mxu0 %v13419_v18  ;;  %v13446_v11 = vld [vmem:[%s17307_s3 + $0x498] sm:$0xff]   ;;  %v13447_v18 = vld [vmem:[%s17307_s3 + $0x460] sm:$0xff]  }
 0x3fa   : > { %v12457_v39 = vpop.f32.mrb[136].mxu0  ;;  %12781 = vmatprep.subr.bf16.mxu1 %v13420_v31  ;;  %v13448_v31 = vld [vmem:[%s17307_s3 + $0x4e0] sm:$0xff]  }
 0x3fb   : > { %v12479_v17 = vpop.f32.mrb[136].mxu1  ;;  %v12458_v21 = vpop.f32.mrb[137].mxu0 }
 0x3fc   : > { %v12459_v35 = vadd.f32 %v12458_v21, %v12457_v39  ;;  %v12480_v38 = vpop.f32.mrb[137].mxu1  ;;  %v12460_v33 = vpop.f32.mrb[138].mxu0  ;;  %12760 = vmatpush3.bf16.msra.mxu0 %v13421_v10  ;;  %v13449_v10 = vld [vmem:[%s17307_s3 + $0x420] sm:$0xff]   ;;  %v13452_v39 = vld [vmem:[%s17307_s3 + $0x4e8] sm:$0xff]   ;;  %v13455_v21 = vld [vmem:[%s17307_s3 + $0x470] sm:$0xff]  }
 0x3fd   : > { %v12481_v44 = vadd.f32 %v12480_v38, %v12479_v17  ;;  %v12482_v7 = vpop.f32.mrb[138].mxu1  ;;  %12782 = vmatpush3.bf16.msra.mxu1 %v13422_v37  ;;  %v12461_v54 = vpop.f32.mrb[139].mxu0  ;;  %12761 = vmatprep.subr.bf16.mxu0 %v13423_v62  ;;  %v13450_v37 = vld [vmem:[%s17307_s3 + $0x4a0] sm:$0xff]   ;;  %v13451_v62 = vld [vmem:[%s17307_s3 + $0x468] sm:$0xff]   ;;  %v13456_v38 = vld [vmem:[%s17307_s3 + $0x4f0] sm:$0xff]  }
 0x3fe   : > { %v12483_v40 = vpop.f32.mrb[139].mxu1  ;;  %12783 = vmatprep.subr.bf16.mxu1 %v13424_v8  ;;  %v13453_v8 = vld [vmem:[%s17307_s3 + $0x428] sm:$0xff]   ;;  %v13457_v54 = vld [vmem:[%s17307_s3 + $0x430] sm:$0xff]  }
 0x3ff   : > { %v16601_v56 = vadd.f32 %v12481_v44, %v12459_v35  ;;  %v13454_v17 = vld [vmem:[%s17307_s3 + $0x4a8] sm:$0xff]   ;;  %v13458_v40 = vld [vmem:[%s17307_s3 + $0x4b0] sm:$0xff]  }
 0x400   : > { %12762 = vmatpush3.bf16.msra.mxu0 %v13425_v0 }
 0x401   : > { %12784 = vmatpush3.bf16.msra.mxu1 %v13426_v6  ;;  %12763 = vmatprep.subr.bf16.mxu0 %v13427_v51 }
 0x402   : > { %12785 = vmatprep.subr.bf16.mxu1 %v13428_v26  ;;  %v13459_v26 = vld [vmem:[%s17307_s3 + $0x478] sm:$0xff]  }
 0x404   : > { %12764 = vmatpush3.bf16.msra.mxu0 %v13429_v58 }
 0x405   : > { %12786 = vmatpush3.bf16.msra.mxu1 %v13430_v36  ;;  %12793 = vmatprep.subr.bf16.mxu0 %v13431_v28  ;;  %v4770_v36 = vadd.f32 %v16580_v27, %v15351_v32  ;;  %v4773_v28 = vadd.f32 %v16580_v27, %v15645_v63  ;;  %v4832_v32 = vmax.f32 %v4768_v43, 0.0  ;;  %v13463_v63 = vld [vmem:[%s17307_s3 + $0x540] sm:$0xff]  }
 0x406   : > { %12815 = vmatprep.subr.bf16.mxu1 %v13432_v13 }
 0x407   : > { %8648 = vmatmul.mubr.bf16.vlgmr.msra.gmra.mrb[164].mxu0 %v4884_v1  ;;  %v4834_v3 = vmax.f32 %v4770_v36, 0.0  ;;  %v4839_v1 = vmax.f32 %v4775_v23, 0.0 }
 0x408   : > { %8688 = vmatmul.mubr.bf16.vlgmr.msra.gmra.mrb[164].mxu1 %v4886_v34  ;;  %12794 = vmatpush3.bf16.msra.mxu0 %v13433_v15  ;;  %v4837_v15 = vmax.f32 %v4773_v28, 0.0  ;;  %v13466_v34 = vld [vmem:[%s17307_s3 + $0x580] sm:$0xff]  }
 0x409   : > { %9111 = vmatprep.mubr.bf16.mxu0 %v5698_v24  ;;  %12816 = vmatpush3.bf16.msra.mxu1 %v13434_v5  ;;  %v5697_v5 = vpack.c.bf16 %v4832_v32, %v4832_v32  ;;  %v13467_v24 = vld [vmem:[%s17307_s3 + $0x548] sm:$0xff]   ;;  %v13495_v32 = vld [vmem:[%s17307_s3 + $0x840] sm:$0xff]  }
 0x40a   : > { %9151 = vmatprep.mubr.bf16.mxu1 %v5700_v25  ;;  %12795 = vmatprep.subr.bf16.mxu0 %v13435_v19  ;;  %v5699_v19 = vpack.c.bf16 %v4834_v3, %v4834_v3  ;;  %v13468_v25 = vld [vmem:[%s17307_s3 + $0x5c8] sm:$0xff]  }
 0x40b   : > { %12817 = vmatprep.subr.bf16.mxu1 %v13436_v48  ;;  %v5702_v48 = vpack.c.bf16 %v4837_v15, %v4837_v15 }
 0x40c   : > { %12796 = vmatpush3.bf16.msra.mxu0 %v13437_v9  ;;  %v5704_v9 = vpack.c.bf16 %v4839_v1, %v4839_v1 }
 0x40d   : > { %12818 = vmatpush3.bf16.msra.mxu1 %v13438_v29  ;;  %12797 = vmatprep.subr.bf16.mxu0 %v13439_v50  ;;  %v13469_v29 = vld [vmem:[%s17307_s3 + $0x508] sm:$0xff]  }
 0x40e   : > { %12819 = vmatprep.subr.bf16.mxu1 %v13440_v30  ;;  %v13470_v50 = vld [vmem:[%s17307_s3 + $0x588] sm:$0xff]   ;;  %v13471_v30 = vld [vmem:[%s17307_s3 + $0x550] sm:$0xff]  }
 0x410   : > { %12798 = vmatpush3.bf16.msra.mxu0 %v13441_v42  ;;  %v13472_v42 = vld [vmem:[%s17307_s3 + $0x5d0] sm:$0xff]  }
 0x411   : > { %12820 = vmatpush3.bf16.msra.mxu1 %v13442_v2  ;;  %12799 = vmatprep.subr.bf16.mxu0 %v13443_v20  ;;  %v13473_v2 = vld [vmem:[%s17307_s3 + $0x510] sm:$0xff]  }
 0x412   : > { %12821 = vmatprep.subr.bf16.mxu1 %v13444_v47  ;;  %v13474_v20 = vld [vmem:[%s17307_s3 + $0x590] sm:$0xff]   ;;  %v13475_v47 = vld [vmem:[%s17307_s3 + $0x558] sm:$0xff]  }
 0x414   : > { %12800 = vmatpush3.bf16.msra.mxu0 %v13445_v46  ;;  %v13476_v46 = vld [vmem:[%s17307_s3 + $0x5d8] sm:$0xff]  }
 0x415   : > { %12822 = vmatpush3.bf16.msra.mxu1 %v13446_v11  ;;  %12801 = vmatprep.subr.bf16.mxu0 %v13447_v18  ;;  %v13477_v11 = vld [vmem:[%s17307_s3 + $0x518] sm:$0xff]  }
 0x416   : > { %12823 = vmatprep.subr.bf16.mxu1 %v13448_v31  ;;  %v13478_v18 = vld [vmem:[%s17307_s3 + $0x598] sm:$0xff]   ;;  %v13479_v31 = vld [vmem:[%s17307_s3 + $0x560] sm:$0xff]  }
 0x418   : > { %12802 = vmatpush3.bf16.msra.mxu0 %v13449_v10  ;;  %v13480_v10 = vld [vmem:[%s17307_s3 + $0x5e0] sm:$0xff]  }
 0x419   : > { %12824 = vmatpush3.bf16.msra.mxu1 %v13450_v37  ;;  %12803 = vmatprep.subr.bf16.mxu0 %v13451_v62  ;;  %v13481_v37 = vld [vmem:[%s17307_s3 + $0x520] sm:$0xff]  }
 0x41a   : > { %v12501_v35 = vpop.f32.mrb[140].mxu0  ;;  %12825 = vmatprep.subr.bf16.mxu1 %v13452_v39  ;;  %v13482_v62 = vld [vmem:[%s17307_s3 + $0x5a0] sm:$0xff]   ;;  %v13483_v39 = vld [vmem:[%s17307_s3 + $0x568] sm:$0xff]  }
 0x41b   : > { %v12523_v33 = vpop.f32.mrb[140].mxu1  ;;  %v12502_v0 = vpop.f32.mrb[141].mxu0 }
 0x41c   : > { %v12503_v59 = vadd.f32 %v12502_v0, %v12501_v35  ;;  %v12524_v44 = vpop.f32.mrb[141].mxu1  ;;  %v12504_v7 = vpop.f32.mrb[142].mxu0  ;;  %12804 = vmatpush3.bf16.msra.mxu0 %v13453_v8  ;;  %v13484_v8 = vld [vmem:[%s17307_s3 + $0x5e8] sm:$0xff]   ;;  %v13487_v35 = vld [vmem:[%s17307_s3 + $0x570] sm:$0xff]  }
 0x41d   : > { %v12525_v6 = vadd.f32 %v12524_v44, %v12523_v33  ;;  %v12526_v51 = vpop.f32.mrb[142].mxu1  ;;  %12826 = vmatpush3.bf16.msra.mxu1 %v13454_v17  ;;  %v12505_v16 = vpop.f32.mrb[143].mxu0  ;;  %12805 = vmatprep.subr.bf16.mxu0 %v13455_v21  ;;  %v13485_v17 = vld [vmem:[%s17307_s3 + $0x528] sm:$0xff]   ;;  %v13488_v0 = vld [vmem:[%s17307_s3 + $0x5f0] sm:$0xff]  }
 0x41e   : > { %v6470_v58 = vadd.f32 %v12503_v59, %v16601_v56  ;;  %v12527_v49 = vpop.f32.mrb[143].mxu1  ;;  %12827 = vmatprep.subr.bf16.mxu1 %v13456_v38  ;;  %v13462_v56 = vld [vmem:[%s17307_s3 + $0x4b8] sm:$0xff]   ;;  %v13486_v21 = vld [vmem:[%s17307_s3 + $0x5a8] sm:$0xff]   ;;  %v16795_v38 = vpop.permute.xlu0 %4734  ;;  %v13489_v51 = vld [vmem:[%s17307_s3 + $0x530] sm:$0xff]   ;;  %v4772_v16 = vadd.f32 %v16580_v27, %v15632_v4 }
 0x41f   : > { %v13491_v49 = vld [vmem:[%s17307_s3 + $0x578] sm:$0xff]   ;;  %v4785_v23 = vadd.f32 %v16795_v38, %v15422_v55 }
 0x420   : > { %v16712_v13 = vadd.f32 %v12525_v6, %v6470_v58  ;;  %12806 = vmatpush3.bf16.msra.mxu0 %v13457_v54  ;;  %v13490_v58 = vld [vmem:[%s17307_s3 + $0x5b0] sm:$0xff]   ;;  %v13492_v4 = vld [vmem:[%s17307_s3 + $0x5f8] sm:$0xff]  }
 0x421   : > { %12828 = vmatpush3.bf16.msra.mxu1 %v13458_v40  ;;  %12807 = vmatprep.subr.bf16.mxu0 %v13459_v26  ;;  %v4849_v3 = vmax.f32 %v4785_v23, 0.0 }
 0x422   : > { %12829 = vmatprep.subr.bf16.mxu1 %v13460_v61  ;;  %v4774_v61 = vadd.f32 %v16580_v27, %v15640_v57  ;;  %v4836_v57 = vmax.f32 %v4772_v16, 0.0  ;;  %v13494_v27 = vld [vmem:[%s17307_s3 + $0x5b8] sm:$0xff]   ;;  %v13522_v16 = vld [vmem:[%s17307_s3 + $0x8b0] sm:$0xff]  }
 0x424   : > { %12808 = vmatpush3.bf16.msra.mxu0 %v13461_v41  ;;  %v13493_v41 = vld [vmem:[%s17307_s3 + $0x538] sm:$0xff]   ;;  %v4838_v55 = vmax.f32 %v4774_v61, 0.0  ;;  %v5701_v15 = vpack.c.bf16 %v4836_v57, %v4836_v57  ;;  %v17802_v61 = vld [vmem:[#allocation5_spill] sm:$0xff] }
 0x425   : > { %12830 = vmatpush3.bf16.msra.mxu1 %v13462_v56  ;;  %12837 = vmatprep.subr.bf16.mxu0 %v13463_v63  ;;  %v4787_v56 = vadd.f32 %v16795_v38, %v15431_v52  ;;  %v13496_v63 = vld [vmem:[%s17307_s3 + $0x8c0] sm:$0xff]  }
 0x426   : > { %12859 = vmatprep.subr.bf16.mxu1 %v13464_v53  ;;  %v13497_v52 = vld [vmem:[%s17307_s3 + $0x800] sm:$0xff]   ;;  %v5703_v1 = vpack.c.bf16 %v4838_v55, %v4838_v55 }
 0x427   : > { %9112 = vmatmul.mubr.bf16.vlgmr.msra.gmra.mrb[168].mxu0 %v5697_v5  ;;  %v4851_v53 = vmax.f32 %v4787_v56, 0.0  ;;  %v13499_v5 = vld [vmem:[%s17307_s3 + $0x848] sm:$0xff]  }
 0x428   : > { %9152 = vmatmul.mubr.bf16.vlgmr.msra.gmra.mrb[168].mxu1 %v5699_v19  ;;  %12838 = vmatpush3.bf16.msra.mxu0 %v13465_v12  ;;  %v13498_v12 = vld [vmem:[%s17307_s3 + $0x880] sm:$0xff]   ;;  %v13500_v19 = vld [vmem:[%s17307_s3 + $0x8c8] sm:$0xff]  }
 0x429   : > { %9191 = vmatprep.mubr.bf16.mxu0 %v5702_v48  ;;  %12860 = vmatpush3.bf16.msra.mxu1 %v13466_v34  ;;  %v6516_v34 = vpack.c.bf16 %v4849_v3, %v4849_v3  ;;  %v13501_v48 = vld [vmem:[%s17307_s3 + $0x808] sm:$0xff]  }
 0x42a   : > { %9231 = vmatprep.mubr.bf16.mxu1 %v5704_v9  ;;  %12839 = vmatprep.subr.bf16.mxu0 %v13467_v24  ;;  %v6518_v24 = vpack.c.bf16 %v4851_v53, %v4851_v53  ;;  %v13503_v9 = vld [vmem:[%s17307_s3 + $0x850] sm:$0xff]  }
 0x42b   : > { %12861 = vmatprep.subr.bf16.mxu1 %v13468_v25  ;;  %v13502_v25 = vld [vmem:[%s17307_s3 + $0x888] sm:$0xff]  }
 0x42c   : > { %12840 = vmatpush3.bf16.msra.mxu0 %v13469_v29  ;;  %v13504_v29 = vld [vmem:[%s17307_s3 + $0x8d0] sm:$0xff]  }
 0x42d   : > { %12862 = vmatpush3.bf16.msra.mxu1 %v13470_v50  ;;  %12841 = vmatprep.subr.bf16.mxu0 %v13471_v30  ;;  %v13505_v50 = vld [vmem:[%s17307_s3 + $0x810] sm:$0xff]  }
 0x42e   : > { %12863 = vmatprep.subr.bf16.mxu1 %v13472_v42  ;;  %v13506_v30 = vld [vmem:[%s17307_s3 + $0x890] sm:$0xff]   ;;  %v13507_v42 = vld [vmem:[%s17307_s3 + $0x858] sm:$0xff]  }
 0x430   : > { %12842 = vmatpush3.bf16.msra.mxu0 %v13473_v2  ;;  %v13508_v2 = vld [vmem:[%s17307_s3 + $0x8d8] sm:$0xff]  }
 0x431   : > { %12864 = vmatpush3.bf16.msra.mxu1 %v13474_v20  ;;  %12843 = vmatprep.subr.bf16.mxu0 %v13475_v47  ;;  %v13509_v20 = vld [vmem:[%s17307_s3 + $0x818] sm:$0xff]  }
 0x432   : > { %12865 = vmatprep.subr.bf16.mxu1 %v13476_v46  ;;  %v13510_v47 = vld [vmem:[%s17307_s3 + $0x898] sm:$0xff]   ;;  %v13511_v46 = vld [vmem:[%s17307_s3 + $0x860] sm:$0xff]  }
 0x434   : > { %12844 = vmatpush3.bf16.msra.mxu0 %v13477_v11  ;;  %v13512_v11 = vld [vmem:[%s17307_s3 + $0x8e0] sm:$0xff]  }
 0x435   : > { %12866 = vmatpush3.bf16.msra.mxu1 %v13478_v18  ;;  %12845 = vmatprep.subr.bf16.mxu0 %v13479_v31  ;;  %v13513_v18 = vld [vmem:[%s17307_s3 + $0x820] sm:$0xff]  }
 0x436   : > { %12867 = vmatprep.subr.bf16.mxu1 %v13480_v10  ;;  %v13514_v31 = vld [vmem:[%s17307_s3 + $0x8a0] sm:$0xff]   ;;  %v13515_v10 = vld [vmem:[%s17307_s3 + $0x868] sm:$0xff]  }
 0x438   : > { %12846 = vmatpush3.bf16.msra.mxu0 %v13481_v37  ;;  %v13516_v37 = vld [vmem:[%s17307_s3 + $0x8e8] sm:$0xff]  }
 0x439   : > { %12868 = vmatpush3.bf16.msra.mxu1 %v13482_v62  ;;  %12847 = vmatprep.subr.bf16.mxu0 %v13483_v39  ;;  %v13517_v62 = vld [vmem:[%s17307_s3 + $0x828] sm:$0xff]  }
 0x43a   : > { %v12545_v33 = vpop.f32.mrb[144].mxu0  ;;  %12869 = vmatprep.subr.bf16.mxu1 %v13484_v8  ;;  %v13518_v39 = vld [vmem:[%s17307_s3 + $0x8a8] sm:$0xff]   ;;  %v13519_v8 = vld [vmem:[%s17307_s3 + $0x870] sm:$0xff]  }
 0x43b   : > { %v12567_v59 = vpop.f32.mrb[144].mxu1  ;;  %v12546_v44 = vpop.f32.mrb[145].mxu0 }
 0x43c   : > { %v12547_v7 = vadd.f32 %v12546_v44, %v12545_v33  ;;  %v12568_v54 = vpop.f32.mrb[145].mxu1  ;;  %v12548_v6 = vpop.f32.mrb[146].mxu0  ;;  %12848 = vmatpush3.bf16.msra.mxu0 %v13485_v17 }
 0x43d   : > { %v12569_v40 = vadd.f32 %v12568_v54, %v12567_v59  ;;  %v12570_v26 = vpop.f32.mrb[146].mxu1  ;;  %12870 = vmatpush3.bf16.msra.mxu1 %v13486_v21  ;;  %v12549_v43 = vpop.f32.mrb[147].mxu0  ;;  %12849 = vmatprep.subr.bf16.mxu0 %v13487_v35  ;;  %v13520_v21 = vld [vmem:[%s17307_s3 + $0x8f0] sm:$0xff]  }
 0x43e   : > { %v12571_v36 = vpop.f32.mrb[147].mxu1  ;;  %12871 = vmatprep.subr.bf16.mxu1 %v13488_v0  ;;  %v4784_v26 = vadd.f32 %v16795_v38, %v15407_v14  ;;  %v13525_v14 = vld [vmem:[%s17307_s3 + $0x838] sm:$0xff]  }
 0x43f   : > { %v16816_v28 = vadd.f32 %v12569_v40, %v12547_v7  ;;  %v13521_v7 = vld [vmem:[%s17307_s3 + $0x830] sm:$0xff]   ;;  %v13523_v40 = vld [vmem:[%s17307_s3 + $0x878] sm:$0xff]   ;;  %v4786_v36 = vadd.f32 %v16795_v38, %v17802_v61 }
 0x440   : > { %12850 = vmatpush3.bf16.msra.mxu0 %v13489_v51 }
 0x441   : > { %12872 = vmatpush3.bf16.msra.mxu1 %v13490_v58  ;;  %12851 = vmatprep.subr.bf16.mxu0 %v13491_v49  ;;  %v13524_v49 = vld [vmem:[%s17307_s3 + $0x8f8] sm:$0xff]   ;;  %v4850_v55 = vmax.f32 %v4786_v36, 0.0 }
 0x442   : > { %12873 = vmatprep.subr.bf16.mxu1 %v13492_v4  ;;  %v17803_v4 = vld [vmem:[#allocation7_spill] sm:$0xff] }
 0x443   : > { %v4789_v23 = vadd.f32 %v16795_v38, %v17803_v4  ;;  %v13556_v4 = vld [vmem:[%s17307_s3 + $0x9f8] sm:$0xff]  }
 0x444   : > { %12852 = vmatpush3.bf16.msra.mxu0 %v13493_v41  ;;  %v17804_v41 = vld [vmem:[#allocation59_spill] sm:$0xff] }
 0x445   : > { %12874 = vmatpush3.bf16.msra.mxu1 %v13494_v27  ;;  %12881 = vmatprep.subr.bf16.mxu0 %v13495_v32  ;;  %v4791_v56 = vadd.f32 %v16795_v38, %v17804_v41  ;;  %v4848_v27 = vmax.f32 %v4784_v26, 0.0  ;;  %v13527_v32 = vld [vmem:[%s17307_s3 + $0x940] sm:$0xff]   ;;  %v4853_v3 = vmax.f32 %v4789_v23, 0.0  ;;  %v17807_v41 = vld [vmem:[#allocation56_spill] sm:$0xff] }
 0x446   : > { %12903 = vmatprep.subr.bf16.mxu1 %v13496_v63  ;;  %v13528_v63 = vld [vmem:[%s17307_s3 + $0x9c0] sm:$0xff]  }
 0x447   : > { %9192 = vmatmul.mubr.bf16.vlgmr.msra.gmra.mrb[172].mxu0 %v5701_v15  ;;  %v4855_v53 = vmax.f32 %v4791_v56, 0.0  ;;  %v6515_v15 = vpack.c.bf16 %v4848_v27, %v4848_v27 }
 0x448   : > { %9232 = vmatmul.mubr.bf16.vlgmr.msra.gmra.mrb[172].mxu1 %v5703_v1  ;;  %12882 = vmatpush3.bf16.msra.mxu0 %v13497_v52  ;;  %v13529_v52 = vld [vmem:[%s17307_s3 + $0x900] sm:$0xff]   ;;  %v6517_v1 = vpack.c.bf16 %v4850_v55, %v4850_v55 }
 0x449   : > { %9655 = vmatprep.mubr.bf16.mxu0 %v6516_v34  ;;  %12904 = vmatpush3.bf16.msra.mxu1 %v13498_v12  ;;  %v13530_v12 = vld [vmem:[%s17307_s3 + $0x980] sm:$0xff]   ;;  %v6520_v34 = vpack.c.bf16 %v4853_v3, %v4853_v3 }
 0x44a   : > { %9695 = vmatprep.mubr.bf16.mxu1 %v6518_v24  ;;  %12883 = vmatprep.subr.bf16.mxu0 %v13499_v5  ;;  %v13531_v5 = vld [vmem:[%s17307_s3 + $0x948] sm:$0xff]   ;;  %v6522_v24 = vpack.c.bf16 %v4855_v53, %v4855_v53  ;;  %v13559_v55 = vld [vmem:[%s17307_s3 + $0xc40] sm:$0xff]  }
 0x44b   : > { %12905 = vmatprep.subr.bf16.mxu1 %v13500_v19  ;;  %v13532_v19 = vld [vmem:[%s17307_s3 + $0x9c8] sm:$0xff]   ;;  %v13560_v3 = vld [vmem:[%s17307_s3 + $0xcc0] sm:$0xff]  }
 0x44c   : > { %12884 = vmatpush3.bf16.msra.mxu0 %v13501_v48  ;;  %v13533_v48 = vld [vmem:[%s17307_s3 + $0x908] sm:$0xff]   ;;  %v13561_v53 = vld [vmem:[%s17307_s3 + $0xc00] sm:$0xff]  }
 0x44d   : > { %12906 = vmatpush3.bf16.msra.mxu1 %v13502_v25  ;;  %12885 = vmatprep.subr.bf16.mxu0 %v13503_v9  ;;  %v13534_v25 = vld [vmem:[%s17307_s3 + $0x988] sm:$0xff]   ;;  %v13535_v9 = vld [vmem:[%s17307_s3 + $0x950] sm:$0xff]  }
 0x44e   : > { %12907 = vmatprep.subr.bf16.mxu1 %v13504_v29  ;;  %v13536_v29 = vld [vmem:[%s17307_s3 + $0x9d0] sm:$0xff]  }
 0x450   : > { %12886 = vmatpush3.bf16.msra.mxu0 %v13505_v50  ;;  %v13537_v50 = vld [vmem:[%s17307_s3 + $0x910] sm:$0xff]  }
 0x451   : > { %12908 = vmatpush3.bf16.msra.mxu1 %v13506_v30  ;;  %12887 = vmatprep.subr.bf16.mxu0 %v13507_v42  ;;  %v13538_v30 = vld [vmem:[%s17307_s3 + $0x990] sm:$0xff]   ;;  %v13539_v42 = vld [vmem:[%s17307_s3 + $0x958] sm:$0xff]  }
 0x452   : > { %12909 = vmatprep.subr.bf16.mxu1 %v13508_v2  ;;  %v13540_v2 = vld [vmem:[%s17307_s3 + $0x9d8] sm:$0xff]  }
 0x454   : > { %12888 = vmatpush3.bf16.msra.mxu0 %v13509_v20  ;;  %v13541_v20 = vld [vmem:[%s17307_s3 + $0x918] sm:$0xff]  }
 0x455   : > { %12910 = vmatpush3.bf16.msra.mxu1 %v13510_v47  ;;  %12889 = vmatprep.subr.bf16.mxu0 %v13511_v46  ;;  %v13542_v47 = vld [vmem:[%s17307_s3 + $0x998] sm:$0xff]   ;;  %v13543_v46 = vld [vmem:[%s17307_s3 + $0x960] sm:$0xff]  }
 0x456   : > { %12911 = vmatprep.subr.bf16.mxu1 %v13512_v11  ;;  %v13544_v11 = vld [vmem:[%s17307_s3 + $0x9e0] sm:$0xff]  }
 0x458   : > { %12890 = vmatpush3.bf16.msra.mxu0 %v13513_v18  ;;  %v13545_v18 = vld [vmem:[%s17307_s3 + $0x920] sm:$0xff]  }
 0x459   : > { %12912 = vmatpush3.bf16.msra.mxu1 %v13514_v31  ;;  %12891 = vmatprep.subr.bf16.mxu0 %v13515_v10  ;;  %v13546_v31 = vld [vmem:[%s17307_s3 + $0x9a0] sm:$0xff]   ;;  %v13547_v10 = vld [vmem:[%s17307_s3 + $0x968] sm:$0xff]  }
 0x45a   : > { %v12589_v17 = vpop.f32.mrb[148].mxu0  ;;  %12913 = vmatprep.subr.bf16.mxu1 %v13516_v37  ;;  %v13548_v37 = vld [vmem:[%s17307_s3 + $0x9e8] sm:$0xff]  }
 0x45b   : > { %v12611_v35 = vpop.f32.mrb[148].mxu1  ;;  %v12590_v33 = vpop.f32.mrb[149].mxu0 }
 0x45c   : > { %v12591_v0 = vadd.f32 %v12590_v33, %v12589_v17  ;;  %v12612_v59 = vpop.f32.mrb[149].mxu1  ;;  %v12592_v44 = vpop.f32.mrb[150].mxu0  ;;  %12892 = vmatpush3.bf16.msra.mxu0 %v13517_v62  ;;  %v13549_v62 = vld [vmem:[%s17307_s3 + $0x928] sm:$0xff]  }
 0x45d   : > { %v12613_v54 = vadd.f32 %v12612_v59, %v12611_v35  ;;  %v12614_v6 = vpop.f32.mrb[150].mxu1  ;;  %12914 = vmatpush3.bf16.msra.mxu1 %v13518_v39  ;;  %v12593_v51 = vpop.f32.mrb[151].mxu0  ;;  %12893 = vmatprep.subr.bf16.mxu0 %v13519_v8  ;;  %v13550_v39 = vld [vmem:[%s17307_s3 + $0x9a8] sm:$0xff]   ;;  %v13551_v8 = vld [vmem:[%s17307_s3 + $0x970] sm:$0xff]  }
 0x45e   : > { %v7288_v43 = vadd.f32 %v12591_v0, %v16816_v28  ;;  %v12615_v58 = vpop.f32.mrb[151].mxu1  ;;  %12915 = vmatprep.subr.bf16.mxu1 %v13520_v21  ;;  %v13526_v28 = vld [vmem:[%s17307_s3 + $0x8b8] sm:$0xff]   ;;  %v17010_v17 = vpop.permute.xlu1 %4744  ;;  %v13552_v35 = vld [vmem:[%s17307_s3 + $0x9f0] sm:$0xff]   ;;  %v17805_v6 = vld [vmem:[#allocation8_spill] sm:$0xff] }
 0x45f   : > { %v4788_v51 = vadd.f32 %v16795_v38, %v17805_v6  ;;  %v13555_v58 = vld [vmem:[%s17307_s3 + $0x978] sm:$0xff]   ;;  %v4801_v56 = vadd.f32 %v17010_v17, %v17807_v41  ;;  %v13585_v6 = vld [vmem:[%s17307_s3 + $0xc30] sm:$0xff]  }
 0x460   : > { %v16927_v57 = vadd.f32 %v12613_v54, %v7288_v43  ;;  %12894 = vmatpush3.bf16.msra.mxu0 %v13521_v7  ;;  %v13553_v54 = vld [vmem:[%s17307_s3 + $0x930] sm:$0xff]   ;;  %v17810_v41 = vld [vmem:[#allocation6_spill] sm:$0xff] }
 0x461   : > { %12916 = vmatpush3.bf16.msra.mxu1 %v13522_v16  ;;  %12895 = vmatprep.subr.bf16.mxu0 %v13523_v40  ;;  %v13554_v43 = vld [vmem:[%s17307_s3 + $0x9b0] sm:$0xff]  }
 0x462   : > { %12917 = vmatprep.subr.bf16.mxu1 %v13524_v49  ;;  %v17806_v49 = vld [vmem:[#allocation58_spill] sm:$0xff] }
 0x463   : > { %v4790_v61 = vadd.f32 %v16795_v38, %v17806_v49  ;;  %v4852_v38 = vmax.f32 %v4788_v51, 0.0 }
 0x464   : > { %12896 = vmatpush3.bf16.msra.mxu0 %v13525_v14  ;;  %v13557_v14 = vld [vmem:[%s17307_s3 + $0x938] sm:$0xff]  }
 0x465   : > { %12918 = vmatpush3.bf16.msra.mxu1 %v13526_v28  ;;  %12925 = vmatprep.subr.bf16.mxu0 %v13527_v32  ;;  %v17808_v28 = vld [vmem:[#allocation57_spill] sm:$0xff]  ;;  %v13558_v32 = vld [vmem:[%s17307_s3 + $0x9b8] sm:$0xff]  }
 0x466   : > { %12947 = vmatprep.subr.bf16.mxu1 %v13528_v63  ;;  %v4803_v27 = vadd.f32 %v17010_v17, %v17808_v28  ;;  %v4854_v63 = vmax.f32 %v4790_v61, 0.0  ;;  %v4807_v28 = vadd.f32 %v17010_v17, %v15786_v45 }
 0x467   : > { %9656 = vmatmul.mubr.bf16.vlgmr.msra.gmra.mrb[176].mxu0 %v6515_v15 }
 0x468   : > { %9696 = vmatmul.mubr.bf16.vlgmr.msra.gmra.mrb[176].mxu1 %v6517_v1  ;;  %12926 = vmatpush3.bf16.msra.mxu0 %v13529_v52  ;;  %v4865_v52 = vmax.f32 %v4801_v56, 0.0  ;;  %v4867_v15 = vmax.f32 %v4803_v27, 0.0  ;;  %v13562_v1 = vld [vmem:[%s17307_s3 + $0xc80] sm:$0xff]   ;;  %v4802_v56 = vadd.f32 %v17010_v17, %v17810_v41 }
 0x469   : > { %9735 = vmatprep.mubr.bf16.mxu0 %v6520_v34  ;;  %12948 = vmatpush3.bf16.msra.mxu1 %v13530_v12  ;;  %v6519_v12 = vpack.c.bf16 %v4852_v38, %v4852_v38  ;;  %v13563_v34 = vld [vmem:[%s17307_s3 + $0xc48] sm:$0xff]   ;;  %v13590_v38 = vld [vmem:[%s17307_s3 + $0xcb8] sm:$0xff]  }
 0x46a   : > { %9775 = vmatprep.mubr.bf16.mxu1 %v6522_v24  ;;  %12927 = vmatprep.subr.bf16.mxu0 %v13531_v5  ;;  %v6521_v5 = vpack.c.bf16 %v4854_v63, %v4854_v63  ;;  %v13564_v24 = vld [vmem:[%s17307_s3 + $0xcc8] sm:$0xff]   ;;  %v4866_v45 = vmax.f32 %v4802_v56, 0.0  ;;  %v13621_v56 = vld [vmem:[%s17307_s3 + $0xd38] sm:$0xff]  }
 0x46b   : > { %12949 = vmatprep.subr.bf16.mxu1 %v13532_v19  ;;  %v7334_v19 = vpack.c.bf16 %v4865_v52, %v4865_v52  ;;  %v4871_v52 = vmax.f32 %v4807_v28, 0.0 }
 0x46c   : > { %12928 = vmatpush3.bf16.msra.mxu0 %v13533_v48  ;;  %v7336_v48 = vpack.c.bf16 %v4867_v15, %v4867_v15  ;;  %v13594_v15 = vld [vmem:[%s17307_s3 + $0xd80] sm:$0xff]  }
 0x46d   : > { %12950 = vmatpush3.bf16.msra.mxu1 %v13534_v25  ;;  %12929 = vmatprep.subr.bf16.mxu0 %v13535_v9  ;;  %v13565_v25 = vld [vmem:[%s17307_s3 + $0xc08] sm:$0xff]  }
 0x46e   : > { %12951 = vmatprep.subr.bf16.mxu1 %v13536_v29  ;;  %v13566_v9 = vld [vmem:[%s17307_s3 + $0xc88] sm:$0xff]   ;;  %v13567_v29 = vld [vmem:[%s17307_s3 + $0xc50] sm:$0xff]  }
 0x470   : > { %12930 = vmatpush3.bf16.msra.mxu0 %v13537_v50  ;;  %v13568_v50 = vld [vmem:[%s17307_s3 + $0xcd0] sm:$0xff]  }
 0x471   : > { %12952 = vmatpush3.bf16.msra.mxu1 %v13538_v30  ;;  %12931 = vmatprep.subr.bf16.mxu0 %v13539_v42  ;;  %v13569_v30 = vld [vmem:[%s17307_s3 + $0xc10] sm:$0xff]  }
 0x472   : > { %12953 = vmatprep.subr.bf16.mxu1 %v13540_v2  ;;  %v13570_v42 = vld [vmem:[%s17307_s3 + $0xc90] sm:$0xff]   ;;  %v13571_v2 = vld [vmem:[%s17307_s3 + $0xc58] sm:$0xff]  }
 0x474   : > { %12932 = vmatpush3.bf16.msra.mxu0 %v13541_v20  ;;  %v13572_v20 = vld [vmem:[%s17307_s3 + $0xcd8] sm:$0xff]  }
 0x475   : > { %12954 = vmatpush3.bf16.msra.mxu1 %v13542_v47  ;;  %12933 = vmatprep.subr.bf16.mxu0 %v13543_v46  ;;  %v13573_v47 = vld [vmem:[%s17307_s3 + $0xc18] sm:$0xff]  }
 0x476   : > { %12955 = vmatprep.subr.bf16.mxu1 %v13544_v11  ;;  %v13574_v46 = vld [vmem:[%s17307_s3 + $0xc98] sm:$0xff]   ;;  %v13575_v11 = vld [vmem:[%s17307_s3 + $0xc60] sm:$0xff]  }
 0x478   : > { %12934 = vmatpush3.bf16.msra.mxu0 %v13545_v18  ;;  %v13576_v18 = vld [vmem:[%s17307_s3 + $0xce0] sm:$0xff]  }
 0x479   : > { %12956 = vmatpush3.bf16.msra.mxu1 %v13546_v31  ;;  %12935 = vmatprep.subr.bf16.mxu0 %v13547_v10  ;;  %v13577_v31 = vld [vmem:[%s17307_s3 + $0xc20] sm:$0xff]  }
 0x47a   : > { %v12633_v21 = vpop.f32.mrb[152].mxu0  ;;  %12957 = vmatprep.subr.bf16.mxu1 %v13548_v37  ;;  %v13578_v10 = vld [vmem:[%s17307_s3 + $0xca0] sm:$0xff]   ;;  %v13579_v37 = vld [vmem:[%s17307_s3 + $0xc68] sm:$0xff]  }
 0x47b   : > { %v12655_v33 = vpop.f32.mrb[152].mxu1  ;;  %v12634_v0 = vpop.f32.mrb[153].mxu0 }
 0x47c   : > { %v12635_v59 = vadd.f32 %v12634_v0, %v12633_v21  ;;  %v12656_v44 = vpop.f32.mrb[153].mxu1  ;;  %v12636_v7 = vpop.f32.mrb[154].mxu0  ;;  %12936 = vmatpush3.bf16.msra.mxu0 %v13549_v62  ;;  %v13580_v62 = vld [vmem:[%s17307_s3 + $0xce8] sm:$0xff]   ;;  %v13583_v21 = vld [vmem:[%s17307_s3 + $0xc70] sm:$0xff]  }
 0x47d   : > { %v12657_v16 = vadd.f32 %v12656_v44, %v12655_v33  ;;  %v12658_v40 = vpop.f32.mrb[154].mxu1  ;;  %12958 = vmatpush3.bf16.msra.mxu1 %v13550_v39  ;;  %v12637_v26 = vpop.f32.mrb[155].mxu0  ;;  %12937 = vmatprep.subr.bf16.mxu0 %v13551_v8  ;;  %v13581_v39 = vld [vmem:[%s17307_s3 + $0xc28] sm:$0xff]   ;;  %v13584_v33 = vld [vmem:[%s17307_s3 + $0xcf0] sm:$0xff]  }
 0x47e   : > { %v12659_v36 = vpop.f32.mrb[155].mxu1  ;;  %12959 = vmatprep.subr.bf16.mxu1 %v13552_v35  ;;  %v13582_v8 = vld [vmem:[%s17307_s3 + $0xca8] sm:$0xff]   ;;  %v13586_v26 = vld [vmem:[%s17307_s3 + $0xcb0] sm:$0xff]  }
 0x47f   : > { %v17031_v23 = vadd.f32 %v12657_v16, %v12635_v59 }
 0x480   : > { %12938 = vmatpush3.bf16.msra.mxu0 %v13553_v54 }
 0x481   : > { %12960 = vmatpush3.bf16.msra.mxu1 %v13554_v43  ;;  %12939 = vmatprep.subr.bf16.mxu0 %v13555_v58  ;;  %v13587_v43 = vld [vmem:[%s17307_s3 + $0xc78] sm:$0xff]   ;;  %v17809_v58 = vld [vmem:[#allocation55_spill] sm:$0xff] }
 0x482   : > { %12961 = vmatprep.subr.bf16.mxu1 %v13556_v4  ;;  %v4800_v49 = vadd.f32 %v17010_v17, %v17809_v58  ;;  %v13588_v4 = vld [vmem:[%s17307_s3 + $0xcf8] sm:$0xff]   ;;  %v17812_v58 = vld [vmem:[#allocation60_spill] sm:$0xff] }
 0x484   : > { %12940 = vmatpush3.bf16.msra.mxu0 %v13557_v14  ;;  %v4805_v14 = vadd.f32 %v17010_v17, %v15781_v22  ;;  %v13591_v22 = vld [vmem:[%s17307_s3 + $0xd40] sm:$0xff]  }
 0x485   : > { %12962 = vmatpush3.bf16.msra.mxu1 %v13558_v32  ;;  %12969 = vmatprep.subr.bf16.mxu0 %v13559_v55  ;;  %v4864_v32 = vmax.f32 %v4800_v49, 0.0  ;;  %v13592_v55 = vld [vmem:[%s17307_s3 + $0xdc0] sm:$0xff]   ;;  %v4806_v49 = vadd.f32 %v17010_v17, %v17812_v58 }
 0x486   : > { %12991 = vmatprep.subr.bf16.mxu1 %v13560_v3  ;;  %v4869_v63 = vmax.f32 %v4805_v14, 0.0  ;;  %v13593_v3 = vld [vmem:[%s17307_s3 + $0xd00] sm:$0xff]  }
 0x487   : > { %9736 = vmatmul.mubr.bf16.vlgmr.msra.gmra.mrb[180].mxu0 %v6519_v12  ;;  %v7335_v12 = vpack.c.bf16 %v4866_v45, %v4866_v45 }
 0x488   : > { %9776 = vmatmul.mubr.bf16.vlgmr.msra.gmra.mrb[180].mxu1 %v6521_v5  ;;  %12970 = vmatpush3.bf16.msra.mxu0 %v13561_v53  ;;  %v7333_v53 = vpack.c.bf16 %v4864_v32, %v4864_v32  ;;  %v7338_v5 = vpack.c.bf16 %v4869_v63, %v4869_v63 }
 0x489   : > { %10199 = vmatprep.mubr.bf16.mxu0 %v7334_v19  ;;  %12992 = vmatpush3.bf16.msra.mxu1 %v13562_v1  ;;  %v13595_v1 = vld [vmem:[%s17307_s3 + $0xd48] sm:$0xff]   ;;  %v7340_v19 = vpack.c.bf16 %v4871_v52, %v4871_v52 }
 0x48a   : > { %10239 = vmatprep.mubr.bf16.mxu1 %v7336_v48  ;;  %12971 = vmatprep.subr.bf16.mxu0 %v13563_v34  ;;  %v13596_v34 = vld [vmem:[%s17307_s3 + $0xdc8] sm:$0xff]  }
 0x48b   : > { %12993 = vmatprep.subr.bf16.mxu1 %v13564_v24  ;;  %v13597_v24 = vld [vmem:[%s17307_s3 + $0xd08] sm:$0xff]  }
 0x48c   : > { %12972 = vmatpush3.bf16.msra.mxu0 %v13565_v25  ;;  %v13598_v48 = vld [vmem:[%s17307_s3 + $0xd88] sm:$0xff]   ;;  %v13599_v25 = vld [vmem:[%s17307_s3 + $0xd50] sm:$0xff]  }
 0x48d   : > { %12994 = vmatpush3.bf16.msra.mxu1 %v13566_v9  ;;  %12973 = vmatprep.subr.bf16.mxu0 %v13567_v29  ;;  %v13600_v9 = vld [vmem:[%s17307_s3 + $0xdd0] sm:$0xff]  }
 0x48e   : > { %12995 = vmatprep.subr.bf16.mxu1 %v13568_v50  ;;  %v13601_v29 = vld [vmem:[%s17307_s3 + $0xd10] sm:$0xff]  }
 0x48f   : > { %v13602_v50 = vld [vmem:[%s17307_s3 + $0xd90] sm:$0xff]  }
 0x490   : > { %12974 = vmatpush3.bf16.msra.mxu0 %v13569_v30  ;;  %v13603_v30 = vld [vmem:[%s17307_s3 + $0xd58] sm:$0xff]  }
 0x491   : > { %12996 = vmatpush3.bf16.msra.mxu1 %v13570_v42  ;;  %12975 = vmatprep.subr.bf16.mxu0 %v13571_v2  ;;  %v13604_v42 = vld [vmem:[%s17307_s3 + $0xdd8] sm:$0xff]  }
 0x492   : > { %12997 = vmatprep.subr.bf16.mxu1 %v13572_v20  ;;  %v13605_v2 = vld [vmem:[%s17307_s3 + $0xd18] sm:$0xff]  }
 0x493   : > { %v13606_v20 = vld [vmem:[%s17307_s3 + $0xd98] sm:$0xff]  }
 0x494   : > { %12976 = vmatpush3.bf16.msra.mxu0 %v13573_v47  ;;  %v13607_v47 = vld [vmem:[%s17307_s3 + $0xd60] sm:$0xff]  }
 0x495   : > { %12998 = vmatpush3.bf16.msra.mxu1 %v13574_v46  ;;  %12977 = vmatprep.subr.bf16.mxu0 %v13575_v11  ;;  %v13608_v46 = vld [vmem:[%s17307_s3 + $0xde0] sm:$0xff]  }
 0x496   : > { %12999 = vmatprep.subr.bf16.mxu1 %v13576_v18  ;;  %v13609_v11 = vld [vmem:[%s17307_s3 + $0xd20] sm:$0xff]  }
 0x497   : > { %v13610_v18 = vld [vmem:[%s17307_s3 + $0xda0] sm:$0xff]  }
 0x498   : > { %12978 = vmatpush3.bf16.msra.mxu0 %v13577_v31  ;;  %v13611_v31 = vld [vmem:[%s17307_s3 + $0xd68] sm:$0xff]  }
 0x499   : > { %13000 = vmatpush3.bf16.msra.mxu1 %v13578_v10  ;;  %12979 = vmatprep.subr.bf16.mxu0 %v13579_v37  ;;  %v13612_v10 = vld [vmem:[%s17307_s3 + $0xde8] sm:$0xff]  }
 0x49a   : > { %v12677_v35 = vpop.f32.mrb[156].mxu0  ;;  %13001 = vmatprep.subr.bf16.mxu1 %v13580_v62  ;;  %v13613_v37 = vld [vmem:[%s17307_s3 + $0xd28] sm:$0xff]  }
 0x49b   : > { %v12699_v0 = vpop.f32.mrb[156].mxu1  ;;  %v12678_v59 = vpop.f32.mrb[157].mxu0  ;;  %v13614_v62 = vld [vmem:[%s17307_s3 + $0xda8] sm:$0xff]  }
 0x49c   : > { %v12679_v44 = vadd.f32 %v12678_v59, %v12677_v35  ;;  %v12700_v7 = vpop.f32.mrb[157].mxu1  ;;  %v12680_v54 = vpop.f32.mrb[158].mxu0  ;;  %12980 = vmatpush3.bf16.msra.mxu0 %v13581_v39  ;;  %v13615_v39 = vld [vmem:[%s17307_s3 + $0xd70] sm:$0xff]  }
 0x49d   : > { %v12701_v51 = vadd.f32 %v12700_v7, %v12699_v0  ;;  %v12702_v16 = vpop.f32.mrb[158].mxu1  ;;  %13002 = vmatpush3.bf16.msra.mxu1 %v13582_v8  ;;  %v12681_v40 = vpop.f32.mrb[159].mxu0  ;;  %12981 = vmatprep.subr.bf16.mxu0 %v13583_v21  ;;  %v13616_v21 = vld [vmem:[%s17307_s3 + $0xdf0] sm:$0xff]  }
 0x49e   : > { %v8106_v61 = vadd.f32 %v12679_v44, %v17031_v23  ;;  %v12703_v36 = vpop.f32.mrb[159].mxu1  ;;  %13003 = vmatprep.subr.bf16.mxu1 %v13584_v33  ;;  %v13589_v23 = vld [vmem:[%s17307_s3 + $0xc38] sm:$0xff]   ;;  %v13617_v7 = vld [vmem:[%s17307_s3 + $0xd30] sm:$0xff]  }
 0x49f   : > { %v17811_v54 = vld [vmem:[#allocation9_spill] sm:$0xff] }
 0x4a0   : > { %v17142_v27 = vadd.f32 %v12701_v51, %v8106_v61  ;;  %12982 = vmatpush3.bf16.msra.mxu0 %v13585_v6  ;;  %v4804_v6 = vadd.f32 %v17010_v17, %v17811_v54  ;;  %v13622_v17 = vld [vmem:[%s17307_s3 + $0xdb8] sm:$0xff]  }
 0x4a1   : > { %13004 = vmatpush3.bf16.msra.mxu1 %v13586_v26  ;;  %12983 = vmatprep.subr.bf16.mxu0 %v13587_v43  ;;  %v13618_v26 = vld [vmem:[%s17307_s3 + $0xdb0] sm:$0xff]   ;;  %v13619_v43 = vld [vmem:[%s17307_s3 + $0xd78] sm:$0xff]  }
 0x4a2   : > { %13005 = vmatprep.subr.bf16.mxu1 %v13588_v4  ;;  %v13620_v4 = vld [vmem:[%s17307_s3 + $0xdf8] sm:$0xff]   ;;  %v4868_v14 = vmax.f32 %v4804_v6, 0.0 }
 0x4a4   : > { %12984 = vmatpush3.bf16.msra.mxu0 %v13589_v23  ;;  %v7337_v28 = vpack.c.bf16 %v4868_v14, %v4868_v14 }
 0x4a5   : > { %13006 = vmatpush3.bf16.msra.mxu1 %v13590_v38  ;;  %13013 = vmatprep.subr.bf16.mxu0 %v13591_v22 }
 0x4a6   : > { %13035 = vmatprep.subr.bf16.mxu1 %v13592_v55 }
 0x4a7   : > { %10200 = vmatmul.mubr.bf16.vlgmr.msra.gmra.mrb[184].mxu0 %v7333_v53 }
 0x4a8   : > { %10240 = vmatmul.mubr.bf16.vlgmr.msra.gmra.mrb[184].mxu1 %v7335_v12  ;;  %13014 = vmatpush3.bf16.msra.mxu0 %v13593_v3 }
 0x4a9   : > { %10279 = vmatprep.mubr.bf16.mxu0 %v7338_v5  ;;  %13036 = vmatpush3.bf16.msra.mxu1 %v13594_v15 }
 0x4aa   : > { %10319 = vmatprep.mubr.bf16.mxu1 %v7340_v19  ;;  %13015 = vmatprep.subr.bf16.mxu0 %v13595_v1 }
 0x4ab   : > { %13037 = vmatprep.subr.bf16.mxu1 %v13596_v34 }
 0x4ac   : > { %13016 = vmatpush3.bf16.msra.mxu0 %v13597_v24 }
 0x4ad   : > { %13038 = vmatpush3.bf16.msra.mxu1 %v13598_v48  ;;  %13017 = vmatprep.subr.bf16.mxu0 %v13599_v25 }
 0x4ae   : > { %13039 = vmatprep.subr.bf16.mxu1 %v13600_v9 }
 0x4b0   : > { %13018 = vmatpush3.bf16.msra.mxu0 %v13601_v29 }
 0x4b1   : > { %13040 = vmatpush3.bf16.msra.mxu1 %v13602_v50  ;;  %13019 = vmatprep.subr.bf16.mxu0 %v13603_v30 }
 0x4b2   : > { %13041 = vmatprep.subr.bf16.mxu1 %v13604_v42 }
 0x4b4   : > { %13020 = vmatpush3.bf16.msra.mxu0 %v13605_v2 }
 0x4b5   : > { %13042 = vmatpush3.bf16.msra.mxu1 %v13606_v20  ;;  %13021 = vmatprep.subr.bf16.mxu0 %v13607_v47 }
 0x4b6   : > { %13043 = vmatprep.subr.bf16.mxu1 %v13608_v46 }
 0x4b8   : > { %13022 = vmatpush3.bf16.msra.mxu0 %v13609_v11 }
 0x4b9   : > { %13044 = vmatpush3.bf16.msra.mxu1 %v13610_v18  ;;  %13023 = vmatprep.subr.bf16.mxu0 %v13611_v31 }
 0x4ba   : > { %v12721_v8 = vpop.f32.mrb[160].mxu0  ;;  %13045 = vmatprep.subr.bf16.mxu1 %v13612_v10 }
 0x4bb   : > { %v12743_v35 = vpop.f32.mrb[160].mxu1  ;;  %v12722_v33 = vpop.f32.mrb[161].mxu0 }
 0x4bc   : > { %v12723_v0 = vadd.f32 %v12722_v33, %v12721_v8  ;;  %v12744_v59 = vpop.f32.mrb[161].mxu1  ;;  %v12724_v44 = vpop.f32.mrb[162].mxu0  ;;  %13024 = vmatpush3.bf16.msra.mxu0 %v13613_v37 }
 0x4bd   : > { %v12745_v51 = vadd.f32 %v12744_v59, %v12743_v35  ;;  %v12746_v16 = vpop.f32.mrb[162].mxu1  ;;  %13046 = vmatpush3.bf16.msra.mxu1 %v13614_v62  ;;  %v12725_v40 = vpop.f32.mrb[163].mxu0  ;;  %13025 = vmatprep.subr.bf16.mxu0 %v13615_v39 }
 0x4be   : > { %v8570_v61 = vadd.f32 %v12723_v0, %v16497_v60  ;;  %v12747_v36 = vpop.f32.mrb[163].mxu1  ;;  %13047 = vmatprep.subr.bf16.mxu1 %v13616_v21  ;;  %v4870_v60 = vmax.f32 %v4806_v49, 0.0 }
 0x4c0   : > { %v8610_v41 = vadd.f32 %v12745_v51, %v8570_v61  ;;  %13026 = vmatpush3.bf16.msra.mxu0 %v13617_v7  ;;  %v7339_v23 = vpack.c.bf16 %v4870_v60, %v4870_v60 }
 0x4c1   : > { %13048 = vmatpush3.bf16.msra.mxu1 %v13618_v26  ;;  %13027 = vmatprep.subr.bf16.mxu0 %v13619_v43 }
 0x4c2   : > { %13049 = vmatprep.subr.bf16.mxu1 %v13620_v4 }
 0x4c4   : > { %13028 = vmatpush3.bf16.msra.mxu0 %v13621_v56 }
 0x4c5   : > { %13050 = vmatpush3.bf16.msra.mxu1 %v13622_v17 }
 0x4c7   : > { %10280 = vmatmul.mubr.bf16.vlgmr.msra.gmra.mrb[188].mxu0 %v7337_v28 }
 0x4c8   : > { %10320 = vmatmul.mubr.bf16.vlgmr.msra.gmra.mrb[188].mxu1 %v7339_v23 }
 0x4da   : > { %v12765_v38 = vpop.f32.mrb[164].mxu0 }
 0x4db   : > { %v12787_v32 = vpop.f32.mrb[164].mxu1  ;;  %v12766_v22 = vpop.f32.mrb[165].mxu0 }
 0x4dc   : > { %v12767_v45 = vadd.f32 %v12766_v22, %v12765_v38  ;;  %v12788_v55 = vpop.f32.mrb[165].mxu1  ;;  %v12768_v63 = vpop.f32.mrb[166].mxu0 }
 0x4dd   : > { %v12789_v3 = vadd.f32 %v12788_v55, %v12787_v32  ;;  %v12790_v52 = vpop.f32.mrb[166].mxu1  ;;  %v12769_v53 = vpop.f32.mrb[167].mxu0 }
 0x4de   : > { %v8650_v15 = vadd.f32 %v12767_v45, %v8610_v41  ;;  %v12791_v12 = vpop.f32.mrb[167].mxu1 }
 0x4e0   : > { %v8690_v1 = vadd.f32 %v12789_v3, %v8650_v15 }
 0x4fa   : > { %v12809_v5 = vpop.f32.mrb[168].mxu0 }
 0x4fb   : > { %v12831_v34 = vpop.f32.mrb[168].mxu1  ;;  %v12810_v19 = vpop.f32.mrb[169].mxu0 }
 0x4fc   : > { %v12811_v24 = vadd.f32 %v12810_v19, %v12809_v5  ;;  %v12832_v48 = vpop.f32.mrb[169].mxu1  ;;  %v12812_v25 = vpop.f32.mrb[170].mxu0 }
 0x4fd   : > { %v12833_v9 = vadd.f32 %v12832_v48, %v12831_v34  ;;  %v12834_v29 = vpop.f32.mrb[170].mxu1  ;;  %v12813_v50 = vpop.f32.mrb[171].mxu0 }
 0x4fe   : > { %v9114_v30 = vadd.f32 %v12811_v24, %v16712_v13  ;;  %v12835_v42 = vpop.f32.mrb[171].mxu1 }
 0x500   : > { %v9154_v2 = vadd.f32 %v12833_v9, %v9114_v30 }
 0x51a   : > { %v12853_v20 = vpop.f32.mrb[172].mxu0 }
 0x51b   : > { %v12875_v47 = vpop.f32.mrb[172].mxu1  ;;  %v12854_v46 = vpop.f32.mrb[173].mxu0 }
 0x51c   : > { %v12855_v11 = vadd.f32 %v12854_v46, %v12853_v20  ;;  %v12876_v18 = vpop.f32.mrb[173].mxu1  ;;  %v12856_v31 = vpop.f32.mrb[174].mxu0 }
 0x51d   : > { %v12877_v10 = vadd.f32 %v12876_v18, %v12875_v47  ;;  %v12878_v37 = vpop.f32.mrb[174].mxu1  ;;  %v12857_v62 = vpop.f32.mrb[175].mxu0 }
 0x51e   : > { %v9194_v39 = vadd.f32 %v12855_v11, %v9154_v2  ;;  %v12879_v8 = vpop.f32.mrb[175].mxu1 }
 0x520   : > { %v9234_v21 = vadd.f32 %v12877_v10, %v9194_v39 }
 0x522   : > { %v10327_v35 = vadd.f32 %v9234_v21, %v8690_v1 }
 0x53a   : > { %v12897_v33 = vpop.f32.mrb[176].mxu0 }
 0x53b   : > { %v12919_v0 = vpop.f32.mrb[176].mxu1  ;;  %v12898_v59 = vpop.f32.mrb[177].mxu0 }
 0x53c   : > { %v12899_v44 = vadd.f32 %v12898_v59, %v12897_v33  ;;  %v12920_v13 = vpop.f32.mrb[177].mxu1  ;;  %v12900_v7 = vpop.f32.mrb[178].mxu0 }
 0x53d   : > { %v12921_v54 = vadd.f32 %v12920_v13, %v12919_v0  ;;  %v12922_v6 = vpop.f32.mrb[178].mxu1  ;;  %v12901_v51 = vpop.f32.mrb[179].mxu0 }
 0x53e   : > { %v9658_v16 = vadd.f32 %v12899_v44, %v16927_v57  ;;  %v12923_v40 = vpop.f32.mrb[179].mxu1 }
 0x540   : > { %v9698_v26 = vadd.f32 %v12921_v54, %v9658_v16 }
 0x55a   : > { %v12941_v43 = vpop.f32.mrb[180].mxu0 }
 0x55b   : > { %v12963_v58 = vpop.f32.mrb[180].mxu1  ;;  %v12942_v49 = vpop.f32.mrb[181].mxu0 }
 0x55c   : > { %v12943_v61 = vadd.f32 %v12942_v49, %v12941_v43  ;;  %v12964_v36 = vpop.f32.mrb[181].mxu1  ;;  %v12944_v4 = vpop.f32.mrb[182].mxu0 }
 0x55d   : > { %v12965_v41 = vadd.f32 %v12964_v36, %v12963_v58  ;;  %v12966_v56 = vpop.f32.mrb[182].mxu1  ;;  %v12945_v14 = vpop.f32.mrb[183].mxu0 }
 0x55e   : > { %v9738_v17 = vadd.f32 %v12943_v61, %v9698_v26  ;;  %v12967_v60 = vpop.f32.mrb[183].mxu1 }
 0x560   : > { %v9778_v28 = vadd.f32 %v12965_v41, %v9738_v17 }
 0x57a   : > { %v12985_v23 = vpop.f32.mrb[184].mxu0 }
 0x57b   : > { %v13007_v38 = vpop.f32.mrb[184].mxu1  ;;  %v12986_v32 = vpop.f32.mrb[185].mxu0 }
 0x57c   : > { %v12987_v22 = vadd.f32 %v12986_v32, %v12985_v23  ;;  %v13008_v57 = vpop.f32.mrb[185].mxu1  ;;  %v12988_v45 = vpop.f32.mrb[186].mxu0 }
 0x57d   : > { %v13009_v55 = vadd.f32 %v13008_v57, %v13007_v38  ;;  %v13010_v63 = vpop.f32.mrb[186].mxu1  ;;  %v12989_v3 = vpop.f32.mrb[187].mxu0 }
 0x57e   : > { %v10202_v52 = vadd.f32 %v12987_v22, %v17142_v27  ;;  %v13011_v53 = vpop.f32.mrb[187].mxu1  ;;  %v12347_v27 = vld [vmem:[%s17308_s4] ss:$0 sm:$0xff] }
 0x580   : > { %v10242_v15 = vadd.f32 %v13009_v55, %v10202_v52 }
 0x59a   : > { %v13029_v12 = vpop.f32.mrb[188].mxu0 }
 0x59b   : > { %v13051_v1 = vpop.f32.mrb[188].mxu1  ;;  %v13030_v5 = vpop.f32.mrb[189].mxu0 }
 0x59c   : > { %v13031_v34 = vadd.f32 %v13030_v5, %v13029_v12  ;;  %v13052_v19 = vpop.f32.mrb[189].mxu1  ;;  %v13032_v24 = vpop.f32.mrb[190].mxu0 }
 0x59d   : > { %v13053_v48 = vadd.f32 %v13052_v19, %v13051_v1  ;;  %v13054_v25 = vpop.f32.mrb[190].mxu1  ;;  %v13033_v9 = vpop.f32.mrb[191].mxu0 }
 0x59e   : > { %v10282_v29 = vadd.f32 %v13031_v34, %v10242_v15  ;;  %v13055_v50 = vpop.f32.mrb[191].mxu1 }
 0x5a0   : > { %v10322_v30 = vadd.f32 %v13053_v48, %v10282_v29 }
 0x5a2   : > { %v10328_v42 = vadd.f32 %v10322_v30, %v9778_v28 }
 0x5a4   : > { %v10329_v2 = vadd.f32 %v10328_v42, %v10327_v35 }
 0x5a6   : > { %v10337_v20 = vadd.f32 %v12347_v27, %v10329_v2 }
 0x5a8   : > { %10338 = vst [vmem:[%s217_s25] sm:$0xff] %v10337_v20 }
 0x5a9   : > { %13660 = shalt.err (!%p13657_p3)
}
 0x5aa   : > { %s13661_s13 = scalar_lea.hbm %s17262_s7, 128  ;;  %s13665_s16 = scalar_lea.hbm %s17309_s5, 256 }
 0x5ab   : > { %p13662_p4 = scmp.ne.s32.totalorder %s17262_s7, %s13661_s13  ;;  %p13666_p9 = scmp.lt.u32.totalorder %s17262_s7, %s17309_s5 }
 0x5ac   : > { %p13667_p10 = scmp.lt.u32.totalorder %s13665_s16, %s13661_s13  ;;  %p13669_p12 = scmp.lt.u32.totalorder %s13661_s13, %s17262_s7 }
 0x5ad   : > { %p13663_p7 = pnand %p13662_p4, %p13781_p5 }
 0x5ae   : > { %p13668_p11 = por %p13667_p10, %p13666_p9 }
 0x5af   : > { %p13664_p8 = pneg %p13663_p7 }
 0x5b0   : > { %p13670_p13 = por %p13669_p12, %p13668_p11 }
 0x5b2   : > { %p13671_p0 = pnand %p13670_p13, %p13664_p8 }
 0x5b4   : > { %13674 = shalt.err (!%p13671_p0)
}
 0x5b5   : > { %13057 = dma.vmem_to_hbm [thread:$0]  (%p13781_p5), %s17264_s26, 128, %s17262_s7, %s10340_s8  }
 0x5b6 PF: > { %p13063_p1 = scmp.ge.s32.totalorder %s13709_s21, 2  ;;  %s10365_s11 = sand.u32 1, %s13697_s18  }
 0x5b7   : > { %s10366_s25 = scalar_lea.sflag [#allocation3], %s10365_s11 }
 0x5b8   : > { %p13060_p2 = pnand %p13063_p1, %p13785_p6 }
 0x5ba   : > { %13692 = dma.done.wait (!%p13060_p2), %s10366_s25, 128  }
 0x5bb   : > { %13694 = vsyncadd (!%p13060_p2), %s10366_s25, 4294967168  ;;  %p15_p3 = scmp.ge.s32.totalorder %s13768_s24, 4   ;;  %s17813_s18 = smov %s13701_s19 }
 0x5bc   : > { %s17814_s19 = smov %s13705_s20  ;;  %s17815_s20 = smov %s13779_s27 }
 0x5bd   : > { %s17816_s21 = smov %s13768_s24  ;;  %17 = sbr.rel (!%p15_p3) target bundleno = 3 (0x3), region = 82 }
 0x5c4   :  { %10371 = vsyncpa [#allocation3], 1 }
 0x5c5   :  { %10373 = vsyncpa [#allocation3 + $0x1], 1 }

</bundles_post_ra>
